<compile_context>
chip_gen: v7x
topology: tpu7x:2x2x1
jax: 0.10.0
libtpu: 0.0.40
codegen_flags: <defaults>
</compile_context>

<pallas_src>
import functools

import jax
import jax.numpy as jnp
from jax.experimental import pallas as pl
from jax.experimental.pallas import tpu as pltpu  # noqa: F401  (TPU backend assumed)

EPS = 1e-5  # nn.BatchNorm2d default eps


def _round_up(x, m):
    return (x + m - 1) // m * m


# ---------------------------------------------------------------------------
# Fused per-layer kernel: conv (im2col matmul) + bias + batch-stat BN + ReLU
# (+ optional 2x2 maxpool).  Single invocation; conv output stays VMEM/vreg
# resident end-to-end.
# ---------------------------------------------------------------------------
def fused_layer_kernel(p_ref, w_ref, b_ref, g_ref, beta_ref, o_ref, *,
                       inv_count, valid_ranges, pool_chunk):
    # conv as im2col matmul on the MXU (bf16 inputs, f32 accumulation) + bias
    acc = jnp.dot(p_ref[...], w_ref[...],
                  preferred_element_type=jnp.float32) + b_ref[...]

    # validity mask for padded / reordered rows (static row ranges baked in)
    i = jax.lax.broadcasted_iota(jnp.int32, acc.shape, 0)
    valid = (i >= valid_ranges[0][0]) & (i < valid_ranges[0][1])
    for lo, hi in valid_ranges[1:]:
        valid = valid | ((i >= lo) & (i < hi))
    mask = valid.astype(jnp.float32)

    # batch statistics over all valid conv-output rows (biased var, two-pass)
    mean = jnp.sum(acc * mask, axis=0, keepdims=True) * inv_count
    d = (acc - mean) * mask
    var = jnp.sum(d * d, axis=0, keepdims=True) * inv_count

    # fold BN into per-channel scale/shift, then ReLU
    scale = g_ref[...] * jax.lax.rsqrt(var + EPS)
    shift = beta_ref[...] - mean * scale
    y = jnp.maximum(acc * scale + shift, 0.0)

    if pool_chunk is not None:
        # rows are laid out as four aligned chunks, one per 2x2 window offset
        mo = pool_chunk
        y = jnp.maximum(jnp.maximum(y[0:mo], y[mo:2 * mo]),
                        jnp.maximum(y[2 * mo:3 * mo], y[3 * mo:4 * mo]))

    o_ref[...] = y


# ---------------------------------------------------------------------------
# Wrapper glue: im2col patch extraction (with pool-friendly row ordering),
# padding, reshapes.
# ---------------------------------------------------------------------------
def _im2col(x_nhwc, kh, kw, padding):
    """P[n, oh, ow, (i*kw+j)*Cin + c] = x[n, oh+i, ow+j, c] (after spatial pad)."""
    if padding:
        x_nhwc = jnp.pad(x_nhwc,
                         ((0, 0), (padding, padding), (padding, padding), (0, 0)))
    N, H, W, _ = x_nhwc.shape
    OH, OW = H - kh + 1, W - kw + 1
    P = jnp.concatenate(
        [x_nhwc[:, i:i + OH, j:j + OW, :] for i in range(kh) for j in range(kw)],
        axis=-1)
    return P, OH, OW


def conv_bn_relu_layer(x_nhwc, params, *, padding, pool):
    w_oihw, b, gamma, beta = params
    Cout, Cin, kh, kw = w_oihw.shape
    N = x_nhwc.shape[0]
    K = kh * kw * Cin

    # bf16 inputs for the MXU; all accumulation stays f32 inside the kernel
    P, OH, OW = _im2col(x_nhwc.astype(jnp.bfloat16), kh, kw, padding)
    n_valid = N * OH * OW  # rows entering the batch statistics

    if pool:
        PH, PW = OH // 2, OW // 2          # MaxPool2d(2) floors, like PyTorch
        mo_r = N * PH * PW                 # valid rows per 2x2-offset chunk
        mo = max(8, _round_up(mo_r, 8))    # sublane-aligned chunk size
        chunks, ranges = [], []
        for q, (dy, dx) in enumerate([(0, 0), (0, 1), (1, 0), (1, 1)]):
            c = P[:, dy:2 * PH:2, dx:2 * PW:2, :].reshape(mo_r, K)
            chunks.append(jnp.pad(c, ((0, mo - mo_r), (0, 0))))
            ranges.append((q * mo, q * mo + mo_r))
        # conv-output positions outside the 2*PH x 2*PW pooled region (odd OH/OW)
        # still contribute to the BN batch statistics.
        extras = []
        if OH > 2 * PH:
            extras.append(P[:, 2 * PH:, :, :].reshape(-1, K))
        if OW > 2 * PW:
            extras.append(P[:, :2 * PH, 2 * PW:, :].reshape(-1, K))
        if extras:
            E = jnp.concatenate(extras, axis=0)
            extra_r = E.shape[0]
            extra = _round_up(extra_r, 8)
            chunks.append(jnp.pad(E, ((0, extra - extra_r), (0, 0))))
            ranges.append((4 * mo, 4 * mo + extra_r))
        patches = jnp.concatenate(chunks, axis=0)
        out_rows, pool_chunk = mo, mo
    else:
        m_pad = max(8, _round_up(n_valid, 8))
        patches = jnp.pad(P.reshape(n_valid, K), ((0, m_pad - n_valid), (0, 0)))
        ranges = [(0, n_valid)]
        out_rows, pool_chunk = m_pad, None

    # weight reshaped to (kh, kw, Cin, Cout) -> (K, Cout), matching patch ordering
    w_mat = jnp.transpose(w_oihw, (2, 3, 1, 0)).reshape(K, Cout).astype(jnp.bfloat16)

    kern = functools.partial(
        fused_layer_kernel,
        inv_count=1.0 / n_valid,
        valid_ranges=tuple(ranges),
        pool_chunk=pool_chunk)

    out = pl.pallas_call(
        kern,
        out_shape=jax.ShapeDtypeStruct((out_rows, Cout), jnp.float32),
    )(patches, w_mat,
      b.reshape(1, Cout).astype(jnp.float32),
      gamma.reshape(1, Cout).astype(jnp.float32),
      beta.reshape(1, Cout).astype(jnp.float32))

    if pool:
        return out[:mo_r].reshape(N, PH, PW, Cout)
    return out[:n_valid].reshape(N, OH, OW, Cout)


def cnn_encoder(x_nchw, params):
    # TODO(synk): im2col + NCHW<->NHWC transposes remain XLA-side glue; at this
    # problem size the per-layer fused kernel dominates and this glue is tiny.
    x = jnp.transpose(x_nchw, (0, 2, 3, 1)).astype(jnp.float32)     # NCHW -> NHWC
    x = conv_bn_relu_layer(x, params["layer1"], padding=0, pool=True)   # 3x3, p0, BN, ReLU, MaxPool2
    x = conv_bn_relu_layer(x, params["layer2"], padding=0, pool=True)   # 3x3, p0, BN, ReLU, MaxPool2
    x = conv_bn_relu_layer(x, params["layer3"], padding=1, pool=False)  # 5x5, p1, BN, ReLU
    x = conv_bn_relu_layer(x, params["layer4"], padding=1, pool=False)  # 5x5, p1, BN, ReLU
    return jnp.transpose(x, (0, 3, 1, 2))                           # NHWC -> NCHW


def init_params(key):
    def conv_layer(k, cin, cout, ksz):
        k1, k2, k3, k4 = jax.random.split(k, 4)
        w = 0.1 * jax.random.normal(k1, (cout, cin, ksz, ksz), jnp.float32)
        b = 0.1 * jax.random.normal(k2, (cout,), jnp.float32)
        gamma = 1.0 + 0.1 * jax.random.normal(k3, (cout,), jnp.float32)
        beta = 0.1 * jax.random.normal(k4, (cout,), jnp.float32)
        return (w, b, gamma, beta)

    ks = jax.random.split(key, 4)
    return {
        "layer1": conv_layer(ks[0], 3, 64, 3),
        "layer2": conv_layer(ks[1], 64, 64, 3),
        "layer3": conv_layer(ks[2], 64, 64, 5),
        "layer4": conv_layer(ks[3], 64, 64, 5),
    }


if __name__ == "__main__":
    key = jax.random.PRNGKey(0)
    kx, kp = jax.random.split(key)
    # NCHW input like the PyTorch module: (N=2, C=3, H=28, W=28)
    x = jax.random.normal(kx, (2, 3, 28, 28), jnp.float32)
    params = init_params(kp)

    out = jax.jit(cnn_encoder)(x, params)
    jax.block_until_ready(out)
    # 28 -> 26 -> 13 -> 11 -> 5 -> 3 -> 1  => (2, 64, 1, 1)
    assert out.shape == (2, 64, 1, 1), out.shape
    assert out.dtype == jnp.float32
    print("KERNEL_OK")
</pallas_src>

<mosaic_0001>
module attributes {stable_mosaic.version = 11 : i64} {
  func.func @fused_layer_kernel(%arg0: memref<1376x27xbf16, #tpu.memory_space<vmem>>, %arg1: memref<27x64xbf16, #tpu.memory_space<vmem>>, %arg2: memref<1x64xf32, #tpu.memory_space<vmem>>, %arg3: memref<1x64xf32, #tpu.memory_space<vmem>>, %arg4: memref<1x64xf32, #tpu.memory_space<vmem>>, %arg5: memref<344x64xf32, #tpu.memory_space<vmem>>) attributes {dimension_semantics = [], scalar_prefetch = 0 : i64, scratch_operands = 0 : i64, tpu.core_type = #tpu.core_type<tc>} {
    %c0 = arith.constant 0 : index
    %c0_0 = arith.constant 0 : index
    %0 = vector.load %arg0[%c0, %c0_0] : memref<1376x27xbf16, #tpu.memory_space<vmem>>, vector<1376x27xbf16>
    %c0_1 = arith.constant 0 : index
    %c0_2 = arith.constant 0 : index
    %1 = vector.load %arg1[%c0_1, %c0_2] : memref<27x64xbf16, #tpu.memory_space<vmem>>, vector<27x64xbf16>
    %cst = arith.constant dense<0.000000e+00> : vector<1376x64xf32>
    %2 = tpu.matmul %0, %1, %cst {dimension_numbers = #tpu.dot_dimension_numbers<[1], [0], [0], [1], [0, 0, 1, 1], [], []>} : vector<1376x27xbf16>, vector<27x64xbf16>, vector<1376x64xf32> -> vector<1376x64xf32>
    %c0_3 = arith.constant 0 : index
    %c0_4 = arith.constant 0 : index
    %3 = vector.load %arg2[%c0_3, %c0_4] : memref<1x64xf32, #tpu.memory_space<vmem>>, vector<1x64xf32>
    %4 = vector.broadcast %3 : vector<1x64xf32> to vector<1376x64xf32>
    %5 = arith.addf %2, %4 : vector<1376x64xf32>
    %6 = tpu.iota {dimensions = array<i32: 0>} : vector<1376x64xi32>
    %c0_i32 = arith.constant 0 : i32
    %7 = vector.broadcast %c0_i32 : i32 to vector<1376x64xi32>
    %8 = arith.cmpi sge, %6, %7 : vector<1376x64xi32>
    %c338_i32 = arith.constant 338 : i32
    %9 = vector.broadcast %c338_i32 : i32 to vector<1376x64xi32>
    %10 = arith.cmpi slt, %6, %9 : vector<1376x64xi32>
    %11 = arith.andi %8, %10 : vector<1376x64xi1>
    %c344_i32 = arith.constant 344 : i32
    %12 = vector.broadcast %c344_i32 : i32 to vector<1376x64xi32>
    %13 = arith.cmpi sge, %6, %12 : vector<1376x64xi32>
    %c682_i32 = arith.constant 682 : i32
    %14 = vector.broadcast %c682_i32 : i32 to vector<1376x64xi32>
    %15 = arith.cmpi slt, %6, %14 : vector<1376x64xi32>
    %16 = arith.andi %13, %15 : vector<1376x64xi1>
    %17 = arith.ori %11, %16 : vector<1376x64xi1>
    %c688_i32 = arith.constant 688 : i32
    %18 = vector.broadcast %c688_i32 : i32 to vector<1376x64xi32>
    %19 = arith.cmpi sge, %6, %18 : vector<1376x64xi32>
    %c1026_i32 = arith.constant 1026 : i32
    %20 = vector.broadcast %c1026_i32 : i32 to vector<1376x64xi32>
    %21 = arith.cmpi slt, %6, %20 : vector<1376x64xi32>
    %22 = arith.andi %19, %21 : vector<1376x64xi1>
    %23 = arith.ori %17, %22 : vector<1376x64xi1>
    %c1032_i32 = arith.constant 1032 : i32
    %24 = vector.broadcast %c1032_i32 : i32 to vector<1376x64xi32>
    %25 = arith.cmpi sge, %6, %24 : vector<1376x64xi32>
    %c1370_i32 = arith.constant 1370 : i32
    %26 = vector.broadcast %c1370_i32 : i32 to vector<1376x64xi32>
    %27 = arith.cmpi slt, %6, %26 : vector<1376x64xi32>
    %28 = arith.andi %25, %27 : vector<1376x64xi1>
    %29 = arith.ori %23, %28 : vector<1376x64xi1>
    %30 = arith.extui %29 : vector<1376x64xi1> to vector<1376x64xi32>
    %31 = arith.sitofp %30 : vector<1376x64xi32> to vector<1376x64xf32>
    %32 = arith.mulf %5, %31 : vector<1376x64xf32>
    %cst_5 = arith.constant dense<0.000000e+00> : vector<64xf32>
    %33 = vector.multi_reduction <add>, %32, %cst_5 [0] : vector<1376x64xf32> to vector<64xf32>
    %34 = vector.shape_cast %33 : vector<64xf32> to vector<1x64xf32>
    %cst_6 = arith.constant 7.396450e-04 : f32
    %35 = vector.broadcast %cst_6 : f32 to vector<1x64xf32>
    %36 = arith.mulf %34, %35 : vector<1x64xf32>
    %37 = vector.broadcast %36 : vector<1x64xf32> to vector<1376x64xf32>
    %38 = arith.subf %5, %37 : vector<1376x64xf32>
    %39 = arith.mulf %38, %31 : vector<1376x64xf32>
    %40 = arith.mulf %39, %39 : vector<1376x64xf32>
    %cst_7 = arith.constant dense<0.000000e+00> : vector<64xf32>
    %41 = vector.multi_reduction <add>, %40, %cst_7 [0] : vector<1376x64xf32> to vector<64xf32>
    %42 = vector.shape_cast %41 : vector<64xf32> to vector<1x64xf32>
    %cst_8 = arith.constant 7.396450e-04 : f32
    %43 = vector.broadcast %cst_8 : f32 to vector<1x64xf32>
    %44 = arith.mulf %42, %43 : vector<1x64xf32>
    %c0_9 = arith.constant 0 : index
    %c0_10 = arith.constant 0 : index
    %45 = vector.load %arg3[%c0_9, %c0_10] : memref<1x64xf32, #tpu.memory_space<vmem>>, vector<1x64xf32>
    %cst_11 = arith.constant 9.99999974E-6 : f32
    %46 = vector.broadcast %cst_11 : f32 to vector<1x64xf32>
    %47 = arith.addf %44, %46 : vector<1x64xf32>
    %48 = math.rsqrt %47 : vector<1x64xf32>
    %49 = arith.mulf %45, %48 : vector<1x64xf32>
    %c0_12 = arith.constant 0 : index
    %c0_13 = arith.constant 0 : index
    %50 = vector.load %arg4[%c0_12, %c0_13] : memref<1x64xf32, #tpu.memory_space<vmem>>, vector<1x64xf32>
    %51 = arith.mulf %36, %49 : vector<1x64xf32>
    %52 = arith.subf %50, %51 : vector<1x64xf32>
    %53 = vector.broadcast %49 : vector<1x64xf32> to vector<1376x64xf32>
    %54 = arith.mulf %5, %53 : vector<1376x64xf32>
    %55 = vector.broadcast %52 : vector<1x64xf32> to vector<1376x64xf32>
    %56 = arith.addf %54, %55 : vector<1376x64xf32>
    %cst_14 = arith.constant 0.000000e+00 : f32
    %57 = vector.broadcast %cst_14 : f32 to vector<1376x64xf32>
    %58 = arith.maximumf %56, %57 : vector<1376x64xf32>
    %59 = vector.extract_strided_slice %58 {offsets = [0, 0], sizes = [344, 64], strides = [1, 1]} : vector<1376x64xf32> to vector<344x64xf32>
    %60 = vector.extract_strided_slice %58 {offsets = [344, 0], sizes = [344, 64], strides = [1, 1]} : vector<1376x64xf32> to vector<344x64xf32>
    %61 = arith.maximumf %59, %60 : vector<344x64xf32>
    %62 = vector.extract_strided_slice %58 {offsets = [688, 0], sizes = [344, 64], strides = [1, 1]} : vector<1376x64xf32> to vector<344x64xf32>
    %63 = vector.extract_strided_slice %58 {offsets = [1032, 0], sizes = [344, 64], strides = [1, 1]} : vector<1376x64xf32> to vector<344x64xf32>
    %64 = arith.maximumf %62, %63 : vector<344x64xf32>
    %65 = arith.maximumf %61, %64 : vector<344x64xf32>
    %c0_15 = arith.constant 0 : index
    %c0_16 = arith.constant 0 : index
    %66 = vector.load %arg5[%c0_15, %c0_16] : memref<344x64xf32, #tpu.memory_space<vmem>>, vector<344x64xf32>
    tpu.vector_store %arg5[%c0_15, %c0_16], %65 {strides = array<i32>} : memref<344x64xf32, #tpu.memory_space<vmem>>, vector<344x64xf32>,
    return
  }
}

module attributes {stable_mosaic.version = 11 : i64} {
  func.func @fused_layer_kernel(%arg0: memref<272x576xbf16, #tpu.memory_space<vmem>>, %arg1: memref<576x64xbf16, #tpu.memory_space<vmem>>, %arg2: memref<1x64xf32, #tpu.memory_space<vmem>>, %arg3: memref<1x64xf32, #tpu.memory_space<vmem>>, %arg4: memref<1x64xf32, #tpu.memory_space<vmem>>, %arg5: memref<56x64xf32, #tpu.memory_space<vmem>>) attributes {dimension_semantics = [], scalar_prefetch = 0 : i64, scratch_operands = 0 : i64, tpu.core_type = #tpu.core_type<tc>} {
    %c0 = arith.constant 0 : index
    %c0_0 = arith.constant 0 : index
    %0 = vector.load %arg0[%c0, %c0_0] : memref<272x576xbf16, #tpu.memory_space<vmem>>, vector<272x576xbf16>
    %c0_1 = arith.constant 0 : index
    %c0_2 = arith.constant 0 : index
    %1 = vector.load %arg1[%c0_1, %c0_2] : memref<576x64xbf16, #tpu.memory_space<vmem>>, vector<576x64xbf16>
    %cst = arith.constant dense<0.000000e+00> : vector<272x64xf32>
    %2 = tpu.matmul %0, %1, %cst {dimension_numbers = #tpu.dot_dimension_numbers<[1], [0], [0], [1], [0, 0, 1, 1], [], []>} : vector<272x576xbf16>, vector<576x64xbf16>, vector<272x64xf32> -> vector<272x64xf32>
    %c0_3 = arith.constant 0 : index
    %c0_4 = arith.constant 0 : index
    %3 = vector.load %arg2[%c0_3, %c0_4] : memref<1x64xf32, #tpu.memory_space<vmem>>, vector<1x64xf32>
    %4 = vector.broadcast %3 : vector<1x64xf32> to vector<272x64xf32>
    %5 = arith.addf %2, %4 : vector<272x64xf32>
    %6 = tpu.iota {dimensions = array<i32: 0>} : vector<272x64xi32>
    %c0_i32 = arith.constant 0 : i32
    %7 = vector.broadcast %c0_i32 : i32 to vector<272x64xi32>
    %8 = arith.cmpi sge, %6, %7 : vector<272x64xi32>
    %c50_i32 = arith.constant 50 : i32
    %9 = vector.broadcast %c50_i32 : i32 to vector<272x64xi32>
    %10 = arith.cmpi slt, %6, %9 : vector<272x64xi32>
    %11 = arith.andi %8, %10 : vector<272x64xi1>
    %c56_i32 = arith.constant 56 : i32
    %12 = vector.broadcast %c56_i32 : i32 to vector<272x64xi32>
    %13 = arith.cmpi sge, %6, %12 : vector<272x64xi32>
    %c106_i32 = arith.constant 106 : i32
    %14 = vector.broadcast %c106_i32 : i32 to vector<272x64xi32>
    %15 = arith.cmpi slt, %6, %14 : vector<272x64xi32>
    %16 = arith.andi %13, %15 : vector<272x64xi1>
    %17 = arith.ori %11, %16 : vector<272x64xi1>
    %c112_i32 = arith.constant 112 : i32
    %18 = vector.broadcast %c112_i32 : i32 to vector<272x64xi32>
    %19 = arith.cmpi sge, %6, %18 : vector<272x64xi32>
    %c162_i32 = arith.constant 162 : i32
    %20 = vector.broadcast %c162_i32 : i32 to vector<272x64xi32>
    %21 = arith.cmpi slt, %6, %20 : vector<272x64xi32>
    %22 = arith.andi %19, %21 : vector<272x64xi1>
    %23 = arith.ori %17, %22 : vector<272x64xi1>
    %c168_i32 = arith.constant 168 : i32
    %24 = vector.broadcast %c168_i32 : i32 to vector<272x64xi32>
    %25 = arith.cmpi sge, %6, %24 : vector<272x64xi32>
    %c218_i32 = arith.constant 218 : i32
    %26 = vector.broadcast %c218_i32 : i32 to vector<272x64xi32>
    %27 = arith.cmpi slt, %6, %26 : vector<272x64xi32>
    %28 = arith.andi %25, %27 : vector<272x64xi1>
    %29 = arith.ori %23, %28 : vector<272x64xi1>
    %c224_i32 = arith.constant 224 : i32
    %30 = vector.broadcast %c224_i32 : i32 to vector<272x64xi32>
    %31 = arith.cmpi sge, %6, %30 : vector<272x64xi32>
    %c266_i32 = arith.constant 266 : i32
    %32 = vector.broadcast %c266_i32 : i32 to vector<272x64xi32>
    %33 = arith.cmpi slt, %6, %32 : vector<272x64xi32>
    %34 = arith.andi %31, %33 : vector<272x64xi1>
    %35 = arith.ori %29, %34 : vector<272x64xi1>
    %36 = arith.extui %35 : vector<272x64xi1> to vector<272x64xi32>
    %37 = arith.sitofp %36 : vector<272x64xi32> to vector<272x64xf32>
    %38 = arith.mulf %5, %37 : vector<272x64xf32>
    %cst_5 = arith.constant dense<0.000000e+00> : vector<64xf32>
    %39 = vector.multi_reduction <add>, %38, %cst_5 [0] : vector<272x64xf32> to vector<64xf32>
    %40 = vector.shape_cast %39 : vector<64xf32> to vector<1x64xf32>
    %cst_6 = arith.constant 0.00413223123 : f32
    %41 = vector.broadcast %cst_6 : f32 to vector<1x64xf32>
    %42 = arith.mulf %40, %41 : vector<1x64xf32>
    %43 = vector.broadcast %42 : vector<1x64xf32> to vector<272x64xf32>
    %44 = arith.subf %5, %43 : vector<272x64xf32>
    %45 = arith.mulf %44, %37 : vector<272x64xf32>
    %46 = arith.mulf %45, %45 : vector<272x64xf32>
    %cst_7 = arith.constant dense<0.000000e+00> : vector<64xf32>
    %47 = vector.multi_reduction <add>, %46, %cst_7 [0] : vector<272x64xf32> to vector<64xf32>
    %48 = vector.shape_cast %47 : vector<64xf32> to vector<1x64xf32>
    %cst_8 = arith.constant 0.00413223123 : f32
    %49 = vector.broadcast %cst_8 : f32 to vector<1x64xf32>
    %50 = arith.mulf %48, %49 : vector<1x64xf32>
    %c0_9 = arith.constant 0 : index
    %c0_10 = arith.constant 0 : index
    %51 = vector.load %arg3[%c0_9, %c0_10] : memref<1x64xf32, #tpu.memory_space<vmem>>, vector<1x64xf32>
    %cst_11 = arith.constant 9.99999974E-6 : f32
    %52 = vector.broadcast %cst_11 : f32 to vector<1x64xf32>
    %53 = arith.addf %50, %52 : vector<1x64xf32>
    %54 = math.rsqrt %53 : vector<1x64xf32>
    %55 = arith.mulf %51, %54 : vector<1x64xf32>
    %c0_12 = arith.constant 0 : index
    %c0_13 = arith.constant 0 : index
    %56 = vector.load %arg4[%c0_12, %c0_13] : memref<1x64xf32, #tpu.memory_space<vmem>>, vector<1x64xf32>
    %57 = arith.mulf %42, %55 : vector<1x64xf32>
    %58 = arith.subf %56, %57 : vector<1x64xf32>
    %59 = vector.broadcast %55 : vector<1x64xf32> to vector<272x64xf32>
    %60 = arith.mulf %5, %59 : vector<272x64xf32>
    %61 = vector.broadcast %58 : vector<1x64xf32> to vector<272x64xf32>
    %62 = arith.addf %60, %61 : vector<272x64xf32>
    %cst_14 = arith.constant 0.000000e+00 : f32
    %63 = vector.broadcast %cst_14 : f32 to vector<272x64xf32>
    %64 = arith.maximumf %62, %63 : vector<272x64xf32>
    %65 = vector.extract_strided_slice %64 {offsets = [0, 0], sizes = [56, 64], strides = [1, 1]} : vector<272x64xf32> to vector<56x64xf32>
    %66 = vector.extract_strided_slice %64 {offsets = [56, 0], sizes = [56, 64], strides = [1, 1]} : vector<272x64xf32> to vector<56x64xf32>
    %67 = arith.maximumf %65, %66 : vector<56x64xf32>
    %68 = vector.extract_strided_slice %64 {offsets = [112, 0], sizes = [56, 64], strides = [1, 1]} : vector<272x64xf32> to vector<56x64xf32>
    %69 = vector.extract_strided_slice %64 {offsets = [168, 0], sizes = [56, 64], strides = [1, 1]} : vector<272x64xf32> to vector<56x64xf32>
    %70 = arith.maximumf %68, %69 : vector<56x64xf32>
    %71 = arith.maximumf %67, %70 : vector<56x64xf32>
    %c0_15 = arith.constant 0 : index
    %c0_16 = arith.constant 0 : index
    %72 = vector.load %arg5[%c0_15, %c0_16] : memref<56x64xf32, #tpu.memory_space<vmem>>, vector<56x64xf32>
    tpu.vector_store %arg5[%c0_15, %c0_16], %71 {strides = array<i32>} : memref<56x64xf32, #tpu.memory_space<vmem>>, vector<56x64xf32>,
    return
  }
}

module attributes {stable_mosaic.version = 11 : i64} {
  func.func @fused_layer_kernel(%arg0: memref<24x1600xbf16, #tpu.memory_space<vmem>>, %arg1: memref<1600x64xbf16, #tpu.memory_space<vmem>>, %arg2: memref<1x64xf32, #tpu.memory_space<vmem>>, %arg3: memref<1x64xf32, #tpu.memory_space<vmem>>, %arg4: memref<1x64xf32, #tpu.memory_space<vmem>>, %arg5: memref<24x64xf32, #tpu.memory_space<vmem>>) attributes {dimension_semantics = [], scalar_prefetch = 0 : i64, scratch_operands = 0 : i64, tpu.core_type = #tpu.core_type<tc>} {
    %c0 = arith.constant 0 : index
    %c0_0 = arith.constant 0 : index
    %0 = vector.load %arg0[%c0, %c0_0] : memref<24x1600xbf16, #tpu.memory_space<vmem>>, vector<24x1600xbf16>
    %c0_1 = arith.constant 0 : index
    %c0_2 = arith.constant 0 : index
    %1 = vector.load %arg1[%c0_1, %c0_2] : memref<1600x64xbf16, #tpu.memory_space<vmem>>, vector<1600x64xbf16>
    %cst = arith.constant dense<0.000000e+00> : vector<24x64xf32>
    %2 = tpu.matmul %0, %1, %cst {dimension_numbers = #tpu.dot_dimension_numbers<[1], [0], [0], [1], [0, 0, 1, 1], [], []>} : vector<24x1600xbf16>, vector<1600x64xbf16>, vector<24x64xf32> -> vector<24x64xf32>
    %c0_3 = arith.constant 0 : index
    %c0_4 = arith.constant 0 : index
    %3 = vector.load %arg2[%c0_3, %c0_4] : memref<1x64xf32, #tpu.memory_space<vmem>>, vector<1x64xf32>
    %4 = vector.broadcast %3 : vector<1x64xf32> to vector<24x64xf32>
    %5 = arith.addf %2, %4 : vector<24x64xf32>
    %6 = tpu.iota {dimensions = array<i32: 0>} : vector<24x64xi32>
    %c0_i32 = arith.constant 0 : i32
    %7 = vector.broadcast %c0_i32 : i32 to vector<24x64xi32>
    %8 = arith.cmpi sge, %6, %7 : vector<24x64xi32>
    %c18_i32 = arith.constant 18 : i32
    %9 = vector.broadcast %c18_i32 : i32 to vector<24x64xi32>
    %10 = arith.cmpi slt, %6, %9 : vector<24x64xi32>
    %11 = arith.andi %8, %10 : vector<24x64xi1>
    %12 = arith.extui %11 : vector<24x64xi1> to vector<24x64xi32>
    %13 = arith.sitofp %12 : vector<24x64xi32> to vector<24x64xf32>
    %14 = arith.mulf %5, %13 : vector<24x64xf32>
    %cst_5 = arith.constant dense<0.000000e+00> : vector<64xf32>
    %15 = vector.multi_reduction <add>, %14, %cst_5 [0] : vector<24x64xf32> to vector<64xf32>
    %16 = vector.shape_cast %15 : vector<64xf32> to vector<1x64xf32>
    %cst_6 = arith.constant 0.055555556 : f32
    %17 = vector.broadcast %cst_6 : f32 to vector<1x64xf32>
    %18 = arith.mulf %16, %17 : vector<1x64xf32>
    %19 = vector.broadcast %18 : vector<1x64xf32> to vector<24x64xf32>
    %20 = arith.subf %5, %19 : vector<24x64xf32>
    %21 = arith.mulf %20, %13 : vector<24x64xf32>
    %22 = arith.mulf %21, %21 : vector<24x64xf32>
    %cst_7 = arith.constant dense<0.000000e+00> : vector<64xf32>
    %23 = vector.multi_reduction <add>, %22, %cst_7 [0] : vector<24x64xf32> to vector<64xf32>
    %24 = vector.shape_cast %23 : vector<64xf32> to vector<1x64xf32>
    %cst_8 = arith.constant 0.055555556 : f32
    %25 = vector.broadcast %cst_8 : f32 to vector<1x64xf32>
    %26 = arith.mulf %24, %25 : vector<1x64xf32>
    %c0_9 = arith.constant 0 : index
    %c0_10 = arith.constant 0 : index
    %27 = vector.load %arg3[%c0_9, %c0_10] : memref<1x64xf32, #tpu.memory_space<vmem>>, vector<1x64xf32>
    %cst_11 = arith.constant 9.99999974E-6 : f32
    %28 = vector.broadcast %cst_11 : f32 to vector<1x64xf32>
    %29 = arith.addf %26, %28 : vector<1x64xf32>
    %30 = math.rsqrt %29 : vector<1x64xf32>
    %31 = arith.mulf %27, %30 : vector<1x64xf32>
    %c0_12 = arith.constant 0 : index
    %c0_13 = arith.constant 0 : index
    %32 = vector.load %arg4[%c0_12, %c0_13] : memref<1x64xf32, #tpu.memory_space<vmem>>, vector<1x64xf32>
    %33 = arith.mulf %18, %31 : vector<1x64xf32>
    %34 = arith.subf %32, %33 : vector<1x64xf32>
    %35 = vector.broadcast %31 : vector<1x64xf32> to vector<24x64xf32>
    %36 = arith.mulf %5, %35 : vector<24x64xf32>
    %37 = vector.broadcast %34 : vector<1x64xf32> to vector<24x64xf32>
    %38 = arith.addf %36, %37 : vector<24x64xf32>
    %cst_14 = arith.constant 0.000000e+00 : f32
    %39 = vector.broadcast %cst_14 : f32 to vector<24x64xf32>
    %40 = arith.maximumf %38, %39 : vector<24x64xf32>
    %c0_15 = arith.constant 0 : index
    %c0_16 = arith.constant 0 : index
    %41 = vector.load %arg5[%c0_15, %c0_16] : memref<24x64xf32, #tpu.memory_space<vmem>>, vector<24x64xf32>
    tpu.vector_store %arg5[%c0_15, %c0_16], %40 {strides = array<i32>} : memref<24x64xf32, #tpu.memory_space<vmem>>, vector<24x64xf32>,
    return
  }
}

module attributes {stable_mosaic.version = 11 : i64} {
  func.func @fused_layer_kernel(%arg0: memref<8x1600xbf16, #tpu.memory_space<vmem>>, %arg1: memref<1600x64xbf16, #tpu.memory_space<vmem>>, %arg2: memref<1x64xf32, #tpu.memory_space<vmem>>, %arg3: memref<1x64xf32, #tpu.memory_space<vmem>>, %arg4: memref<1x64xf32, #tpu.memory_space<vmem>>, %arg5: memref<8x64xf32, #tpu.memory_space<vmem>>) attributes {dimension_semantics = [], scalar_prefetch = 0 : i64, scratch_operands = 0 : i64, tpu.core_type = #tpu.core_type<tc>} {
    %c0 = arith.constant 0 : index
    %c0_0 = arith.constant 0 : index
    %0 = vector.load %arg0[%c0, %c0_0] : memref<8x1600xbf16, #tpu.memory_space<vmem>>, vector<8x1600xbf16>
    %c0_1 = arith.constant 0 : index
    %c0_2 = arith.constant 0 : index
    %1 = vector.load %arg1[%c0_1, %c0_2] : memref<1600x64xbf16, #tpu.memory_space<vmem>>, vector<1600x64xbf16>
    %cst = arith.constant dense<0.000000e+00> : vector<8x64xf32>
    %2 = tpu.matmul %0, %1, %cst {dimension_numbers = #tpu.dot_dimension_numbers<[1], [0], [0], [1], [0, 0, 1, 1], [], []>} : vector<8x1600xbf16>, vector<1600x64xbf16>, vector<8x64xf32> -> vector<8x64xf32>
    %c0_3 = arith.constant 0 : index
    %c0_4 = arith.constant 0 : index
    %3 = vector.load %arg2[%c0_3, %c0_4] : memref<1x64xf32, #tpu.memory_space<vmem>>, vector<1x64xf32>
    %4 = vector.broadcast %3 : vector<1x64xf32> to vector<8x64xf32>
    %5 = arith.addf %2, %4 : vector<8x64xf32>
    %6 = tpu.iota {dimensions = array<i32: 0>} : vector<8x64xi32>
    %c0_i32 = arith.constant 0 : i32
    %7 = vector.broadcast %c0_i32 : i32 to vector<8x64xi32>
    %8 = arith.cmpi sge, %6, %7 : vector<8x64xi32>
    %c2_i32 = arith.constant 2 : i32
    %9 = vector.broadcast %c2_i32 : i32 to vector<8x64xi32>
    %10 = arith.cmpi slt, %6, %9 : vector<8x64xi32>
    %11 = arith.andi %8, %10 : vector<8x64xi1>
    %12 = arith.extui %11 : vector<8x64xi1> to vector<8x64xi32>
    %13 = arith.sitofp %12 : vector<8x64xi32> to vector<8x64xf32>
    %14 = arith.mulf %5, %13 : vector<8x64xf32>
    %cst_5 = arith.constant dense<0.000000e+00> : vector<64xf32>
    %15 = vector.multi_reduction <add>, %14, %cst_5 [0] : vector<8x64xf32> to vector<64xf32>
    %16 = vector.shape_cast %15 : vector<64xf32> to vector<1x64xf32>
    %cst_6 = arith.constant 5.000000e-01 : f32
    %17 = vector.broadcast %cst_6 : f32 to vector<1x64xf32>
    %18 = arith.mulf %16, %17 : vector<1x64xf32>
    %19 = vector.broadcast %18 : vector<1x64xf32> to vector<8x64xf32>
    %20 = arith.subf %5, %19 : vector<8x64xf32>
    %21 = arith.mulf %20, %13 : vector<8x64xf32>
    %22 = arith.mulf %21, %21 : vector<8x64xf32>
    %cst_7 = arith.constant dense<0.000000e+00> : vector<64xf32>
    %23 = vector.multi_reduction <add>, %22, %cst_7 [0] : vector<8x64xf32> to vector<64xf32>
    %24 = vector.shape_cast %23 : vector<64xf32> to vector<1x64xf32>
    %cst_8 = arith.constant 5.000000e-01 : f32
    %25 = vector.broadcast %cst_8 : f32 to vector<1x64xf32>
    %26 = arith.mulf %24, %25 : vector<1x64xf32>
    %c0_9 = arith.constant 0 : index
    %c0_10 = arith.constant 0 : index
    %27 = vector.load %arg3[%c0_9, %c0_10] : memref<1x64xf32, #tpu.memory_space<vmem>>, vector<1x64xf32>
    %cst_11 = arith.constant 9.99999974E-6 : f32
    %28 = vector.broadcast %cst_11 : f32 to vector<1x64xf32>
    %29 = arith.addf %26, %28 : vector<1x64xf32>
    %30 = math.rsqrt %29 : vector<1x64xf32>
    %31 = arith.mulf %27, %30 : vector<1x64xf32>
    %c0_12 = arith.constant 0 : index
    %c0_13 = arith.constant 0 : index
    %32 = vector.load %arg4[%c0_12, %c0_13] : memref<1x64xf32, #tpu.memory_space<vmem>>, vector<1x64xf32>
    %33 = arith.mulf %18, %31 : vector<1x64xf32>
    %34 = arith.subf %32, %33 : vector<1x64xf32>
    %35 = vector.broadcast %31 : vector<1x64xf32> to vector<8x64xf32>
    %36 = arith.mulf %5, %35 : vector<8x64xf32>
    %37 = vector.broadcast %34 : vector<1x64xf32> to vector<8x64xf32>
    %38 = arith.addf %36, %37 : vector<8x64xf32>
    %cst_14 = arith.constant 0.000000e+00 : f32
    %39 = vector.broadcast %cst_14 : f32 to vector<8x64xf32>
    %40 = arith.maximumf %38, %39 : vector<8x64xf32>
    %c0_15 = arith.constant 0 : index
    %c0_16 = arith.constant 0 : index
    %41 = vector.load %arg5[%c0_15, %c0_16] : memref<8x64xf32, #tpu.memory_space<vmem>>, vector<8x64xf32>
    tpu.vector_store %arg5[%c0_15, %c0_16], %40 {strides = array<i32>} : memref<8x64xf32, #tpu.memory_space<vmem>>, vector<8x64xf32>,
    return
  }
}

</mosaic_0001>

<bundles_post_ra>
// kernel: cnn_encoder.5
= control target key start
LH: loop header
LB: loop body
LE: loop exit
PB: predicated region body
PF: predicated region fallthrough
CT: control target
= control target key end

     0   :  { %v3139_v0 = vmov 0   ;;  %v3140_v39 = vmov 0.0   ;;  %vm3141_vm0 = vmmov 0   ;;  %vm843_vm1 = vcmask 523264   ;;  %s4094_s1 = inlined_call_operand.vmem [shape: bf16[576,64], index: 1, kind: input, shape index: {}]   ;;  %s4095_s0 = inlined_call_operand.vmem [shape: bf16[272,576], index: 0, kind: input, shape index: {}]   ;;  %s4096_s2 = inlined_call_operand.vmem [shape: f32[1,64], index: 2, kind: input, shape index: {}]   ;;  %s4097_s3 = inlined_call_operand.vmem [shape: f32[1,64], index: 3, kind: input, shape index: {}]   ;;  %s4098_s4 = inlined_call_operand.vmem [shape: f32[1,64], index: 4, kind: input, shape index: {}]   ;;  %s4099_s5 = inlined_call_operand.vmem [shape: f32[56,64], index: 5, kind: output, shape index: {}]  }
   0x1   :  { %895 = vmatprep.subr.bf16.mxu1 %v3139_v0  ;;  %1064 = vmatprep.subr.bf16.mxu0 %v3139_v0  ;;  %v2982_v1 = vld [vmem:[%s4094_s1] sm:$0xff]   ;;  %v2984_v3 = vld [vmem:[%s4094_s1 + $0x8] sm:$0xff]   ;;  %v2986_v5 = vld [vmem:[%s4094_s1 + $0x10] sm:$0xff]  }
   0x2   :  { %v3180_v2 = vld [vmem:[%s4094_s1 + $0x80] sm:$0xff]   ;;  %896 = vmatpush1.bf16.msra.mxu1 %v2982_v1  ;;  %v3190_v4 = vld [vmem:[%s4094_s1 + $0x88] sm:$0xff]   ;;  %v3201_v6 = vld [vmem:[%s4094_s1 + $0x90] sm:$0xff]  }
   0x3   :  { %1065 = vmatpush1.bf16.msra.mxu0 %v3180_v2  ;;  %897 = vmatprep.subr.bf16.mxu1 %v3139_v0  ;;  %v2988_v7 = vld [vmem:[%s4094_s1 + $0x18] sm:$0xff]   ;;  %v2990_v9 = vld [vmem:[%s4094_s1 + $0x20] sm:$0xff]   ;;  %v2992_v11 = vld [vmem:[%s4094_s1 + $0x28] sm:$0xff]  }
   0x4   :  { %1066 = vmatprep.subr.bf16.mxu0 %v3139_v0  ;;  %v3212_v8 = vld [vmem:[%s4094_s1 + $0x98] sm:$0xff]   ;;  %v3223_v10 = vld [vmem:[%s4094_s1 + $0xa0] sm:$0xff]   ;;  %v3234_v12 = vld [vmem:[%s4094_s1 + $0xa8] sm:$0xff]  }
   0x5   :  { %v2994_v13 = vld [vmem:[%s4094_s1 + $0x30] sm:$0xff]   ;;  %v2996_v15 = vld [vmem:[%s4094_s1 + $0x38] sm:$0xff]   ;;  %v2998_v17 = vld [vmem:[%s4094_s1 + $0x40] sm:$0xff]  }
   0x6   :  { %898 = vmatpush1.bf16.msra.mxu1 %v2984_v3  ;;  %v3245_v14 = vld [vmem:[%s4094_s1 + $0xb0] sm:$0xff]   ;;  %v3256_v16 = vld [vmem:[%s4094_s1 + $0xb8] sm:$0xff]   ;;  %v3267_v18 = vld [vmem:[%s4094_s1 + $0xc0] sm:$0xff]  }
   0x7   :  { %1067 = vmatpush1.bf16.msra.mxu0 %v3190_v4  ;;  %899 = vmatprep.subr.bf16.mxu1 %v3139_v0  ;;  %v3016_v19 = vld [vmem:[%s4095_s0 + $0x4] ss:$20 sps:$4 sm:$0xff]   ;;  %v3000_v20 = vld [vmem:[%s4094_s1 + $0x48] sm:$0xff]   ;;  %v3002_v23 = vld [vmem:[%s4094_s1 + $0x50] sm:$0xff]  }
   0x8   :  { %1068 = vmatprep.subr.bf16.mxu0 %v3139_v0  ;;  %v3019_v21 = vld [vmem:[%s4095_s0 + $0xc] ss:$20 sps:$4 sm:$0xff]   ;;  %927 = vmatprep.mubr.bf16.mxu1 %v3016_v19  ;;  %v3295_v24 = vld [vmem:[%s4094_s1 + $0xd0] sm:$0xff]   ;;  %v3004_v25 = vld [vmem:[%s4094_s1 + $0x58] sm:$0xff]  }
   0x9   :  { %v3284_v22 = vld [vmem:[%s4094_s1 + $0xc8] sm:$0xff]   ;;  %1096 = vmatprep.mubr.bf16.mxu0 %v3019_v21  ;;  %v3306_v26 = vld [vmem:[%s4094_s1 + $0xd8] sm:$0xff]   ;;  %v3006_v27 = vld [vmem:[%s4094_s1 + $0x60] sm:$0xff]  }
   0xa   :  { %900 = vmatpush1.bf16.msra.mxu1 %v2986_v5  ;;  %v3317_v28 = vld [vmem:[%s4094_s1 + $0xe0] sm:$0xff]   ;;  %v3008_v29 = vld [vmem:[%s4094_s1 + $0x68] sm:$0xff]   ;;  %v3010_v31 = vld [vmem:[%s4094_s1 + $0x70] sm:$0xff]  }
   0xb   :  { %1069 = vmatpush1.bf16.msra.mxu0 %v3201_v6  ;;  %901 = vmatprep.subr.bf16.mxu1 %v3139_v0  ;;  %v3328_v30 = vld [vmem:[%s4094_s1 + $0xe8] sm:$0xff]   ;;  %v3339_v32 = vld [vmem:[%s4094_s1 + $0xf0] sm:$0xff]   ;;  %v3012_v33 = vld [vmem:[%s4094_s1 + $0x78] sm:$0xff]  }
   0xc   :  { %1070 = vmatprep.subr.bf16.mxu0 %v3139_v0  ;;  %v3350_v34 = vld [vmem:[%s4094_s1 + $0xf8] sm:$0xff]   ;;  %v3014_v35 = vld [vmem:[%s4095_s0] ss:$20 sps:$4 sm:$0xff]   ;;  %v3033_v41 = vld [vmem:[%s4094_s1 + $0x108] sm:$0xff]  }
   0xd   :  { %v3017_v36 = vld [vmem:[%s4095_s0 + $0x8] ss:$20 sps:$4 sm:$0xff]   ;;  %v3021_v37 = vld [vmem:[%s4095_s0 + $0x2c] ss:$20 sps:$4 sm:$0xff]   ;;  %v3026_v43 = vld [vmem:[%s4095_s0 + $0x30] ss:$20 sps:$4 sm:$0xff]  }
   0xe   :  { %902 = vmatpush1.bf16.msra.mxu1 %v2988_v7  ;;  %v3020_v38 = vld [vmem:[%s4094_s1 + $0x100] sm:$0xff]   ;;  %v3023_v40 = vld [vmem:[%s4095_s0 + $0x34] ss:$20 sps:$4 sm:$0xff]   ;;  %v3029_v45 = vld [vmem:[%s4095_s0 + $0x5c] ss:$20 sps:$4 sm:$0xff]  }
   0xf   :  { %1071 = vmatpush1.bf16.msra.mxu0 %v3212_v8  ;;  %903 = vmatprep.subr.bf16.mxu1 %v3139_v0  ;;  %v3025_v42 = vld [vmem:[%s4095_s0 + $0x28] ss:$20 sps:$4 sm:$0xff]   ;;  %v3046_v46 = vld [vmem:[%s4094_s1 + $0x110] sm:$0xff]   ;;  %v3032_v49 = vld [vmem:[%s4095_s0 + $0x58] ss:$20 sps:$4 sm:$0xff]  }
  0x10   :  { %1072 = vmatprep.subr.bf16.mxu0 %v3139_v0  ;;  %v3027_v44 = vld [vmem:[%s4095_s0 + $0x54] ss:$20 sps:$4 sm:$0xff]   ;;  %v3063_v47 = vld [vmem:[%s4094_s1 + $0x118] sm:$0xff]   ;;  %v3031_v48 = vld [vmem:[%s4095_s0 + $0x50] ss:$20 sps:$4 sm:$0xff]  }
  0x11   :  { %v3034_v50 = vld [vmem:[%s4095_s0 + $0x7c] ss:$20 sps:$4 sm:$0xff]   ;;  %v3036_v51 = vld [vmem:[%s4095_s0 + $0x84] ss:$20 sps:$4 sm:$0xff]   ;;  %v3039_v53 = vld [vmem:[%s4095_s0 + $0x80] ss:$20 sps:$4 sm:$0xff]  }
  0x12   :  { %904 = vmatpush1.bf16.msra.mxu1 %v2990_v9  ;;  %v3038_v52 = vld [vmem:[%s4095_s0 + $0x78] ss:$20 sps:$4 sm:$0xff]   ;;  %v3044_v56 = vld [vmem:[%s4095_s0 + $0xa0] ss:$20 sps:$4 sm:$0xff]   ;;  %v3045_v57 = vld [vmem:[%s4095_s0 + $0xa8] ss:$20 sps:$4 sm:$0xff]  }
  0x13   :  { %1073 = vmatpush1.bf16.msra.mxu0 %v3223_v10  ;;  %905 = vmatprep.subr.bf16.mxu1 %v3139_v0  ;;  %v3040_v54 = vld [vmem:[%s4095_s0 + $0xa4] ss:$20 sps:$4 sm:$0xff]   ;;  %v3042_v55 = vld [vmem:[%s4095_s0 + $0xac] ss:$20 sps:$4 sm:$0xff]   ;;  %v3049_v59 = vld [vmem:[%s4095_s0 + $0xd4] ss:$20 sps:$4 sm:$0xff]  }
  0x14   :  { %1074 = vmatprep.subr.bf16.mxu0 %v3139_v0  ;;  %v3047_v58 = vld [vmem:[%s4095_s0 + $0xcc] ss:$20 sps:$4 sm:$0xff]   ;;  %v3051_v60 = vld [vmem:[%s4095_s0 + $0xc8] ss:$20 sps:$4 sm:$0xff]   ;;  %v3052_v61 = vld [vmem:[%s4095_s0 + $0xd0] ss:$20 sps:$4 sm:$0xff]  }
  0x15   :  { %v3053_v62 = vld [vmem:[%s4095_s0 + $0xf4] ss:$20 sps:$4 sm:$0xff]   ;;  %v3055_v63 = vld [vmem:[%s4095_s0 + $0xfc] ss:$20 sps:$4 sm:$0xff]   ;;  %v3064_v5 = vld [vmem:[%s4095_s0 + $0x118] ss:$20 sps:$4 sm:$0xff]  }
  0x16   :  { %906 = vmatpush1.bf16.msra.mxu1 %v2992_v11  ;;  %v3057_v1 = vld [vmem:[%s4095_s0 + $0xf0] ss:$20 sps:$4 sm:$0xff]   ;;  %v3070_v9 = vld [vmem:[%s4095_s0 + $0x140] ss:$20 sps:$4 sm:$0xff]   ;;  %v3087_v21 = vld [vmem:[%s4095_s0 + $0x88] ss:$20 sps:$4 sm:$0xff]  }
  0x17   :  { %1075 = vmatpush1.bf16.msra.mxu0 %v3234_v12  ;;  %907 = vmatprep.subr.bf16.mxu1 %v3139_v0  ;;  %v3059_v3 = vld [vmem:[%s4095_s0 + $0x11c] ss:$20 sps:$4 sm:$0xff]   ;;  %v3066_v7 = vld [vmem:[%s4095_s0 + $0x144] ss:$20 sps:$4 sm:$0xff]   ;;  %v3072_v11 = vld [vmem:[%s4095_s0 + $0x16c] ss:$20 sps:$4 sm:$0xff]  }
  0x18   :  { %1076 = vmatprep.subr.bf16.mxu0 %v3139_v0  ;;  %v3084_v19 = vld [vmem:[%s4095_s0 + $0x1e4] ss:$20 sps:$4 sm:$0xff]  }
  0x1a   :  { %908 = vmatpush1.bf16.msra.mxu1 %v2994_v13  ;;  %v3076_v13 = vld [vmem:[%s4095_s0 + $0x194] ss:$20 sps:$4 sm:$0xff]  }
  0x1b   :  { %1077 = vmatpush1.bf16.msra.mxu0 %v3245_v14  ;;  %909 = vmatprep.subr.bf16.mxu1 %v3139_v0 }
  0x1c   :  { %1078 = vmatprep.subr.bf16.mxu0 %v3139_v0 }
  0x1e   :  { %910 = vmatpush1.bf16.msra.mxu1 %v2996_v15  ;;  %v3079_v15 = vld [vmem:[%s4095_s0 + $0x38] ss:$20 sps:$4 sm:$0xff]  }
  0x1f   :  { %1079 = vmatpush1.bf16.msra.mxu0 %v3256_v16  ;;  %911 = vmatprep.subr.bf16.mxu1 %v3139_v0 }
  0x20   :  { %1080 = vmatprep.subr.bf16.mxu0 %v3139_v0 }
  0x22   :  { %912 = vmatpush1.bf16.msra.mxu1 %v2998_v17  ;;  %v3082_v17 = vld [vmem:[%s4095_s0 + $0x1b8] ss:$20 sps:$4 sm:$0xff]  }
  0x23   :  { %1081 = vmatpush1.bf16.msra.mxu0 %v3267_v18  ;;  %913 = vmatprep.subr.bf16.mxu1 %v3139_v0 }
  0x24   :  { %1082 = vmatprep.subr.bf16.mxu0 %v3139_v0 }
  0x26   :  { %914 = vmatpush1.bf16.msra.mxu1 %v3000_v20  ;;  %v3086_v20 = vld [vmem:[%s4095_s0 + $0x1e0] ss:$20 sps:$4 sm:$0xff]  }
  0x27   :  { %1083 = vmatpush1.bf16.msra.mxu0 %v3284_v22  ;;  %915 = vmatprep.subr.bf16.mxu1 %v3139_v0 }
  0x28   :  { %1084 = vmatprep.subr.bf16.mxu0 %v3139_v0 }
  0x2a   :  { %916 = vmatpush1.bf16.msra.mxu1 %v3002_v23  ;;  %v3090_v23 = vld [vmem:[%s4095_s0 + $0x208] ss:$20 sps:$4 sm:$0xff]  }
  0x2b   :  { %1085 = vmatpush1.bf16.msra.mxu0 %v3295_v24  ;;  %917 = vmatprep.subr.bf16.mxu1 %v3139_v0 }
  0x2c   :  { %1086 = vmatprep.subr.bf16.mxu0 %v3139_v0 }
  0x2e   :  { %918 = vmatpush1.bf16.msra.mxu1 %v3004_v25  ;;  %v3092_v25 = vld [vmem:[%s4095_s0 + $0x234] ss:$20 sps:$4 sm:$0xff]  }
  0x2f   :  { %1087 = vmatpush1.bf16.msra.mxu0 %v3306_v26  ;;  %919 = vmatprep.subr.bf16.mxu1 %v3139_v0 }
  0x30   :  { %1088 = vmatprep.subr.bf16.mxu0 %v3139_v0 }
  0x32   :  { %920 = vmatpush1.bf16.msra.mxu1 %v3006_v27  ;;  %v3095_v27 = vld [vmem:[%s4095_s0 + $0xd8] ss:$20 sps:$4 sm:$0xff]  }
  0x33   :  { %1089 = vmatpush1.bf16.msra.mxu0 %v3317_v28  ;;  %921 = vmatprep.subr.bf16.mxu1 %v3139_v0 }
  0x34   :  { %1090 = vmatprep.subr.bf16.mxu0 %v3139_v0 }
  0x36   :  { %922 = vmatpush1.bf16.msra.mxu1 %v3008_v29  ;;  %v3098_v29 = vld [vmem:[%s4095_s0 + $0x258] ss:$20 sps:$4 sm:$0xff]  }
  0x37   :  { %1091 = vmatpush1.bf16.msra.mxu0 %v3328_v30  ;;  %923 = vmatprep.subr.bf16.mxu1 %v3139_v0 }
  0x38   :  { %1092 = vmatprep.subr.bf16.mxu0 %v3139_v0 }
  0x3a   :  { %924 = vmatpush1.bf16.msra.mxu1 %v3010_v31  ;;  %v3100_v31 = vld [vmem:[%s4095_s0 + $0x284] ss:$20 sps:$4 sm:$0xff]  }
  0x3b   :  { %1093 = vmatpush1.bf16.msra.mxu0 %v3339_v32  ;;  %925 = vmatprep.subr.bf16.mxu1 %v3139_v0 }
  0x3c   :  { %1094 = vmatprep.subr.bf16.mxu0 %v3139_v0 }
  0x3e   :  { %926 = vmatpush1.bf16.msra.mxu1 %v3012_v33  ;;  %v3103_v33 = vld [vmem:[%s4095_s0 + $0x128] ss:$20 sps:$4 sm:$0xff]  }
  0x3f   :  { %1095 = vmatpush1.bf16.msra.mxu0 %v3350_v34  ;;  %2811 = vmatprep.subr.bf16.mxu1 %v3139_v0 }
  0x40   :  { %2735 = vmatprep.subr.bf16.mxu0 %v3140_v39 }
  0x41   :  { %928 = vmatmul.mubr.bf16.vlgmr.msra.gmra.mrb[0].mxu1 %v3014_v35  ;;  %v3104_v35 = vld [vmem:[%s4095_s0 + $0x170] ss:$20 sps:$4 sm:$0xff]  }
  0x42   :  { %1097 = vmatmul.mubr.bf16.vlgmr.msra.gmra.mrb[0].mxu0 %v3017_v36  ;;  %935 = vmatprep.mubr.bf16.mxu1 %v3021_v37  ;;  %v3107_v36 = vld [vmem:[%s4095_s0 + $0x150] ss:$20 sps:$4 sm:$0xff]  }
  0x43   :  { %2736 = vmatpush3.bf16.msra.mxu0 %v3020_v38  ;;  %2827 = vmatpush1.bf16.msra.mxu1 %v3180_v2  ;;  %v3058_v2 = vld [vmem:[%s4095_s0 + $0xf8] ss:$20 sps:$4 sm:$0xff]   ;;  %v3108_v37 = vld [vmem:[%s4095_s0 + $0x19c] ss:$20 sps:$4 sm:$0xff]  }
  0x44   :  { %1104 = vmatprep.mubr.bf16.mxu0 %v3023_v40  ;;  %2812 = vmatprep.subr.bf16.mxu1 %v3139_v0  ;;  %v3110_v38 = vld [vmem:[%s4095_s0 + $0x198] ss:$20 sps:$4 sm:$0xff]  }
  0x45   :  { %2737 = vmatprep.subr.bf16.mxu0 %v3140_v39  ;;  %v3111_v40 = vld [vmem:[%s4095_s0 + $0x178] ss:$20 sps:$4 sm:$0xff]  }
  0x47   :  { %2828 = vmatpush1.bf16.msra.mxu1 %v3190_v4  ;;  %2738 = vmatpush3.bf16.msra.mxu0 %v3033_v41  ;;  %v3061_v4 = vld [vmem:[%s4095_s0 + $0x124] ss:$20 sps:$4 sm:$0xff]  }
  0x48   :  { %2813 = vmatprep.subr.bf16.mxu1 %v3139_v0  ;;  %2739 = vmatprep.subr.bf16.mxu0 %v3140_v39  ;;  %v3112_v41 = vld [vmem:[%s4095_s0 + $0x1c4] ss:$20 sps:$4 sm:$0xff]  }
  0x49   :  { %936 = vmatmul.mubr.bf16.gmra.mrb[4].mxu1 %v3025_v42  ;;  %v3114_v42 = vld [vmem:[%s4095_s0 + $0x1c0] ss:$20 sps:$4 sm:$0xff]  }
  0x4a   :  { %1105 = vmatmul.mubr.bf16.gmra.mrb[4].mxu0 %v3026_v43  ;;  %943 = vmatprep.mubr.bf16.mxu1 %v3027_v44  ;;  %v3115_v43 = vld [vmem:[%s4095_s0 + $0x1a0] ss:$20 sps:$4 sm:$0xff]  }
  0x4b   :  { %1112 = vmatprep.mubr.bf16.mxu0 %v3029_v45  ;;  %2829 = vmatpush1.bf16.msra.mxu1 %v3201_v6  ;;  %v3065_v6 = vld [vmem:[%s4095_s0 + $0x120] ss:$20 sps:$4 sm:$0xff]   ;;  %v3118_v45 = vld [vmem:[%s4095_s0 + $0x1e8] ss:$20 sps:$4 sm:$0xff]  }
  0x4c   :  { %2814 = vmatprep.subr.bf16.mxu1 %v3139_v0  ;;  %2740 = vmatpush3.bf16.msra.mxu0 %v3046_v46  ;;  %v3116_v44 = vld [vmem:[%s4095_s0 + $0x1ec] ss:$20 sps:$4 sm:$0xff]   ;;  %v3119_v46 = vld [vmem:[%s4095_s0 + $0x1c8] ss:$20 sps:$4 sm:$0xff]  }
  0x4d   :  { %2741 = vmatprep.subr.bf16.mxu0 %v3140_v39 }
  0x4f   :  { %2830 = vmatpush1.bf16.msra.mxu1 %v3212_v8  ;;  %v3068_v8 = vld [vmem:[%s4095_s0 + $0x14c] ss:$20 sps:$4 sm:$0xff]  }
  0x50   :  { %2815 = vmatprep.subr.bf16.mxu1 %v3139_v0  ;;  %2742 = vmatpush3.bf16.msra.mxu0 %v3063_v47  ;;  %v3120_v47 = vld [vmem:[%s4095_s0 + $0x214] ss:$20 sps:$4 sm:$0xff]  }
  0x51   :  { %944 = vmatmul.mubr.bf16.gmra.mrb[8].mxu1 %v3031_v48  ;;  %v3122_v48 = vld [vmem:[%s4095_s0 + $0x210] ss:$20 sps:$4 sm:$0xff]  }
  0x52   :  { %1113 = vmatmul.mubr.bf16.gmra.mrb[8].mxu0 %v3032_v49  ;;  %951 = vmatprep.mubr.bf16.mxu1 %v3034_v50  ;;  %v3123_v49 = vld [vmem:[%s4095_s0 + $0x1f0] ss:$20 sps:$4 sm:$0xff]  }
  0x53   :  { %1120 = vmatprep.mubr.bf16.mxu0 %v3036_v51  ;;  %2831 = vmatpush1.bf16.msra.mxu1 %v3223_v10  ;;  %v3071_v10 = vld [vmem:[%s4095_s0 + $0x148] ss:$20 sps:$4 sm:$0xff]   ;;  %v3126_v51 = vld [vmem:[%s4095_s0 + $0x238] ss:$20 sps:$4 sm:$0xff]  }
  0x54   :  { %2816 = vmatprep.subr.bf16.mxu1 %v3139_v0  ;;  %v3124_v50 = vld [vmem:[%s4095_s0 + $0x23c] ss:$20 sps:$4 sm:$0xff]  }
  0x57   :  { %2832 = vmatpush1.bf16.msra.mxu1 %v3234_v12  ;;  %v3075_v12 = vld [vmem:[%s4095_s0 + $0x10] ss:$20 sps:$4 sm:$0xff]  }
  0x58   :  { %2817 = vmatprep.subr.bf16.mxu1 %v3139_v0 }
  0x59   :  { %952 = vmatmul.mubr.bf16.gmra.mrb[12].mxu1 %v3038_v52  ;;  %v3127_v52 = vld [vmem:[%s4095_s0 + $0x218] ss:$20 sps:$4 sm:$0xff]  }
  0x5a   :  { %1121 = vmatmul.mubr.bf16.gmra.mrb[12].mxu0 %v3039_v53  ;;  %959 = vmatprep.mubr.bf16.mxu1 %v3040_v54  ;;  %v3128_v53 = vld [vmem:[%s4095_s0 + $0x264] ss:$20 sps:$4 sm:$0xff]   ;;  %v3130_v54 = vld [vmem:[%s4095_s0 + $0x260] ss:$20 sps:$4 sm:$0xff]  }
  0x5b   :  { %1128 = vmatprep.mubr.bf16.mxu0 %v3042_v55  ;;  %2833 = vmatpush1.bf16.msra.mxu1 %v3245_v14  ;;  %v3078_v14 = vld [vmem:[%s4095_s0 + $0x190] ss:$20 sps:$4 sm:$0xff]   ;;  %v3131_v55 = vld [vmem:[%s4095_s0 + $0x240] ss:$20 sps:$4 sm:$0xff]  }
  0x5c   :  { %2818 = vmatprep.subr.bf16.mxu1 %v3139_v0 }
  0x5f   :  { %2834 = vmatpush1.bf16.msra.mxu1 %v3256_v16  ;;  %v3080_v16 = vld [vmem:[%s4095_s0 + $0x1bc] ss:$20 sps:$4 sm:$0xff]  }
  0x60   :  { %2819 = vmatprep.subr.bf16.mxu1 %v3139_v0 }
  0x61   :  { %960 = vmatmul.mubr.bf16.gmra.mrb[16].mxu1 %v3044_v56  ;;  %v3132_v56 = vld [vmem:[%s4095_s0 + $0x28c] ss:$20 sps:$4 sm:$0xff]  }
  0x62   :  { %1129 = vmatmul.mubr.bf16.gmra.mrb[16].mxu0 %v3045_v57  ;;  %967 = vmatprep.mubr.bf16.mxu1 %v3047_v58  ;;  %v3134_v57 = vld [vmem:[%s4095_s0 + $0x288] ss:$20 sps:$4 sm:$0xff]  }
  0x63   :  { %1136 = vmatprep.mubr.bf16.mxu0 %v3049_v59  ;;  %2835 = vmatpush1.bf16.msra.mxu1 %v3267_v18  ;;  %v3083_v18 = vld [vmem:[%s4095_s0 + $0x60] ss:$20 sps:$4 sm:$0xff]   ;;  %v3135_v58 = vld [vmem:[%s4095_s0 + $0x268] ss:$20 sps:$4 sm:$0xff]   ;;  %v3136_v59 = vld [vmem:[%s4095_s0 + $0x290] ss:$20 sps:$4 sm:$0xff]  }
  0x64   :  { %2820 = vmatprep.subr.bf16.mxu1 %v3139_v0 }
  0x67   :  { %2836 = vmatpush1.bf16.msra.mxu1 %v3284_v22  ;;  %v3088_v22 = vld [vmem:[%s4095_s0 + $0x20c] ss:$20 sps:$4 sm:$0xff]  }
  0x68   :  { %2821 = vmatprep.subr.bf16.mxu1 %v3139_v0 }
  0x69   :  { %968 = vmatmul.mubr.bf16.gmra.mrb[20].mxu1 %v3051_v60 }
  0x6a   :  { %1137 = vmatmul.mubr.bf16.gmra.mrb[20].mxu0 %v3052_v61  ;;  %975 = vmatprep.mubr.bf16.mxu1 %v3053_v62 }
  0x6b   :  { %1144 = vmatprep.mubr.bf16.mxu0 %v3055_v63  ;;  %2837 = vmatpush1.bf16.msra.mxu1 %v3295_v24  ;;  %v3091_v24 = vld [vmem:[%s4095_s0 + $0xb0] ss:$20 sps:$4 sm:$0xff]  }
  0x6c   :  { %2822 = vmatprep.subr.bf16.mxu1 %v3139_v0 }
  0x6f   :  { %2838 = vmatpush1.bf16.msra.mxu1 %v3306_v26  ;;  %v3094_v26 = vld [vmem:[%s4095_s0 + $0x230] ss:$20 sps:$4 sm:$0xff]  }
  0x70   :  { %2823 = vmatprep.subr.bf16.mxu1 %v3139_v0 }
  0x71   :  { %976 = vmatmul.mubr.bf16.gmra.mrb[24].mxu1 %v3057_v1 }
  0x72   :  { %1145 = vmatmul.mubr.bf16.gmra.mrb[24].mxu0 %v3058_v2  ;;  %983 = vmatprep.mubr.bf16.mxu1 %v3059_v3 }
  0x73   :  { %1152 = vmatprep.mubr.bf16.mxu0 %v3061_v4  ;;  %2839 = vmatpush1.bf16.msra.mxu1 %v3317_v28  ;;  %v3096_v28 = vld [vmem:[%s4095_s0 + $0x25c] ss:$20 sps:$4 sm:$0xff]  }
  0x74   :  { %2824 = vmatprep.subr.bf16.mxu1 %v3139_v0 }
  0x77   :  { %2840 = vmatpush1.bf16.msra.mxu1 %v3328_v30  ;;  %v3099_v30 = vld [vmem:[%s4095_s0 + $0x100] ss:$20 sps:$4 sm:$0xff]  }
  0x78   :  { %2825 = vmatprep.subr.bf16.mxu1 %v3139_v0 }
  0x79   :  { %984 = vmatmul.mubr.bf16.gmra.mrb[28].mxu1 %v3064_v5 }
  0x7a   :  { %1153 = vmatmul.mubr.bf16.gmra.mrb[28].mxu0 %v3065_v6  ;;  %991 = vmatprep.mubr.bf16.mxu1 %v3066_v7 }
  0x7b   :  { %1160 = vmatprep.mubr.bf16.mxu0 %v3068_v8  ;;  %2841 = vmatpush1.bf16.msra.mxu1 %v3339_v32  ;;  %v3102_v32 = vld [vmem:[%s4095_s0 + $0x280] ss:$20 sps:$4 sm:$0xff]  }
  0x7c   :  { %2826 = vmatprep.subr.bf16.mxu1 %v3139_v0  ;;  %v3074_v0 = vld [vmem:[%s4095_s0 + $0x168] ss:$20 sps:$4 sm:$0xff]  }
  0x7f   :  { %2842 = vmatpush1.bf16.msra.mxu1 %v3350_v34  ;;  %v3106_v34 = vld [vmem:[%s4095_s0 + $0x174] ss:$20 sps:$4 sm:$0xff]  }
  0x81   :  { %992 = vmatmul.mubr.bf16.gmra.mrb[32].mxu1 %v3070_v9 }
  0x82   :  { %1161 = vmatmul.mubr.bf16.gmra.mrb[32].mxu0 %v3071_v10  ;;  %999 = vmatprep.mubr.bf16.mxu1 %v3072_v11 }
  0x83   :  { %2743 = vmatprep.mubr.msk.bf16.mxu0 %vm3141_vm0, %v3140_v39 }
  0x89   :  { %1000 = vmatmul.mubr.bf16.gmra.mrb[36].mxu1 %v3074_v0 }
  0x8a   :  { %2744 = vmatmul.mubr.msk.bf16.vlgmr.msra.gmra.mrb[0].mxu0 %vm843_vm1, %v3075_v12  ;;  %1007 = vmatprep.mubr.bf16.mxu1 %v3076_v13 }
  0x8b   :  { %2747 = vmatprep.mubr.msk.bf16.mxu0 %vm3141_vm0, %v3140_v39 }
  0x91   :  { %1008 = vmatmul.mubr.bf16.gmra.mrb[40].mxu1 %v3078_v14 }
  0x92   :  { %2748 = vmatmul.mubr.msk.bf16.gmra.mrb[4].mxu0 %vm843_vm1, %v3079_v15  ;;  %1015 = vmatprep.mubr.bf16.mxu1 %v3080_v16 }
  0x93   :  { %2751 = vmatprep.mubr.msk.bf16.mxu0 %vm3141_vm0, %v3140_v39 }
  0x99   :  { %1016 = vmatmul.mubr.bf16.gmra.mrb[44].mxu1 %v3082_v17 }
  0x9a   :  { %2752 = vmatmul.mubr.msk.bf16.gmra.mrb[8].mxu0 %vm843_vm1, %v3083_v18  ;;  %1023 = vmatprep.mubr.bf16.mxu1 %v3084_v19 }
  0x9b   :  { %2755 = vmatprep.mubr.msk.bf16.mxu0 %vm3141_vm0, %v3140_v39 }
  0xa1   :  { %1024 = vmatmul.mubr.bf16.gmra.mrb[48].mxu1 %v3086_v20 }
  0xa2   :  { %2756 = vmatmul.mubr.msk.bf16.gmra.mrb[12].mxu0 %vm843_vm1, %v3087_v21  ;;  %1031 = vmatprep.mubr.bf16.mxu1 %v3088_v22 }
  0xa3   :  { %2759 = vmatprep.mubr.msk.bf16.mxu0 %vm3141_vm0, %v3140_v39 }
  0xa9   :  { %1032 = vmatmul.mubr.bf16.gmra.mrb[52].mxu1 %v3090_v23 }
  0xaa   :  { %2760 = vmatmul.mubr.msk.bf16.gmra.mrb[16].mxu0 %vm843_vm1, %v3091_v24  ;;  %1039 = vmatprep.mubr.bf16.mxu1 %v3092_v25 }
  0xab   :  { %2763 = vmatprep.mubr.msk.bf16.mxu0 %vm3141_vm0, %v3140_v39 }
  0xb1   :  { %1040 = vmatmul.mubr.bf16.gmra.mrb[56].mxu1 %v3094_v26 }
  0xb2   :  { %2764 = vmatmul.mubr.msk.bf16.gmra.mrb[20].mxu0 %vm843_vm1, %v3095_v27  ;;  %1047 = vmatprep.mubr.bf16.mxu1 %v3096_v28 }
  0xb3   :  { %2767 = vmatprep.mubr.msk.bf16.mxu0 %vm3141_vm0, %v3140_v39 }
  0xb9   :  { %1048 = vmatmul.mubr.bf16.gmra.mrb[60].mxu1 %v3098_v29 }
  0xba   :  { %2768 = vmatmul.mubr.msk.bf16.gmra.mrb[24].mxu0 %vm843_vm1, %v3099_v30  ;;  %1055 = vmatprep.mubr.bf16.mxu1 %v3100_v31 }
  0xbb   :  { %2771 = vmatprep.mubr.msk.bf16.mxu0 %vm3141_vm0, %v3140_v39 }
  0xc1   :  { %1056 = vmatmul.mubr.bf16.gmra.mrb[64].mxu1 %v3102_v32  ;;  %v3719_v32 = vld [vmem:[%s4096_s2] ss:$0 sm:$0xff] }
  0xc2   :  { %2772 = vmatmul.mubr.msk.bf16.gmra.mrb[28].mxu0 %vm843_vm1, %v3103_v33  ;;  %1168 = vmatprep.mubr.bf16.mxu1 %v3106_v34 }
  0xc3   :  { %2775 = vmatprep.mubr.msk.bf16.mxu0 %vm3141_vm0, %v3140_v39 }
  0xc9   :  { %1169 = vmatmul.mubr.bf16.vlgmr.msra.gmra.mrb[36].mxu1 %v3104_v35 }
  0xca   :  { %2776 = vmatmul.mubr.msk.bf16.gmra.mrb[32].mxu0 %vm843_vm1, %v3107_v36  ;;  %1176 = vmatprep.mubr.bf16.mxu1 %v3108_v37 }
  0xcb   :  { %2779 = vmatprep.mubr.msk.bf16.mxu0 %vm3141_vm0, %v3140_v39 }
  0xd1   :  { %1177 = vmatmul.mubr.bf16.gmra.mrb[40].mxu1 %v3110_v38 }
  0xd2   :  { %2780 = vmatmul.mubr.msk.bf16.gmra.mrb[36].mxu0 %vm843_vm1, %v3111_v40  ;;  %1184 = vmatprep.mubr.bf16.mxu1 %v3112_v41 }
  0xd3   :  { %2783 = vmatprep.mubr.msk.bf16.mxu0 %vm3141_vm0, %v3140_v39 }
  0xd9   :  { %1185 = vmatmul.mubr.bf16.gmra.mrb[44].mxu1 %v3114_v42 }
  0xda   :  { %2784 = vmatmul.mubr.msk.bf16.gmra.mrb[40].mxu0 %vm843_vm1, %v3115_v43  ;;  %1192 = vmatprep.mubr.bf16.mxu1 %v3116_v44 }
  0xdb   :  { %2787 = vmatprep.mubr.msk.bf16.mxu0 %vm3141_vm0, %v3140_v39 }
  0xe1   :  { %1193 = vmatmul.mubr.bf16.gmra.mrb[48].mxu1 %v3118_v45 }
  0xe2   :  { %2788 = vmatmul.mubr.msk.bf16.gmra.mrb[44].mxu0 %vm843_vm1, %v3119_v46  ;;  %1200 = vmatprep.mubr.bf16.mxu1 %v3120_v47 }
  0xe3   :  { %2791 = vmatprep.mubr.msk.bf16.mxu0 %vm3141_vm0, %v3140_v39 }
  0xe9   :  { %1201 = vmatmul.mubr.bf16.gmra.mrb[52].mxu1 %v3122_v48 }
  0xea   :  { %2792 = vmatmul.mubr.msk.bf16.gmra.mrb[48].mxu0 %vm843_vm1, %v3123_v49  ;;  %1208 = vmatprep.mubr.bf16.mxu1 %v3124_v50 }
  0xeb   :  { %2795 = vmatprep.mubr.msk.bf16.mxu0 %vm3141_vm0, %v3140_v39 }
  0xf1   :  { %1209 = vmatmul.mubr.bf16.gmra.mrb[56].mxu1 %v3126_v51 }
  0xf2   :  { %2796 = vmatmul.mubr.msk.bf16.gmra.mrb[52].mxu0 %vm843_vm1, %v3127_v52  ;;  %1216 = vmatprep.mubr.bf16.mxu1 %v3128_v53 }
  0xf3   :  { %2799 = vmatprep.mubr.msk.bf16.mxu0 %vm3141_vm0, %v3140_v39 }
  0xf9   :  { %1217 = vmatmul.mubr.bf16.gmra.mrb[60].mxu1 %v3130_v54 }
  0xfa   :  { %2800 = vmatmul.mubr.msk.bf16.gmra.mrb[56].mxu0 %vm843_vm1, %v3131_v55  ;;  %1224 = vmatprep.mubr.bf16.mxu1 %v3132_v56 }
  0xfb   :  { %2803 = vmatprep.mubr.msk.bf16.mxu0 %vm3141_vm0, %v3140_v39 }
 0x101   :  { %1225 = vmatmul.mubr.bf16.gmra.mrb[64].mxu1 %v3134_v57 }
 0x102   :  { %2804 = vmatmul.mubr.msk.bf16.gmra.mrb[60].mxu0 %vm843_vm1, %v3135_v58 }
 0x103   :  { %2807 = vmatprep.mubr.msk.bf16.mxu0 %vm3141_vm0, %v3140_v39 }
 0x10a   :  { %2808 = vmatmul.mubr.msk.bf16.gmra.mrb[64].mxu0 %vm843_vm1, %v3136_v59 }
 0x114   :  { %v929_v60 = vpop.f32.mrb[0].mxu1 }
 0x115   :  { %v931_v61 = vpop.f32.mrb[1].mxu1  ;;  %v930_v33 = vadd.f32 %v3719_v32, %v929_v60 }
 0x116   :  { %v932_v62 = vpop.f32.mrb[2].mxu1 }
 0x117   :  { %v934_v63 = vpop.f32.mrb[3].mxu1  ;;  %v933_v35 = vadd.f32 %v3719_v32, %v932_v62 }
 0x11c   :  { %v937_v1 = vpop.f32.mrb[4].mxu1 }
 0x11d   :  { %v939_v2 = vpop.f32.mrb[5].mxu1  ;;  %v938_v42 = vadd.f32 %v3719_v32, %v937_v1 }
 0x11e   :  { %v940_v3 = vpop.f32.mrb[6].mxu1 }
 0x11f   :  { %v942_v4 = vpop.f32.mrb[7].mxu1  ;;  %v941_v44 = vadd.f32 %v3719_v32, %v940_v3  ;;  %v1402_v3 = vlaneseq }
 0x124   :  { %v945_v5 = vpop.f32.mrb[8].mxu1 }
 0x125   :  { %v947_v6 = vpop.f32.mrb[9].mxu1  ;;  %v946_v50 = vadd.f32 %v3719_v32, %v945_v5 }
 0x126   :  { %v948_v7 = vpop.f32.mrb[10].mxu1 }
 0x127   :  { %v950_v8 = vpop.f32.mrb[11].mxu1  ;;  %v949_v52 = vadd.f32 %v3719_v32, %v948_v7  ;;  %v3747_v7 = vshrl.u32 %v1402_v3, 7 }
 0x12c   :  { %v953_v9 = vpop.f32.mrb[12].mxu1 }
 0x12d   :  { %v955_v10 = vpop.f32.mrb[13].mxu1  ;;  %v954_v58 = vadd.f32 %v3719_v32, %v953_v9 }
 0x12e   :  { %v956_v11 = vpop.f32.mrb[14].mxu1 }
 0x12f   :  { %v958_v0 = vpop.f32.mrb[15].mxu1  ;;  %v957_v60 = vadd.f32 %v3719_v32, %v956_v11 }
 0x134   :  { %v961_v12 = vpop.f32.mrb[16].mxu1 }
 0x135   :  { %v963_v13 = vpop.f32.mrb[17].mxu1  ;;  %v962_v4 = vadd.f32 %v3719_v32, %v961_v12 }
 0x136   :  { %v964_v14 = vpop.f32.mrb[18].mxu1 }
 0x137   :  { %v966_v15 = vpop.f32.mrb[19].mxu1  ;;  %v965_v6 = vadd.f32 %v3719_v32, %v964_v14 }
 0x138   :  { %v1409_v15 = vadd.s32 48, %v3747_v7 }
 0x13a   :  { %vm1477_vm2 = vcmp.lt.s32.totalorder %v1409_v15, 50 }
 0x13c   :  { %v969_v16 = vpop.f32.mrb[20].mxu1 }
 0x13d   :  { %v971_v17 = vpop.f32.mrb[21].mxu1 }
 0x13e   :  { %v3702_v18 = vpop.f32.mrb[22].mxu1  ;;  %v970_v17 = vadd.f32 %v3719_v32, %v969_v16 }
 0x13f   :  { %v974_v19 = vpop.f32.mrb[23].mxu1 }
 0x144   :  { %v3704_v20 = vpop.f32.mrb[24].mxu1 }
 0x145   :  { %v979_v21 = vpop.f32.mrb[25].mxu1 }
 0x146   :  { %v3706_v22 = vpop.f32.mrb[26].mxu1 }
 0x147   :  { %v982_v23 = vpop.f32.mrb[27].mxu1 }
 0x148   :  { %v973_v23 = vadd.f32 %v3719_v32, %v3702_v18  ;;  %v978_v18 = vadd.f32 %v3719_v32, %v3704_v20 }
 0x14c   :  { %v3708_v24 = vpop.f32.mrb[28].mxu1 }
 0x14d   :  { %v987_v25 = vpop.f32.mrb[29].mxu1 }
 0x14e   :  { %v3710_v26 = vpop.f32.mrb[30].mxu1 }
 0x14f   :  { %v990_v27 = vpop.f32.mrb[31].mxu1 }
 0x154   :  { %v3712_v28 = vpop.f32.mrb[32].mxu1 }
 0x155   :  { %v995_v29 = vpop.f32.mrb[33].mxu1 }
 0x156   :  { %v3714_v30 = vpop.f32.mrb[34].mxu1 }
 0x157   :  { %v998_v31 = vpop.f32.mrb[35].mxu1 }
 0x15d   :  { %v1267_v34 = vpop.f32.mrb[0].mxu0 }
 0x15e   :  { %v3723_v36 = vadd.f32 %v1267_v34, %v930_v33  ;;  %v2745_v37 = vpop.f32.mrb[1].mxu0 }
 0x15f   :  { %v1270_v38 = vpop.f32.mrb[2].mxu0 }
 0x160   :  { %v3725_v40 = vadd.f32 %v1270_v38, %v933_v35  ;;  %v2746_v41 = vpop.f32.mrb[3].mxu0  ;;  %v2185_v12 = vsel %vm843_vm1, %v3723_v36, 0.0  ;;  %v3770_v35 = vsel %vm1477_vm2, 1.0, %v3140_v39 }
 0x162   :  { %v2186_v13 = vsel %vm843_vm1, %v3725_v40, 0.0 }
 0x163   :  { %v2187_v19 = vadd.f32 %v2186_v13, %v2185_v12 }
 0x165   :  { %v1275_v43 = vpop.f32.mrb[4].mxu0 }
 0x166   :  { %v3729_v45 = vadd.f32 %v1275_v43, %v938_v42  ;;  %v2749_v46 = vpop.f32.mrb[5].mxu0 }
 0x167   :  { %v1278_v47 = vpop.f32.mrb[6].mxu0 }
 0x168   :  { %v3731_v48 = vadd.f32 %v1278_v47, %v941_v44  ;;  %v2750_v49 = vpop.f32.mrb[7].mxu0  ;;  %v2188_v14 = vsel %vm843_vm1, %v3729_v45, 0.0  ;;  %v981_v44 = vadd.f32 %v3719_v32, %v3706_v22 }
 0x169   :  { %v2189_v29 = vadd.f32 %v2188_v14, %v2187_v19  ;;  %v997_v14 = vadd.f32 %v3719_v32, %v3714_v30 }
 0x16a   :  { %v2190_v16 = vsel %vm843_vm1, %v3731_v48, 0.0 }
 0x16b   :  { %v2191_v38 = vadd.f32 %v2190_v16, %v2189_v29 }
 0x16d   :  { %v1283_v51 = vpop.f32.mrb[8].mxu0 }
 0x16e   :  { %v3735_v53 = vadd.f32 %v1283_v51, %v946_v50  ;;  %v2753_v54 = vpop.f32.mrb[9].mxu0 }
 0x16f   :  { %v1286_v55 = vpop.f32.mrb[10].mxu0 }
 0x170   :  { %v3737_v56 = vadd.f32 %v1286_v55, %v949_v52  ;;  %v2754_v57 = vpop.f32.mrb[11].mxu0  ;;  %v2192_v37 = vsel %vm843_vm1, %v3735_v53, 0.0 }
 0x171   :  { %v2193_v42 = vadd.f32 %v2192_v37, %v2191_v38  ;;  %v986_v57 = vadd.f32 %v3719_v32, %v3708_v24 }
 0x172   :  { %v2194_v46 = vsel %vm843_vm1, %v3737_v56, 0.0 }
 0x173   :  { %v2195_v54 = vadd.f32 %v2194_v46, %v2193_v42 }
 0x175   :  { %v1291_v59 = vpop.f32.mrb[12].mxu0 }
 0x176   :  { %v3741_v61 = vadd.f32 %v1291_v59, %v954_v58  ;;  %v2757_v62 = vpop.f32.mrb[13].mxu0  ;;  %v1416_v58 = vadd.s32 104, %v3747_v7  ;;  %v989_v59 = vadd.f32 %v3719_v32, %v3710_v26  ;;  %v994_v26 = vadd.f32 %v3719_v32, %v3712_v28 }
 0x177   :  { %v1294_v63 = vpop.f32.mrb[14].mxu0 }
 0x178   :  { %v3743_v1 = vadd.f32 %v1294_v63, %v957_v60  ;;  %v2758_v2 = vpop.f32.mrb[15].mxu0  ;;  %v2157_v41 = vmul.f32 %v3741_v61, %v3770_v35  ;;  %vm1586_vm3 = vcmp.lt.s32.totalorder %v1416_v58, 106 }
 0x179   :  { %v3807_v15 = vsel %vm1586_vm3, 1.0, %v3140_v39 }
 0x17a   :  { %v2196_v51 = vsel %vm843_vm1, %v2157_v41, 0.0  ;;  %v2198_v60 = vsel %vm843_vm1, %v3743_v1, 0.0 }
 0x17b   :  { %v2197_v55 = vadd.f32 %v2196_v51, %v2195_v54 }
 0x17d   :  { %v1299_v5 = vpop.f32.mrb[16].mxu0  ;;  %v2199_v3 = vadd.f32 %v2198_v60, %v2197_v55 }
 0x17e   :  { %v3749_v8 = vadd.f32 %v1299_v5, %v962_v4  ;;  %v2761_v9 = vpop.f32.mrb[17].mxu0 }
 0x17f   :  { %v1302_v10 = vpop.f32.mrb[18].mxu0 }
 0x180   :  { %v3751_v11 = vadd.f32 %v1302_v10, %v965_v6  ;;  %v2762_v0 = vpop.f32.mrb[19].mxu0  ;;  %v2200_v62 = vsel %vm843_vm1, %v3749_v8, 0.0 }
 0x181   :  { %v2201_v6 = vadd.f32 %v2200_v62, %v2199_v3 }
 0x182   :  { %v2202_v9 = vsel %vm843_vm1, %v3751_v11, 0.0 }
 0x183   :  { %v2203_v13 = vadd.f32 %v2202_v9, %v2201_v6 }
 0x185   :  { %v1307_v21 = vpop.f32.mrb[20].mxu0 }
 0x186   :  { %v3763_v25 = vadd.f32 %v1307_v21, %v970_v17  ;;  %v2765_v27 = vpop.f32.mrb[21].mxu0 }
 0x187   :  { %v1310_v31 = vpop.f32.mrb[22].mxu0 }
 0x188   :  { %v3767_v33 = vadd.f32 %v1310_v31, %v973_v23  ;;  %v2766_v34 = vpop.f32.mrb[23].mxu0  ;;  %v2204_v10 = vsel %vm843_vm1, %v3763_v25, 0.0 }
 0x189   :  { %v2205_v27 = vadd.f32 %v2204_v10, %v2203_v13 }
 0x18a   :  { %v2206_v31 = vsel %vm843_vm1, %v3767_v33, 0.0 }
 0x18b   :  { %v2207_v30 = vadd.f32 %v2206_v31, %v2205_v27 }
 0x18d   :  { %v1315_v43 = vpop.f32.mrb[24].mxu0 }
 0x18e   :  { %v3782_v47 = vadd.f32 %v1315_v43, %v978_v18  ;;  %v2769_v49 = vpop.f32.mrb[25].mxu0 }
 0x18f   :  { %v1318_v50 = vpop.f32.mrb[26].mxu0 }
 0x190   :  { %v3785_v52 = vadd.f32 %v1318_v50, %v981_v44  ;;  %v2770_v20 = vpop.f32.mrb[27].mxu0  ;;  %v2208_v38 = vsel %vm843_vm1, %v3782_v47, 0.0 }
 0x191   :  { %v2209_v43 = vadd.f32 %v2208_v38, %v2207_v30 }
 0x192   :  { %v2164_v16 = vmul.f32 %v3785_v52, %v3807_v15 }
 0x194   :  { %v2210_v18 = vsel %vm843_vm1, %v2164_v16, 0.0 }
 0x195   :  { %v1323_v22 = vpop.f32.mrb[28].mxu0  ;;  %v2211_v55 = vadd.f32 %v2210_v18, %v2209_v43 }
 0x196   :  { %v3796_v63 = vadd.f32 %v1323_v22, %v986_v57  ;;  %v2773_v2 = vpop.f32.mrb[29].mxu0 }
 0x197   :  { %v1326_v4 = vpop.f32.mrb[30].mxu0  ;;  %v1423_v2 = vadd.s32 160, %v3747_v7 }
 0x198   :  { %v3798_v5 = vadd.f32 %v1326_v4, %v989_v59  ;;  %v2774_v24 = vpop.f32.mrb[31].mxu0  ;;  %v2212_v49 = vsel %vm843_vm1, %v3796_v63, 0.0 }
 0x199   :  { %v2213_v60 = vadd.f32 %v2212_v49, %v2211_v55  ;;  %vm1729_vm4 = vcmp.lt.s32.totalorder %v1423_v2, 162 }
 0x19a   :  { %v2214_v62 = vsel %vm843_vm1, %v3798_v5, 0.0 }
 0x19b   :  { %v2215_v6 = vadd.f32 %v2214_v62, %v2213_v60 }
 0x19c   :  { %v1170_v0 = vpop.f32.mrb[36].mxu1 }
 0x19d   :  { %v1331_v17 = vpop.f32.mrb[32].mxu0  ;;  %v1172_v12 = vpop.f32.mrb[37].mxu1  ;;  %v2879_v41 = vadd.f32 %v3719_v32, %v1170_v0 }
 0x19e   :  { %v3811_v19 = vadd.f32 %v1331_v17, %v994_v26  ;;  %v2777_v21 = vpop.f32.mrb[33].mxu0  ;;  %v1173_v23 = vpop.f32.mrb[38].mxu1 }
 0x19f   :  { %v1334_v29 = vpop.f32.mrb[34].mxu0  ;;  %v1175_v28 = vpop.f32.mrb[39].mxu1  ;;  %v2881_v50 = vadd.f32 %v3719_v32, %v1173_v23 }
 0x1a0   :  { %v3817_v34 = vadd.f32 %v1334_v29, %v997_v14  ;;  %v2778_v37 = vpop.f32.mrb[35].mxu0  ;;  %v2216_v3 = vsel %vm843_vm1, %v3811_v19, 0.0  ;;  %v3844_v28 = vsel %vm1729_vm4, 1.0, %v3140_v39 }
 0x1a1   :  { %v2217_v12 = vadd.f32 %v2216_v3, %v2215_v6 }
 0x1a2   :  { %v2218_v23 = vsel %vm843_vm1, %v3817_v34, 0.0 }
 0x1a3   :  { %v2219_v16 = vadd.f32 %v2218_v23, %v2217_v12 }
 0x1a4   :  { %v1178_v42 = vpop.f32.mrb[40].mxu1 }
 0x1a5   :  { %v1339_v44 = vpop.f32.mrb[36].mxu0  ;;  %v1180_v46 = vpop.f32.mrb[41].mxu1  ;;  %v2883_v4 = vadd.f32 %v3719_v32, %v1178_v42 }
 0x1a6   :  { %v3826_v51 = vadd.f32 %v2879_v41, %v1339_v44  ;;  %v2781_v20 = vpop.f32.mrb[37].mxu0  ;;  %v1181_v54 = vpop.f32.mrb[42].mxu1 }
 0x1a7   :  { %v1342_v57 = vpop.f32.mrb[38].mxu0  ;;  %v1183_v58 = vpop.f32.mrb[43].mxu1  ;;  %v2885_v10 = vadd.f32 %v3719_v32, %v1181_v54 }
 0x1a8   :  { %v3828_v22 = vadd.f32 %v2881_v50, %v1342_v57  ;;  %v2782_v59 = vpop.f32.mrb[39].mxu0  ;;  %v2220_v31 = vsel %vm843_vm1, %v3826_v51, 0.0 }
 0x1a9   :  { %v2221_v18 = vadd.f32 %v2220_v31, %v2219_v16 }
 0x1aa   :  { %v2222_v43 = vsel %vm843_vm1, %v3828_v22, 0.0 }
 0x1ab   :  { %v2223_v59 = vadd.f32 %v2222_v43, %v2221_v18 }
 0x1ac   :  { %v1186_v24 = vpop.f32.mrb[44].mxu1 }
 0x1ad   :  { %v1347_v9 = vpop.f32.mrb[40].mxu0  ;;  %v1188_v26 = vpop.f32.mrb[45].mxu1  ;;  %v2887_v37 = vadd.f32 %v3719_v32, %v1186_v24 }
 0x1ae   :  { %v3837_v0 = vadd.f32 %v2883_v4, %v1347_v9  ;;  %v2785_v13 = vpop.f32.mrb[41].mxu0  ;;  %v1189_v17 = vpop.f32.mrb[46].mxu1 }
 0x1af   :  { %v1350_v14 = vpop.f32.mrb[42].mxu0  ;;  %v1191_v21 = vpop.f32.mrb[47].mxu1  ;;  %v2889_v44 = vadd.f32 %v3719_v32, %v1189_v17 }
 0x1b0   :  { %v3841_v27 = vadd.f32 %v2885_v10, %v1350_v14  ;;  %v2786_v29 = vpop.f32.mrb[43].mxu0  ;;  %v2171_v38 = vmul.f32 %v3837_v0, %v3844_v28 }
 0x1b1   :  { %v1430_v29 = vadd.s32 216, %v3747_v7 }
 0x1b2   :  { %v2224_v55 = vsel %vm843_vm1, %v2171_v38, 0.0  ;;  %v2226_v24 = vsel %vm843_vm1, %v3841_v27, 0.0 }
 0x1b3   :  { %v2225_v60 = vadd.f32 %v2224_v55, %v2223_v59  ;;  %vm1872_vm5 = vcmp.lt.s32.totalorder %v1430_v29, 218 }
 0x1b4   :  { %v1194_v30 = vpop.f32.mrb[48].mxu1  ;;  %v3879_v55 = vsel %vm1872_vm5, 1.0, %v3140_v39 }
 0x1b5   :  { %v1355_v41 = vpop.f32.mrb[44].mxu0  ;;  %v1196_v42 = vpop.f32.mrb[49].mxu1  ;;  %v2891_v62 = vadd.f32 %v3719_v32, %v1194_v30  ;;  %v2227_v17 = vadd.f32 %v2226_v24, %v2225_v60 }
 0x1b6   :  { %v3854_v46 = vadd.f32 %v2887_v37, %v1355_v41  ;;  %v2789_v49 = vpop.f32.mrb[45].mxu0  ;;  %v1197_v50 = vpop.f32.mrb[50].mxu1 }
 0x1b7   :  { %v1358_v20 = vpop.f32.mrb[46].mxu0  ;;  %v1199_v54 = vpop.f32.mrb[51].mxu1  ;;  %v2893_v9 = vadd.f32 %v3719_v32, %v1197_v50 }
 0x1b8   :  { %v3857_v57 = vadd.f32 %v2889_v44, %v1358_v20  ;;  %v2790_v58 = vpop.f32.mrb[47].mxu0  ;;  %v2228_v6 = vsel %vm843_vm1, %v3854_v46, 0.0 }
 0x1b9   :  { %v2229_v31 = vadd.f32 %v2228_v6, %v2227_v17 }
 0x1ba   :  { %v2230_v16 = vsel %vm843_vm1, %v3857_v57, 0.0 }
 0x1bb   :  { %v2231_v18 = vadd.f32 %v2230_v16, %v2229_v31 }
 0x1bc   :  { %v1202_v2 = vpop.f32.mrb[52].mxu1 }
 0x1bd   :  { %v1363_v3 = vpop.f32.mrb[48].mxu0  ;;  %v1204_v4 = vpop.f32.mrb[53].mxu1  ;;  %v2895_v37 = vadd.f32 %v3719_v32, %v1202_v2 }
 0x1be   :  { %v3865_v26 = vadd.f32 %v2891_v62, %v1363_v3  ;;  %v2793_v10 = vpop.f32.mrb[49].mxu0  ;;  %v1205_v13 = vpop.f32.mrb[54].mxu1 }
 0x1bf   :  { %v1366_v12 = vpop.f32.mrb[50].mxu0  ;;  %v1207_v14 = vpop.f32.mrb[55].mxu1  ;;  %v2897_v43 = vadd.f32 %v3719_v32, %v1205_v13 }
 0x1c0   :  { %v3867_v21 = vadd.f32 %v2893_v9, %v1366_v12  ;;  %v2794_v23 = vpop.f32.mrb[51].mxu0  ;;  %v2232_v38 = vsel %vm843_vm1, %v3865_v26, 0.0 }
 0x1c1   :  { %v2233_v20 = vadd.f32 %v2232_v38, %v2231_v18 }
 0x1c2   :  { %v2234_v59 = vsel %vm843_vm1, %v3867_v21, 0.0 }
 0x1c3   :  { %v2235_v4 = vadd.f32 %v2234_v59, %v2233_v20 }
 0x1c4   :  { %v1210_v30 = vpop.f32.mrb[56].mxu1 }
 0x1c5   :  { %v1371_v41 = vpop.f32.mrb[52].mxu0  ;;  %v1212_v42 = vpop.f32.mrb[57].mxu1  ;;  %v2899_v24 = vadd.f32 %v3719_v32, %v1210_v30 }
 0x1c6   :  { %v3876_v44 = vadd.f32 %v2895_v37, %v1371_v41  ;;  %v2797_v49 = vpop.f32.mrb[53].mxu0  ;;  %v1213_v50 = vpop.f32.mrb[58].mxu1 }
 0x1c7   :  { %v1374_v54 = vpop.f32.mrb[54].mxu0  ;;  %v1215_v58 = vpop.f32.mrb[59].mxu1  ;;  %v2901_v12 = vadd.f32 %v3719_v32, %v1213_v50 }
 0x1c8   :  { %v3883_v60 = vadd.f32 %v2897_v43, %v1374_v54  ;;  %v2798_v62 = vpop.f32.mrb[55].mxu0  ;;  %v2236_v2 = vsel %vm843_vm1, %v3876_v44, 0.0 }
 0x1c9   :  { %v2237_v10 = vadd.f32 %v2236_v2, %v2235_v4 }
 0x1ca   :  { %v2178_v3 = vmul.f32 %v3883_v60, %v3879_v55 }
 0x1cc   :  { %v1218_v6 = vpop.f32.mrb[60].mxu1  ;;  %v2238_v9 = vsel %vm843_vm1, %v2178_v3, 0.0 }
 0x1cd   :  { %v1379_v13 = vpop.f32.mrb[56].mxu0  ;;  %v1220_v17 = vpop.f32.mrb[61].mxu1  ;;  %v2239_v31 = vadd.f32 %v2238_v9, %v2237_v10  ;;  %v2903_v49 = vadd.f32 %v3719_v32, %v1218_v6 }
 0x1ce   :  { %v3892_v14 = vadd.f32 %v2899_v24, %v1379_v13  ;;  %v2801_v23 = vpop.f32.mrb[57].mxu0  ;;  %v1221_v29 = vpop.f32.mrb[62].mxu1  ;;  %v1436_v13 = vadd.s32 264, %v3747_v7 }
 0x1cf   :  { %v1382_v16 = vpop.f32.mrb[58].mxu0  ;;  %v1223_v37 = vpop.f32.mrb[63].mxu1  ;;  %v2905_v58 = vadd.f32 %v3719_v32, %v1221_v29 }
 0x1d0   :  { %v2240_v38 = vsel %vm843_vm1, %v3892_v14, 0.0  ;;  %v3896_v18 = vadd.f32 %v2901_v12, %v1382_v16  ;;  %v2802_v30 = vpop.f32.mrb[59].mxu0  ;;  %vm2014_vm6 = vcmp.lt.s32.totalorder %v1436_v13, 266 }
 0x1d1   :  { %v2241_v41 = vadd.f32 %v2240_v38, %v2239_v31  ;;  %v2713_v30 = vsel %vm2014_vm6, 1.0, %v3140_v39 }
 0x1d2   :  { %v2242_v42 = vsel %vm843_vm1, %v3896_v18, 0.0 }
 0x1d3   :  { %v2243_v43 = vadd.f32 %v2242_v42, %v2241_v41 }
 0x1d4   :  { %v1226_v50 = vpop.f32.mrb[64].mxu1 }
 0x1d5   :  { %v1387_v20 = vpop.f32.mrb[60].mxu0  ;;  %v1228_v54 = vpop.f32.mrb[65].mxu1  ;;  %v2907_v23 = vadd.f32 %v3719_v32, %v1226_v50 }
 0x1d6   :  { %v3902_v59 = vadd.f32 %v2903_v49, %v1387_v20  ;;  %v2805_v62 = vpop.f32.mrb[61].mxu0  ;;  %v1229_v2 = vpop.f32.mrb[66].mxu1 }
 0x1d7   :  { %v1390_v3 = vpop.f32.mrb[62].mxu0  ;;  %v1231_v4 = vpop.f32.mrb[67].mxu1  ;;  %v2909_v31 = vadd.f32 %v3719_v32, %v1229_v2 }
 0x1d8   :  { %v2244_v24 = vsel %vm843_vm1, %v3902_v59, 0.0  ;;  %v3906_v9 = vadd.f32 %v2905_v58, %v1390_v3  ;;  %v2806_v10 = vpop.f32.mrb[63].mxu0 }
 0x1d9   :  { %v2245_v6 = vadd.f32 %v2244_v24, %v2243_v43 }
 0x1da   :  { %v2246_v17 = vsel %vm843_vm1, %v3906_v9, 0.0 }
 0x1db   :  { %v2247_v12 = vadd.f32 %v2246_v17, %v2245_v6 }
 0x1dd   :  { %v1395_v29 = vpop.f32.mrb[64].mxu0 }
 0x1de   :  { %v3913_v16 = vadd.f32 %v2907_v23, %v1395_v29  ;;  %v2809_v37 = vpop.f32.mrb[65].mxu0 }
 0x1df   :  { %v1398_v38 = vpop.f32.mrb[66].mxu0 }
 0x1e0   :  { %v2248_v41 = vsel %vm843_vm1, %v3913_v16, 0.0  ;;  %v2910_v42 = vadd.f32 %v2909_v31, %v1398_v38  ;;  %v2810_v43 = vpop.f32.mrb[67].mxu0 }
 0x1e1   :  { %v2249_v49 = vadd.f32 %v2248_v41, %v2247_v12 }
 0x1e2   :  { %v2184_v20 = vmul.f32 %v2910_v42, %v2713_v30 }
 0x1e4   :  { %v2250_v54 = vsel %vm843_vm1, %v2184_v20, 0.0 }
 0x1e5   :  { %v2251_v50 = vadd.f32 %v2250_v54, %v2249_v49 }
 0x1e7   :  { %v2252_v58 = vrot.slane %v2251_v50, 4 }
 0x1e9   :  { %v2253_v62 = vadd.f32 %v2252_v58, %v2251_v50 }
 0x1eb   :  { %v2254_v3 = vrot.slane %v2253_v62, 2 }
 0x1ed   :  { %v2255_v32 = vadd.f32 %v2254_v3, %v2253_v62 }
 0x1ef   :  { %v2256_v2 = vrot.slane %v2255_v32, 1 }
 0x1f1   :  { %v2257_v4 = vadd.f32 %v2256_v2, %v2255_v32 }
 0x1f3   :  { %v3919_v24 = vmul.f32 0.004132231, %v2257_v4 }
 0x1f5   :  { %v2292_v39 = vsub.f32 %v2910_v42, %v3919_v24  ;;  %v2259_v10 = vsub.f32 %v3723_v36, %v3919_v24  ;;  %v2260_v13 = vsub.f32 %v3725_v40, %v3919_v24  ;;  %v2261_v17 = vsub.f32 %v3729_v45, %v3919_v24 }
 0x1f6   :  { %v2262_v12 = vsub.f32 %v3731_v48, %v3919_v24  ;;  %v2263_v31 = vsub.f32 %v3735_v53, %v3919_v24  ;;  %v2265_v37 = vsub.f32 %v3741_v61, %v3919_v24  ;;  %v2264_v41 = vsub.f32 %v3737_v56, %v3919_v24 }
 0x1f7   :  { %v3926_v6 = vmul.f32 %v2713_v30, %v2292_v39  ;;  %v2327_v23 = vmul.f32 %v2259_v10, %v2259_v10  ;;  %v2328_v29 = vmul.f32 %v2260_v13, %v2260_v13  ;;  %v2329_v38 = vmul.f32 %v2261_v17, %v2261_v17 }
 0x1f8   :  { %v2330_v30 = vmul.f32 %v2262_v12, %v2262_v12  ;;  %v2299_v20 = vmul.f32 %v3770_v35, %v2265_v37  ;;  %v2331_v54 = vmul.f32 %v2263_v31, %v2263_v31  ;;  %v2266_v62 = vsub.f32 %v3743_v1, %v3919_v24 }
 0x1f9   :  { %v2361_v42 = vsel %vm843_vm1, %v2327_v23, 0.0  ;;  %v2362_v43 = vsel %vm843_vm1, %v2328_v29, 0.0  ;;  %v2364_v50 = vsel %vm843_vm1, %v2329_v38, 0.0  ;;  %v2332_v3 = vmul.f32 %v2264_v41, %v2264_v41 }
 0x1fa   :  { %v2363_v49 = vadd.f32 %v2362_v43, %v2361_v42  ;;  %v2366_v32 = vsel %vm843_vm1, %v2330_v30, 0.0  ;;  %v2267_v4 = vsub.f32 %v3749_v8, %v3919_v24  ;;  %v2333_v39 = vmul.f32 %v2299_v20, %v2299_v20 }
 0x1fb   :  { %v2368_v10 = vsel %vm843_vm1, %v2331_v54, 0.0  ;;  %v2268_v35 = vsub.f32 %v3751_v11, %v3919_v24  ;;  %v2334_v17 = vmul.f32 %v2266_v62, %v2266_v62  ;;  %v2370_v12 = vsel %vm843_vm1, %v2332_v3, 0.0 }
 0x1fc   :  { %v2365_v58 = vadd.f32 %v2364_v50, %v2363_v49  ;;  %v2269_v29 = vsub.f32 %v3763_v25, %v3919_v24  ;;  %v2335_v31 = vmul.f32 %v2267_v4, %v2267_v4  ;;  %v2372_v37 = vsel %vm843_vm1, %v2333_v39, 0.0 }
 0x1fd   :  { %v2270_v41 = vsub.f32 %v3767_v33, %v3919_v24  ;;  %v2272_v30 = vsub.f32 %v3785_v52, %v3919_v24  ;;  %v2336_v42 = vmul.f32 %v2268_v35, %v2268_v35  ;;  %v2374_v43 = vsel %vm843_vm1, %v2334_v17, 0.0 }
 0x1fe   :  { %v2367_v2 = vadd.f32 %v2366_v32, %v2365_v58  ;;  %v2271_v20 = vsub.f32 %v3782_v47, %v3919_v24  ;;  %v2337_v54 = vmul.f32 %v2269_v29, %v2269_v29  ;;  %v2376_v50 = vsel %vm843_vm1, %v2335_v31, 0.0 }
 0x1ff   :  { %v2306_v62 = vmul.f32 %v3807_v15, %v2272_v30  ;;  %v2338_v3 = vmul.f32 %v2270_v41, %v2270_v41  ;;  %v2378_v32 = vsel %vm843_vm1, %v2336_v42, 0.0  ;;  %v2273_v4 = vsub.f32 %v3796_v63, %v3919_v24 }
 0x200   :  { %v2369_v13 = vadd.f32 %v2368_v10, %v2367_v2  ;;  %v2339_v39 = vmul.f32 %v2271_v20, %v2271_v20  ;;  %v2380_v10 = vsel %vm843_vm1, %v2337_v54, 0.0  ;;  %v2274_v35 = vsub.f32 %v3798_v5, %v3919_v24 }
 0x201   :  { %v2340_v17 = vmul.f32 %v2306_v62, %v2306_v62  ;;  %v2275_v15 = vsub.f32 %v3811_v19, %v3919_v24  ;;  %v2341_v29 = vmul.f32 %v2273_v4, %v2273_v4 }
 0x202   :  { %v2371_v23 = vadd.f32 %v2370_v12, %v2369_v13  ;;  %v2382_v12 = vsel %vm843_vm1, %v2338_v3, 0.0  ;;  %v2384_v31 = vsel %vm843_vm1, %v2339_v39, 0.0  ;;  %v2342_v41 = vmul.f32 %v2274_v35, %v2274_v35 }
 0x203   :  { %v2386_v30 = vsel %vm843_vm1, %v2340_v17, 0.0  ;;  %v2343_v20 = vmul.f32 %v2275_v15, %v2275_v15  ;;  %v2388_v54 = vsel %vm843_vm1, %v2341_v29, 0.0 }
 0x204   :  { %v2373_v38 = vadd.f32 %v2372_v37, %v2371_v23  ;;  %v2390_v3 = vsel %vm843_vm1, %v2342_v41, 0.0 }
 0x205   :  { %v2392_v39 = vsel %vm843_vm1, %v2343_v20, 0.0  ;;  %v2284_v20 = vsub.f32 %v3867_v21, %v3919_v24 }
 0x206   :  { %v2375_v49 = vadd.f32 %v2374_v43, %v2373_v38  ;;  %v2276_v38 = vsub.f32 %v3817_v34, %v3919_v24  ;;  %v2277_v43 = vsub.f32 %v3826_v51, %v3919_v24 }
 0x208   :  { %v2377_v58 = vadd.f32 %v2376_v50, %v2375_v49  ;;  %v2279_v49 = vsub.f32 %v3837_v0, %v3919_v24  ;;  %v2344_v62 = vmul.f32 %v2276_v38, %v2276_v38  ;;  %v2345_v4 = vmul.f32 %v2277_v43, %v2277_v43 }
 0x20a   :  { %v2379_v2 = vadd.f32 %v2378_v32, %v2377_v58  ;;  %v2278_v58 = vsub.f32 %v3828_v22, %v3919_v24  ;;  %v2394_v17 = vsel %vm843_vm1, %v2344_v62, 0.0  ;;  %v2396_v29 = vsel %vm843_vm1, %v2345_v4, 0.0 }
 0x20c   :  { %v2381_v13 = vadd.f32 %v2380_v10, %v2379_v2  ;;  %v2313_v2 = vmul.f32 %v3844_v28, %v2279_v49  ;;  %v2346_v35 = vmul.f32 %v2278_v58, %v2278_v58  ;;  %v2282_v28 = vsub.f32 %v3857_v57, %v3919_v24 }
 0x20e   :  { %v2383_v23 = vadd.f32 %v2382_v12, %v2381_v13  ;;  %v2280_v13 = vsub.f32 %v3841_v27, %v3919_v24  ;;  %v2347_v15 = vmul.f32 %v2313_v2, %v2313_v2  ;;  %v2398_v38 = vsel %vm843_vm1, %v2346_v35, 0.0 }
 0x210   :  { %v2385_v37 = vadd.f32 %v2384_v31, %v2383_v23  ;;  %v2281_v23 = vsub.f32 %v3854_v46, %v3919_v24  ;;  %v2400_v43 = vsel %vm843_vm1, %v2347_v15, 0.0 }
 0x212   :  { %v2387_v42 = vadd.f32 %v2386_v30, %v2385_v37  ;;  %v2348_v37 = vmul.f32 %v2280_v13, %v2280_v13  ;;  %v2283_v30 = vsub.f32 %v3865_v26, %v3919_v24 }
 0x214   :  { %v2389_v50 = vadd.f32 %v2388_v54, %v2387_v42  ;;  %v2349_v42 = vmul.f32 %v2281_v23, %v2281_v23  ;;  %v2286_v54 = vsub.f32 %v3883_v60, %v3919_v24  ;;  %v2402_v58 = vsel %vm843_vm1, %v2348_v37, 0.0 }
 0x216   :  { %v2391_v32 = vadd.f32 %v2390_v3, %v2389_v50  ;;  %v2350_v50 = vmul.f32 %v2282_v28, %v2282_v28  ;;  %v2285_v3 = vsub.f32 %v3876_v44, %v3919_v24  ;;  %v2404_v2 = vsel %vm843_vm1, %v2349_v42, 0.0 }
 0x218   :  { %v2393_v10 = vadd.f32 %v2392_v39, %v2391_v32  ;;  %v2351_v32 = vmul.f32 %v2283_v30, %v2283_v30  ;;  %v2320_v39 = vmul.f32 %v3879_v55, %v2286_v54  ;;  %v2406_v13 = vsel %vm843_vm1, %v2350_v50, 0.0 }
 0x219   :  { %v2289_v55 = vsub.f32 %v3902_v59, %v3919_v24 }
 0x21a   :  { %v2395_v12 = vadd.f32 %v2394_v17, %v2393_v10  ;;  %v2352_v10 = vmul.f32 %v2284_v20, %v2284_v20  ;;  %v2287_v17 = vsub.f32 %v3892_v14, %v3919_v24  ;;  %v2408_v23 = vsel %vm843_vm1, %v2351_v32, 0.0 }
 0x21b   :  { %v2290_v14 = vsub.f32 %v3906_v9, %v3919_v24  ;;  %v2357_v20 = vmul.f32 %v2289_v55, %v2289_v55  ;;  %v2360_v9 = vmul.f32 %v3926_v6, %v3926_v6  ;;  %v2435_v6 = vld [vmem:[%s4097_s3] sm:$0x1]  ;;  %v2445_v55 = vsub.s32 0, %v3747_v7 }
 0x21c   :  { %v2397_v31 = vadd.f32 %v2396_v29, %v2395_v12  ;;  %v2353_v12 = vmul.f32 %v2285_v3, %v2285_v3  ;;  %v2288_v29 = vsub.f32 %v3896_v18, %v3919_v24  ;;  %v2410_v28 = vsel %vm843_vm1, %v2352_v10, 0.0 }
 0x21d   :  { %v2291_v18 = vsub.f32 %v3913_v16, %v3919_v24  ;;  %v2420_v32 = vsel %vm843_vm1, %v2357_v20, 0.0 }
 0x21e   :  { %v2399_v41 = vadd.f32 %v2398_v38, %v2397_v31  ;;  %v2354_v31 = vmul.f32 %v2320_v39, %v2320_v39  ;;  %v2355_v38 = vmul.f32 %v2287_v17, %v2287_v17  ;;  %v2356_v42 = vmul.f32 %v2288_v29, %v2288_v29 }
 0x21f   :  { %v2359_v3 = vmul.f32 %v2291_v18, %v2291_v18 }
 0x220   :  { %v2401_v49 = vadd.f32 %v2400_v43, %v2399_v41  ;;  %v2412_v41 = vsel %vm843_vm1, %v2353_v12, 0.0  ;;  %v2414_v43 = vsel %vm843_vm1, %v2354_v31, 0.0  ;;  %v2416_v54 = vsel %vm843_vm1, %v2355_v38, 0.0 }
 0x221   :  { %v2418_v59 = vsel %vm843_vm1, %v2356_v42, 0.0  ;;  %v2424_v16 = vsel %vm843_vm1, %v2359_v3, 0.0 }
 0x222   :  { %v2403_v62 = vadd.f32 %v2402_v58, %v2401_v49  ;;  %v2358_v58 = vmul.f32 %v2290_v14, %v2290_v14 }
 0x224   :  { %v2405_v4 = vadd.f32 %v2404_v2, %v2403_v62 }
 0x226   :  { %v2407_v35 = vadd.f32 %v2406_v13, %v2405_v4  ;;  %v2422_v4 = vsel %vm843_vm1, %v2358_v58, 0.0  ;;  %v2426_v13 = vsel %vm843_vm1, %v2360_v9, 0.0 }
 0x228   :  { %v2409_v15 = vadd.f32 %v2408_v23, %v2407_v35 }
 0x22a   :  { %v2411_v37 = vadd.f32 %v2410_v28, %v2409_v15 }
 0x22c   :  { %v2413_v30 = vadd.f32 %v2412_v41, %v2411_v37 }
 0x22e   :  { %v2415_v49 = vadd.f32 %v2414_v43, %v2413_v30  ;;  %v2439_v30 = vld [vmem:[%s4098_s4] sm:$0x1] }
 0x230   :  { %v2417_v50 = vadd.f32 %v2416_v54, %v2415_v49 }
 0x232   :  { %v2419_v62 = vadd.f32 %v2418_v59, %v2417_v50 }
 0x234   :  { %v2421_v2 = vadd.f32 %v2420_v32, %v2419_v62 }
 0x236   :  { %v2423_v39 = vadd.f32 %v2422_v4, %v2421_v2 }
 0x238   :  { %v2425_v10 = vadd.f32 %v2424_v16, %v2423_v39 }
 0x23a   :  { %v2427_v35 = vadd.f32 %v2426_v13, %v2425_v10 }
 0x23c   :  { %v2428_v17 = vrot.slane %v2427_v35, 4 }
 0x23e   :  { %v2429_v12 = vadd.f32 %v2428_v17, %v2427_v35 }
 0x240   :  { %v2430_v23 = vrot.slane %v2429_v12, 2 }
 0x242   :  { %v2431_v15 = vadd.f32 %v2430_v23, %v2429_v12 }
 0x244   :  { %v2432_v29 = vrot.slane %v2431_v15, 1 }
 0x246   :  { %v2433_v31 = vadd.f32 %v2432_v29, %v2431_v15 }
 0x248   :  { %v2434_v28 = vmul.f32 0.004132231, %v2433_v31 }
 0x24a   :  { %v2436_v37 = vadd.f32 1e-05, %v2434_v28 }
 0x24c   :  { %3137 = vrsqrt.f32 %v2436_v37 }
 0x256   :  { %v3138_v38 = vpop.eup %3137 }
 0x257   :  { %v2438_v41 = vmul.f32 %v3138_v38, %v2435_v6 }
 0x259   :  { %v2440_v14 = vmul.f32 %v2438_v41, %v3919_v24  ;;  %v2446_v42 = vrot.slane %v2438_v41, %v2445_v55 }
 0x25b   :  { %v2441_v43 = vsub.f32 %v2439_v30, %v2440_v14  ;;  %v2448_v49 = vmul.f32 %v3723_v36, %v2446_v42  ;;  %v2449_v18 = vmul.f32 %v3725_v40, %v2446_v42  ;;  %v2450_v20 = vmul.f32 %v3729_v45, %v2446_v42 }
 0x25c   :  { %v2451_v54 = vmul.f32 %v3731_v48, %v2446_v42  ;;  %v2452_v7 = vmul.f32 %v3735_v53, %v2446_v42  ;;  %v2453_v50 = vmul.f32 %v3737_v56, %v2446_v42  ;;  %v2454_v58 = vmul.f32 %v3741_v61, %v2446_v42 }
 0x25d   :  { %v2455_v59 = vmul.f32 %v3743_v1, %v2446_v42  ;;  %v2456_v24 = vmul.f32 %v3749_v8, %v2446_v42  ;;  %v2457_v62 = vmul.f32 %v3751_v11, %v2446_v42  ;;  %v2458_v36 = vmul.f32 %v3763_v25, %v2446_v42 }
 0x25e   :  { %v2459_v40 = vmul.f32 %v3767_v33, %v2446_v42  ;;  %v2460_v45 = vmul.f32 %v3782_v47, %v2446_v42  ;;  %v2461_v48 = vmul.f32 %v3785_v52, %v2446_v42  ;;  %v2462_v53 = vmul.f32 %v3796_v63, %v2446_v42 }
 0x25f   :  { %v2463_v56 = vmul.f32 %v3798_v5, %v2446_v42  ;;  %v2464_v61 = vmul.f32 %v3811_v19, %v2446_v42  ;;  %v2465_v1 = vmul.f32 %v3817_v34, %v2446_v42  ;;  %v2466_v8 = vmul.f32 %v3826_v51, %v2446_v42 }
 0x260   :  { %v2467_v11 = vmul.f32 %v3828_v22, %v2446_v42  ;;  %v2468_v25 = vmul.f32 %v3837_v0, %v2446_v42  ;;  %v2469_v33 = vmul.f32 %v3841_v27, %v2446_v42  ;;  %v2470_v47 = vmul.f32 %v3854_v46, %v2446_v42 }
 0x261   :  { %v2471_v52 = vmul.f32 %v3857_v57, %v2446_v42  ;;  %v2480_v3 = vrot.slane %v2441_v43, %v2445_v55  ;;  %v2472_v63 = vmul.f32 %v3865_v26, %v2446_v42  ;;  %v2473_v5 = vmul.f32 %v3867_v21, %v2446_v42 }
 0x262   :  { %v2474_v19 = vmul.f32 %v3876_v44, %v2446_v42  ;;  %v2475_v34 = vmul.f32 %v3883_v60, %v2446_v42 }
 0x263   :  { %v2482_v51 = vadd.f32 %v2480_v3, %v2448_v49  ;;  %v2483_v32 = vadd.f32 %v2480_v3, %v2449_v18  ;;  %v2484_v22 = vadd.f32 %v2480_v3, %v2450_v20  ;;  %v2485_v2 = vadd.f32 %v2480_v3, %v2451_v54 }
 0x264   :  { %v2486_v0 = vadd.f32 %v2480_v3, %v2452_v7  ;;  %v2487_v9 = vadd.f32 %v2480_v3, %v2453_v50  ;;  %v2488_v27 = vadd.f32 %v2480_v3, %v2454_v58  ;;  %v2489_v4 = vadd.f32 %v2480_v3, %v2455_v59 }
 0x265   :  { %v2490_v46 = vadd.f32 %v2480_v3, %v2456_v24  ;;  %v2491_v39 = vadd.f32 %v2480_v3, %v2457_v62  ;;  %v2492_v57 = vadd.f32 %v2480_v3, %v2458_v36  ;;  %v2493_v16 = vadd.f32 %v2480_v3, %v2459_v40 }
 0x266   :  { %v2494_v10 = vadd.f32 %v2480_v3, %v2460_v45  ;;  %v2495_v26 = vadd.f32 %v2480_v3, %v2461_v48  ;;  %v2496_v13 = vadd.f32 %v2480_v3, %v2462_v53  ;;  %v2497_v21 = vadd.f32 %v2480_v3, %v2463_v56 }
 0x267   :  { %v2498_v35 = vadd.f32 %v2480_v3, %v2464_v61  ;;  %v2499_v44 = vadd.f32 %v2480_v3, %v2465_v1  ;;  %v2500_v17 = vadd.f32 %v2480_v3, %v2466_v8  ;;  %v2501_v60 = vadd.f32 %v2480_v3, %v2467_v11 }
 0x268   :  { %v2502_v12 = vadd.f32 %v2480_v3, %v2468_v25  ;;  %v2503_v23 = vadd.f32 %v2480_v3, %v2469_v33  ;;  %v2504_v15 = vadd.f32 %v2480_v3, %v2470_v47  ;;  %v2505_v29 = vadd.f32 %v2480_v3, %v2471_v52 }
 0x269   :  { %v2506_v31 = vadd.f32 %v2480_v3, %v2472_v63  ;;  %v2507_v28 = vadd.f32 %v2480_v3, %v2473_v5  ;;  %v2508_v37 = vadd.f32 %v2480_v3, %v2474_v19  ;;  %v2509_v6 = vadd.f32 %v2480_v3, %v2475_v34 }
 0x26a   :  { %v2510_v55 = vmax.f32 %v2482_v51, 0.0  ;;  %v2511_v38 = vmax.f32 %v2483_v32, 0.0  ;;  %v2512_v41 = vmax.f32 %v2484_v22, 0.0  ;;  %v2513_v30 = vmax.f32 %v2485_v2, 0.0 }
 0x26b   :  { %v2514_v14 = vmax.f32 %v2486_v0, 0.0  ;;  %v2515_v42 = vmax.f32 %v2487_v9, 0.0  ;;  %v2516_v43 = vmax.f32 %v2488_v27, 0.0  ;;  %v2517_v49 = vmax.f32 %v2489_v4, 0.0 }
 0x26c   :  { %v2518_v18 = vmax.f32 %v2490_v46, 0.0  ;;  %v2519_v20 = vmax.f32 %v2491_v39, 0.0  ;;  %v2520_v54 = vmax.f32 %v2492_v57, 0.0  ;;  %v2521_v7 = vmax.f32 %v2493_v16, 0.0 }
 0x26d   :  { %v2522_v50 = vmax.f32 %v2494_v10, 0.0  ;;  %v2523_v58 = vmax.f32 %v2495_v26, 0.0  ;;  %v2524_v59 = vmax.f32 %v2496_v13, 0.0  ;;  %v2525_v24 = vmax.f32 %v2497_v21, 0.0 }
 0x26e   :  { %v2526_v62 = vmax.f32 %v2498_v35, 0.0  ;;  %v2527_v36 = vmax.f32 %v2499_v44, 0.0  ;;  %v2528_v40 = vmax.f32 %v2500_v17, 0.0  ;;  %v2529_v45 = vmax.f32 %v2501_v60, 0.0 }
 0x26f   :  { %v2530_v48 = vmax.f32 %v2502_v12, 0.0  ;;  %v2531_v53 = vmax.f32 %v2503_v23, 0.0  ;;  %v2532_v56 = vmax.f32 %v2504_v15, 0.0  ;;  %v2533_v61 = vmax.f32 %v2505_v29, 0.0 }
 0x270   :  { %v2534_v1 = vmax.f32 %v2506_v31, 0.0  ;;  %v2535_v8 = vmax.f32 %v2507_v28, 0.0  ;;  %v2536_v11 = vmax.f32 %v2508_v37, 0.0  ;;  %v2537_v25 = vmax.f32 %v2509_v6, 0.0 }
 0x271   :  { %v2538_v33 = vmax.f32 %v2510_v55, %v2517_v49  ;;  %v2539_v47 = vmax.f32 %v2511_v38, %v2518_v18  ;;  %v2540_v52 = vmax.f32 %v2512_v41, %v2519_v20  ;;  %v2541_v3 = vmax.f32 %v2513_v30, %v2520_v54 }
 0x272   :  { %v2542_v63 = vmax.f32 %v2514_v14, %v2521_v7  ;;  %v2543_v5 = vmax.f32 %v2515_v42, %v2522_v50  ;;  %v2544_v19 = vmax.f32 %v2516_v43, %v2523_v58  ;;  %v2545_v34 = vmax.f32 %v2524_v59, %v2531_v53 }
 0x273   :  { %v2546_v51 = vmax.f32 %v2525_v24, %v2532_v56  ;;  %v2547_v32 = vmax.f32 %v2526_v62, %v2533_v61  ;;  %v2548_v22 = vmax.f32 %v2527_v36, %v2534_v1  ;;  %v2549_v2 = vmax.f32 %v2528_v40, %v2535_v8 }
 0x274   :  { %v2550_v0 = vmax.f32 %v2529_v45, %v2536_v11  ;;  %v2551_v9 = vmax.f32 %v2530_v48, %v2537_v25  ;;  %v2552_v27 = vmax.f32 %v2538_v33, %v2545_v34 }
 0x275   :  { %v2553_v4 = vmax.f32 %v2539_v47, %v2546_v51  ;;  %v2554_v46 = vmax.f32 %v2540_v52, %v2547_v32  ;;  %v2555_v39 = vmax.f32 %v2541_v3, %v2548_v22  ;;  %v2556_v57 = vmax.f32 %v2542_v63, %v2549_v2 }
 0x276   :  { %v2557_v16 = vmax.f32 %v2543_v5, %v2550_v0  ;;  %v2558_v10 = vmax.f32 %v2544_v19, %v2551_v9  ;;  %2559 = vst.msk [vmem:[%s4099_s5] sm:$0xff] %vm843_vm1, %v2552_v27 }
 0x277   :  { %2560 = vst.msk [vmem:[%s4099_s5 + $0x8] sm:$0xff] %vm843_vm1, %v2553_v4  ;;  %2561 = vst.msk [vmem:[%s4099_s5 + $0x10] sm:$0xff] %vm843_vm1, %v2554_v46 }
 0x278   :  { %2562 = vst.msk [vmem:[%s4099_s5 + $0x18] sm:$0xff] %vm843_vm1, %v2555_v39  ;;  %2563 = vst.msk [vmem:[%s4099_s5 + $0x20] sm:$0xff] %vm843_vm1, %v2556_v57 }
 0x279   :  { %2564 = vst.msk [vmem:[%s4099_s5 + $0x28] sm:$0xff] %vm843_vm1, %v2557_v16  ;;  %2565 = vst.msk [vmem:[%s4099_s5 + $0x30] sm:$0xff] %vm843_vm1, %v2558_v10 }

// kernel: cnn_encoder.4
= control target key start
LH: loop header
LB: loop body
LE: loop exit
PB: predicated region body
PF: predicated region fallthrough
CT: control target
= control target key end

     0   :  { %vm904_vm0 = vcmask 1044480   ;;  %vm905_vm1 = vcmask 1045504   ;;  %vm645_vm2 = vcmask 220160   ;;  %v7369_v1 = vmov 65535   ;;  %s11746_s1 = inlined_call_operand.vmem [shape: bf16[27,64], index: 1, kind: input, shape index: {}]   ;;  %s11747_s0 = inlined_call_operand.vmem [shape: bf16[1376,27], index: 0, kind: input, shape index: {}]   ;;  %s11748_s2 = inlined_call_operand.vmem [shape: f32[1,64], index: 2, kind: input, shape index: {}]   ;;  %s11749_s3 = inlined_call_operand.vmem [shape: f32[1,64], index: 3, kind: input, shape index: {}]   ;;  %s11750_s4 = inlined_call_operand.vmem [shape: f32[1,64], index: 4, kind: input, shape index: {}]   ;;  %s11751_s5 = inlined_call_operand.vmem [shape: f32[344,64], index: 5, kind: output, shape index: {}]  }
   0x1   :  { %v7278_v0 = vld [vmem:[%s11746_s1] sm:$0xff]   ;;  %v906_v2 = vsel %vm904_vm0, 4294967295, %v7369_v1  ;;  %v7279_v3 = vld [vmem:[%s11746_s1 + $0x8] sm:$0x3f]   ;;  %v7282_v8 = vld [vmem:[%s11747_s0 + $0x10] sm:$0xff]   ;;  %vm4901_vm3 = vcmask 523264  }
   0x2   :  { %7096 = vmatprep.subr.bf16.mxu0 %v7278_v0  ;;  %v907_v4 = vsel %vm905_vm1, %v906_v2, 0  ;;  %v7280_v5 = vld [vmem:[%s11747_s0] sm:$0xff]   ;;  %7272 = vmatprep.subr.bf16.mxu1 %v7278_v0  ;;  %v7281_v7 = vld [vmem:[%s11747_s0 + $0x8] sm:$0xff]   ;;  %v7283_v9 = vld [vmem:[%s11747_s0 + $0x18] sm:$0xff]  }
   0x3   :  { %7097 = vmatpush3.bf16.msra.mxu0 %v7278_v0  ;;  %v909_v6 = vand.u32 %v7279_v3, %v907_v4  ;;  %7274 = vmatpush3.bf16.msra.mxu1 %v7278_v0  ;;  %v7284_v10 = vld [vmem:[%s11747_s0 + $0x20] sm:$0xff]   ;;  %v7285_v11 = vld [vmem:[%s11747_s0 + $0x28] sm:$0xff]   ;;  %v7286_v12 = vld [vmem:[%s11747_s0 + $0x30] sm:$0xff]  }
   0x4   :  { %7100 = vmatprep.mubr.msk.bf16.mxu0 %vm645_vm2, %v7280_v5  ;;  %v7287_v13 = vld [vmem:[%s11747_s0 + $0x38] sm:$0xff]   ;;  %v7288_v14 = vld [vmem:[%s11747_s0 + $0x40] sm:$0xff]   ;;  %v7289_v15 = vld [vmem:[%s11747_s0 + $0x48] sm:$0xff]  }
   0x5   :  { %7098 = vmatprep.subr.bf16.mxu0 %v909_v6  ;;  %7273 = vmatprep.subr.bf16.mxu1 %v909_v6  ;;  %v7290_v16 = vld [vmem:[%s11747_s0 + $0x50] sm:$0xff]   ;;  %v7291_v17 = vld [vmem:[%s11747_s0 + $0x58] sm:$0xff]   ;;  %v7292_v18 = vld [vmem:[%s11747_s0 + $0x60] sm:$0xff]  }
   0x6   :  { %v7324_v19 = vld [vmem:[%s11747_s0 + $0x160] sm:$0xff]   ;;  %v7325_v20 = vld [vmem:[%s11747_s0 + $0x168] sm:$0xff]   ;;  %v7326_v21 = vld [vmem:[%s11747_s0 + $0x170] sm:$0xff]  }
   0x7   :  { %7099 = vmatpush3.bf16.msra.mxu0 %v909_v6  ;;  %7275 = vmatpush3.bf16.msra.mxu1 %v909_v6  ;;  %v7293_v22 = vld [vmem:[%s11747_s0 + $0x68] sm:$0xff]   ;;  %v7294_v23 = vld [vmem:[%s11747_s0 + $0x70] sm:$0xff]   ;;  %v7327_v24 = vld [vmem:[%s11747_s0 + $0x178] sm:$0xff]  }
   0x8   :  { %7188 = vmatprep.mubr.msk.bf16.mxu1 %vm645_vm2, %v7324_v19  ;;  %v7328_v25 = vld [vmem:[%s11747_s0 + $0x180] sm:$0xff]   ;;  %v7295_v26 = vld [vmem:[%s11747_s0 + $0x78] sm:$0xff]   ;;  %v7329_v28 = vld [vmem:[%s11747_s0 + $0x188] sm:$0xff]  }
   0x9   :  { %v7296_v27 = vld [vmem:[%s11747_s0 + $0x80] sm:$0xff]   ;;  %v7330_v29 = vld [vmem:[%s11747_s0 + $0x190] sm:$0xff]   ;;  %v7297_v30 = vld [vmem:[%s11747_s0 + $0x88] sm:$0xff]  }
   0xa   :  { %7101 = vmatmul.mubr.msk.bf16.vlgmr.msra.gmra.mrb[0].mxu0 %vm645_vm2, %v7281_v7  ;;  %7189 = vmatmul.mubr.msk.bf16.vlgmr.msra.gmra.mrb[0].mxu1 %vm645_vm2, %v7325_v20  ;;  %v7298_v31 = vld [vmem:[%s11747_s0 + $0x90] sm:$0xff]   ;;  %v7331_v32 = vld [vmem:[%s11747_s0 + $0x198] sm:$0xff]   ;;  %v7332_v33 = vld [vmem:[%s11747_s0 + $0x1a0] sm:$0xff]  }
   0xb   :  { %7104 = vmatprep.mubr.msk.bf16.mxu0 %vm645_vm2, %v7282_v8  ;;  %7192 = vmatprep.mubr.msk.bf16.mxu1 %vm645_vm2, %v7326_v21  ;;  %v7299_v34 = vld [vmem:[%s11747_s0 + $0x98] sm:$0xff]   ;;  %v7300_v35 = vld [vmem:[%s11747_s0 + $0xa0] sm:$0xff]   ;;  %v7333_v36 = vld [vmem:[%s11747_s0 + $0x1a8] sm:$0xff]  }
   0xc   :  { %v7301_v37 = vld [vmem:[%s11747_s0 + $0xa8] sm:$0xff]   ;;  %v7302_v38 = vld [vmem:[%s11747_s0 + $0xb0] sm:$0xff]   ;;  %v7335_v40 = vld [vmem:[%s11747_s0 + $0x1b8] sm:$0xff]  }
   0xd   :  { %v7334_v39 = vld [vmem:[%s11747_s0 + $0x1b0] sm:$0xff]   ;;  %v7303_v41 = vld [vmem:[%s11747_s0 + $0xb8] sm:$0xff]   ;;  %v7304_v42 = vld [vmem:[%s11747_s0 + $0xc0] sm:$0xff]  }
   0xe   :  { %v7336_v43 = vld [vmem:[%s11747_s0 + $0x1c0] sm:$0xff]   ;;  %v7337_v44 = vld [vmem:[%s11747_s0 + $0x1c8] sm:$0xff]   ;;  %v7306_v46 = vld [vmem:[%s11747_s0 + $0xd0] sm:$0xff]  }
   0xf   :  { %v7305_v45 = vld [vmem:[%s11747_s0 + $0xc8] sm:$0xff]   ;;  %v7338_v47 = vld [vmem:[%s11747_s0 + $0x1d0] sm:$0xff]   ;;  %v7339_v48 = vld [vmem:[%s11747_s0 + $0x1d8] sm:$0xff]  }
  0x10   :  { %v7307_v49 = vld [vmem:[%s11747_s0 + $0xd8] sm:$0xff]   ;;  %v7308_v50 = vld [vmem:[%s11747_s0 + $0xe0] sm:$0xff]   ;;  %v7341_v52 = vld [vmem:[%s11747_s0 + $0x1e8] sm:$0xff]  }
  0x11   :  { %v7340_v51 = vld [vmem:[%s11747_s0 + $0x1e0] sm:$0xff]   ;;  %v7309_v53 = vld [vmem:[%s11747_s0 + $0xe8] sm:$0xff]   ;;  %v7310_v54 = vld [vmem:[%s11747_s0 + $0xf0] sm:$0xff]  }
  0x12   :  { %7105 = vmatmul.mubr.msk.bf16.gmra.mrb[4].mxu0 %vm645_vm2, %v7283_v9  ;;  %7193 = vmatmul.mubr.msk.bf16.gmra.mrb[4].mxu1 %vm645_vm2, %v7327_v24  ;;  %v7342_v55 = vld [vmem:[%s11747_s0 + $0x1f0] sm:$0xff]   ;;  %v7343_v56 = vld [vmem:[%s11747_s0 + $0x1f8] sm:$0xff]   ;;  %v7312_v58 = vld [vmem:[%s11747_s0 + $0x100] sm:$0xff]  }
  0x13   :  { %7108 = vmatprep.mubr.msk.bf16.mxu0 %vm645_vm2, %v7284_v10  ;;  %7196 = vmatprep.mubr.msk.bf16.mxu1 %vm645_vm2, %v7328_v25  ;;  %v7311_v57 = vld [vmem:[%s11747_s0 + $0xf8] sm:$0xff]   ;;  %v7344_v59 = vld [vmem:[%s11747_s0 + $0x200] sm:$0xff]   ;;  %v7345_v60 = vld [vmem:[%s11747_s0 + $0x208] sm:$0xff]  }
  0x14   :  { %v7313_v61 = vld [vmem:[%s11747_s0 + $0x108] sm:$0xff]   ;;  %v7314_v62 = vld [vmem:[%s11747_s0 + $0x110] sm:$0xff]   ;;  %v7315_v63 = vld [vmem:[%s11747_s0 + $0x118] sm:$0xff]  }
  0x15   :  { %v7346_v0 = vld [vmem:[%s11747_s0 + $0x210] sm:$0xff]   ;;  %v7316_v1 = vld [vmem:[%s11747_s0 + $0x120] sm:$0xff]   ;;  %v7347_v2 = vld [vmem:[%s11747_s0 + $0x218] sm:$0xff]  }
  0x16   :  { %v7317_v3 = vld [vmem:[%s11747_s0 + $0x128] sm:$0xff]   ;;  %v7348_v4 = vld [vmem:[%s11747_s0 + $0x220] sm:$0xff]   ;;  %v7318_v5 = vld [vmem:[%s11747_s0 + $0x130] sm:$0xff]  }
  0x17   :  { %v7349_v6 = vld [vmem:[%s11747_s0 + $0x228] sm:$0xff]   ;;  %v7319_v7 = vld [vmem:[%s11747_s0 + $0x138] sm:$0xff]   ;;  %v7350_v8 = vld [vmem:[%s11747_s0 + $0x230] sm:$0xff]  }
  0x18   :  { %v7320_v9 = vld [vmem:[%s11747_s0 + $0x140] sm:$0xff]   ;;  %v7351_v10 = vld [vmem:[%s11747_s0 + $0x238] sm:$0xff]   ;;  %v7357_v19 = vld [vmem:[%s11747_s0 + $0x268] sm:$0xff]  }
  0x19   :  { %v7358_v20 = vld [vmem:[%s11747_s0 + $0x270] sm:$0xff]   ;;  %v7359_v21 = vld [vmem:[%s11747_s0 + $0x278] sm:$0xff]  }
  0x1a   :  { %7109 = vmatmul.mubr.msk.bf16.gmra.mrb[8].mxu0 %vm645_vm2, %v7285_v11  ;;  %7197 = vmatmul.mubr.msk.bf16.gmra.mrb[8].mxu1 %vm645_vm2, %v7329_v28  ;;  %v7321_v11 = vld [vmem:[%s11747_s0 + $0x148] sm:$0xff]   ;;  %v7362_v24 = vld [vmem:[%s11747_s0 + $0x290] sm:$0xff]   ;;  %v7363_v25 = vld [vmem:[%s11747_s0 + $0x298] sm:$0xff]  }
  0x1b   :  { %7112 = vmatprep.mubr.msk.bf16.mxu0 %vm645_vm2, %v7286_v12  ;;  %7200 = vmatprep.mubr.msk.bf16.mxu1 %vm645_vm2, %v7330_v29  ;;  %v7352_v12 = vld [vmem:[%s11747_s0 + $0x240] sm:$0xff]  }
  0x1c   :  { %v7754_v28 = vld [vmem:[%s11748_s2] ss:$0 sm:$0xff] }
  0x22   :  { %7113 = vmatmul.mubr.msk.bf16.gmra.mrb[12].mxu0 %vm645_vm2, %v7287_v13  ;;  %7201 = vmatmul.mubr.msk.bf16.gmra.mrb[12].mxu1 %vm645_vm2, %v7331_v32  ;;  %v7322_v13 = vld [vmem:[%s11747_s0 + $0x150] sm:$0xff]  }
  0x23   :  { %7116 = vmatprep.mubr.msk.bf16.mxu0 %vm645_vm2, %v7288_v14  ;;  %7204 = vmatprep.mubr.msk.bf16.mxu1 %vm645_vm2, %v7332_v33  ;;  %v7353_v14 = vld [vmem:[%s11747_s0 + $0x248] sm:$0xff]  }
  0x2a   :  { %7117 = vmatmul.mubr.msk.bf16.gmra.mrb[16].mxu0 %vm645_vm2, %v7289_v15  ;;  %7205 = vmatmul.mubr.msk.bf16.gmra.mrb[16].mxu1 %vm645_vm2, %v7333_v36  ;;  %v7323_v15 = vld [vmem:[%s11747_s0 + $0x158] sm:$0xff]  }
  0x2b   :  { %7120 = vmatprep.mubr.msk.bf16.mxu0 %vm645_vm2, %v7290_v16  ;;  %7208 = vmatprep.mubr.msk.bf16.mxu1 %vm645_vm2, %v7334_v39  ;;  %v7354_v16 = vld [vmem:[%s11747_s0 + $0x250] sm:$0xff]  }
  0x32   :  { %7121 = vmatmul.mubr.msk.bf16.gmra.mrb[20].mxu0 %vm645_vm2, %v7291_v17  ;;  %7209 = vmatmul.mubr.msk.bf16.gmra.mrb[20].mxu1 %vm645_vm2, %v7335_v40  ;;  %v7355_v17 = vld [vmem:[%s11747_s0 + $0x258] sm:$0xff]  }
  0x33   :  { %7124 = vmatprep.mubr.msk.bf16.mxu0 %vm645_vm2, %v7292_v18  ;;  %7212 = vmatprep.mubr.msk.bf16.mxu1 %vm645_vm2, %v7336_v43  ;;  %v7356_v18 = vld [vmem:[%s11747_s0 + $0x260] sm:$0xff]  }
  0x3a   :  { %7125 = vmatmul.mubr.msk.bf16.gmra.mrb[24].mxu0 %vm645_vm2, %v7293_v22  ;;  %7213 = vmatmul.mubr.msk.bf16.gmra.mrb[24].mxu1 %vm645_vm2, %v7337_v44  ;;  %v7360_v22 = vld [vmem:[%s11747_s0 + $0x280] sm:$0xff]  }
  0x3b   :  { %7128 = vmatprep.mubr.msk.bf16.mxu0 %vm645_vm2, %v7294_v23  ;;  %7216 = vmatprep.mubr.msk.bf16.mxu1 %vm645_vm2, %v7338_v47  ;;  %v7361_v23 = vld [vmem:[%s11747_s0 + $0x288] sm:$0xff]  }
  0x42   :  { %7129 = vmatmul.mubr.msk.bf16.gmra.mrb[28].mxu0 %vm645_vm2, %v7295_v26  ;;  %7217 = vmatmul.mubr.msk.bf16.gmra.mrb[28].mxu1 %vm645_vm2, %v7339_v48  ;;  %v7364_v26 = vld [vmem:[%s11747_s0 + $0x2a0] sm:$0xff]  }
  0x43   :  { %7132 = vmatprep.mubr.msk.bf16.mxu0 %vm645_vm2, %v7296_v27  ;;  %7220 = vmatprep.mubr.msk.bf16.mxu1 %vm645_vm2, %v7340_v51  ;;  %v7365_v27 = vld [vmem:[%s11747_s0 + $0x2a8] sm:$0xff]  }
  0x4a   :  { %7133 = vmatmul.mubr.msk.bf16.gmra.mrb[32].mxu0 %vm645_vm2, %v7297_v30  ;;  %7221 = vmatmul.mubr.msk.bf16.gmra.mrb[32].mxu1 %vm645_vm2, %v7341_v52 }
  0x4b   :  { %7136 = vmatprep.mubr.msk.bf16.mxu0 %vm645_vm2, %v7298_v31  ;;  %7224 = vmatprep.mubr.msk.bf16.mxu1 %vm645_vm2, %v7342_v55 }
  0x52   :  { %7137 = vmatmul.mubr.msk.bf16.gmra.mrb[36].mxu0 %vm645_vm2, %v7299_v34  ;;  %7225 = vmatmul.mubr.msk.bf16.gmra.mrb[36].mxu1 %vm645_vm2, %v7343_v56 }
  0x53   :  { %7140 = vmatprep.mubr.msk.bf16.mxu0 %vm645_vm2, %v7300_v35  ;;  %7228 = vmatprep.mubr.msk.bf16.mxu1 %vm645_vm2, %v7344_v59 }
  0x5a   :  { %7141 = vmatmul.mubr.msk.bf16.gmra.mrb[40].mxu0 %vm645_vm2, %v7301_v37  ;;  %7229 = vmatmul.mubr.msk.bf16.gmra.mrb[40].mxu1 %vm645_vm2, %v7345_v60 }
  0x5b   :  { %7144 = vmatprep.mubr.msk.bf16.mxu0 %vm645_vm2, %v7302_v38  ;;  %7232 = vmatprep.mubr.msk.bf16.mxu1 %vm645_vm2, %v7346_v0 }
  0x62   :  { %7145 = vmatmul.mubr.msk.bf16.gmra.mrb[44].mxu0 %vm645_vm2, %v7303_v41  ;;  %7233 = vmatmul.mubr.msk.bf16.gmra.mrb[44].mxu1 %vm645_vm2, %v7347_v2 }
  0x63   :  { %7148 = vmatprep.mubr.msk.bf16.mxu0 %vm645_vm2, %v7304_v42  ;;  %7236 = vmatprep.mubr.msk.bf16.mxu1 %vm645_vm2, %v7348_v4 }
  0x6a   :  { %7149 = vmatmul.mubr.msk.bf16.gmra.mrb[48].mxu0 %vm645_vm2, %v7305_v45  ;;  %7237 = vmatmul.mubr.msk.bf16.gmra.mrb[48].mxu1 %vm645_vm2, %v7349_v6 }
  0x6b   :  { %7152 = vmatprep.mubr.msk.bf16.mxu0 %vm645_vm2, %v7306_v46  ;;  %7240 = vmatprep.mubr.msk.bf16.mxu1 %vm645_vm2, %v7350_v8 }
  0x72   :  { %7153 = vmatmul.mubr.msk.bf16.gmra.mrb[52].mxu0 %vm645_vm2, %v7307_v49  ;;  %7241 = vmatmul.mubr.msk.bf16.gmra.mrb[52].mxu1 %vm645_vm2, %v7351_v10 }
  0x73   :  { %7156 = vmatprep.mubr.msk.bf16.mxu0 %vm645_vm2, %v7308_v50  ;;  %7244 = vmatprep.mubr.msk.bf16.mxu1 %vm645_vm2, %v7352_v12 }
  0x7a   :  { %7157 = vmatmul.mubr.msk.bf16.gmra.mrb[56].mxu0 %vm645_vm2, %v7309_v53  ;;  %7245 = vmatmul.mubr.msk.bf16.gmra.mrb[56].mxu1 %vm645_vm2, %v7353_v14 }
  0x7b   :  { %7160 = vmatprep.mubr.msk.bf16.mxu0 %vm645_vm2, %v7310_v54  ;;  %7248 = vmatprep.mubr.msk.bf16.mxu1 %vm645_vm2, %v7354_v16 }
  0x82   :  { %7161 = vmatmul.mubr.msk.bf16.gmra.mrb[60].mxu0 %vm645_vm2, %v7311_v57  ;;  %7249 = vmatmul.mubr.msk.bf16.gmra.mrb[60].mxu1 %vm645_vm2, %v7355_v17 }
  0x83   :  { %7164 = vmatprep.mubr.msk.bf16.mxu0 %vm645_vm2, %v7312_v58  ;;  %7252 = vmatprep.mubr.msk.bf16.mxu1 %vm645_vm2, %v7356_v18 }
  0x8a   :  { %7165 = vmatmul.mubr.msk.bf16.gmra.mrb[64].mxu0 %vm645_vm2, %v7313_v61  ;;  %7253 = vmatmul.mubr.msk.bf16.gmra.mrb[64].mxu1 %vm645_vm2, %v7357_v19 }
  0x8b   :  { %7168 = vmatprep.mubr.msk.bf16.mxu0 %vm645_vm2, %v7314_v62  ;;  %7256 = vmatprep.mubr.msk.bf16.mxu1 %vm645_vm2, %v7358_v20 }
  0x92   :  { %7169 = vmatmul.mubr.msk.bf16.gmra.mrb[68].mxu0 %vm645_vm2, %v7315_v63  ;;  %7257 = vmatmul.mubr.msk.bf16.gmra.mrb[68].mxu1 %vm645_vm2, %v7359_v21 }
  0x93   :  { %7172 = vmatprep.mubr.msk.bf16.mxu0 %vm645_vm2, %v7316_v1  ;;  %7260 = vmatprep.mubr.msk.bf16.mxu1 %vm645_vm2, %v7360_v22 }
  0x9a   :  { %7173 = vmatmul.mubr.msk.bf16.gmra.mrb[72].mxu0 %vm645_vm2, %v7317_v3  ;;  %7261 = vmatmul.mubr.msk.bf16.gmra.mrb[72].mxu1 %vm645_vm2, %v7361_v23 }
  0x9b   :  { %7176 = vmatprep.mubr.msk.bf16.mxu0 %vm645_vm2, %v7318_v5  ;;  %7264 = vmatprep.mubr.msk.bf16.mxu1 %vm645_vm2, %v7362_v24 }
  0xa2   :  { %7177 = vmatmul.mubr.msk.bf16.gmra.mrb[76].mxu0 %vm645_vm2, %v7319_v7  ;;  %7265 = vmatmul.mubr.msk.bf16.gmra.mrb[76].mxu1 %vm645_vm2, %v7363_v25 }
  0xa3   :  { %7180 = vmatprep.mubr.msk.bf16.mxu0 %vm645_vm2, %v7320_v9  ;;  %7268 = vmatprep.mubr.msk.bf16.mxu1 %vm645_vm2, %v7364_v26 }
  0xaa   :  { %7181 = vmatmul.mubr.msk.bf16.gmra.mrb[80].mxu0 %vm645_vm2, %v7321_v11  ;;  %7269 = vmatmul.mubr.msk.bf16.gmra.mrb[80].mxu1 %vm645_vm2, %v7365_v27 }
  0xab   :  { %7184 = vmatprep.mubr.msk.bf16.mxu0 %vm645_vm2, %v7322_v13 }
  0xb2   :  { %7185 = vmatmul.mubr.msk.bf16.gmra.mrb[84].mxu0 %vm645_vm2, %v7323_v15 }
  0xdd   :  { %v7102_v29 = vpop.f32.mrb[0].mxu0 }
  0xde   :  { %v945_v30 = vpop.f32.mrb[1].mxu0  ;;  %v7760_v34 = vadd.f32 %v7102_v29, %v7754_v28 }
  0xdf   :  { %v7757_v31 = vadd.f32 %v7754_v28, %v945_v30  ;;  %v7103_v32 = vpop.f32.mrb[2].mxu0 }
  0xe0   :  { %v948_v33 = vpop.f32.mrb[3].mxu0  ;;  %12184 = vst [vmem:[#allocation3_spill] sm:$0xff] %v7760_v34  ;;  %v7768_v37 = vadd.f32 %v7103_v32, %v7754_v28  ;;  %v4905_v40 = vsel %vm4901_vm3, %v7760_v34, 0.0 }
  0xe1   :  { %12183 = vst [vmem:[#allocation2_spill] sm:$0xff] %v7757_v31  ;;  %v7763_v35 = vadd.f32 %v7754_v28, %v948_v33  ;;  %v4902_v36 = vsel %vm4901_vm3, %v7757_v31, 0.0 }
  0xe2   :  { %12186 = vst [vmem:[#allocation5_spill] sm:$0xff] %v7768_v37  ;;  %v4907_v44 = vsel %vm4901_vm3, %v7768_v37, 0.0 }
  0xe3   :  { %12185 = vst [vmem:[#allocation4_spill] sm:$0xff] %v7763_v35  ;;  %v4903_v38 = vsel %vm4901_vm3, %v7763_v35, 0.0 }
  0xe4   :  { %v4904_v39 = vadd.f32 %v4903_v38, %v4902_v36 }
  0xe5   :  { %v7106_v41 = vpop.f32.mrb[4].mxu0 }
  0xe6   :  { %v4906_v42 = vadd.f32 %v4905_v40, %v4904_v39  ;;  %v961_v43 = vpop.f32.mrb[5].mxu0  ;;  %v7780_v49 = vadd.f32 %v7106_v41, %v7754_v28 }
  0xe7   :  { %v7777_v45 = vadd.f32 %v7754_v28, %v961_v43  ;;  %v7107_v46 = vpop.f32.mrb[6].mxu0 }
  0xe8   :  { %v4908_v47 = vadd.f32 %v4907_v44, %v4906_v42  ;;  %v964_v48 = vpop.f32.mrb[7].mxu0  ;;  %12188 = vst [vmem:[#allocation7_spill] sm:$0xff] %v7780_v49  ;;  %v7788_v53 = vadd.f32 %v7107_v46, %v7754_v28  ;;  %v4913_v56 = vsel %vm4901_vm3, %v7780_v49, 0.0 }
  0xe9   :  { %12187 = vst [vmem:[#allocation6_spill] sm:$0xff] %v7777_v45  ;;  %v4909_v50 = vsel %vm4901_vm3, %v7777_v45, 0.0  ;;  %v7785_v51 = vadd.f32 %v7754_v28, %v964_v48 }
  0xea   :  { %v4910_v52 = vadd.f32 %v4909_v50, %v4908_v47  ;;  %12190 = vst [vmem:[#allocation9_spill] sm:$0xff] %v7788_v53  ;;  %v4915_v60 = vsel %vm4901_vm3, %v7788_v53, 0.0 }
  0xeb   :  { %12189 = vst [vmem:[#allocation8_spill] sm:$0xff] %v7785_v51  ;;  %v4911_v54 = vsel %vm4901_vm3, %v7785_v51, 0.0 }
  0xec   :  { %v4912_v55 = vadd.f32 %v4911_v54, %v4910_v52 }
  0xed   :  { %v7110_v57 = vpop.f32.mrb[8].mxu0 }
  0xee   :  { %v4914_v58 = vadd.f32 %v4913_v56, %v4912_v55  ;;  %v977_v59 = vpop.f32.mrb[9].mxu0  ;;  %v7800_v1 = vadd.f32 %v7110_v57, %v7754_v28 }
  0xef   :  { %v7797_v61 = vadd.f32 %v7754_v28, %v977_v59  ;;  %v7111_v62 = vpop.f32.mrb[10].mxu0 }
  0xf0   :  { %v4916_v63 = vadd.f32 %v4915_v60, %v4914_v58  ;;  %v980_v0 = vpop.f32.mrb[11].mxu0  ;;  %12192 = vst [vmem:[#allocation11_spill] sm:$0xff] %v7800_v1  ;;  %v7808_v5 = vadd.f32 %v7111_v62, %v7754_v28  ;;  %v4921_v8 = vsel %vm4901_vm3, %v7800_v1, 0.0 }
  0xf1   :  { %12191 = vst [vmem:[#allocation10_spill] sm:$0xff] %v7797_v61  ;;  %v4917_v2 = vsel %vm4901_vm3, %v7797_v61, 0.0  ;;  %v7805_v3 = vadd.f32 %v7754_v28, %v980_v0 }
  0xf2   :  { %v4918_v4 = vadd.f32 %v4917_v2, %v4916_v63  ;;  %12194 = vst [vmem:[#allocation13_spill] sm:$0xff] %v7808_v5  ;;  %v4923_v12 = vsel %vm4901_vm3, %v7808_v5, 0.0  ;;  %v7867_v63 = vpop.f32.mrb[0].mxu1 }
  0xf3   :  { %12193 = vst [vmem:[#allocation12_spill] sm:$0xff] %v7805_v3  ;;  %v4919_v6 = vsel %vm4901_vm3, %v7805_v3, 0.0 }
  0xf4   :  { %v4920_v7 = vadd.f32 %v4919_v6, %v4918_v4  ;;  %v7874_v4 = vpop.f32.mrb[1].mxu1 }
  0xf5   :  { %v7114_v9 = vpop.f32.mrb[12].mxu0 }
  0xf6   :  { %v4922_v10 = vadd.f32 %v4921_v8, %v4920_v7  ;;  %v993_v11 = vpop.f32.mrb[13].mxu0  ;;  %v7820_v17 = vadd.f32 %v7114_v9, %v7754_v28  ;;  %v7876_v7 = vpop.f32.mrb[2].mxu1 }
  0xf7   :  { %v7817_v13 = vadd.f32 %v7754_v28, %v993_v11  ;;  %v7115_v14 = vpop.f32.mrb[14].mxu0 }
  0xf8   :  { %v4924_v15 = vadd.f32 %v4923_v12, %v4922_v10  ;;  %v996_v16 = vpop.f32.mrb[15].mxu0  ;;  %12196 = vst [vmem:[#allocation15_spill] sm:$0xff] %v7820_v17  ;;  %v7828_v21 = vadd.f32 %v7115_v14, %v7754_v28  ;;  %v4929_v24 = vsel %vm4901_vm3, %v7820_v17, 0.0  ;;  %v7880_v10 = vpop.f32.mrb[3].mxu1 }
  0xf9   :  { %12195 = vst [vmem:[#allocation14_spill] sm:$0xff] %v7817_v13  ;;  %v4925_v18 = vsel %vm4901_vm3, %v7817_v13, 0.0  ;;  %v7825_v19 = vadd.f32 %v7754_v28, %v996_v16 }
  0xfa   :  { %v4926_v20 = vadd.f32 %v4925_v18, %v4924_v15  ;;  %12198 = vst [vmem:[#allocation17_spill] sm:$0xff] %v7828_v21  ;;  %v4931_v29 = vsel %vm4901_vm3, %v7828_v21, 0.0 }
  0xfb   :  { %12197 = vst [vmem:[#allocation16_spill] sm:$0xff] %v7825_v19  ;;  %v4927_v22 = vsel %vm4901_vm3, %v7825_v19, 0.0 }
  0xfc   :  { %v4928_v23 = vadd.f32 %v4927_v22, %v4926_v20 }
  0xfd   :  { %v7118_v25 = vpop.f32.mrb[16].mxu0 }
  0xfe   :  { %v4930_v26 = vadd.f32 %v4929_v24, %v4928_v23  ;;  %v1009_v27 = vpop.f32.mrb[17].mxu0  ;;  %v7840_v38 = vadd.f32 %v7118_v25, %v7754_v28 }
  0xff   :  { %v7837_v30 = vadd.f32 %v7754_v28, %v1009_v27  ;;  %v7119_v32 = vpop.f32.mrb[18].mxu0 }
 0x100   :  { %v4932_v33 = vadd.f32 %v4931_v29, %v4930_v26  ;;  %v1012_v36 = vpop.f32.mrb[19].mxu0  ;;  %12200 = vst [vmem:[#allocation19_spill] sm:$0xff] %v7840_v38  ;;  %v7848_v42 = vadd.f32 %v7119_v32, %v7754_v28  ;;  %v4937_v46 = vsel %vm4901_vm3, %v7840_v38, 0.0  ;;  %v7895_v26 = vpop.f32.mrb[4].mxu1 }
 0x101   :  { %12199 = vst [vmem:[#allocation18_spill] sm:$0xff] %v7837_v30  ;;  %v4933_v39 = vsel %vm4901_vm3, %v7837_v30, 0.0  ;;  %v7845_v40 = vadd.f32 %v7754_v28, %v1012_v36  ;;  %v7902_v32 = vpop.f32.mrb[5].mxu1 }
 0x102   :  { %v4934_v41 = vadd.f32 %v4933_v39, %v4932_v33  ;;  %12202 = vst [vmem:[#allocation21_spill] sm:$0xff] %v7848_v42  ;;  %v4939_v52 = vsel %vm4901_vm3, %v7848_v42, 0.0  ;;  %v7904_v36 = vpop.f32.mrb[6].mxu1 }
 0x103   :  { %12201 = vst [vmem:[#allocation20_spill] sm:$0xff] %v7845_v40  ;;  %v4935_v43 = vsel %vm4901_vm3, %v7845_v40, 0.0 }
 0x104   :  { %v4936_v44 = vadd.f32 %v4935_v43, %v4934_v41  ;;  %v7908_v43 = vpop.f32.mrb[7].mxu1 }
 0x105   :  { %v7122_v47 = vpop.f32.mrb[20].mxu0 }
 0x106   :  { %v4938_v48 = vadd.f32 %v4937_v46, %v4936_v44  ;;  %v1025_v50 = vpop.f32.mrb[21].mxu0  ;;  %v7860_v58 = vadd.f32 %v7122_v47, %v7754_v28 }
 0x107   :  { %v7857_v54 = vadd.f32 %v7754_v28, %v1025_v50  ;;  %v7123_v55 = vpop.f32.mrb[22].mxu0 }
 0x108   :  { %v4940_v56 = vadd.f32 %v4939_v52, %v4938_v48  ;;  %v1028_v57 = vpop.f32.mrb[23].mxu0  ;;  %12204 = vst [vmem:[#allocation23_spill] sm:$0xff] %v7860_v58  ;;  %v7870_v0 = vadd.f32 %v7123_v55, %v7754_v28  ;;  %v4945_v8 = vsel %vm4901_vm3, %v7860_v58, 0.0 }
 0x109   :  { %12203 = vst [vmem:[#allocation22_spill] sm:$0xff] %v7857_v54  ;;  %v4941_v59 = vsel %vm4901_vm3, %v7857_v54, 0.0  ;;  %v7865_v60 = vadd.f32 %v7754_v28, %v1028_v57 }
 0x10a   :  { %v4942_v62 = vadd.f32 %v4941_v59, %v4940_v56  ;;  %12206 = vst [vmem:[#allocation25_spill] sm:$0xff] %v7870_v0  ;;  %v4947_v14 = vsel %vm4901_vm3, %v7870_v0, 0.0 }
 0x10b   :  { %12205 = vst [vmem:[#allocation24_spill] sm:$0xff] %v7865_v60  ;;  %v4943_v2 = vsel %vm4901_vm3, %v7865_v60, 0.0 }
 0x10c   :  { %v4944_v6 = vadd.f32 %v4943_v2, %v4942_v62  ;;  %v7923_v2 = vpop.f32.mrb[8].mxu1 }
 0x10d   :  { %v7126_v9 = vpop.f32.mrb[24].mxu0 }
 0x10e   :  { %v4946_v11 = vadd.f32 %v4945_v8, %v4944_v6  ;;  %v1041_v12 = vpop.f32.mrb[25].mxu0  ;;  %v7888_v22 = vadd.f32 %v7126_v9, %v7754_v28  ;;  %v7930_v9 = vpop.f32.mrb[9].mxu1 }
 0x10f   :  { %v7885_v15 = vadd.f32 %v7754_v28, %v1041_v12  ;;  %v7127_v16 = vpop.f32.mrb[26].mxu0  ;;  %v7932_v12 = vpop.f32.mrb[10].mxu1 }
 0x110   :  { %v4948_v18 = vadd.f32 %v4947_v14, %v4946_v11  ;;  %v1044_v20 = vpop.f32.mrb[27].mxu0  ;;  %12208 = vst [vmem:[#allocation27_spill] sm:$0xff] %v7888_v22  ;;  %v7898_v27 = vadd.f32 %v7127_v16, %v7754_v28  ;;  %v4953_v39 = vsel %vm4901_vm3, %v7888_v22, 0.0 }
 0x111   :  { %12207 = vst [vmem:[#allocation26_spill] sm:$0xff] %v7885_v15  ;;  %v4949_v23 = vsel %vm4901_vm3, %v7885_v15, 0.0  ;;  %v7893_v24 = vadd.f32 %v7754_v28, %v1044_v20 }
 0x112   :  { %v4950_v25 = vadd.f32 %v4949_v23, %v4948_v18  ;;  %12210 = vst [vmem:[#allocation29_spill] sm:$0xff] %v7898_v27  ;;  %v4955_v47 = vsel %vm4901_vm3, %v7898_v27, 0.0  ;;  %v7936_v18 = vpop.f32.mrb[11].mxu1 }
 0x113   :  { %12209 = vst [vmem:[#allocation28_spill] sm:$0xff] %v7893_v24  ;;  %v4951_v29 = vsel %vm4901_vm3, %v7893_v24, 0.0 }
 0x114   :  { %v4952_v33 = vadd.f32 %v4951_v29, %v4950_v25 }
 0x115   :  { %v7130_v41 = vpop.f32.mrb[28].mxu0 }
 0x116   :  { %v4954_v44 = vadd.f32 %v4953_v39, %v4952_v33  ;;  %v1057_v46 = vpop.f32.mrb[29].mxu0  ;;  %v7916_v56 = vadd.f32 %v7130_v41, %v7754_v28  ;;  %v1632_v39 = vlaneseq }
 0x117   :  { %v7913_v48 = vadd.f32 %v7754_v28, %v1057_v46  ;;  %v7131_v50 = vpop.f32.mrb[30].mxu0 }
 0x118   :  { %v4956_v52 = vadd.f32 %v4955_v47, %v4954_v44  ;;  %v1060_v55 = vpop.f32.mrb[31].mxu0  ;;  %12212 = vst [vmem:[#allocation31_spill] sm:$0xff] %v7916_v56  ;;  %v7926_v6 = vadd.f32 %v7131_v50, %v7754_v28  ;;  %v4961_v14 = vsel %vm4901_vm3, %v7916_v56, 0.0 }
 0x119   :  { %12211 = vst [vmem:[#allocation30_spill] sm:$0xff] %v7913_v48  ;;  %v4957_v57 = vsel %vm4901_vm3, %v7913_v48, 0.0  ;;  %v7921_v59 = vadd.f32 %v7754_v28, %v1060_v55  ;;  %v7951_v55 = vpop.f32.mrb[12].mxu1 }
 0x11a   :  { %v4958_v62 = vadd.f32 %v4957_v57, %v4956_v52  ;;  %12214 = vst [vmem:[#allocation33_spill] sm:$0xff] %v7926_v6  ;;  %v4963_v25 = vsel %vm4901_vm3, %v7926_v6, 0.0 }
 0x11b   :  { %12213 = vst [vmem:[#allocation32_spill] sm:$0xff] %v7921_v59  ;;  %v4959_v8 = vsel %vm4901_vm3, %v7921_v59, 0.0 }
 0x11c   :  { %v4960_v11 = vadd.f32 %v4959_v8, %v4958_v62  ;;  %v7958_v8 = vshrl.u32 %v1632_v39, 7 }
 0x11d   :  { %v7134_v16 = vpop.f32.mrb[32].mxu0 }
 0x11e   :  { %v4962_v20 = vadd.f32 %v4961_v14, %v4960_v11  ;;  %v1073_v23 = vpop.f32.mrb[33].mxu0  ;;  %v7944_v46 = vadd.f32 %v7134_v16, %v7754_v28  ;;  %12219 = vst [vmem:[#allocation38_spill] sm:$0xff] %v7958_v8  ;;  %v7960_v11 = vpop.f32.mrb[13].mxu1 }
 0x11f   :  { %v7941_v29 = vadd.f32 %v7754_v28, %v1073_v23  ;;  %v7135_v33 = vpop.f32.mrb[34].mxu0  ;;  %v7962_v16 = vpop.f32.mrb[14].mxu1 }
 0x120   :  { %v4964_v41 = vadd.f32 %v4963_v25, %v4962_v20  ;;  %v1076_v44 = vpop.f32.mrb[35].mxu0  ;;  %12216 = vst [vmem:[#allocation35_spill] sm:$0xff] %v7944_v46  ;;  %v7954_v57 = vadd.f32 %v7135_v33, %v7754_v28  ;;  %v4969_v20 = vsel %vm4901_vm3, %v7944_v46, 0.0  ;;  %v7966_v25 = vpop.f32.mrb[15].mxu1 }
 0x121   :  { %12215 = vst [vmem:[#allocation34_spill] sm:$0xff] %v7941_v29  ;;  %v4965_v47 = vsel %vm4901_vm3, %v7941_v29, 0.0  ;;  %v7949_v50 = vadd.f32 %v7754_v28, %v1076_v44  ;;  %v7982_v6 = vpop.f32.mrb[16].mxu1 }
 0x122   :  { %v4966_v52 = vadd.f32 %v4965_v47, %v4964_v41  ;;  %12218 = vst [vmem:[#allocation37_spill] sm:$0xff] %v7954_v57  ;;  %v4971_v33 = vsel %vm4901_vm3, %v7954_v57, 0.0 }
 0x123   :  { %12217 = vst [vmem:[#allocation36_spill] sm:$0xff] %v7949_v50  ;;  %v4967_v62 = vsel %vm4901_vm3, %v7949_v50, 0.0  ;;  %v1675_v50 = vadd.s32 336, %v7958_v8 }
 0x124   :  { %v4968_v14 = vadd.f32 %v4967_v62, %v4966_v52 }
 0x125   :  { %v7138_v23 = vpop.f32.mrb[36].mxu0  ;;  %vm2019_vm4 = vcmp.lt.s32.totalorder %v1675_v50, 338 }
 0x126   :  { %v4970_v41 = vadd.f32 %v4969_v20, %v4968_v14  ;;  %v1089_v44 = vpop.f32.mrb[37].mxu0  ;;  %v7975_v29 = vadd.f32 %v7138_v23, %v7754_v28 }
 0x127   :  { %v7971_v47 = vadd.f32 %v7754_v28, %v1089_v44  ;;  %v7139_v39 = vpop.f32.mrb[38].mxu0 }
 0x128   :  { %v4972_v52 = vadd.f32 %v4971_v33, %v4970_v41  ;;  %v1092_v62 = vpop.f32.mrb[39].mxu0  ;;  %12221 = vst [vmem:[#allocation40_spill] sm:$0xff] %v7975_v29  ;;  %v7985_v44 = vadd.f32 %v7139_v39, %v7754_v28  ;;  %v7989_v41 = vpop.f32.mrb[17].mxu1  ;;  %v11774_v39 = vmov 0.0  }
 0x129   :  { %12220 = vst [vmem:[#allocation39_spill] sm:$0xff] %v7971_v47  ;;  %v4973_v46 = vsel %vm4901_vm3, %v7971_v47, 0.0  ;;  %v7980_v14 = vadd.f32 %v7754_v28, %v1092_v62  ;;  %v7991_v33 = vpop.f32.mrb[18].mxu1  ;;  %v4977_v47 = vsel %vm4901_vm3, %v7975_v29, 0.0  ;;  %v8001_v59 = vsel %vm2019_vm4, 1.0, %v11774_v39 }
 0x12a   :  { %v4974_v20 = vadd.f32 %v4973_v46, %v4972_v52  ;;  %12223 = vst [vmem:[#allocation42_spill] sm:$0xff] %v7985_v44  ;;  %v7995_v56 = vpop.f32.mrb[19].mxu1  ;;  %12225 = vst [vmem:[#allocation44_spill] sm:$0xff] %v8001_v59 }
 0x12b   :  { %12222 = vst [vmem:[#allocation41_spill] sm:$0xff] %v7980_v14  ;;  %v4975_v57 = vsel %vm4901_vm3, %v7980_v14, 0.0  ;;  %v8015_v27 = vpop.f32.mrb[20].mxu1 }
 0x12c   :  { %v4976_v23 = vadd.f32 %v4975_v57, %v4974_v20  ;;  %v4979_v57 = vsel %vm4901_vm3, %v7985_v44, 0.0 }
 0x12d   :  { %v7142_v62 = vpop.f32.mrb[40].mxu0 }
 0x12e   :  { %v4978_v46 = vadd.f32 %v4977_v47, %v4976_v23  ;;  %v7998_v52 = vadd.f32 %v7142_v62, %v7754_v28  ;;  %v1105_v50 = vpop.f32.mrb[41].mxu0 }
 0x12f   :  { %v8006_v20 = vadd.f32 %v7754_v28, %v1105_v50  ;;  %v7143_v14 = vpop.f32.mrb[42].mxu0 }
 0x130   :  { %12224 = vst [vmem:[#allocation43_spill] sm:$0xff] %v7998_v52  ;;  %v4980_v29 = vadd.f32 %v4979_v57, %v4978_v46  ;;  %v1108_v48 = vpop.f32.mrb[43].mxu0  ;;  %v4771_v47 = vmul.f32 %v8001_v59, %v7998_v52  ;;  %v8018_v44 = vadd.f32 %v7143_v14, %v7754_v28  ;;  %v8022_v46 = vpop.f32.mrb[21].mxu1 }
 0x131   :  { %12226 = vst [vmem:[#allocation45_spill] sm:$0xff] %v8006_v20  ;;  %v4981_v23 = vsel %vm4901_vm3, %v8006_v20, 0.0  ;;  %v8013_v62 = vadd.f32 %v7754_v28, %v1108_v48  ;;  %v8024_v22 = vpop.f32.mrb[22].mxu1 }
 0x132   :  { %v4982_v39 = vadd.f32 %v4981_v23, %v4980_v29  ;;  %12228 = vst [vmem:[#allocation47_spill] sm:$0xff] %v8018_v44  ;;  %v4985_v59 = vsel %vm4901_vm3, %v4771_v47, 0.0  ;;  %v8027_v20 = vpop.f32.mrb[23].mxu1  ;;  %v4987_v23 = vsel %vm4901_vm3, %v8018_v44, 0.0 }
 0x133   :  { %12227 = vst [vmem:[#allocation46_spill] sm:$0xff] %v8013_v62  ;;  %v4983_v50 = vsel %vm4901_vm3, %v8013_v62, 0.0 }
 0x134   :  { %v4984_v57 = vadd.f32 %v4983_v50, %v4982_v39 }
 0x135   :  { %v7146_v52 = vpop.f32.mrb[44].mxu0 }
 0x136   :  { %v4986_v48 = vadd.f32 %v4985_v59, %v4984_v57  ;;  %v1121_v29 = vpop.f32.mrb[45].mxu0  ;;  %v8035_v39 = vadd.f32 %v7146_v52, %v7754_v28  ;;  %v8042_v57 = vpop.f32.mrb[24].mxu1 }
 0x137   :  { %v8032_v14 = vadd.f32 %v7754_v28, %v1121_v29  ;;  %v7147_v24 = vpop.f32.mrb[46].mxu0 }
 0x138   :  { %v4988_v62 = vadd.f32 %v4987_v23, %v4986_v48  ;;  %v1124_v15 = vpop.f32.mrb[47].mxu0  ;;  %12230 = vst [vmem:[#allocation49_spill] sm:$0xff] %v8035_v39  ;;  %v8045_v44 = vadd.f32 %v7147_v24, %v7754_v28  ;;  %v8049_v48 = vpop.f32.mrb[25].mxu1 }
 0x139   :  { %12229 = vst [vmem:[#allocation48_spill] sm:$0xff] %v8032_v14  ;;  %v4989_v47 = vsel %vm4901_vm3, %v8032_v14, 0.0  ;;  %v8040_v50 = vadd.f32 %v7754_v28, %v1124_v15  ;;  %v8051_v52 = vpop.f32.mrb[26].mxu1  ;;  %v4993_v14 = vsel %vm4901_vm3, %v8035_v39, 0.0 }
 0x13a   :  { %v4990_v59 = vadd.f32 %v4989_v47, %v4988_v62  ;;  %12232 = vst [vmem:[#allocation51_spill] sm:$0xff] %v8045_v44  ;;  %v8055_v15 = vpop.f32.mrb[27].mxu1  ;;  %v4995_v24 = vsel %vm4901_vm3, %v8045_v44, 0.0 }
 0x13b   :  { %12231 = vst [vmem:[#allocation50_spill] sm:$0xff] %v8040_v50  ;;  %v4991_v29 = vsel %vm4901_vm3, %v8040_v50, 0.0 }
 0x13c   :  { %v4992_v23 = vadd.f32 %v4991_v29, %v4990_v59 }
 0x13d   :  { %v7150_v0 = vpop.f32.mrb[48].mxu0 }
 0x13e   :  { %v4994_v62 = vadd.f32 %v4993_v14, %v4992_v23  ;;  %v1137_v47 = vpop.f32.mrb[49].mxu0  ;;  %v8063_v59 = vadd.f32 %v7150_v0, %v7754_v28  ;;  %v8070_v23 = vpop.f32.mrb[28].mxu1 }
 0x13f   :  { %v8060_v58 = vadd.f32 %v7754_v28, %v1137_v47  ;;  %v7151_v50 = vpop.f32.mrb[50].mxu0 }
 0x140   :  { %v4996_v60 = vadd.f32 %v4995_v24, %v4994_v62  ;;  %v1140_v54 = vpop.f32.mrb[51].mxu0  ;;  %12234 = vst [vmem:[#allocation53_spill] sm:$0xff] %v8063_v59  ;;  %v8073_v44 = vadd.f32 %v7151_v50, %v7754_v28  ;;  %v8077_v62 = vpop.f32.mrb[29].mxu1 }
 0x141   :  { %12233 = vst [vmem:[#allocation52_spill] sm:$0xff] %v8060_v58  ;;  %v4997_v29 = vsel %vm4901_vm3, %v8060_v58, 0.0  ;;  %v8068_v39 = vadd.f32 %v7754_v28, %v1140_v54  ;;  %v8079_v0 = vpop.f32.mrb[30].mxu1  ;;  %v5001_v58 = vsel %vm4901_vm3, %v8063_v59, 0.0 }
 0x142   :  { %v4998_v14 = vadd.f32 %v4997_v29, %v4996_v60  ;;  %12236 = vst [vmem:[#allocation55_spill] sm:$0xff] %v8073_v44  ;;  %v8083_v54 = vpop.f32.mrb[31].mxu1  ;;  %v5003_v50 = vsel %vm4901_vm3, %v8073_v44, 0.0 }
 0x143   :  { %12235 = vst [vmem:[#allocation54_spill] sm:$0xff] %v8068_v39  ;;  %v4999_v47 = vsel %vm4901_vm3, %v8068_v39, 0.0 }
 0x144   :  { %v5000_v24 = vadd.f32 %v4999_v47, %v4998_v14 }
 0x145   :  { %v7154_v42 = vpop.f32.mrb[52].mxu0 }
 0x146   :  { %v5002_v60 = vadd.f32 %v5001_v58, %v5000_v24  ;;  %v1153_v29 = vpop.f32.mrb[53].mxu0  ;;  %v8091_v14 = vadd.f32 %v7154_v42, %v7754_v28  ;;  %v8098_v24 = vpop.f32.mrb[32].mxu1 }
 0x147   :  { %v8088_v38 = vadd.f32 %v7754_v28, %v1153_v29  ;;  %v7155_v39 = vpop.f32.mrb[54].mxu0 }
 0x148   :  { %v5004_v40 = vadd.f32 %v5003_v50, %v5002_v60  ;;  %v1156_v30 = vpop.f32.mrb[55].mxu0  ;;  %12238 = vst [vmem:[#allocation57_spill] sm:$0xff] %v8091_v14  ;;  %v8101_v44 = vadd.f32 %v7155_v39, %v7754_v28  ;;  %v8105_v60 = vpop.f32.mrb[33].mxu1 }
 0x149   :  { %12237 = vst [vmem:[#allocation56_spill] sm:$0xff] %v8088_v38  ;;  %v5005_v47 = vsel %vm4901_vm3, %v8088_v38, 0.0  ;;  %v8096_v59 = vadd.f32 %v7754_v28, %v1156_v30  ;;  %v8107_v42 = vpop.f32.mrb[34].mxu1  ;;  %v5009_v38 = vsel %vm4901_vm3, %v8091_v14, 0.0 }
 0x14a   :  { %v5006_v58 = vadd.f32 %v5005_v47, %v5004_v40  ;;  %12240 = vst [vmem:[#allocation59_spill] sm:$0xff] %v8101_v44  ;;  %v8111_v30 = vpop.f32.mrb[35].mxu1  ;;  %v5011_v39 = vsel %vm4901_vm3, %v8101_v44, 0.0 }
 0x14b   :  { %12239 = vst [vmem:[#allocation58_spill] sm:$0xff] %v8096_v59  ;;  %v5007_v29 = vsel %vm4901_vm3, %v8096_v59, 0.0 }
 0x14c   :  { %v5008_v50 = vadd.f32 %v5007_v29, %v5006_v58 }
 0x14d   :  { %v7158_v21 = vpop.f32.mrb[56].mxu0 }
 0x14e   :  { %v5010_v40 = vadd.f32 %v5009_v38, %v5008_v50  ;;  %v1169_v47 = vpop.f32.mrb[57].mxu0  ;;  %v8119_v58 = vadd.f32 %v7158_v21, %v7754_v28  ;;  %v8126_v50 = vpop.f32.mrb[36].mxu1 }
 0x14f   :  { %v8116_v17 = vadd.f32 %v7754_v28, %v1169_v47  ;;  %v7159_v59 = vpop.f32.mrb[58].mxu0 }
 0x150   :  { %v5012_v19 = vadd.f32 %v5011_v39, %v5010_v40  ;;  %v1172_v13 = vpop.f32.mrb[59].mxu0  ;;  %12242 = vst [vmem:[#allocation61_spill] sm:$0xff] %v8119_v58  ;;  %v8129_v44 = vadd.f32 %v7159_v59, %v7754_v28  ;;  %v8133_v40 = vpop.f32.mrb[37].mxu1 }
 0x151   :  { %12241 = vst [vmem:[#allocation60_spill] sm:$0xff] %v8116_v17  ;;  %v5013_v29 = vsel %vm4901_vm3, %v8116_v17, 0.0  ;;  %v8124_v14 = vadd.f32 %v7754_v28, %v1172_v13  ;;  %v8135_v21 = vpop.f32.mrb[38].mxu1  ;;  %v5017_v17 = vsel %vm4901_vm3, %v8119_v58, 0.0 }
 0x152   :  { %v5014_v38 = vadd.f32 %v5013_v29, %v5012_v19  ;;  %12244 = vst [vmem:[#allocation63_spill] sm:$0xff] %v8129_v44  ;;  %v8139_v13 = vpop.f32.mrb[39].mxu1  ;;  %v5019_v59 = vsel %vm4901_vm3, %v8129_v44, 0.0 }
 0x153   :  { %12243 = vst [vmem:[#allocation62_spill] sm:$0xff] %v8124_v14  ;;  %v5015_v47 = vsel %vm4901_vm3, %v8124_v14, 0.0 }
 0x154   :  { %v5016_v39 = vadd.f32 %v5015_v47, %v5014_v38 }
 0x155   :  { %v7162_v5 = vpop.f32.mrb[60].mxu0 }
 0x156   :  { %v5018_v19 = vadd.f32 %v5017_v17, %v5016_v39  ;;  %v1185_v29 = vpop.f32.mrb[61].mxu0  ;;  %v8147_v38 = vadd.f32 %v7162_v5, %v7754_v28  ;;  %v8154_v39 = vpop.f32.mrb[40].mxu1 }
 0x157   :  { %v8144_v1 = vadd.f32 %v7754_v28, %v1185_v29  ;;  %v7163_v14 = vpop.f32.mrb[62].mxu0 }
 0x158   :  { %v5020_v3 = vadd.f32 %v5019_v59, %v5018_v19  ;;  %v1188_v61 = vpop.f32.mrb[63].mxu0  ;;  %12246 = vst [vmem:[#allocation65_spill] sm:$0xff] %v8147_v38  ;;  %v8157_v44 = vadd.f32 %v7163_v14, %v7754_v28  ;;  %v8161_v19 = vpop.f32.mrb[41].mxu1 }
 0x159   :  { %12245 = vst [vmem:[#allocation64_spill] sm:$0xff] %v8144_v1  ;;  %v5021_v47 = vsel %vm4901_vm3, %v8144_v1, 0.0  ;;  %v8152_v58 = vadd.f32 %v7754_v28, %v1188_v61  ;;  %v8163_v5 = vpop.f32.mrb[42].mxu1  ;;  %v5025_v1 = vsel %vm4901_vm3, %v8147_v38, 0.0 }
 0x15a   :  { %v5022_v17 = vadd.f32 %v5021_v47, %v5020_v3  ;;  %12248 = vst [vmem:[#allocation67_spill] sm:$0xff] %v8157_v44  ;;  %v8167_v61 = vpop.f32.mrb[43].mxu1  ;;  %v5027_v14 = vsel %vm4901_vm3, %v8157_v44, 0.0 }
 0x15b   :  { %12247 = vst [vmem:[#allocation66_spill] sm:$0xff] %v8152_v58  ;;  %v5023_v29 = vsel %vm4901_vm3, %v8152_v58, 0.0  ;;  %v8187_v37 = vpop.f32.mrb[44].mxu1 }
 0x15c   :  { %v5024_v59 = vadd.f32 %v5023_v29, %v5022_v17  ;;  %12253 = vst [vmem:[#allocation72_spill] sm:$0xff] %v8187_v37 }
 0x15d   :  { %v7166_v53 = vpop.f32.mrb[64].mxu0 }
 0x15e   :  { %v5026_v3 = vadd.f32 %v5025_v1, %v5024_v59  ;;  %v1201_v47 = vpop.f32.mrb[65].mxu0  ;;  %v8175_v17 = vadd.f32 %v7166_v53, %v7754_v28 }
 0x15f   :  { %v8172_v49 = vadd.f32 %v7754_v28, %v1201_v47  ;;  %v7167_v58 = vpop.f32.mrb[66].mxu0 }
 0x160   :  { %v5028_v51 = vadd.f32 %v5027_v14, %v5026_v3  ;;  %v1204_v45 = vpop.f32.mrb[67].mxu0  ;;  %12250 = vst [vmem:[#allocation69_spill] sm:$0xff] %v8175_v17  ;;  %v8183_v59 = vadd.f32 %v7167_v58, %v7754_v28  ;;  %v5033_v53 = vsel %vm4901_vm3, %v8175_v17, 0.0  ;;  %v8191_v14 = vpop.f32.mrb[45].mxu1 }
 0x161   :  { %12249 = vst [vmem:[#allocation68_spill] sm:$0xff] %v8172_v49  ;;  %v5029_v29 = vsel %vm4901_vm3, %v8172_v49, 0.0  ;;  %v8180_v38 = vadd.f32 %v7754_v28, %v1204_v45  ;;  %v8193_v45 = vpop.f32.mrb[46].mxu1 }
 0x162   :  { %v5030_v1 = vadd.f32 %v5029_v29, %v5028_v51  ;;  %12252 = vst [vmem:[#allocation71_spill] sm:$0xff] %v8183_v59  ;;  %12254 = vst [vmem:[#allocation73_spill] sm:$0xff] %v8193_v45  ;;  %v5035_v51 = vsel %vm4901_vm3, %v8183_v59, 0.0 }
 0x163   :  { %12251 = vst [vmem:[#allocation70_spill] sm:$0xff] %v8180_v38  ;;  %v5031_v47 = vsel %vm4901_vm3, %v8180_v38, 0.0 }
 0x164   :  { %v5032_v44 = vadd.f32 %v5031_v47, %v5030_v1  ;;  %v8200_v1 = vpop.f32.mrb[47].mxu1 }
 0x165   :  { %v7170_v3 = vpop.f32.mrb[68].mxu0  ;;  %12256 = vst [vmem:[#allocation75_spill] sm:$0xff] %v8200_v1  ;;  %v8215_v45 = vpop.f32.mrb[48].mxu1 }
 0x166   :  { %v5034_v49 = vadd.f32 %v5033_v53, %v5032_v44  ;;  %v1217_v34 = vpop.f32.mrb[69].mxu0  ;;  %v8203_v17 = vadd.f32 %v7170_v3, %v7754_v28  ;;  %12260 = vst [vmem:[#allocation79_spill] sm:$0xff] %v8215_v45 }
 0x167   :  { %v8198_v58 = vadd.f32 %v7754_v28, %v1217_v34  ;;  %v7171_v29 = vpop.f32.mrb[70].mxu0 }
 0x168   :  { %v5036_v47 = vadd.f32 %v5035_v51, %v5034_v49  ;;  %v1220_v38 = vpop.f32.mrb[71].mxu0  ;;  %12257 = vst [vmem:[#allocation76_spill] sm:$0xff] %v8203_v17  ;;  %v8211_v59 = vadd.f32 %v7171_v29, %v7754_v28  ;;  %v5041_v49 = vsel %vm4901_vm3, %v8203_v17, 0.0  ;;  %v8219_v51 = vpop.f32.mrb[49].mxu1 }
 0x169   :  { %12255 = vst [vmem:[#allocation74_spill] sm:$0xff] %v8198_v58  ;;  %v5037_v44 = vsel %vm4901_vm3, %v8198_v58, 0.0  ;;  %v8208_v53 = vadd.f32 %v7754_v28, %v1220_v38  ;;  %12261 = vst [vmem:[#allocation80_spill] sm:$0xff] %v8219_v51  ;;  %v8221_v38 = vpop.f32.mrb[50].mxu1 }
 0x16a   :  { %v5038_v35 = vadd.f32 %v5037_v44, %v5036_v47  ;;  %12259 = vst [vmem:[#allocation78_spill] sm:$0xff] %v8211_v59  ;;  %12262 = vst [vmem:[#allocation81_spill] sm:$0xff] %v8221_v38  ;;  %v5043_v29 = vsel %vm4901_vm3, %v8211_v59, 0.0 }
 0x16b   :  { %12258 = vst [vmem:[#allocation77_spill] sm:$0xff] %v8208_v53  ;;  %v5039_v34 = vsel %vm4901_vm3, %v8208_v53, 0.0 }
 0x16c   :  { %v5040_v31 = vadd.f32 %v5039_v34, %v5038_v35  ;;  %v8228_v35 = vpop.f32.mrb[51].mxu1 }
 0x16d   :  { %v7174_v3 = vpop.f32.mrb[72].mxu0  ;;  %12264 = vst [vmem:[#allocation83_spill] sm:$0xff] %v8228_v35  ;;  %v8243_v35 = vpop.f32.mrb[52].mxu1 }
 0x16e   :  { %v5042_v58 = vadd.f32 %v5041_v49, %v5040_v31  ;;  %v1233_v37 = vpop.f32.mrb[73].mxu0  ;;  %v8231_v17 = vadd.f32 %v7174_v3, %v7754_v28  ;;  %12268 = vst [vmem:[#allocation87_spill] sm:$0xff] %v8243_v35 }
 0x16f   :  { %v8226_v47 = vadd.f32 %v7754_v28, %v1233_v37  ;;  %v7175_v44 = vpop.f32.mrb[74].mxu0 }
 0x170   :  { %v5044_v34 = vadd.f32 %v5043_v29, %v5042_v58  ;;  %v1236_v53 = vpop.f32.mrb[75].mxu0  ;;  %12265 = vst [vmem:[#allocation84_spill] sm:$0xff] %v8231_v17  ;;  %v8239_v59 = vadd.f32 %v7175_v44, %v7754_v28  ;;  %v5049_v58 = vsel %vm4901_vm3, %v8231_v17, 0.0  ;;  %v8247_v29 = vpop.f32.mrb[53].mxu1 }
 0x171   :  { %12263 = vst [vmem:[#allocation82_spill] sm:$0xff] %v8226_v47  ;;  %v5045_v31 = vsel %vm4901_vm3, %v8226_v47, 0.0  ;;  %v8236_v49 = vadd.f32 %v7754_v28, %v1236_v53  ;;  %12269 = vst [vmem:[#allocation88_spill] sm:$0xff] %v8247_v29  ;;  %v8249_v53 = vpop.f32.mrb[54].mxu1 }
 0x172   :  { %v5046_v38 = vadd.f32 %v5045_v31, %v5044_v34  ;;  %12267 = vst [vmem:[#allocation86_spill] sm:$0xff] %v8239_v59  ;;  %12270 = vst [vmem:[#allocation89_spill] sm:$0xff] %v8249_v53  ;;  %v5051_v44 = vsel %vm4901_vm3, %v8239_v59, 0.0 }
 0x173   :  { %12266 = vst [vmem:[#allocation85_spill] sm:$0xff] %v8236_v49  ;;  %v5047_v37 = vsel %vm4901_vm3, %v8236_v49, 0.0 }
 0x174   :  { %v5048_v45 = vadd.f32 %v5047_v37, %v5046_v38  ;;  %v8256_v38 = vpop.f32.mrb[55].mxu1 }
 0x175   :  { %v7178_v3 = vpop.f32.mrb[76].mxu0  ;;  %12272 = vst [vmem:[#allocation91_spill] sm:$0xff] %v8256_v38  ;;  %v8271_v38 = vpop.f32.mrb[56].mxu1 }
 0x176   :  { %v5050_v47 = vadd.f32 %v5049_v58, %v5048_v45  ;;  %v1249_v51 = vpop.f32.mrb[77].mxu0  ;;  %v8259_v17 = vadd.f32 %v7178_v3, %v7754_v28  ;;  %12276 = vst [vmem:[#allocation95_spill] sm:$0xff] %v8271_v38 }
 0x177   :  { %v8254_v34 = vadd.f32 %v7754_v28, %v1249_v51  ;;  %v7179_v31 = vpop.f32.mrb[78].mxu0 }
 0x178   :  { %v5052_v37 = vadd.f32 %v5051_v44, %v5050_v47  ;;  %v1252_v49 = vpop.f32.mrb[79].mxu0  ;;  %12273 = vst [vmem:[#allocation92_spill] sm:$0xff] %v8259_v17  ;;  %v8267_v59 = vadd.f32 %v7179_v31, %v7754_v28  ;;  %v5057_v47 = vsel %vm4901_vm3, %v8259_v17, 0.0  ;;  %v8275_v44 = vpop.f32.mrb[57].mxu1 }
 0x179   :  { %12271 = vst [vmem:[#allocation90_spill] sm:$0xff] %v8254_v34  ;;  %v5053_v45 = vsel %vm4901_vm3, %v8254_v34, 0.0  ;;  %v8264_v58 = vadd.f32 %v7754_v28, %v1252_v49  ;;  %12277 = vst [vmem:[#allocation96_spill] sm:$0xff] %v8275_v44  ;;  %v8277_v49 = vpop.f32.mrb[58].mxu1 }
 0x17a   :  { %v5054_v53 = vadd.f32 %v5053_v45, %v5052_v37  ;;  %12275 = vst [vmem:[#allocation94_spill] sm:$0xff] %v8267_v59  ;;  %12278 = vst [vmem:[#allocation97_spill] sm:$0xff] %v8277_v49  ;;  %v5059_v31 = vsel %vm4901_vm3, %v8267_v59, 0.0  ;;  %v1718_v49 = vadd.s32 680, %v7958_v8 }
 0x17b   :  { %12274 = vst [vmem:[#allocation93_spill] sm:$0xff] %v8264_v58  ;;  %v5055_v51 = vsel %vm4901_vm3, %v8264_v58, 0.0 }
 0x17c   :  { %v5056_v35 = vadd.f32 %v5055_v51, %v5054_v53  ;;  %v8284_v53 = vpop.f32.mrb[59].mxu1  ;;  %vm2578_vm5 = vcmp.lt.s32.totalorder %v1718_v49, 682 }
 0x17d   :  { %v7182_v3 = vpop.f32.mrb[80].mxu0  ;;  %12280 = vst [vmem:[#allocation99_spill] sm:$0xff] %v8284_v53 }
 0x17e   :  { %v5058_v34 = vadd.f32 %v5057_v47, %v5056_v35  ;;  %v1265_v29 = vpop.f32.mrb[81].mxu0  ;;  %v8287_v17 = vadd.f32 %v7182_v3, %v7754_v28 }
 0x17f   :  { %v8282_v37 = vadd.f32 %v7754_v28, %v1265_v29  ;;  %v7183_v45 = vpop.f32.mrb[82].mxu0 }
 0x180   :  { %v5060_v51 = vadd.f32 %v5059_v31, %v5058_v34  ;;  %v1268_v58 = vpop.f32.mrb[83].mxu0  ;;  %12281 = vst [vmem:[#allocation100_spill] sm:$0xff] %v8287_v17  ;;  %v8296_v29 = vadd.f32 %v7183_v45, %v7754_v28  ;;  %v8300_v31 = vpop.f32.mrb[60].mxu1  ;;  %v5065_v3 = vsel %vm4901_vm3, %v8287_v17, 0.0  ;;  %v12289_v17 = vmov 0.0  }
 0x181   :  { %12279 = vst [vmem:[#allocation98_spill] sm:$0xff] %v8282_v37  ;;  %v5061_v35 = vsel %vm4901_vm3, %v8282_v37, 0.0  ;;  %v8292_v47 = vadd.f32 %v7754_v28, %v1268_v58  ;;  %12284 = vst [vmem:[#allocation103_spill] sm:$0xff] %v8300_v31  ;;  %v8304_v37 = vpop.f32.mrb[61].mxu1  ;;  %v8316_v31 = vsel %vm2578_vm5, 1.0, %v12289_v17 }
 0x182   :  { %v5062_v59 = vadd.f32 %v5061_v35, %v5060_v51  ;;  %12283 = vst [vmem:[#allocation102_spill] sm:$0xff] %v8296_v29  ;;  %12285 = vst [vmem:[#allocation104_spill] sm:$0xff] %v8304_v37  ;;  %v8306_v1 = vpop.f32.mrb[62].mxu1  ;;  %v5067_v45 = vsel %vm4901_vm3, %v8296_v29, 0.0 }
 0x183   :  { %12282 = vst [vmem:[#allocation101_spill] sm:$0xff] %v8292_v47  ;;  %v5063_v38 = vsel %vm4901_vm3, %v8292_v47, 0.0  ;;  %12286 = vst [vmem:[#allocation105_spill] sm:$0xff] %v8306_v1 }
 0x184   :  { %v5064_v34 = vadd.f32 %v5063_v38, %v5062_v59  ;;  %v8313_v38 = vpop.f32.mrb[63].mxu1  ;;  %12290 = vst [vmem:[#allocation108_spill] sm:$0xff] %v8316_v31 }
 0x185   :  { %v7186_v53 = vpop.f32.mrb[84].mxu0  ;;  %12288 = vst [vmem:[#allocation107_spill] sm:$0xff] %v8313_v38  ;;  %v8328_v1 = vpop.f32.mrb[64].mxu1 }
 0x186   :  { %v5066_v58 = vadd.f32 %v5065_v3, %v5064_v34  ;;  %v1281_v44 = vpop.f32.mrb[85].mxu0  ;;  %v8324_v3 = vadd.f32 %v7186_v53, %v7754_v28  ;;  %v8334_v38 = vpop.f32.mrb[65].mxu1 }
 0x187   :  { %v8311_v51 = vadd.f32 %v7754_v28, %v1281_v44  ;;  %v7187_v59 = vpop.f32.mrb[86].mxu0  ;;  %v8336_v37 = vpop.f32.mrb[66].mxu1 }
 0x188   :  { %v5068_v35 = vadd.f32 %v5067_v45, %v5066_v58  ;;  %v1284_v47 = vpop.f32.mrb[87].mxu0  ;;  %12292 = vst [vmem:[#allocation110_spill] sm:$0xff] %v8324_v3  ;;  %v8331_v58 = vadd.f32 %v7187_v59, %v7754_v28  ;;  %v5073_v53 = vsel %vm4901_vm3, %v8324_v3, 0.0 }
 0x189   :  { %12287 = vst [vmem:[#allocation106_spill] sm:$0xff] %v8311_v51  ;;  %v5069_v49 = vsel %vm4901_vm3, %v8311_v51, 0.0  ;;  %v8321_v34 = vadd.f32 %v7754_v28, %v1284_v47  ;;  %v8342_v47 = vadd.f32 %v7754_v28, %v7874_v4 }
 0x18a   :  { %v5070_v29 = vadd.f32 %v5069_v49, %v5068_v35  ;;  %12293 = vst [vmem:[#allocation111_spill] sm:$0xff] %v8331_v58  ;;  %v8344_v35 = vpop.f32.mrb[67].mxu1  ;;  %v5075_v59 = vsel %vm4901_vm3, %v8331_v58, 0.0 }
 0x18b   :  { %12291 = vst [vmem:[#allocation109_spill] sm:$0xff] %v8321_v34  ;;  %v4814_v44 = vmul.f32 %v8316_v31, %v8321_v34  ;;  %12294 = vst [vmem:[#allocation112_spill] sm:$0xff] %v8342_v47  ;;  %v5077_v3 = vsel %vm4901_vm3, %v8342_v47, 0.0  ;;  %v8358_v31 = vpop.f32.mrb[68].mxu1 }
 0x18d   :  { %v5071_v45 = vsel %vm4901_vm3, %v4814_v44, 0.0  ;;  %v8350_v44 = vadd.f32 %v7754_v28, %v7880_v10  ;;  %v8366_v10 = vpop.f32.mrb[69].mxu1 }
 0x18e   :  { %v5072_v51 = vadd.f32 %v5071_v45, %v5070_v29  ;;  %v8354_v45 = vadd.f32 %v7867_v63, %v7754_v28 }
 0x18f   :  { %12295 = vst [vmem:[#allocation113_spill] sm:$0xff] %v8350_v44 }
 0x190   :  { %v5074_v49 = vadd.f32 %v5073_v53, %v5072_v51  ;;  %12296 = vst [vmem:[#allocation114_spill] sm:$0xff] %v8354_v45  ;;  %v8362_v51 = vadd.f32 %v7876_v7, %v7754_v28  ;;  %v5079_v53 = vsel %vm4901_vm3, %v8350_v44, 0.0  ;;  %v5081_v63 = vsel %vm4901_vm3, %v8354_v45, 0.0 }
 0x191   :  { %v8382_v44 = vadd.f32 %v7754_v28, %v7908_v43 }
 0x192   :  { %v5076_v29 = vadd.f32 %v5075_v59, %v5074_v49  ;;  %12297 = vst [vmem:[#allocation115_spill] sm:$0xff] %v8362_v51  ;;  %v8368_v59 = vpop.f32.mrb[70].mxu1  ;;  %v5083_v7 = vsel %vm4901_vm3, %v8362_v51, 0.0 }
 0x193   :  { %12299 = vst [vmem:[#allocation117_spill] sm:$0xff] %v8382_v44 }
 0x194   :  { %v5078_v4 = vadd.f32 %v5077_v3, %v5076_v29  ;;  %v8374_v3 = vadd.f32 %v7754_v28, %v7902_v32  ;;  %v8376_v29 = vpop.f32.mrb[71].mxu1 }
 0x195   :  { %v8390_v58 = vpop.f32.mrb[72].mxu1 }
 0x196   :  { %v5080_v49 = vadd.f32 %v5079_v53, %v5078_v4  ;;  %12298 = vst [vmem:[#allocation116_spill] sm:$0xff] %v8374_v3  ;;  %v8386_v53 = vadd.f32 %v7895_v26, %v7754_v28  ;;  %v5085_v45 = vsel %vm4901_vm3, %v8374_v3, 0.0  ;;  %v8398_v43 = vpop.f32.mrb[73].mxu1 }
 0x198   :  { %v5082_v47 = vadd.f32 %v5081_v63, %v5080_v49  ;;  %12300 = vst [vmem:[#allocation118_spill] sm:$0xff] %v8386_v53  ;;  %v8394_v49 = vadd.f32 %v7904_v36, %v7754_v28  ;;  %v5087_v63 = vsel %vm4901_vm3, %v8382_v44, 0.0  ;;  %v5089_v26 = vsel %vm4901_vm3, %v8386_v53, 0.0 }
 0x199   :  { %v8414_v44 = vadd.f32 %v7754_v28, %v7936_v18 }
 0x19a   :  { %v5084_v4 = vadd.f32 %v5083_v7, %v5082_v47  ;;  %12301 = vst [vmem:[#allocation119_spill] sm:$0xff] %v8394_v49  ;;  %v8400_v7 = vpop.f32.mrb[74].mxu1  ;;  %v5091_v36 = vsel %vm4901_vm3, %v8394_v49, 0.0 }
 0x19b   :  { %12303 = vst [vmem:[#allocation121_spill] sm:$0xff] %v8414_v44 }
 0x19c   :  { %v5086_v32 = vadd.f32 %v5085_v45, %v5084_v4  ;;  %v8406_v45 = vadd.f32 %v7754_v28, %v7930_v9  ;;  %v8408_v4 = vpop.f32.mrb[75].mxu1 }
 0x19d   :  { %v8422_v51 = vpop.f32.mrb[76].mxu1 }
 0x19e   :  { %v5088_v47 = vadd.f32 %v5087_v63, %v5086_v32  ;;  %12302 = vst [vmem:[#allocation120_spill] sm:$0xff] %v8406_v45  ;;  %v8418_v63 = vadd.f32 %v7923_v2, %v7754_v28  ;;  %v5093_v53 = vsel %vm4901_vm3, %v8406_v45, 0.0  ;;  %v8430_v18 = vpop.f32.mrb[77].mxu1 }
 0x1a0   :  { %v5090_v3 = vadd.f32 %v5089_v26, %v5088_v47  ;;  %12304 = vst [vmem:[#allocation122_spill] sm:$0xff] %v8418_v63  ;;  %v8426_v47 = vadd.f32 %v7932_v12, %v7754_v28  ;;  %v5095_v26 = vsel %vm4901_vm3, %v8414_v44, 0.0  ;;  %v5097_v2 = vsel %vm4901_vm3, %v8418_v63, 0.0 }
 0x1a1   :  { %v8446_v44 = vadd.f32 %v7754_v28, %v7966_v25 }
 0x1a2   :  { %v5092_v32 = vadd.f32 %v5091_v36, %v5090_v3  ;;  %12305 = vst [vmem:[#allocation123_spill] sm:$0xff] %v8426_v47  ;;  %v8432_v36 = vpop.f32.mrb[78].mxu1  ;;  %v5099_v12 = vsel %vm4901_vm3, %v8426_v47, 0.0  ;;  %v8488_v47 = vadd.f32 %v7991_v33, %v7754_v28 }
 0x1a3   :  { %12307 = vst [vmem:[#allocation125_spill] sm:$0xff] %v8446_v44 }
 0x1a4   :  { %v5094_v9 = vadd.f32 %v5093_v53, %v5092_v32  ;;  %v8438_v53 = vadd.f32 %v7754_v28, %v7960_v11  ;;  %v8440_v32 = vpop.f32.mrb[79].mxu1 }
 0x1a5   :  { %v8454_v49 = vpop.f32.mrb[80].mxu1 }
 0x1a6   :  { %v5096_v3 = vadd.f32 %v5095_v26, %v5094_v9  ;;  %12306 = vst [vmem:[#allocation124_spill] sm:$0xff] %v8438_v53  ;;  %v8450_v26 = vadd.f32 %v7951_v55, %v7754_v28  ;;  %v5101_v63 = vsel %vm4901_vm3, %v8438_v53, 0.0  ;;  %v8462_v25 = vpop.f32.mrb[81].mxu1 }
 0x1a8   :  { %v5098_v45 = vadd.f32 %v5097_v2, %v5096_v3  ;;  %12308 = vst [vmem:[#allocation126_spill] sm:$0xff] %v8450_v26  ;;  %v8458_v3 = vadd.f32 %v7962_v16, %v7754_v28  ;;  %v5103_v2 = vsel %vm4901_vm3, %v8446_v44, 0.0  ;;  %v5105_v55 = vsel %vm4901_vm3, %v8450_v26, 0.0 }
 0x1a9   :  { %v8478_v44 = vadd.f32 %v7754_v28, %v7995_v56 }
 0x1aa   :  { %v5100_v9 = vadd.f32 %v5099_v12, %v5098_v45  ;;  %v8464_v12 = vpop.f32.mrb[82].mxu1  ;;  %v5107_v16 = vsel %vm4901_vm3, %v8458_v3, 0.0 }
 0x1ac   :  { %v5102_v11 = vadd.f32 %v5101_v63, %v5100_v9  ;;  %v8470_v63 = vadd.f32 %v7754_v28, %v7989_v41  ;;  %v8472_v9 = vpop.f32.mrb[83].mxu1 }
 0x1ae   :  { %v5104_v45 = vadd.f32 %v5103_v2, %v5102_v11  ;;  %v8482_v2 = vadd.f32 %v7982_v6, %v7754_v28  ;;  %v5109_v26 = vsel %vm4901_vm3, %v8470_v63, 0.0 }
 0x1b0   :  { %v5106_v53 = vadd.f32 %v5105_v55, %v5104_v45  ;;  %v5111_v45 = vsel %vm4901_vm3, %v8478_v44, 0.0  ;;  %v5113_v56 = vsel %vm4901_vm3, %v8482_v2, 0.0 }
 0x1b2   :  { %v5108_v11 = vadd.f32 %v5107_v16, %v5106_v53  ;;  %v8496_v53 = vadd.f32 %v7754_v28, %v8022_v46  ;;  %v5115_v16 = vsel %vm4901_vm3, %v8488_v47, 0.0  ;;  %v8513_v46 = vld [vmem:[%s11748_s2] ss:$0 sm:$0xff] }
 0x1b4   :  { %v5110_v41 = vadd.f32 %v5109_v26, %v5108_v11  ;;  %v8502_v26 = vadd.f32 %v7754_v28, %v8027_v20  ;;  %v8506_v11 = vadd.f32 %v8015_v27, %v7754_v28  ;;  %v8525_v27 = vadd.f32 %v8513_v46, %v8049_v48 }
 0x1b5   :  { %v8541_v48 = vadd.f32 %v8513_v46, %v8051_v52 }
 0x1b6   :  { %v5112_v55 = vadd.f32 %v5111_v45, %v5110_v41  ;;  %v5117_v41 = vsel %vm4901_vm3, %v8496_v53, 0.0  ;;  %v5119_v20 = vsel %vm4901_vm3, %v8502_v26, 0.0  ;;  %v5121_v28 = vsel %vm4901_vm3, %v8506_v11, 0.0 }
 0x1b8   :  { %v5114_v6 = vadd.f32 %v5113_v56, %v5112_v55  ;;  %v8517_v55 = vadd.f32 %v8513_v46, %v8024_v22 }
 0x1ba   :  { %v5116_v33 = vadd.f32 %v5115_v16, %v5114_v6  ;;  %v5123_v16 = vsel %vm4901_vm3, %v8517_v55, 0.0 }
 0x1bc   :  { %v5118_v45 = vadd.f32 %v5117_v41, %v5116_v33  ;;  %v8531_v33 = vadd.f32 %v8513_v46, %v8055_v15  ;;  %v8535_v41 = vadd.f32 %v8513_v46, %v8042_v57 }
 0x1be   :  { %v5120_v56 = vadd.f32 %v5119_v20, %v5118_v45  ;;  %v5125_v45 = vsel %vm4901_vm3, %v8525_v27, 0.0  ;;  %v5129_v15 = vsel %vm4901_vm3, %v8535_v41, 0.0 }
 0x1c0   :  { %v5122_v6 = vadd.f32 %v5121_v28, %v5120_v56  ;;  %v5127_v56 = vsel %vm4901_vm3, %v8531_v33, 0.0 }
 0x1c2   :  { %v5124_v22 = vadd.f32 %v5123_v16, %v5122_v6  ;;  %v8549_v6 = vadd.f32 %v8513_v46, %v8077_v62  ;;  %v5131_v16 = vsel %vm4901_vm3, %v8541_v48, 0.0  ;;  %v8565_v62 = vadd.f32 %v8513_v46, %v8079_v0 }
 0x1c4   :  { %v5126_v20 = vadd.f32 %v5125_v45, %v5124_v22  ;;  %v8555_v22 = vadd.f32 %v8513_v46, %v8083_v54  ;;  %v8559_v45 = vadd.f32 %v8513_v46, %v8070_v23 }
 0x1c6   :  { %v5128_v28 = vadd.f32 %v5127_v56, %v5126_v20  ;;  %v5133_v20 = vsel %vm4901_vm3, %v8549_v6, 0.0  ;;  %v5137_v54 = vsel %vm4901_vm3, %v8559_v45, 0.0 }
 0x1c8   :  { %v5130_v57 = vadd.f32 %v5129_v15, %v5128_v28  ;;  %v5135_v28 = vsel %vm4901_vm3, %v8555_v22, 0.0 }
 0x1ca   :  { %v5132_v52 = vadd.f32 %v5131_v16, %v5130_v57  ;;  %v8573_v57 = vadd.f32 %v8513_v46, %v8105_v60  ;;  %v5139_v16 = vsel %vm4901_vm3, %v8565_v62, 0.0 }
 0x1cc   :  { %v5134_v56 = vadd.f32 %v5133_v20, %v5132_v52  ;;  %12309 = vst [vmem:[#allocation127_spill] sm:$0xff] %v8573_v57  ;;  %v8579_v52 = vadd.f32 %v8513_v46, %v8111_v30  ;;  %v8583_v20 = vadd.f32 %v8513_v46, %v8098_v24  ;;  %v8598_v24 = vadd.f32 %v8513_v46, %v8133_v40 }
 0x1cd   :  { %v8615_v40 = vadd.f32 %v8513_v46, %v8126_v50 }
 0x1ce   :  { %v5136_v15 = vadd.f32 %v5135_v28, %v5134_v56  ;;  %12310 = vst [vmem:[#allocation128_spill] sm:$0xff] %v8583_v20  ;;  %v5141_v56 = vsel %vm4901_vm3, %v8573_v57, 0.0  ;;  %v1761_v28 = vadd.s32 1024, %v7958_v8 }
 0x1cf   :  { %12315 = vst [vmem:[#allocation133_spill] sm:$0xff] %v8615_v40 }
 0x1d0   :  { %v5138_v23 = vadd.f32 %v5137_v54, %v5136_v15  ;;  %v8590_v15 = vadd.f32 %v8513_v46, %v8107_v42  ;;  %v5143_v54 = vsel %vm4901_vm3, %v8579_v52, 0.0  ;;  %vm3309_vm6 = vcmp.lt.s32.totalorder %v1761_v28, 1026 }
 0x1d1   :  { %v8604_v42 = vadd.f32 %v8513_v46, %v8139_v13  ;;  %v5149_v28 = vsel %vm4901_vm3, %v8598_v24, 0.0  ;;  %v8621_v13 = vadd.f32 %v8513_v46, %v8135_v21  ;;  %v8634_v21 = vadd.f32 %v8513_v46, %v8167_v61 }
 0x1d2   :  { %v5140_v0 = vadd.f32 %v5139_v16, %v5138_v23  ;;  %12311 = vst [vmem:[#allocation129_spill] sm:$0xff] %v8590_v15  ;;  %v5145_v23 = vsel %vm4901_vm3, %v8583_v20, 0.0 }
 0x1d3   :  { %12312 = vst [vmem:[#allocation130_spill] sm:$0xff] %v8604_v42  ;;  %12316 = vst [vmem:[#allocation134_spill] sm:$0xff] %v8621_v13 }
 0x1d4   :  { %v5142_v60 = vadd.f32 %v5141_v56, %v5140_v0  ;;  %v5147_v0 = vsel %vm4901_vm3, %v8590_v15, 0.0  ;;  %v8608_v56 = vadd.f32 %v8513_v46, %v8161_v19  ;;  %v5151_v19 = vsel %vm4901_vm3, %v8604_v42, 0.0 }
 0x1d5   :  { %v5155_v15 = vsel %vm4901_vm3, %v8621_v13, 0.0  ;;  %v8638_v42 = vadd.f32 %v8513_v46, %v8154_v39 }
 0x1d6   :  { %v5144_v30 = vadd.f32 %v5143_v54, %v5142_v60  ;;  %12313 = vst [vmem:[#allocation131_spill] sm:$0xff] %v8608_v56  ;;  %v8611_v54 = vsel %vm3309_vm6, 1.0, %v12289_v17 }
 0x1d7   :  { %12314 = vst [vmem:[#allocation132_spill] sm:$0xff] %v8611_v54  ;;  %12317 = vst [vmem:[#allocation135_spill] sm:$0xff] %v8638_v42  ;;  %v5161_v61 = vsel %vm4901_vm3, %v8638_v42, 0.0 }
 0x1d8   :  { %v5146_v16 = vadd.f32 %v5145_v23, %v5144_v30  ;;  %v4857_v23 = vmul.f32 %v8611_v54, %v8608_v56 }
 0x1da   :  { %v5148_v60 = vadd.f32 %v5147_v0, %v5146_v16  ;;  %v5153_v0 = vsel %vm4901_vm3, %v8615_v40, 0.0 }
 0x1dc   :  { %v5150_v30 = vadd.f32 %v5149_v28, %v5148_v60  ;;  %v5157_v60 = vsel %vm4901_vm3, %v4857_v23, 0.0  ;;  %v8648_v23 = vadd.f32 %v8513_v46, %v8191_v14 }
 0x1de   :  { %v5152_v16 = vadd.f32 %v5151_v19, %v5150_v30  ;;  %v8642_v30 = vadd.f32 %v8513_v46, %v8163_v5  ;;  %v5159_v19 = vsel %vm4901_vm3, %v8634_v21, 0.0  ;;  %12319 = vst [vmem:[#allocation137_spill] sm:$0xff] %v8648_v23  ;;  %v12320_v5 = vld [vmem:[#allocation75_spill] sm:$0xff] }
 0x1e0   :  { %v5154_v50 = vadd.f32 %v5153_v0, %v5152_v16  ;;  %12318 = vst [vmem:[#allocation136_spill] sm:$0xff] %v8642_v30  ;;  %v5163_v39 = vsel %vm4901_vm3, %v8642_v30, 0.0  ;;  %v5165_v0 = vsel %vm4901_vm3, %v8648_v23, 0.0 }
 0x1e2   :  { %v5156_v28 = vadd.f32 %v5155_v15, %v5154_v50  ;;  %v8658_v50 = vadd.f32 %v8513_v46, %v12320_v5 }
 0x1e4   :  { %v5158_v54 = vadd.f32 %v5157_v60, %v5156_v28  ;;  %12321 = vst [vmem:[#allocation75_spill] sm:$0xff] %v8658_v50  ;;  %v12322_v28 = vld [vmem:[#allocation72_spill] sm:$0xff] }
 0x1e5   :  { %v8662_v14 = vadd.f32 %v8513_v46, %v12322_v28 }
 0x1e6   :  { %v5160_v16 = vadd.f32 %v5159_v19, %v5158_v54  ;;  %v12324_v19 = vld [vmem:[#allocation73_spill] sm:$0xff] }
 0x1e7   :  { %12323 = vst [vmem:[#allocation72_spill] sm:$0xff] %v8662_v14  ;;  %v8666_v42 = vadd.f32 %v8513_v46, %v12324_v19 }
 0x1e8   :  { %v5162_v15 = vadd.f32 %v5161_v61, %v5160_v16  ;;  %v5167_v16 = vsel %vm4901_vm3, %v8658_v50, 0.0  ;;  %v12326_v61 = vld [vmem:[#allocation80_spill] sm:$0xff]  ;;  %v12330_v50 = vld [vmem:[#allocation79_spill] sm:$0xff] }
 0x1e9   :  { %12325 = vst [vmem:[#allocation73_spill] sm:$0xff] %v8666_v42  ;;  %v8672_v23 = vadd.f32 %v8513_v46, %v12326_v61  ;;  %v5171_v5 = vsel %vm4901_vm3, %v8666_v42, 0.0  ;;  %v8686_v61 = vadd.f32 %v8513_v46, %v12330_v50  ;;  %v12334_v42 = vld [vmem:[#allocation88_spill] sm:$0xff] }
 0x1ea   :  { %v5164_v60 = vadd.f32 %v5163_v39, %v5162_v15  ;;  %v5169_v15 = vsel %vm4901_vm3, %v8662_v14, 0.0 }
 0x1eb   :  { %12327 = vst [vmem:[#allocation80_spill] sm:$0xff] %v8672_v23  ;;  %12331 = vst [vmem:[#allocation79_spill] sm:$0xff] %v8686_v61 }
 0x1ec   :  { %v5166_v54 = vadd.f32 %v5165_v0, %v5164_v60  ;;  %v5173_v0 = vsel %vm4901_vm3, %v8672_v23, 0.0  ;;  %v12328_v60 = vld [vmem:[#allocation83_spill] sm:$0xff]  ;;  %v8696_v23 = vadd.f32 %v8513_v46, %v12334_v42 }
 0x1ed   :  { %v8682_v28 = vadd.f32 %v8513_v46, %v12328_v60 }
 0x1ee   :  { %v5168_v30 = vadd.f32 %v5167_v16, %v5166_v54  ;;  %v12332_v16 = vld [vmem:[#allocation81_spill] sm:$0xff]  ;;  %12335 = vst [vmem:[#allocation88_spill] sm:$0xff] %v8696_v23  ;;  %v5181_v60 = vsel %vm4901_vm3, %v8696_v23, 0.0 }
 0x1ef   :  { %12329 = vst [vmem:[#allocation83_spill] sm:$0xff] %v8682_v28  ;;  %v8690_v14 = vadd.f32 %v8513_v46, %v12332_v16 }
 0x1f0   :  { %v5170_v39 = vadd.f32 %v5169_v15, %v5168_v30  ;;  %v5175_v30 = vsel %vm4901_vm3, %v8682_v28, 0.0 }
 0x1f1   :  { %12333 = vst [vmem:[#allocation81_spill] sm:$0xff] %v8690_v14  ;;  %v5179_v50 = vsel %vm4901_vm3, %v8690_v14, 0.0  ;;  %v12342_v14 = vld [vmem:[#allocation96_spill] sm:$0xff] }
 0x1f2   :  { %v5172_v19 = vadd.f32 %v5171_v5, %v5170_v39  ;;  %v5177_v39 = vsel %vm4901_vm3, %v8686_v61, 0.0 }
 0x1f4   :  { %v5174_v54 = vadd.f32 %v5173_v0, %v5172_v19  ;;  %v12336_v19 = vld [vmem:[#allocation91_spill] sm:$0xff] }
 0x1f5   :  { %v8706_v16 = vadd.f32 %v8513_v46, %v12336_v19  ;;  %v8722_v19 = vadd.f32 %v8513_v46, %v12342_v14 }
 0x1f6   :  { %v5176_v15 = vadd.f32 %v5175_v30, %v5174_v54  ;;  %v12338_v30 = vld [vmem:[#allocation87_spill] sm:$0xff] }
 0x1f7   :  { %12337 = vst [vmem:[#allocation91_spill] sm:$0xff] %v8706_v16  ;;  %v8710_v42 = vadd.f32 %v8513_v46, %v12338_v30  ;;  %v5183_v61 = vsel %vm4901_vm3, %v8706_v16, 0.0  ;;  %12343 = vst [vmem:[#allocation96_spill] sm:$0xff] %v8722_v19  ;;  %v5189_v30 = vsel %vm4901_vm3, %v8722_v19, 0.0  ;;  %v12346_v16 = vld [vmem:[#allocation95_spill] sm:$0xff] }
 0x1f8   :  { %v5178_v5 = vadd.f32 %v5177_v39, %v5176_v15 }
 0x1f9   :  { %12339 = vst [vmem:[#allocation87_spill] sm:$0xff] %v8710_v42  ;;  %v5185_v39 = vsel %vm4901_vm3, %v8710_v42, 0.0 }
 0x1fa   :  { %v5180_v0 = vadd.f32 %v5179_v50, %v5178_v5  ;;  %v12340_v5 = vld [vmem:[#allocation89_spill] sm:$0xff] }
 0x1fb   :  { %v8718_v50 = vadd.f32 %v8513_v46, %v12340_v5  ;;  %v8734_v5 = vadd.f32 %v8513_v46, %v12346_v16 }
 0x1fc   :  { %v5182_v54 = vadd.f32 %v5181_v60, %v5180_v0 }
 0x1fd   :  { %12341 = vst [vmem:[#allocation89_spill] sm:$0xff] %v8718_v50  ;;  %v5187_v0 = vsel %vm4901_vm3, %v8718_v50, 0.0  ;;  %12347 = vst [vmem:[#allocation95_spill] sm:$0xff] %v8734_v5  ;;  %v12349_v50 = vld [vmem:[#allocation104_spill] sm:$0xff] }
 0x1fe   :  { %v5184_v15 = vadd.f32 %v5183_v61, %v5182_v54  ;;  %v12344_v61 = vld [vmem:[#allocation99_spill] sm:$0xff] }
 0x1ff   :  { %v8730_v54 = vadd.f32 %v8513_v46, %v12344_v61  ;;  %v8746_v61 = vadd.f32 %v8513_v46, %v12349_v50 }
 0x200   :  { %v5186_v23 = vadd.f32 %v5185_v39, %v5184_v15  ;;  %v5193_v39 = vsel %vm4901_vm3, %v8734_v5, 0.0 }
 0x201   :  { %12345 = vst [vmem:[#allocation99_spill] sm:$0xff] %v8730_v54  ;;  %v5191_v14 = vsel %vm4901_vm3, %v8730_v54, 0.0  ;;  %v12352_v54 = vld [vmem:[#allocation103_spill] sm:$0xff] }
 0x202   :  { %v5188_v60 = vadd.f32 %v5187_v0, %v5186_v23  ;;  %v12348_v23 = vld [vmem:[#allocation97_spill] sm:$0xff] }
 0x203   :  { %v8742_v0 = vadd.f32 %v8513_v46, %v12348_v23  ;;  %12350 = vst [vmem:[#allocation97_spill] sm:$0xff] %v8746_v61  ;;  %v8758_v23 = vadd.f32 %v8513_v46, %v12352_v54 }
 0x204   :  { %v5190_v42 = vadd.f32 %v5189_v30, %v5188_v60  ;;  %v5197_v30 = vsel %vm4901_vm3, %v8746_v61, 0.0 }
 0x205   :  { %v5195_v16 = vsel %vm4901_vm3, %v8742_v0, 0.0 }
 0x206   :  { %v5192_v15 = vadd.f32 %v5191_v14, %v5190_v42  ;;  %v12351_v42 = vld [vmem:[#allocation107_spill] sm:$0xff] }
 0x207   :  { %v8754_v14 = vadd.f32 %v8513_v46, %v12351_v42  ;;  %v8770_v42 = vadd.f32 %v8513_v46, %v8334_v38 }
 0x208   :  { %v5194_v19 = vadd.f32 %v5193_v39, %v5192_v15  ;;  %v5201_v39 = vsel %vm4901_vm3, %v8758_v23, 0.0 }
 0x209   :  { %v5199_v50 = vsel %vm4901_vm3, %v8754_v14, 0.0 }
 0x20a   :  { %v5196_v60 = vadd.f32 %v5195_v16, %v5194_v19  ;;  %v12353_v19 = vld [vmem:[#allocation105_spill] sm:$0xff] }
 0x20b   :  { %v8766_v16 = vadd.f32 %v8513_v46, %v12353_v19  ;;  %v8782_v19 = vadd.f32 %v8513_v46, %v8328_v1 }
 0x20c   :  { %v5198_v5 = vadd.f32 %v5197_v30, %v5196_v60  ;;  %v5205_v30 = vsel %vm4901_vm3, %v8770_v42, 0.0 }
 0x20d   :  { %v5203_v54 = vsel %vm4901_vm3, %v8766_v16, 0.0 }
 0x20e   :  { %v5200_v15 = vadd.f32 %v5199_v50, %v5198_v5  ;;  %v8778_v5 = vadd.f32 %v8513_v46, %v8344_v35  ;;  %v8794_v35 = vadd.f32 %v8513_v46, %v8366_v10 }
 0x210   :  { %v5202_v61 = vadd.f32 %v5201_v39, %v5200_v15  ;;  %v5207_v38 = vsel %vm4901_vm3, %v8778_v5, 0.0  ;;  %v5209_v39 = vsel %vm4901_vm3, %v8782_v19, 0.0 }
 0x212   :  { %v5204_v60 = vadd.f32 %v5203_v54, %v5202_v61  ;;  %v8790_v61 = vadd.f32 %v8513_v46, %v8336_v37  ;;  %v8806_v37 = vadd.f32 %v8513_v46, %v8358_v31 }
 0x214   :  { %v5206_v50 = vadd.f32 %v5205_v30, %v5204_v60  ;;  %v5211_v1 = vsel %vm4901_vm3, %v8790_v61, 0.0  ;;  %v5213_v30 = vsel %vm4901_vm3, %v8794_v35, 0.0  ;;  %12355 = vst [vmem:[#allocation107_spill] sm:$0xff] %v8806_v37 }
 0x216   :  { %v5208_v15 = vadd.f32 %v5207_v38, %v5206_v50  ;;  %v8802_v50 = vadd.f32 %v8513_v46, %v8376_v29  ;;  %v8818_v29 = vadd.f32 %v8513_v46, %v8398_v43 }
 0x218   :  { %v5210_v54 = vadd.f32 %v5209_v39, %v5208_v15  ;;  %12354 = vst [vmem:[#allocation104_spill] sm:$0xff] %v8802_v50  ;;  %v5215_v10 = vsel %vm4901_vm3, %v8802_v50, 0.0  ;;  %v5217_v39 = vsel %vm4901_vm3, %v8806_v37, 0.0  ;;  %12357 = vst [vmem:[#allocation105_spill] sm:$0xff] %v8818_v29 }
 0x21a   :  { %v5212_v60 = vadd.f32 %v5211_v1, %v5210_v54  ;;  %v8814_v54 = vadd.f32 %v8513_v46, %v8368_v59  ;;  %v8830_v59 = vadd.f32 %v8513_v46, %v8390_v58 }
 0x21c   :  { %v5214_v38 = vadd.f32 %v5213_v30, %v5212_v60  ;;  %12356 = vst [vmem:[#allocation103_spill] sm:$0xff] %v8814_v54  ;;  %v5219_v31 = vsel %vm4901_vm3, %v8814_v54, 0.0  ;;  %v5221_v30 = vsel %vm4901_vm3, %v8818_v29, 0.0  ;;  %12359 = vst [vmem:[#allocation139_spill] sm:$0xff] %v8830_v59 }
 0x21e   :  { %v5216_v15 = vadd.f32 %v5215_v10, %v5214_v38  ;;  %v8826_v38 = vadd.f32 %v8513_v46, %v8408_v4  ;;  %v8842_v4 = vadd.f32 %v8513_v46, %v8430_v18 }
 0x220   :  { %v5218_v1 = vadd.f32 %v5217_v39, %v5216_v15  ;;  %12358 = vst [vmem:[#allocation138_spill] sm:$0xff] %v8826_v38  ;;  %v5223_v43 = vsel %vm4901_vm3, %v8826_v38, 0.0  ;;  %v5225_v39 = vsel %vm4901_vm3, %v8830_v59, 0.0  ;;  %12361 = vst [vmem:[#allocation141_spill] sm:$0xff] %v8842_v4  ;;  %v12414_v59 = vld [vmem:[#allocation47_spill] sm:$0xff] }
 0x222   :  { %v5220_v60 = vadd.f32 %v5219_v31, %v5218_v1  ;;  %v8838_v1 = vadd.f32 %v8513_v46, %v8400_v7  ;;  %v8854_v7 = vadd.f32 %v8513_v46, %v8422_v51 }
 0x224   :  { %v5222_v10 = vadd.f32 %v5221_v30, %v5220_v60  ;;  %12360 = vst [vmem:[#allocation140_spill] sm:$0xff] %v8838_v1  ;;  %v5227_v58 = vsel %vm4901_vm3, %v8838_v1, 0.0  ;;  %v5229_v30 = vsel %vm4901_vm3, %v8842_v4, 0.0  ;;  %12363 = vst [vmem:[#allocation143_spill] sm:$0xff] %v8854_v7 }
 0x226   :  { %v5224_v15 = vadd.f32 %v5223_v43, %v5222_v10  ;;  %v8850_v10 = vadd.f32 %v8513_v46, %v8440_v32  ;;  %v8866_v32 = vadd.f32 %v8513_v46, %v8462_v25  ;;  %v8883_v25 = vadd.f32 %v8513_v46, %v8464_v12 }
 0x228   :  { %v5226_v31 = vadd.f32 %v5225_v39, %v5224_v15  ;;  %12362 = vst [vmem:[#allocation142_spill] sm:$0xff] %v8850_v10  ;;  %v5231_v18 = vsel %vm4901_vm3, %v8850_v10, 0.0  ;;  %v5233_v39 = vsel %vm4901_vm3, %v8854_v7, 0.0  ;;  %12365 = vst [vmem:[#allocation145_spill] sm:$0xff] %v8866_v32 }
 0x229   :  { %12368 = vst [vmem:[#allocation148_spill] sm:$0xff] %v8883_v25 }
 0x22a   :  { %v5228_v60 = vadd.f32 %v5227_v58, %v5226_v31  ;;  %v8862_v31 = vadd.f32 %v8513_v46, %v8432_v36 }
 0x22c   :  { %v5230_v43 = vadd.f32 %v5229_v30, %v5228_v60  ;;  %12364 = vst [vmem:[#allocation144_spill] sm:$0xff] %v8862_v31  ;;  %v5235_v51 = vsel %vm4901_vm3, %v8862_v31, 0.0  ;;  %v5237_v30 = vsel %vm4901_vm3, %v8866_v32, 0.0 }
 0x22e   :  { %v5232_v15 = vadd.f32 %v5231_v18, %v5230_v43  ;;  %v1804_v43 = vadd.s32 1368, %v7958_v8  ;;  %v8875_v18 = vadd.f32 %v8513_v46, %v8472_v9 }
 0x230   :  { %v5234_v58 = vadd.f32 %v5233_v39, %v5232_v15  ;;  %12366 = vst [vmem:[#allocation146_spill] sm:$0xff] %v8875_v18  ;;  %vm4040_vm7 = vcmp.lt.s32.totalorder %v1804_v43, 1370  ;;  %v8879_v15 = vadd.f32 %v8513_v46, %v8454_v49  ;;  %v5239_v39 = vsel %vm4901_vm3, %v8875_v18, 0.0 }
 0x232   :  { %v5236_v60 = vadd.f32 %v5235_v51, %v5234_v58  ;;  %12367 = vst [vmem:[#allocation147_spill] sm:$0xff] %v8879_v15  ;;  %v8888_v58 = vsel %vm4040_vm7, 1.0, %v12289_v17  ;;  %v5241_v9 = vsel %vm4901_vm3, %v8879_v15, 0.0  ;;  %v12370_v17 = vld [vmem:[#allocation2_spill] sm:$0xff] }
 0x233   :  { %12369 = vst [vmem:[#allocation149_spill] sm:$0xff] %v8888_v58 }
 0x234   :  { %v5238_v36 = vadd.f32 %v5237_v30, %v5236_v60  ;;  %v4900_v60 = vmul.f32 %v8888_v58, %v8883_v25  ;;  %v12372_v58 = vld [vmem:[#allocation3_spill] sm:$0xff] }
 0x236   :  { %v5240_v51 = vadd.f32 %v5239_v39, %v5238_v36  ;;  %v5243_v49 = vsel %vm4901_vm3, %v4900_v60, 0.0  ;;  %v12371_v39 = vld [vmem:[#allocation4_spill] sm:$0xff] }
 0x238   :  { %v5242_v30 = vadd.f32 %v5241_v9, %v5240_v51  ;;  %v12373_v9 = vld [vmem:[#allocation5_spill] sm:$0xff] }
 0x23a   :  { %v5244_v43 = vadd.f32 %v5243_v49, %v5242_v30  ;;  %v12374_v49 = vld [vmem:[#allocation6_spill] sm:$0xff] }
 0x23c   :  { %v5245_v8 = vrot.slane %v5244_v43, 4 }
 0x23e   :  { %v5246_v12 = vadd.f32 %v5245_v8, %v5244_v43 }
 0x240   :  { %v5247_v46 = vrot.slane %v5246_v12, 2 }
 0x242   :  { %v5248_v32 = vadd.f32 %v5247_v46, %v5246_v12 }
 0x244   :  { %v5249_v31 = vrot.slane %v5248_v32, 1 }
 0x246   :  { %v5250_v18 = vadd.f32 %v5249_v31, %v5248_v32  ;;  %v12375_v32 = vld [vmem:[#allocation8_spill] sm:$0xff] }
 0x248   :  { %v8895_v7 = vmul.f32 0.000739645, %v5250_v18 }
 0x24a   :  { %v5252_v36 = vsub.f32 %v12370_v17, %v8895_v7  ;;  %v5253_v15 = vsub.f32 %v12371_v39, %v8895_v7  ;;  %v5254_v51 = vsub.f32 %v12372_v58, %v8895_v7  ;;  %v5255_v60 = vsub.f32 %v12373_v9, %v8895_v7  ;;  %v12376_v58 = vld [vmem:[#allocation7_spill] sm:$0xff]  ;;  %v12377_v9 = vld [vmem:[#allocation9_spill] sm:$0xff] }
 0x24b   :  { %v5256_v43 = vsub.f32 %v12374_v49, %v8895_v7  ;;  %v5257_v18 = vsub.f32 %v12375_v32, %v8895_v7  ;;  %v5258_v25 = vsub.f32 %v12376_v58, %v8895_v7  ;;  %v5259_v49 = vsub.f32 %v12377_v9, %v8895_v7 }
 0x24c   :  { %v5596_v30 = vmul.f32 %v5252_v36, %v5252_v36  ;;  %v5597_v8 = vmul.f32 %v5253_v15, %v5253_v15  ;;  %v5598_v31 = vmul.f32 %v5254_v51, %v5254_v51  ;;  %v5599_v12 = vmul.f32 %v5255_v60, %v5255_v60  ;;  %v12378_v60 = vld [vmem:[#allocation10_spill] sm:$0xff] }
 0x24d   :  { %v5600_v10 = vmul.f32 %v5256_v43, %v5256_v43  ;;  %v5601_v51 = vmul.f32 %v5257_v18, %v5257_v18  ;;  %v5602_v1 = vmul.f32 %v5258_v25, %v5258_v25  ;;  %v5603_v58 = vmul.f32 %v5259_v49, %v5259_v49 }
 0x24e   :  { %v5768_v46 = vsel %vm4901_vm3, %v5596_v30, 0.0  ;;  %v5769_v39 = vsel %vm4901_vm3, %v5597_v8, 0.0  ;;  %v5771_v36 = vsel %vm4901_vm3, %v5598_v31, 0.0  ;;  %v5773_v4 = vsel %vm4901_vm3, %v5599_v12, 0.0 }
 0x24f   :  { %v5770_v17 = vadd.f32 %v5769_v39, %v5768_v46  ;;  %v5260_v30 = vsub.f32 %v12378_v60, %v8895_v7  ;;  %v5775_v39 = vsel %vm4901_vm3, %v5600_v10, 0.0  ;;  %v12379_v46 = vld [vmem:[#allocation12_spill] sm:$0xff]  ;;  %v5781_v10 = vsel %vm4901_vm3, %v5603_v58, 0.0 }
 0x250   :  { %v5261_v43 = vsub.f32 %v12379_v46, %v8895_v7 }
 0x251   :  { %v5772_v15 = vadd.f32 %v5771_v36, %v5770_v17  ;;  %v5777_v17 = vsel %vm4901_vm3, %v5601_v51, 0.0  ;;  %v12380_v36 = vld [vmem:[#allocation11_spill] sm:$0xff]  ;;  %v5604_v9 = vmul.f32 %v5260_v30, %v5260_v30 }
 0x252   :  { %v5262_v18 = vsub.f32 %v12380_v36, %v8895_v7  ;;  %v5605_v60 = vmul.f32 %v5261_v43, %v5261_v43 }
 0x253   :  { %v5774_v32 = vadd.f32 %v5773_v4, %v5772_v15  ;;  %v5779_v4 = vsel %vm4901_vm3, %v5602_v1, 0.0  ;;  %v12381_v15 = vld [vmem:[#allocation13_spill] sm:$0xff]  ;;  %v5783_v51 = vsel %vm4901_vm3, %v5604_v9, 0.0 }
 0x254   :  { %v5263_v25 = vsub.f32 %v12381_v15, %v8895_v7  ;;  %v5606_v46 = vmul.f32 %v5262_v18, %v5262_v18  ;;  %v5785_v1 = vsel %vm4901_vm3, %v5605_v60, 0.0 }
 0x255   :  { %v5776_v8 = vadd.f32 %v5775_v39, %v5774_v32  ;;  %v12382_v39 = vld [vmem:[#allocation14_spill] sm:$0xff] }
 0x256   :  { %v5264_v49 = vsub.f32 %v12382_v39, %v8895_v7  ;;  %v5607_v36 = vmul.f32 %v5263_v25, %v5263_v25  ;;  %v5787_v58 = vsel %vm4901_vm3, %v5606_v46, 0.0 }
 0x257   :  { %v5778_v31 = vadd.f32 %v5777_v17, %v5776_v8  ;;  %v12383_v17 = vld [vmem:[#allocation16_spill] sm:$0xff] }
 0x258   :  { %v5265_v30 = vsub.f32 %v12383_v17, %v8895_v7  ;;  %v5608_v15 = vmul.f32 %v5264_v49, %v5264_v49  ;;  %v5789_v9 = vsel %vm4901_vm3, %v5607_v36, 0.0 }
 0x259   :  { %v5780_v12 = vadd.f32 %v5779_v4, %v5778_v31  ;;  %v12384_v4 = vld [vmem:[#allocation15_spill] sm:$0xff] }
 0x25a   :  { %v5266_v43 = vsub.f32 %v12384_v4, %v8895_v7  ;;  %v5609_v39 = vmul.f32 %v5265_v30, %v5265_v30  ;;  %v5791_v60 = vsel %vm4901_vm3, %v5608_v15, 0.0 }
 0x25b   :  { %v5782_v32 = vadd.f32 %v5781_v10, %v5780_v12  ;;  %v12385_v10 = vld [vmem:[#allocation17_spill] sm:$0xff] }
 0x25c   :  { %v5267_v18 = vsub.f32 %v12385_v10, %v8895_v7  ;;  %v5610_v17 = vmul.f32 %v5266_v43, %v5266_v43  ;;  %v5793_v46 = vsel %vm4901_vm3, %v5609_v39, 0.0 }
 0x25d   :  { %v5784_v8 = vadd.f32 %v5783_v51, %v5782_v32  ;;  %v12386_v51 = vld [vmem:[#allocation18_spill] sm:$0xff] }
 0x25e   :  { %v5268_v25 = vsub.f32 %v12386_v51, %v8895_v7  ;;  %v5611_v4 = vmul.f32 %v5267_v18, %v5267_v18  ;;  %v5795_v36 = vsel %vm4901_vm3, %v5610_v17, 0.0 }
 0x25f   :  { %v5786_v31 = vadd.f32 %v5785_v1, %v5784_v8  ;;  %v12387_v1 = vld [vmem:[#allocation20_spill] sm:$0xff] }
 0x260   :  { %v5269_v49 = vsub.f32 %v12387_v1, %v8895_v7  ;;  %v5612_v10 = vmul.f32 %v5268_v25, %v5268_v25  ;;  %v5797_v15 = vsel %vm4901_vm3, %v5611_v4, 0.0 }
 0x261   :  { %v5788_v12 = vadd.f32 %v5787_v58, %v5786_v31  ;;  %v12388_v58 = vld [vmem:[#allocation19_spill] sm:$0xff] }
 0x262   :  { %v5270_v30 = vsub.f32 %v12388_v58, %v8895_v7  ;;  %v5613_v51 = vmul.f32 %v5269_v49, %v5269_v49  ;;  %v5799_v39 = vsel %vm4901_vm3, %v5612_v10, 0.0 }
 0x263   :  { %v5790_v32 = vadd.f32 %v5789_v9, %v5788_v12  ;;  %v12389_v9 = vld [vmem:[#allocation21_spill] sm:$0xff] }
 0x264   :  { %v5271_v43 = vsub.f32 %v12389_v9, %v8895_v7  ;;  %v5614_v1 = vmul.f32 %v5270_v30, %v5270_v30  ;;  %v5801_v17 = vsel %vm4901_vm3, %v5613_v51, 0.0 }
 0x265   :  { %v5792_v8 = vadd.f32 %v5791_v60, %v5790_v32  ;;  %v12390_v60 = vld [vmem:[#allocation22_spill] sm:$0xff] }
 0x266   :  { %v5272_v18 = vsub.f32 %v12390_v60, %v8895_v7  ;;  %v5615_v58 = vmul.f32 %v5271_v43, %v5271_v43  ;;  %v5803_v4 = vsel %vm4901_vm3, %v5614_v1, 0.0 }
 0x267   :  { %v5794_v31 = vadd.f32 %v5793_v46, %v5792_v8  ;;  %v12391_v46 = vld [vmem:[#allocation24_spill] sm:$0xff] }
 0x268   :  { %v5273_v25 = vsub.f32 %v12391_v46, %v8895_v7  ;;  %v5616_v9 = vmul.f32 %v5272_v18, %v5272_v18  ;;  %v5805_v10 = vsel %vm4901_vm3, %v5615_v58, 0.0 }
 0x269   :  { %v5796_v12 = vadd.f32 %v5795_v36, %v5794_v31  ;;  %v12392_v36 = vld [vmem:[#allocation23_spill] sm:$0xff] }
 0x26a   :  { %v5274_v49 = vsub.f32 %v12392_v36, %v8895_v7  ;;  %v5617_v60 = vmul.f32 %v5273_v25, %v5273_v25  ;;  %v5807_v51 = vsel %vm4901_vm3, %v5616_v9, 0.0 }
 0x26b   :  { %v5798_v32 = vadd.f32 %v5797_v15, %v5796_v12  ;;  %v12393_v15 = vld [vmem:[#allocation25_spill] sm:$0xff] }
 0x26c   :  { %v5275_v30 = vsub.f32 %v12393_v15, %v8895_v7  ;;  %v5618_v46 = vmul.f32 %v5274_v49, %v5274_v49  ;;  %v5809_v1 = vsel %vm4901_vm3, %v5617_v60, 0.0 }
 0x26d   :  { %v5800_v8 = vadd.f32 %v5799_v39, %v5798_v32  ;;  %v12394_v39 = vld [vmem:[#allocation26_spill] sm:$0xff] }
 0x26e   :  { %v5276_v43 = vsub.f32 %v12394_v39, %v8895_v7  ;;  %v5619_v36 = vmul.f32 %v5275_v30, %v5275_v30  ;;  %v5811_v58 = vsel %vm4901_vm3, %v5618_v46, 0.0 }
 0x26f   :  { %v5802_v31 = vadd.f32 %v5801_v17, %v5800_v8  ;;  %v12395_v17 = vld [vmem:[#allocation28_spill] sm:$0xff] }
 0x270   :  { %v5277_v18 = vsub.f32 %v12395_v17, %v8895_v7  ;;  %v5620_v15 = vmul.f32 %v5276_v43, %v5276_v43  ;;  %v5813_v9 = vsel %vm4901_vm3, %v5619_v36, 0.0 }
 0x271   :  { %v5804_v12 = vadd.f32 %v5803_v4, %v5802_v31  ;;  %v12396_v4 = vld [vmem:[#allocation27_spill] sm:$0xff] }
 0x272   :  { %v5278_v25 = vsub.f32 %v12396_v4, %v8895_v7  ;;  %v5621_v39 = vmul.f32 %v5277_v18, %v5277_v18  ;;  %v5815_v60 = vsel %vm4901_vm3, %v5620_v15, 0.0 }
 0x273   :  { %v5806_v32 = vadd.f32 %v5805_v10, %v5804_v12  ;;  %v12397_v10 = vld [vmem:[#allocation29_spill] sm:$0xff] }
 0x274   :  { %v5279_v49 = vsub.f32 %v12397_v10, %v8895_v7  ;;  %v5622_v17 = vmul.f32 %v5278_v25, %v5278_v25  ;;  %v5817_v46 = vsel %vm4901_vm3, %v5621_v39, 0.0 }
 0x275   :  { %v5808_v8 = vadd.f32 %v5807_v51, %v5806_v32  ;;  %v12398_v51 = vld [vmem:[#allocation30_spill] sm:$0xff] }
 0x276   :  { %v5280_v30 = vsub.f32 %v12398_v51, %v8895_v7  ;;  %v5623_v4 = vmul.f32 %v5279_v49, %v5279_v49  ;;  %v5819_v36 = vsel %vm4901_vm3, %v5622_v17, 0.0 }
 0x277   :  { %v5810_v31 = vadd.f32 %v5809_v1, %v5808_v8  ;;  %v12399_v1 = vld [vmem:[#allocation32_spill] sm:$0xff] }
 0x278   :  { %v5281_v43 = vsub.f32 %v12399_v1, %v8895_v7  ;;  %v5624_v10 = vmul.f32 %v5280_v30, %v5280_v30  ;;  %v5821_v15 = vsel %vm4901_vm3, %v5623_v4, 0.0 }
 0x279   :  { %v5812_v12 = vadd.f32 %v5811_v58, %v5810_v31  ;;  %v12400_v58 = vld [vmem:[#allocation31_spill] sm:$0xff] }
 0x27a   :  { %v5282_v18 = vsub.f32 %v12400_v58, %v8895_v7  ;;  %v5625_v51 = vmul.f32 %v5281_v43, %v5281_v43  ;;  %v5823_v39 = vsel %vm4901_vm3, %v5624_v10, 0.0 }
 0x27b   :  { %v5814_v32 = vadd.f32 %v5813_v9, %v5812_v12  ;;  %v12401_v9 = vld [vmem:[#allocation33_spill] sm:$0xff] }
 0x27c   :  { %v5283_v25 = vsub.f32 %v12401_v9, %v8895_v7  ;;  %v5626_v1 = vmul.f32 %v5282_v18, %v5282_v18  ;;  %v5825_v17 = vsel %vm4901_vm3, %v5625_v51, 0.0 }
 0x27d   :  { %v5816_v8 = vadd.f32 %v5815_v60, %v5814_v32  ;;  %v12402_v60 = vld [vmem:[#allocation34_spill] sm:$0xff] }
 0x27e   :  { %v5284_v49 = vsub.f32 %v12402_v60, %v8895_v7  ;;  %v5627_v58 = vmul.f32 %v5283_v25, %v5283_v25  ;;  %v5827_v4 = vsel %vm4901_vm3, %v5626_v1, 0.0 }
 0x27f   :  { %v5818_v31 = vadd.f32 %v5817_v46, %v5816_v8  ;;  %v12403_v46 = vld [vmem:[#allocation36_spill] sm:$0xff] }
 0x280   :  { %v5285_v30 = vsub.f32 %v12403_v46, %v8895_v7  ;;  %v5628_v9 = vmul.f32 %v5284_v49, %v5284_v49  ;;  %v5829_v10 = vsel %vm4901_vm3, %v5627_v58, 0.0 }
 0x281   :  { %v5820_v12 = vadd.f32 %v5819_v36, %v5818_v31  ;;  %v12404_v36 = vld [vmem:[#allocation35_spill] sm:$0xff] }
 0x282   :  { %v5286_v43 = vsub.f32 %v12404_v36, %v8895_v7  ;;  %v5629_v60 = vmul.f32 %v5285_v30, %v5285_v30  ;;  %v5831_v51 = vsel %vm4901_vm3, %v5628_v9, 0.0 }
 0x283   :  { %v5822_v32 = vadd.f32 %v5821_v15, %v5820_v12  ;;  %v12405_v15 = vld [vmem:[#allocation37_spill] sm:$0xff] }
 0x284   :  { %v5287_v18 = vsub.f32 %v12405_v15, %v8895_v7  ;;  %v5630_v46 = vmul.f32 %v5286_v43, %v5286_v43  ;;  %v5833_v1 = vsel %vm4901_vm3, %v5629_v60, 0.0  ;;  %v12411_v60 = vld [vmem:[#allocation43_spill] sm:$0xff] }
 0x285   :  { %v5824_v8 = vadd.f32 %v5823_v39, %v5822_v32  ;;  %v12406_v39 = vld [vmem:[#allocation39_spill] sm:$0xff] }
 0x286   :  { %v5288_v25 = vsub.f32 %v12406_v39, %v8895_v7  ;;  %v5631_v36 = vmul.f32 %v5287_v18, %v5287_v18  ;;  %v5835_v58 = vsel %vm4901_vm3, %v5630_v46, 0.0  ;;  %v12412_v46 = vld [vmem:[#allocation46_spill] sm:$0xff] }
 0x287   :  { %v5826_v31 = vadd.f32 %v5825_v17, %v5824_v8  ;;  %v12407_v17 = vld [vmem:[#allocation41_spill] sm:$0xff] }
 0x288   :  { %v5289_v49 = vsub.f32 %v12407_v17, %v8895_v7  ;;  %v5632_v15 = vmul.f32 %v5288_v25, %v5288_v25  ;;  %v5837_v9 = vsel %vm4901_vm3, %v5631_v36, 0.0  ;;  %v12413_v17 = vld [vmem:[#allocation44_spill] sm:$0xff] }
 0x289   :  { %v5828_v12 = vadd.f32 %v5827_v4, %v5826_v31  ;;  %v12408_v4 = vld [vmem:[#allocation40_spill] sm:$0xff] }
 0x28a   :  { %v5290_v30 = vsub.f32 %v12408_v4, %v8895_v7  ;;  %v5633_v39 = vmul.f32 %v5289_v49, %v5289_v49  ;;  %v5839_v4 = vsel %vm4901_vm3, %v5632_v15, 0.0 }
 0x28b   :  { %v5830_v32 = vadd.f32 %v5829_v10, %v5828_v12  ;;  %v12409_v10 = vld [vmem:[#allocation42_spill] sm:$0xff] }
 0x28c   :  { %v5291_v43 = vsub.f32 %v12409_v10, %v8895_v7  ;;  %v5841_v10 = vsel %vm4901_vm3, %v5633_v39, 0.0 }
 0x28d   :  { %v5832_v8 = vadd.f32 %v5831_v51, %v5830_v32  ;;  %v12410_v51 = vld [vmem:[#allocation45_spill] sm:$0xff] }
 0x28e   :  { %v5292_v18 = vsub.f32 %v12410_v51, %v8895_v7 }
 0x28f   :  { %v5834_v31 = vadd.f32 %v5833_v1, %v5832_v8  ;;  %v5294_v8 = vsub.f32 %v12411_v60, %v8895_v7  ;;  %v5634_v1 = vmul.f32 %v5290_v30, %v5290_v30  ;;  %v5295_v60 = vsub.f32 %v12414_v59, %v8895_v7 }
 0x291   :  { %v5836_v12 = vadd.f32 %v5835_v58, %v5834_v31  ;;  %v5293_v31 = vsub.f32 %v12412_v46, %v8895_v7  ;;  %v5635_v58 = vmul.f32 %v5291_v43, %v5291_v43  ;;  %v5466_v36 = vmul.f32 %v12413_v17, %v5294_v8  ;;  %v12416_v17 = vld [vmem:[#allocation50_spill] sm:$0xff] }
 0x292   :  { %v5639_v8 = vmul.f32 %v5295_v60, %v5295_v60 }
 0x293   :  { %v5838_v32 = vadd.f32 %v5837_v9, %v5836_v12  ;;  %v5636_v12 = vmul.f32 %v5292_v18, %v5292_v18  ;;  %v5843_v9 = vsel %vm4901_vm3, %v5634_v1, 0.0  ;;  %v5637_v30 = vmul.f32 %v5293_v31, %v5293_v31 }
 0x294   :  { %v5845_v15 = vsel %vm4901_vm3, %v5635_v58, 0.0  ;;  %v5638_v43 = vmul.f32 %v5466_v36, %v5466_v36  ;;  %v5297_v18 = vsub.f32 %v12416_v17, %v8895_v7 }
 0x295   :  { %v5840_v25 = vadd.f32 %v5839_v4, %v5838_v32  ;;  %v12415_v32 = vld [vmem:[#allocation48_spill] sm:$0xff]  ;;  %v5847_v39 = vsel %vm4901_vm3, %v5636_v12, 0.0  ;;  %v5849_v1 = vsel %vm4901_vm3, %v5637_v30, 0.0  ;;  %v5853_v12 = vsel %vm4901_vm3, %v5639_v8, 0.0 }
 0x296   :  { %v5296_v46 = vsub.f32 %v12415_v32, %v8895_v7  ;;  %v5641_v32 = vmul.f32 %v5297_v18, %v5297_v18 }
 0x297   :  { %v5842_v49 = vadd.f32 %v5841_v10, %v5840_v25 }
 0x299   :  { %v5844_v51 = vadd.f32 %v5843_v9, %v5842_v49  ;;  %v12417_v49 = vld [vmem:[#allocation49_spill] sm:$0xff]  ;;  %v5640_v9 = vmul.f32 %v5296_v46, %v5296_v46 }
 0x29a   :  { %v5298_v31 = vsub.f32 %v12417_v49, %v8895_v7 }
 0x29b   :  { %v5846_v4 = vadd.f32 %v5845_v15, %v5844_v51  ;;  %v5851_v51 = vsel %vm4901_vm3, %v5638_v43, 0.0  ;;  %v12418_v15 = vld [vmem:[#allocation51_spill] sm:$0xff]  ;;  %v5855_v30 = vsel %vm4901_vm3, %v5640_v9, 0.0  ;;  %v5857_v43 = vsel %vm4901_vm3, %v5641_v32, 0.0 }
 0x29c   :  { %v5299_v36 = vsub.f32 %v12418_v15, %v8895_v7  ;;  %v5642_v17 = vmul.f32 %v5298_v31, %v5298_v31 }
 0x29d   :  { %v5848_v10 = vadd.f32 %v5847_v39, %v5846_v4  ;;  %v12419_v39 = vld [vmem:[#allocation52_spill] sm:$0xff] }
 0x29e   :  { %v5300_v60 = vsub.f32 %v12419_v39, %v8895_v7  ;;  %v5643_v49 = vmul.f32 %v5299_v36, %v5299_v36  ;;  %v5859_v8 = vsel %vm4901_vm3, %v5642_v17, 0.0 }
 0x29f   :  { %v5850_v25 = vadd.f32 %v5849_v1, %v5848_v10  ;;  %v12420_v1 = vld [vmem:[#allocation54_spill] sm:$0xff] }
 0x2a0   :  { %v5301_v46 = vsub.f32 %v12420_v1, %v8895_v7  ;;  %v5644_v15 = vmul.f32 %v5300_v60, %v5300_v60  ;;  %v5861_v9 = vsel %vm4901_vm3, %v5643_v49, 0.0 }
 0x2a1   :  { %v5852_v58 = vadd.f32 %v5851_v51, %v5850_v25  ;;  %v12421_v51 = vld [vmem:[#allocation53_spill] sm:$0xff] }
 0x2a2   :  { %v5302_v18 = vsub.f32 %v12421_v51, %v8895_v7  ;;  %v5645_v39 = vmul.f32 %v5301_v46, %v5301_v46  ;;  %v5863_v32 = vsel %vm4901_vm3, %v5644_v15, 0.0 }
 0x2a3   :  { %v5854_v4 = vadd.f32 %v5853_v12, %v5852_v58  ;;  %v12422_v12 = vld [vmem:[#allocation55_spill] sm:$0xff] }
 0x2a4   :  { %v5303_v31 = vsub.f32 %v12422_v12, %v8895_v7  ;;  %v5646_v1 = vmul.f32 %v5302_v18, %v5302_v18  ;;  %v5865_v17 = vsel %vm4901_vm3, %v5645_v39, 0.0 }
 0x2a5   :  { %v5856_v10 = vadd.f32 %v5855_v30, %v5854_v4  ;;  %v12423_v30 = vld [vmem:[#allocation56_spill] sm:$0xff] }
 0x2a6   :  { %v5304_v36 = vsub.f32 %v12423_v30, %v8895_v7  ;;  %v5647_v51 = vmul.f32 %v5303_v31, %v5303_v31  ;;  %v5867_v49 = vsel %vm4901_vm3, %v5646_v1, 0.0 }
 0x2a7   :  { %v5858_v25 = vadd.f32 %v5857_v43, %v5856_v10  ;;  %v12424_v43 = vld [vmem:[#allocation58_spill] sm:$0xff] }
 0x2a8   :  { %v5305_v60 = vsub.f32 %v12424_v43, %v8895_v7  ;;  %v5648_v12 = vmul.f32 %v5304_v36, %v5304_v36  ;;  %v5869_v15 = vsel %vm4901_vm3, %v5647_v51, 0.0 }
 0x2a9   :  { %v5860_v58 = vadd.f32 %v5859_v8, %v5858_v25  ;;  %v12425_v8 = vld [vmem:[#allocation57_spill] sm:$0xff] }
 0x2aa   :  { %v5306_v46 = vsub.f32 %v12425_v8, %v8895_v7  ;;  %v5649_v30 = vmul.f32 %v5305_v60, %v5305_v60  ;;  %v5871_v39 = vsel %vm4901_vm3, %v5648_v12, 0.0 }
 0x2ab   :  { %v5862_v4 = vadd.f32 %v5861_v9, %v5860_v58  ;;  %v12426_v9 = vld [vmem:[#allocation59_spill] sm:$0xff] }
 0x2ac   :  { %v5307_v18 = vsub.f32 %v12426_v9, %v8895_v7  ;;  %v5650_v43 = vmul.f32 %v5306_v46, %v5306_v46  ;;  %v5873_v1 = vsel %vm4901_vm3, %v5649_v30, 0.0 }
 0x2ad   :  { %v5864_v10 = vadd.f32 %v5863_v32, %v5862_v4  ;;  %v12427_v32 = vld [vmem:[#allocation60_spill] sm:$0xff] }
 0x2ae   :  { %v5308_v31 = vsub.f32 %v12427_v32, %v8895_v7  ;;  %v5651_v8 = vmul.f32 %v5307_v18, %v5307_v18  ;;  %v5875_v51 = vsel %vm4901_vm3, %v5650_v43, 0.0 }
 0x2af   :  { %v5866_v25 = vadd.f32 %v5865_v17, %v5864_v10  ;;  %v12428_v17 = vld [vmem:[#allocation62_spill] sm:$0xff] }
 0x2b0   :  { %v5309_v36 = vsub.f32 %v12428_v17, %v8895_v7  ;;  %v5652_v9 = vmul.f32 %v5308_v31, %v5308_v31  ;;  %v5877_v12 = vsel %vm4901_vm3, %v5651_v8, 0.0 }
 0x2b1   :  { %v5868_v58 = vadd.f32 %v5867_v49, %v5866_v25  ;;  %v12429_v49 = vld [vmem:[#allocation61_spill] sm:$0xff] }
 0x2b2   :  { %v5310_v60 = vsub.f32 %v12429_v49, %v8895_v7  ;;  %v5653_v32 = vmul.f32 %v5309_v36, %v5309_v36  ;;  %v5879_v30 = vsel %vm4901_vm3, %v5652_v9, 0.0 }
 0x2b3   :  { %v5870_v4 = vadd.f32 %v5869_v15, %v5868_v58  ;;  %v12430_v15 = vld [vmem:[#allocation63_spill] sm:$0xff] }
 0x2b4   :  { %v5311_v46 = vsub.f32 %v12430_v15, %v8895_v7  ;;  %v5654_v17 = vmul.f32 %v5310_v60, %v5310_v60  ;;  %v5881_v43 = vsel %vm4901_vm3, %v5653_v32, 0.0 }
 0x2b5   :  { %v5872_v10 = vadd.f32 %v5871_v39, %v5870_v4  ;;  %v12431_v39 = vld [vmem:[#allocation64_spill] sm:$0xff] }
 0x2b6   :  { %v5312_v18 = vsub.f32 %v12431_v39, %v8895_v7  ;;  %v5655_v49 = vmul.f32 %v5311_v46, %v5311_v46  ;;  %v5883_v8 = vsel %vm4901_vm3, %v5654_v17, 0.0 }
 0x2b7   :  { %v5874_v25 = vadd.f32 %v5873_v1, %v5872_v10  ;;  %v12432_v1 = vld [vmem:[#allocation66_spill] sm:$0xff] }
 0x2b8   :  { %v5313_v31 = vsub.f32 %v12432_v1, %v8895_v7  ;;  %v5656_v15 = vmul.f32 %v5312_v18, %v5312_v18  ;;  %v5885_v9 = vsel %vm4901_vm3, %v5655_v49, 0.0 }
 0x2b9   :  { %v5876_v58 = vadd.f32 %v5875_v51, %v5874_v25  ;;  %v12433_v51 = vld [vmem:[#allocation65_spill] sm:$0xff] }
 0x2ba   :  { %v5314_v36 = vsub.f32 %v12433_v51, %v8895_v7  ;;  %v5657_v39 = vmul.f32 %v5313_v31, %v5313_v31  ;;  %v5887_v32 = vsel %vm4901_vm3, %v5656_v15, 0.0 }
 0x2bb   :  { %v5878_v4 = vadd.f32 %v5877_v12, %v5876_v58  ;;  %v12434_v12 = vld [vmem:[#allocation67_spill] sm:$0xff] }
 0x2bc   :  { %v5315_v60 = vsub.f32 %v12434_v12, %v8895_v7  ;;  %v5658_v1 = vmul.f32 %v5314_v36, %v5314_v36  ;;  %v5889_v17 = vsel %vm4901_vm3, %v5657_v39, 0.0 }
 0x2bd   :  { %v5880_v10 = vadd.f32 %v5879_v30, %v5878_v4  ;;  %v12435_v30 = vld [vmem:[#allocation68_spill] sm:$0xff] }
 0x2be   :  { %v5316_v46 = vsub.f32 %v12435_v30, %v8895_v7  ;;  %v5659_v51 = vmul.f32 %v5315_v60, %v5315_v60  ;;  %v5891_v49 = vsel %vm4901_vm3, %v5658_v1, 0.0 }
 0x2bf   :  { %v5882_v25 = vadd.f32 %v5881_v43, %v5880_v10  ;;  %v12436_v43 = vld [vmem:[#allocation70_spill] sm:$0xff] }
 0x2c0   :  { %v5317_v18 = vsub.f32 %v12436_v43, %v8895_v7  ;;  %v5660_v12 = vmul.f32 %v5316_v46, %v5316_v46  ;;  %v5893_v15 = vsel %vm4901_vm3, %v5659_v51, 0.0 }
 0x2c1   :  { %v5884_v58 = vadd.f32 %v5883_v8, %v5882_v25  ;;  %v12437_v8 = vld [vmem:[#allocation69_spill] sm:$0xff] }
 0x2c2   :  { %v5318_v31 = vsub.f32 %v12437_v8, %v8895_v7  ;;  %v5661_v30 = vmul.f32 %v5317_v18, %v5317_v18  ;;  %v5895_v39 = vsel %vm4901_vm3, %v5660_v12, 0.0 }
 0x2c3   :  { %v5886_v4 = vadd.f32 %v5885_v9, %v5884_v58  ;;  %v12438_v9 = vld [vmem:[#allocation71_spill] sm:$0xff] }
 0x2c4   :  { %v5319_v36 = vsub.f32 %v12438_v9, %v8895_v7  ;;  %v5662_v43 = vmul.f32 %v5318_v31, %v5318_v31  ;;  %v5897_v1 = vsel %vm4901_vm3, %v5661_v30, 0.0 }
 0x2c5   :  { %v5888_v10 = vadd.f32 %v5887_v32, %v5886_v4  ;;  %v12439_v32 = vld [vmem:[#allocation74_spill] sm:$0xff] }
 0x2c6   :  { %v5320_v60 = vsub.f32 %v12439_v32, %v8895_v7  ;;  %v5663_v8 = vmul.f32 %v5319_v36, %v5319_v36  ;;  %v5899_v51 = vsel %vm4901_vm3, %v5662_v43, 0.0 }
 0x2c7   :  { %v5890_v25 = vadd.f32 %v5889_v17, %v5888_v10  ;;  %v12440_v17 = vld [vmem:[#allocation77_spill] sm:$0xff] }
 0x2c8   :  { %v5321_v46 = vsub.f32 %v12440_v17, %v8895_v7  ;;  %v5664_v9 = vmul.f32 %v5320_v60, %v5320_v60  ;;  %v5901_v12 = vsel %vm4901_vm3, %v5663_v8, 0.0 }
 0x2c9   :  { %v5892_v58 = vadd.f32 %v5891_v49, %v5890_v25  ;;  %v12441_v49 = vld [vmem:[#allocation76_spill] sm:$0xff] }
 0x2ca   :  { %v5322_v18 = vsub.f32 %v12441_v49, %v8895_v7  ;;  %v5665_v32 = vmul.f32 %v5321_v46, %v5321_v46  ;;  %v5903_v30 = vsel %vm4901_vm3, %v5664_v9, 0.0 }
 0x2cb   :  { %v5894_v4 = vadd.f32 %v5893_v15, %v5892_v58  ;;  %v12442_v15 = vld [vmem:[#allocation78_spill] sm:$0xff] }
 0x2cc   :  { %v5323_v31 = vsub.f32 %v12442_v15, %v8895_v7  ;;  %v5666_v17 = vmul.f32 %v5322_v18, %v5322_v18  ;;  %v5905_v43 = vsel %vm4901_vm3, %v5665_v32, 0.0 }
 0x2cd   :  { %v5896_v10 = vadd.f32 %v5895_v39, %v5894_v4  ;;  %v12443_v39 = vld [vmem:[#allocation82_spill] sm:$0xff] }
 0x2ce   :  { %v5324_v36 = vsub.f32 %v12443_v39, %v8895_v7  ;;  %v5667_v49 = vmul.f32 %v5323_v31, %v5323_v31  ;;  %v5907_v8 = vsel %vm4901_vm3, %v5666_v17, 0.0 }
 0x2cf   :  { %v5898_v25 = vadd.f32 %v5897_v1, %v5896_v10  ;;  %v12444_v1 = vld [vmem:[#allocation85_spill] sm:$0xff] }
 0x2d0   :  { %v5325_v60 = vsub.f32 %v12444_v1, %v8895_v7  ;;  %v5668_v15 = vmul.f32 %v5324_v36, %v5324_v36  ;;  %v5909_v9 = vsel %vm4901_vm3, %v5667_v49, 0.0 }
 0x2d1   :  { %v5900_v58 = vadd.f32 %v5899_v51, %v5898_v25  ;;  %v12445_v51 = vld [vmem:[#allocation84_spill] sm:$0xff] }
 0x2d2   :  { %v5326_v46 = vsub.f32 %v12445_v51, %v8895_v7  ;;  %v5669_v39 = vmul.f32 %v5325_v60, %v5325_v60  ;;  %v5911_v32 = vsel %vm4901_vm3, %v5668_v15, 0.0 }
 0x2d3   :  { %v5902_v4 = vadd.f32 %v5901_v12, %v5900_v58  ;;  %v12446_v12 = vld [vmem:[#allocation86_spill] sm:$0xff] }
 0x2d4   :  { %v5327_v18 = vsub.f32 %v12446_v12, %v8895_v7  ;;  %v5670_v1 = vmul.f32 %v5326_v46, %v5326_v46  ;;  %v5913_v17 = vsel %vm4901_vm3, %v5669_v39, 0.0 }
 0x2d5   :  { %v5904_v10 = vadd.f32 %v5903_v30, %v5902_v4  ;;  %v12447_v30 = vld [vmem:[#allocation90_spill] sm:$0xff] }
 0x2d6   :  { %v5328_v31 = vsub.f32 %v12447_v30, %v8895_v7  ;;  %v5671_v51 = vmul.f32 %v5327_v18, %v5327_v18  ;;  %v5915_v49 = vsel %vm4901_vm3, %v5670_v1, 0.0 }
 0x2d7   :  { %v5906_v25 = vadd.f32 %v5905_v43, %v5904_v10  ;;  %v12448_v43 = vld [vmem:[#allocation93_spill] sm:$0xff] }
 0x2d8   :  { %v5329_v36 = vsub.f32 %v12448_v43, %v8895_v7  ;;  %v5672_v12 = vmul.f32 %v5328_v31, %v5328_v31  ;;  %v5917_v15 = vsel %vm4901_vm3, %v5671_v51, 0.0 }
 0x2d9   :  { %v5908_v58 = vadd.f32 %v5907_v8, %v5906_v25  ;;  %v12449_v8 = vld [vmem:[#allocation92_spill] sm:$0xff] }
 0x2da   :  { %v5330_v60 = vsub.f32 %v12449_v8, %v8895_v7  ;;  %v5673_v30 = vmul.f32 %v5329_v36, %v5329_v36  ;;  %v5919_v39 = vsel %vm4901_vm3, %v5672_v12, 0.0  ;;  %v5337_v12 = vsub.f32 %v8321_v34, %v8895_v7 }
 0x2db   :  { %v5910_v4 = vadd.f32 %v5909_v9, %v5908_v58  ;;  %v12450_v9 = vld [vmem:[#allocation94_spill] sm:$0xff] }
 0x2dc   :  { %v5331_v46 = vsub.f32 %v12450_v9, %v8895_v7  ;;  %v5674_v43 = vmul.f32 %v5330_v60, %v5330_v60  ;;  %v5921_v1 = vsel %vm4901_vm3, %v5673_v30, 0.0  ;;  %v12455_v30 = vld [vmem:[#allocation106_spill] sm:$0xff] }
 0x2dd   :  { %v5912_v10 = vadd.f32 %v5911_v32, %v5910_v4  ;;  %v12451_v32 = vld [vmem:[#allocation98_spill] sm:$0xff] }
 0x2de   :  { %v5332_v18 = vsub.f32 %v12451_v32, %v8895_v7  ;;  %v5675_v8 = vmul.f32 %v5331_v46, %v5331_v46  ;;  %v5923_v51 = vsel %vm4901_vm3, %v5674_v43, 0.0  ;;  %v12457_v32 = vld [vmem:[#allocation110_spill] sm:$0xff] }
 0x2df   :  { %v5914_v25 = vadd.f32 %v5913_v17, %v5912_v10  ;;  %v12452_v17 = vld [vmem:[#allocation101_spill] sm:$0xff]  ;;  %v5338_v34 = vsub.f32 %v12457_v32, %v8895_v7 }
 0x2e0   :  { %v5333_v31 = vsub.f32 %v12452_v17, %v8895_v7  ;;  %v5676_v9 = vmul.f32 %v5332_v18, %v5332_v18  ;;  %v12456_v17 = vld [vmem:[#allocation108_spill] sm:$0xff] }
 0x2e1   :  { %v5916_v58 = vadd.f32 %v5915_v49, %v5914_v25  ;;  %v12453_v49 = vld [vmem:[#allocation100_spill] sm:$0xff]  ;;  %v5509_v43 = vmul.f32 %v12456_v17, %v5337_v12  ;;  %v5682_v12 = vmul.f32 %v5338_v34, %v5338_v34 }
 0x2e2   :  { %v5334_v36 = vsub.f32 %v12453_v49, %v8895_v7  ;;  %v5927_v49 = vsel %vm4901_vm3, %v5676_v9, 0.0  ;;  %v12459_v17 = vld [vmem:[#allocation112_spill] sm:$0xff] }
 0x2e3   :  { %v5918_v4 = vadd.f32 %v5917_v15, %v5916_v58  ;;  %v12454_v15 = vld [vmem:[#allocation102_spill] sm:$0xff] }
 0x2e4   :  { %v5335_v60 = vsub.f32 %v12454_v15, %v8895_v7 }
 0x2e5   :  { %v5920_v10 = vadd.f32 %v5919_v39, %v5918_v4  ;;  %v5677_v4 = vmul.f32 %v5333_v31, %v5333_v31  ;;  %v5925_v39 = vsel %vm4901_vm3, %v5675_v8, 0.0 }
 0x2e7   :  { %v5922_v25 = vadd.f32 %v5921_v1, %v5920_v10  ;;  %v5336_v10 = vsub.f32 %v12455_v30, %v8895_v7  ;;  %v5678_v1 = vmul.f32 %v5334_v36, %v5334_v36  ;;  %v5681_v36 = vmul.f32 %v5509_v43, %v5509_v43 }
 0x2e9   :  { %v5924_v58 = vadd.f32 %v5923_v51, %v5922_v25  ;;  %v5679_v25 = vmul.f32 %v5335_v60, %v5335_v60  ;;  %v5929_v51 = vsel %vm4901_vm3, %v5677_v4, 0.0  ;;  %v5680_v31 = vmul.f32 %v5336_v10, %v5336_v10 }
 0x2ea   :  { %v5931_v8 = vsel %vm4901_vm3, %v5678_v1, 0.0  ;;  %v5340_v60 = vsub.f32 %v12459_v17, %v8895_v7 }
 0x2eb   :  { %v5926_v46 = vadd.f32 %v5925_v39, %v5924_v58  ;;  %v12458_v39 = vld [vmem:[#allocation111_spill] sm:$0xff]  ;;  %v5933_v9 = vsel %vm4901_vm3, %v5679_v25, 0.0  ;;  %v5935_v4 = vsel %vm4901_vm3, %v5680_v31, 0.0  ;;  %v5939_v25 = vsel %vm4901_vm3, %v5682_v12, 0.0 }
 0x2ec   :  { %v5339_v30 = vsub.f32 %v12458_v39, %v8895_v7  ;;  %v5684_v39 = vmul.f32 %v5340_v60, %v5340_v60 }
 0x2ed   :  { %v5928_v18 = vadd.f32 %v5927_v49, %v5926_v46 }
 0x2ef   :  { %v5930_v15 = vadd.f32 %v5929_v51, %v5928_v18  ;;  %v12460_v18 = vld [vmem:[#allocation113_spill] sm:$0xff]  ;;  %v5683_v51 = vmul.f32 %v5339_v30, %v5339_v30 }
 0x2f0   :  { %v5341_v10 = vsub.f32 %v12460_v18, %v8895_v7 }
 0x2f1   :  { %v5932_v58 = vadd.f32 %v5931_v8, %v5930_v15  ;;  %v5937_v15 = vsel %vm4901_vm3, %v5681_v36, 0.0  ;;  %v12461_v8 = vld [vmem:[#allocation114_spill] sm:$0xff]  ;;  %v5941_v31 = vsel %vm4901_vm3, %v5683_v51, 0.0  ;;  %v5943_v36 = vsel %vm4901_vm3, %v5684_v39, 0.0 }
 0x2f2   :  { %v5342_v43 = vsub.f32 %v12461_v8, %v8895_v7  ;;  %v5685_v17 = vmul.f32 %v5341_v10, %v5341_v10 }
 0x2f3   :  { %v5934_v49 = vadd.f32 %v5933_v9, %v5932_v58  ;;  %v12462_v9 = vld [vmem:[#allocation115_spill] sm:$0xff] }
 0x2f4   :  { %v5343_v34 = vsub.f32 %v12462_v9, %v8895_v7  ;;  %v5686_v18 = vmul.f32 %v5342_v43, %v5342_v43  ;;  %v5945_v12 = vsel %vm4901_vm3, %v5685_v17, 0.0 }
 0x2f5   :  { %v5936_v46 = vadd.f32 %v5935_v4, %v5934_v49  ;;  %v12463_v4 = vld [vmem:[#allocation116_spill] sm:$0xff] }
 0x2f6   :  { %v5344_v30 = vsub.f32 %v12463_v4, %v8895_v7  ;;  %v5687_v8 = vmul.f32 %v5343_v34, %v5343_v34  ;;  %v5947_v51 = vsel %vm4901_vm3, %v5686_v18, 0.0 }
 0x2f7   :  { %v5938_v1 = vadd.f32 %v5937_v15, %v5936_v46  ;;  %v12464_v15 = vld [vmem:[#allocation117_spill] sm:$0xff] }
 0x2f8   :  { %v5345_v60 = vsub.f32 %v12464_v15, %v8895_v7  ;;  %v5688_v9 = vmul.f32 %v5344_v30, %v5344_v30  ;;  %v5949_v39 = vsel %vm4901_vm3, %v5687_v8, 0.0 }
 0x2f9   :  { %v5940_v58 = vadd.f32 %v5939_v25, %v5938_v1  ;;  %v12465_v25 = vld [vmem:[#allocation118_spill] sm:$0xff] }
 0x2fa   :  { %v5346_v10 = vsub.f32 %v12465_v25, %v8895_v7  ;;  %v5689_v4 = vmul.f32 %v5345_v60, %v5345_v60  ;;  %v5951_v17 = vsel %vm4901_vm3, %v5688_v9, 0.0 }
 0x2fb   :  { %v5942_v49 = vadd.f32 %v5941_v31, %v5940_v58  ;;  %v12466_v31 = vld [vmem:[#allocation119_spill] sm:$0xff] }
 0x2fc   :  { %v5347_v43 = vsub.f32 %v12466_v31, %v8895_v7  ;;  %v5690_v15 = vmul.f32 %v5346_v10, %v5346_v10  ;;  %v5953_v18 = vsel %vm4901_vm3, %v5689_v4, 0.0 }
 0x2fd   :  { %v5944_v46 = vadd.f32 %v5943_v36, %v5942_v49  ;;  %v12467_v36 = vld [vmem:[#allocation120_spill] sm:$0xff] }
 0x2fe   :  { %v5348_v34 = vsub.f32 %v12467_v36, %v8895_v7  ;;  %v5691_v25 = vmul.f32 %v5347_v43, %v5347_v43  ;;  %v5955_v8 = vsel %vm4901_vm3, %v5690_v15, 0.0 }
 0x2ff   :  { %v5946_v1 = vadd.f32 %v5945_v12, %v5944_v46  ;;  %v12468_v12 = vld [vmem:[#allocation121_spill] sm:$0xff] }
 0x300   :  { %v5349_v30 = vsub.f32 %v12468_v12, %v8895_v7  ;;  %v5692_v31 = vmul.f32 %v5348_v34, %v5348_v34  ;;  %v5957_v9 = vsel %vm4901_vm3, %v5691_v25, 0.0 }
 0x301   :  { %v5948_v58 = vadd.f32 %v5947_v51, %v5946_v1  ;;  %v12469_v51 = vld [vmem:[#allocation122_spill] sm:$0xff] }
 0x302   :  { %v5350_v60 = vsub.f32 %v12469_v51, %v8895_v7  ;;  %v5693_v36 = vmul.f32 %v5349_v30, %v5349_v30  ;;  %v5959_v4 = vsel %vm4901_vm3, %v5692_v31, 0.0 }
 0x303   :  { %v5950_v49 = vadd.f32 %v5949_v39, %v5948_v58  ;;  %v12470_v39 = vld [vmem:[#allocation123_spill] sm:$0xff] }
 0x304   :  { %v5351_v10 = vsub.f32 %v12470_v39, %v8895_v7  ;;  %v5694_v12 = vmul.f32 %v5350_v60, %v5350_v60  ;;  %v5961_v15 = vsel %vm4901_vm3, %v5693_v36, 0.0  ;;  %v5355_v60 = vsub.f32 %v8458_v3, %v8895_v7 }
 0x305   :  { %v5952_v46 = vadd.f32 %v5951_v17, %v5950_v49  ;;  %v12471_v17 = vld [vmem:[#allocation124_spill] sm:$0xff] }
 0x306   :  { %v5352_v43 = vsub.f32 %v12471_v17, %v8895_v7  ;;  %v5695_v51 = vmul.f32 %v5351_v10, %v5351_v10  ;;  %v5963_v25 = vsel %vm4901_vm3, %v5694_v12, 0.0  ;;  %v5356_v10 = vsub.f32 %v8470_v63, %v8895_v7 }
 0x307   :  { %v5954_v1 = vadd.f32 %v5953_v18, %v5952_v46  ;;  %v12472_v18 = vld [vmem:[#allocation125_spill] sm:$0xff] }
 0x308   :  { %v5353_v34 = vsub.f32 %v12472_v18, %v8895_v7  ;;  %v5696_v39 = vmul.f32 %v5352_v43, %v5352_v43  ;;  %v5965_v31 = vsel %vm4901_vm3, %v5695_v51, 0.0  ;;  %v5357_v43 = vsub.f32 %v8478_v44, %v8895_v7 }
 0x309   :  { %v5956_v58 = vadd.f32 %v5955_v8, %v5954_v1  ;;  %v12473_v8 = vld [vmem:[#allocation126_spill] sm:$0xff] }
 0x30a   :  { %v5354_v30 = vsub.f32 %v12473_v8, %v8895_v7  ;;  %v5967_v36 = vsel %vm4901_vm3, %v5696_v39, 0.0 }
 0x30b   :  { %v5958_v49 = vadd.f32 %v5957_v9, %v5956_v58  ;;  %v5697_v9 = vmul.f32 %v5353_v34, %v5353_v34  ;;  %v5358_v34 = vsub.f32 %v8482_v2, %v8895_v7 }
 0x30d   :  { %v5960_v46 = vadd.f32 %v5959_v4, %v5958_v49  ;;  %v5698_v4 = vmul.f32 %v5354_v30, %v5354_v30  ;;  %v5969_v12 = vsel %vm4901_vm3, %v5697_v9, 0.0  ;;  %v5359_v30 = vsub.f32 %v8488_v47, %v8895_v7 }
 0x30f   :  { %v5962_v1 = vadd.f32 %v5961_v15, %v5960_v46  ;;  %v5699_v15 = vmul.f32 %v5355_v60, %v5355_v60  ;;  %v5971_v51 = vsel %vm4901_vm3, %v5698_v4, 0.0  ;;  %v5360_v60 = vsub.f32 %v8496_v53, %v8895_v7 }
 0x311   :  { %v5964_v58 = vadd.f32 %v5963_v25, %v5962_v1  ;;  %v5700_v25 = vmul.f32 %v5356_v10, %v5356_v10  ;;  %v5973_v39 = vsel %vm4901_vm3, %v5699_v15, 0.0  ;;  %v5361_v10 = vsub.f32 %v8502_v26, %v8895_v7 }
 0x313   :  { %v5966_v49 = vadd.f32 %v5965_v31, %v5964_v58  ;;  %v5701_v31 = vmul.f32 %v5357_v43, %v5357_v43  ;;  %v5975_v9 = vsel %vm4901_vm3, %v5700_v25, 0.0  ;;  %v5362_v43 = vsub.f32 %v8506_v11, %v8895_v7 }
 0x315   :  { %v5968_v46 = vadd.f32 %v5967_v36, %v5966_v49  ;;  %v5702_v36 = vmul.f32 %v5358_v34, %v5358_v34  ;;  %v5977_v4 = vsel %vm4901_vm3, %v5701_v31, 0.0  ;;  %v5363_v34 = vsub.f32 %v8517_v55, %v8895_v7 }
 0x317   :  { %v5970_v1 = vadd.f32 %v5969_v12, %v5968_v46  ;;  %v5703_v12 = vmul.f32 %v5359_v30, %v5359_v30  ;;  %v5979_v15 = vsel %vm4901_vm3, %v5702_v36, 0.0  ;;  %v5364_v30 = vsub.f32 %v8525_v27, %v8895_v7 }
 0x319   :  { %v5972_v58 = vadd.f32 %v5971_v51, %v5970_v1  ;;  %v5704_v51 = vmul.f32 %v5360_v60, %v5360_v60  ;;  %v5981_v25 = vsel %vm4901_vm3, %v5703_v12, 0.0  ;;  %v5365_v60 = vsub.f32 %v8531_v33, %v8895_v7 }
 0x31b   :  { %v5974_v49 = vadd.f32 %v5973_v39, %v5972_v58  ;;  %v5705_v39 = vmul.f32 %v5361_v10, %v5361_v10  ;;  %v5983_v31 = vsel %vm4901_vm3, %v5704_v51, 0.0  ;;  %v5366_v10 = vsub.f32 %v8535_v41, %v8895_v7 }
 0x31d   :  { %v5976_v46 = vadd.f32 %v5975_v9, %v5974_v49  ;;  %v5706_v9 = vmul.f32 %v5362_v43, %v5362_v43  ;;  %v5985_v36 = vsel %vm4901_vm3, %v5705_v39, 0.0  ;;  %v5367_v43 = vsub.f32 %v8541_v48, %v8895_v7 }
 0x31f   :  { %v5978_v1 = vadd.f32 %v5977_v4, %v5976_v46  ;;  %v5707_v4 = vmul.f32 %v5363_v34, %v5363_v34  ;;  %v5987_v12 = vsel %vm4901_vm3, %v5706_v9, 0.0  ;;  %v5368_v34 = vsub.f32 %v8549_v6, %v8895_v7 }
 0x321   :  { %v5980_v58 = vadd.f32 %v5979_v15, %v5978_v1  ;;  %v5708_v15 = vmul.f32 %v5364_v30, %v5364_v30  ;;  %v5989_v51 = vsel %vm4901_vm3, %v5707_v4, 0.0  ;;  %v5369_v30 = vsub.f32 %v8555_v22, %v8895_v7 }
 0x323   :  { %v5982_v49 = vadd.f32 %v5981_v25, %v5980_v58  ;;  %v5709_v25 = vmul.f32 %v5365_v60, %v5365_v60  ;;  %v5991_v39 = vsel %vm4901_vm3, %v5708_v15, 0.0  ;;  %v5370_v60 = vsub.f32 %v8559_v45, %v8895_v7 }
 0x325   :  { %v5984_v46 = vadd.f32 %v5983_v31, %v5982_v49  ;;  %v5710_v31 = vmul.f32 %v5366_v10, %v5366_v10  ;;  %v5993_v9 = vsel %vm4901_vm3, %v5709_v25, 0.0  ;;  %v5371_v10 = vsub.f32 %v8565_v62, %v8895_v7 }
 0x327   :  { %v5986_v1 = vadd.f32 %v5985_v36, %v5984_v46  ;;  %v5711_v36 = vmul.f32 %v5367_v43, %v5367_v43  ;;  %v5995_v4 = vsel %vm4901_vm3, %v5710_v31, 0.0  ;;  %v5372_v43 = vsub.f32 %v8573_v57, %v8895_v7 }
 0x329   :  { %v5988_v58 = vadd.f32 %v5987_v12, %v5986_v1  ;;  %v5712_v12 = vmul.f32 %v5368_v34, %v5368_v34  ;;  %v5997_v15 = vsel %vm4901_vm3, %v5711_v36, 0.0  ;;  %v5373_v34 = vsub.f32 %v8579_v52, %v8895_v7 }
 0x32b   :  { %v5990_v49 = vadd.f32 %v5989_v51, %v5988_v58  ;;  %v5713_v51 = vmul.f32 %v5369_v30, %v5369_v30  ;;  %v5999_v25 = vsel %vm4901_vm3, %v5712_v12, 0.0  ;;  %v5374_v30 = vsub.f32 %v8583_v20, %v8895_v7 }
 0x32c   :  { %v5717_v57 = vmul.f32 %v5373_v34, %v5373_v34  ;;  %v5378_v34 = vsub.f32 %v8615_v40, %v8895_v7 }
 0x32d   :  { %v5992_v46 = vadd.f32 %v5991_v39, %v5990_v49  ;;  %v5714_v39 = vmul.f32 %v5370_v60, %v5370_v60  ;;  %v6001_v31 = vsel %vm4901_vm3, %v5713_v51, 0.0 }
 0x32f   :  { %v5994_v1 = vadd.f32 %v5993_v9, %v5992_v46  ;;  %v5715_v9 = vmul.f32 %v5371_v10, %v5371_v10  ;;  %v6003_v36 = vsel %vm4901_vm3, %v5714_v39, 0.0  ;;  %v5376_v10 = vsub.f32 %v8598_v24, %v8895_v7 }
 0x330   :  { %v6009_v39 = vsel %vm4901_vm3, %v5717_v57, 0.0 }
 0x331   :  { %v5996_v58 = vadd.f32 %v5995_v4, %v5994_v1  ;;  %v5716_v4 = vmul.f32 %v5372_v43, %v5372_v43  ;;  %v6005_v12 = vsel %vm4901_vm3, %v5715_v9, 0.0  ;;  %v5380_v9 = vsub.f32 %v8608_v56, %v8895_v7 }
 0x332   :  { %v5381_v56 = vsub.f32 %v8634_v21, %v8895_v7 }
 0x333   :  { %v5998_v49 = vadd.f32 %v5997_v15, %v5996_v58  ;;  %v12474_v15 = vld [vmem:[#allocation129_spill] sm:$0xff]  ;;  %v6007_v51 = vsel %vm4901_vm3, %v5716_v4, 0.0  ;;  %v5379_v4 = vsub.f32 %v8621_v13, %v8895_v7 }
 0x334   :  { %v5375_v60 = vsub.f32 %v12474_v15, %v8895_v7 }
 0x335   :  { %v6000_v46 = vadd.f32 %v5999_v25, %v5998_v49  ;;  %v5718_v25 = vmul.f32 %v5374_v30, %v5374_v30 }
 0x336   :  { %v5719_v20 = vmul.f32 %v5375_v60, %v5375_v60 }
 0x337   :  { %v6002_v1 = vadd.f32 %v6001_v31, %v6000_v46  ;;  %v12475_v31 = vld [vmem:[#allocation130_spill] sm:$0xff] }
 0x338   :  { %v5377_v43 = vsub.f32 %v12475_v31, %v8895_v7 }
 0x339   :  { %v6004_v58 = vadd.f32 %v6003_v36, %v6002_v1  ;;  %v5720_v36 = vmul.f32 %v5376_v10, %v5376_v10  ;;  %v5723_v10 = vmul.f32 %v5379_v4, %v5379_v4 }
 0x33b   :  { %v6006_v49 = vadd.f32 %v6005_v12, %v6004_v58  ;;  %v6011_v58 = vsel %vm4901_vm3, %v5718_v25, 0.0  ;;  %v5721_v12 = vmul.f32 %v5377_v43, %v5377_v43 }
 0x33d   :  { %v6008_v46 = vadd.f32 %v6007_v51, %v6006_v49  ;;  %v6013_v49 = vsel %vm4901_vm3, %v5719_v20, 0.0  ;;  %v12476_v51 = vld [vmem:[#allocation132_spill] sm:$0xff]  ;;  %v6017_v25 = vsel %vm4901_vm3, %v5721_v12, 0.0 }
 0x33e   :  { %v5552_v57 = vmul.f32 %v12476_v51, %v5380_v9  ;;  %v12478_v9 = vld [vmem:[#allocation136_spill] sm:$0xff]  ;;  %v12479_v51 = vld [vmem:[#allocation137_spill] sm:$0xff] }
 0x33f   :  { %v6010_v1 = vadd.f32 %v6009_v39, %v6008_v46  ;;  %v5722_v46 = vmul.f32 %v5378_v34, %v5378_v34  ;;  %v6015_v39 = vsel %vm4901_vm3, %v5720_v36, 0.0  ;;  %v5383_v34 = vsub.f32 %v12478_v9, %v8895_v7 }
 0x340   :  { %v5724_v43 = vmul.f32 %v5552_v57, %v5552_v57  ;;  %v6021_v36 = vsel %vm4901_vm3, %v5723_v10, 0.0  ;;  %v5384_v4 = vsub.f32 %v12479_v51, %v8895_v7 }
 0x341   :  { %v6012_v30 = vadd.f32 %v6011_v58, %v6010_v1  ;;  %v12477_v58 = vld [vmem:[#allocation135_spill] sm:$0xff]  ;;  %v6019_v20 = vsel %vm4901_vm3, %v5722_v46, 0.0 }
 0x342   :  { %v5382_v13 = vsub.f32 %v12477_v58, %v8895_v7  ;;  %v5727_v58 = vmul.f32 %v5383_v34, %v5383_v34  ;;  %v5728_v9 = vmul.f32 %v5384_v4, %v5384_v4  ;;  %v5389_v4 = vsub.f32 %v8682_v28, %v8895_v7 }
 0x343   :  { %v6014_v60 = vadd.f32 %v6013_v49, %v6012_v30  ;;  %v5725_v49 = vmul.f32 %v5381_v56, %v5381_v56 }
 0x345   :  { %v6016_v40 = vadd.f32 %v6015_v39, %v6014_v60  ;;  %v5726_v39 = vmul.f32 %v5382_v13, %v5382_v13  ;;  %v6025_v46 = vsel %vm4901_vm3, %v5725_v49, 0.0  ;;  %v6031_v49 = vsel %vm4901_vm3, %v5728_v9, 0.0 }
 0x347   :  { %v6018_v1 = vadd.f32 %v6017_v25, %v6016_v40  ;;  %v6023_v40 = vsel %vm4901_vm3, %v5724_v43, 0.0  ;;  %v12480_v25 = vld [vmem:[#allocation75_spill] sm:$0xff]  ;;  %v6027_v10 = vsel %vm4901_vm3, %v5726_v39, 0.0  ;;  %v6029_v43 = vsel %vm4901_vm3, %v5727_v58, 0.0 }
 0x348   :  { %v5385_v57 = vsub.f32 %v12480_v25, %v8895_v7 }
 0x349   :  { %v6020_v30 = vadd.f32 %v6019_v20, %v6018_v1  ;;  %v12481_v20 = vld [vmem:[#allocation72_spill] sm:$0xff] }
 0x34a   :  { %v5386_v56 = vsub.f32 %v12481_v20, %v8895_v7  ;;  %v5729_v51 = vmul.f32 %v5385_v57, %v5385_v57 }
 0x34b   :  { %v6022_v60 = vadd.f32 %v6021_v36, %v6020_v30  ;;  %v12482_v36 = vld [vmem:[#allocation73_spill] sm:$0xff] }
 0x34c   :  { %v5387_v13 = vsub.f32 %v12482_v36, %v8895_v7  ;;  %v5730_v25 = vmul.f32 %v5386_v56, %v5386_v56  ;;  %v6033_v39 = vsel %vm4901_vm3, %v5729_v51, 0.0 }
 0x34d   :  { %v6024_v12 = vadd.f32 %v6023_v40, %v6022_v60  ;;  %v12483_v40 = vld [vmem:[#allocation80_spill] sm:$0xff] }
 0x34e   :  { %v5388_v34 = vsub.f32 %v12483_v40, %v8895_v7  ;;  %v6035_v58 = vsel %vm4901_vm3, %v5730_v25, 0.0  ;;  %v5733_v40 = vmul.f32 %v5389_v4, %v5389_v4 }
 0x34f   :  { %v6026_v1 = vadd.f32 %v6025_v46, %v6024_v12  ;;  %v5731_v46 = vmul.f32 %v5387_v13, %v5387_v13 }
 0x350   :  { %v5732_v36 = vmul.f32 %v5388_v34, %v5388_v34  ;;  %v6041_v25 = vsel %vm4901_vm3, %v5733_v40, 0.0 }
 0x351   :  { %v6028_v30 = vadd.f32 %v6027_v10, %v6026_v1  ;;  %v12484_v10 = vld [vmem:[#allocation79_spill] sm:$0xff]  ;;  %v6037_v9 = vsel %vm4901_vm3, %v5731_v46, 0.0 }
 0x352   :  { %v5390_v57 = vsub.f32 %v12484_v10, %v8895_v7  ;;  %v6039_v51 = vsel %vm4901_vm3, %v5732_v36, 0.0 }
 0x353   :  { %v6030_v60 = vadd.f32 %v6029_v43, %v6028_v30  ;;  %v12485_v43 = vld [vmem:[#allocation81_spill] sm:$0xff] }
 0x354   :  { %v5391_v56 = vsub.f32 %v12485_v43, %v8895_v7  ;;  %v5734_v28 = vmul.f32 %v5390_v57, %v5390_v57 }
 0x355   :  { %v6032_v12 = vadd.f32 %v6031_v49, %v6030_v60  ;;  %v12486_v49 = vld [vmem:[#allocation88_spill] sm:$0xff] }
 0x356   :  { %v5392_v13 = vsub.f32 %v12486_v49, %v8895_v7  ;;  %v5735_v10 = vmul.f32 %v5391_v56, %v5391_v56  ;;  %v6043_v46 = vsel %vm4901_vm3, %v5734_v28, 0.0 }
 0x357   :  { %v6034_v1 = vadd.f32 %v6033_v39, %v6032_v12  ;;  %v12487_v39 = vld [vmem:[#allocation91_spill] sm:$0xff] }
 0x358   :  { %v5393_v34 = vsub.f32 %v12487_v39, %v8895_v7  ;;  %v5736_v43 = vmul.f32 %v5392_v13, %v5392_v13  ;;  %v6045_v36 = vsel %vm4901_vm3, %v5735_v10, 0.0 }
 0x359   :  { %v6036_v30 = vadd.f32 %v6035_v58, %v6034_v1  ;;  %v12488_v58 = vld [vmem:[#allocation87_spill] sm:$0xff] }
 0x35a   :  { %v5394_v4 = vsub.f32 %v12488_v58, %v8895_v7  ;;  %v5737_v49 = vmul.f32 %v5393_v34, %v5393_v34  ;;  %v6047_v40 = vsel %vm4901_vm3, %v5736_v43, 0.0 }
 0x35b   :  { %v6038_v60 = vadd.f32 %v6037_v9, %v6036_v30  ;;  %v12489_v9 = vld [vmem:[#allocation89_spill] sm:$0xff] }
 0x35c   :  { %v5395_v57 = vsub.f32 %v12489_v9, %v8895_v7  ;;  %v5738_v39 = vmul.f32 %v5394_v4, %v5394_v4  ;;  %v6049_v28 = vsel %vm4901_vm3, %v5737_v49, 0.0  ;;  %v5399_v4 = vsub.f32 %v8742_v0, %v8895_v7 }
 0x35d   :  { %v6040_v12 = vadd.f32 %v6039_v51, %v6038_v60  ;;  %v12490_v51 = vld [vmem:[#allocation96_spill] sm:$0xff] }
 0x35e   :  { %v5396_v56 = vsub.f32 %v12490_v51, %v8895_v7  ;;  %v5739_v58 = vmul.f32 %v5395_v57, %v5395_v57  ;;  %v6051_v10 = vsel %vm4901_vm3, %v5738_v39, 0.0 }
 0x35f   :  { %v6042_v1 = vadd.f32 %v6041_v25, %v6040_v12  ;;  %v12491_v25 = vld [vmem:[#allocation99_spill] sm:$0xff] }
 0x360   :  { %v5397_v13 = vsub.f32 %v12491_v25, %v8895_v7  ;;  %v5740_v9 = vmul.f32 %v5396_v56, %v5396_v56  ;;  %v6053_v43 = vsel %vm4901_vm3, %v5739_v58, 0.0  ;;  %v5401_v56 = vsub.f32 %v8754_v14, %v8895_v7 }
 0x361   :  { %v6044_v30 = vadd.f32 %v6043_v46, %v6042_v1  ;;  %v12492_v46 = vld [vmem:[#allocation95_spill] sm:$0xff] }
 0x362   :  { %v5398_v34 = vsub.f32 %v12492_v46, %v8895_v7  ;;  %v6055_v49 = vsel %vm4901_vm3, %v5740_v9, 0.0 }
 0x363   :  { %v6046_v60 = vadd.f32 %v6045_v36, %v6044_v30  ;;  %v5741_v36 = vmul.f32 %v5397_v13, %v5397_v13  ;;  %v5402_v13 = vsub.f32 %v8758_v23, %v8895_v7 }
 0x364   :  { %v5742_v25 = vmul.f32 %v5398_v34, %v5398_v34  ;;  %v5403_v34 = vsub.f32 %v8766_v16, %v8895_v7 }
 0x365   :  { %v6048_v12 = vadd.f32 %v6047_v40, %v6046_v60  ;;  %v12493_v40 = vld [vmem:[#allocation97_spill] sm:$0xff]  ;;  %v6057_v39 = vsel %vm4901_vm3, %v5741_v36, 0.0 }
 0x366   :  { %v5400_v57 = vsub.f32 %v12493_v40, %v8895_v7  ;;  %v6059_v58 = vsel %vm4901_vm3, %v5742_v25, 0.0 }
 0x367   :  { %v6050_v1 = vadd.f32 %v6049_v28, %v6048_v12  ;;  %v5743_v28 = vmul.f32 %v5399_v4, %v5399_v4  ;;  %v5404_v4 = vsub.f32 %v8770_v42, %v8895_v7 }
 0x369   :  { %v6052_v30 = vadd.f32 %v6051_v10, %v6050_v1  ;;  %v5744_v10 = vmul.f32 %v5400_v57, %v5400_v57  ;;  %v6061_v9 = vsel %vm4901_vm3, %v5743_v28, 0.0  ;;  %v5405_v57 = vsub.f32 %v8778_v5, %v8895_v7 }
 0x36b   :  { %v6054_v60 = vadd.f32 %v6053_v43, %v6052_v30  ;;  %v5745_v43 = vmul.f32 %v5401_v56, %v5401_v56  ;;  %v6063_v36 = vsel %vm4901_vm3, %v5744_v10, 0.0  ;;  %v5406_v56 = vsub.f32 %v8782_v19, %v8895_v7 }
 0x36d   :  { %v6056_v12 = vadd.f32 %v6055_v49, %v6054_v60  ;;  %v5746_v49 = vmul.f32 %v5402_v13, %v5402_v13  ;;  %v6065_v25 = vsel %vm4901_vm3, %v5745_v43, 0.0  ;;  %v5407_v13 = vsub.f32 %v8790_v61, %v8895_v7 }
 0x36f   :  { %v6058_v1 = vadd.f32 %v6057_v39, %v6056_v12  ;;  %v5747_v39 = vmul.f32 %v5403_v34, %v5403_v34  ;;  %v6067_v28 = vsel %vm4901_vm3, %v5746_v49, 0.0  ;;  %v5408_v34 = vsub.f32 %v8794_v35, %v8895_v7 }
 0x371   :  { %v6060_v30 = vadd.f32 %v6059_v58, %v6058_v1  ;;  %v5748_v58 = vmul.f32 %v5404_v4, %v5404_v4  ;;  %v6069_v10 = vsel %vm4901_vm3, %v5747_v39, 0.0  ;;  %v5409_v4 = vsub.f32 %v8802_v50, %v8895_v7 }
 0x373   :  { %v6062_v60 = vadd.f32 %v6061_v9, %v6060_v30  ;;  %v5749_v9 = vmul.f32 %v5405_v57, %v5405_v57  ;;  %v6071_v43 = vsel %vm4901_vm3, %v5748_v58, 0.0  ;;  %v5410_v57 = vsub.f32 %v8806_v37, %v8895_v7 }
 0x375   :  { %v6064_v12 = vadd.f32 %v6063_v36, %v6062_v60  ;;  %v5750_v36 = vmul.f32 %v5406_v56, %v5406_v56  ;;  %v6073_v49 = vsel %vm4901_vm3, %v5749_v9, 0.0  ;;  %v5411_v56 = vsub.f32 %v8814_v54, %v8895_v7 }
 0x377   :  { %v6066_v1 = vadd.f32 %v6065_v25, %v6064_v12  ;;  %v5751_v25 = vmul.f32 %v5407_v13, %v5407_v13  ;;  %v6075_v39 = vsel %vm4901_vm3, %v5750_v36, 0.0  ;;  %v5412_v13 = vsub.f32 %v8818_v29, %v8895_v7 }
 0x379   :  { %v6068_v30 = vadd.f32 %v6067_v28, %v6066_v1  ;;  %v5752_v28 = vmul.f32 %v5408_v34, %v5408_v34  ;;  %v6077_v58 = vsel %vm4901_vm3, %v5751_v25, 0.0  ;;  %v5413_v34 = vsub.f32 %v8826_v38, %v8895_v7 }
 0x37a   :  { %v5756_v54 = vmul.f32 %v5412_v13, %v5412_v13 }
 0x37b   :  { %v6070_v60 = vadd.f32 %v6069_v10, %v6068_v30  ;;  %v5753_v10 = vmul.f32 %v5409_v4, %v5409_v4  ;;  %v6079_v9 = vsel %vm4901_vm3, %v5752_v28, 0.0  ;;  %v5757_v29 = vmul.f32 %v5413_v34, %v5413_v34 }
 0x37d   :  { %v6072_v12 = vadd.f32 %v6071_v43, %v6070_v60  ;;  %v5754_v43 = vmul.f32 %v5410_v57, %v5410_v57  ;;  %v6081_v36 = vsel %vm4901_vm3, %v5753_v10, 0.0  ;;  %v6087_v10 = vsel %vm4901_vm3, %v5756_v54, 0.0 }
 0x37f   :  { %v6074_v1 = vadd.f32 %v6073_v49, %v6072_v12  ;;  %v5755_v49 = vmul.f32 %v5411_v56, %v5411_v56  ;;  %v6083_v25 = vsel %vm4901_vm3, %v5754_v43, 0.0  ;;  %v6089_v43 = vsel %vm4901_vm3, %v5757_v29, 0.0 }
 0x381   :  { %v6076_v30 = vadd.f32 %v6075_v39, %v6074_v1  ;;  %v12494_v39 = vld [vmem:[#allocation139_spill] sm:$0xff]  ;;  %v6085_v28 = vsel %vm4901_vm3, %v5755_v49, 0.0 }
 0x382   :  { %v5414_v4 = vsub.f32 %v12494_v39, %v8895_v7 }
 0x383   :  { %v6078_v60 = vadd.f32 %v6077_v58, %v6076_v30  ;;  %v12495_v58 = vld [vmem:[#allocation140_spill] sm:$0xff] }
 0x384   :  { %v5415_v57 = vsub.f32 %v12495_v58, %v8895_v7  ;;  %v5758_v38 = vmul.f32 %v5414_v4, %v5414_v4 }
 0x385   :  { %v6080_v12 = vadd.f32 %v6079_v9, %v6078_v60  ;;  %v12496_v9 = vld [vmem:[#allocation141_spill] sm:$0xff] }
 0x386   :  { %v5416_v56 = vsub.f32 %v12496_v9, %v8895_v7  ;;  %v5759_v39 = vmul.f32 %v5415_v57, %v5415_v57  ;;  %v6091_v49 = vsel %vm4901_vm3, %v5758_v38, 0.0  ;;  %v12502_v38 = vld [vmem:[#allocation148_spill] sm:$0xff] }
 0x387   :  { %v6082_v1 = vadd.f32 %v6081_v36, %v6080_v12  ;;  %v12497_v36 = vld [vmem:[#allocation142_spill] sm:$0xff] }
 0x388   :  { %v5417_v13 = vsub.f32 %v12497_v36, %v8895_v7  ;;  %v5760_v58 = vmul.f32 %v5416_v56, %v5416_v56  ;;  %v6093_v54 = vsel %vm4901_vm3, %v5759_v39, 0.0  ;;  %v12503_v39 = vld [vmem:[#allocation147_spill] sm:$0xff] }
 0x389   :  { %v6084_v30 = vadd.f32 %v6083_v25, %v6082_v1  ;;  %v12498_v25 = vld [vmem:[#allocation143_spill] sm:$0xff] }
 0x38a   :  { %v5418_v34 = vsub.f32 %v12498_v25, %v8895_v7  ;;  %v5761_v9 = vmul.f32 %v5417_v13, %v5417_v13  ;;  %v6095_v29 = vsel %vm4901_vm3, %v5760_v58, 0.0  ;;  %v12504_v25 = vld [vmem:[#allocation149_spill] sm:$0xff] }
 0x38b   :  { %v6086_v60 = vadd.f32 %v6085_v28, %v6084_v30  ;;  %v12499_v28 = vld [vmem:[#allocation144_spill] sm:$0xff] }
 0x38c   :  { %v5419_v4 = vsub.f32 %v12499_v28, %v8895_v7  ;;  %v5762_v36 = vmul.f32 %v5418_v34, %v5418_v34  ;;  %v6097_v28 = vsel %vm4901_vm3, %v5761_v9, 0.0 }
 0x38d   :  { %v6088_v12 = vadd.f32 %v6087_v10, %v6086_v60  ;;  %v12500_v10 = vld [vmem:[#allocation145_spill] sm:$0xff] }
 0x38e   :  { %v5420_v57 = vsub.f32 %v12500_v10, %v8895_v7  ;;  %v6099_v10 = vsel %vm4901_vm3, %v5762_v36, 0.0 }
 0x38f   :  { %v6090_v1 = vadd.f32 %v6089_v43, %v6088_v12  ;;  %v12501_v43 = vld [vmem:[#allocation146_spill] sm:$0xff] }
 0x390   :  { %v5421_v56 = vsub.f32 %v12501_v43, %v8895_v7 }
 0x391   :  { %v6092_v30 = vadd.f32 %v6091_v49, %v6090_v1  ;;  %v5423_v1 = vsub.f32 %v12502_v38, %v8895_v7  ;;  %v5763_v49 = vmul.f32 %v5419_v4, %v5419_v4 }
 0x393   :  { %v6094_v60 = vadd.f32 %v6093_v54, %v6092_v30  ;;  %v5422_v30 = vsub.f32 %v12503_v39, %v8895_v7  ;;  %v5764_v54 = vmul.f32 %v5420_v57, %v5420_v57  ;;  %v5595_v58 = vmul.f32 %v12504_v25, %v5423_v1 }
 0x395   :  { %v6096_v12 = vadd.f32 %v6095_v29, %v6094_v60  ;;  %v5765_v60 = vmul.f32 %v5421_v56, %v5421_v56  ;;  %v6101_v29 = vsel %vm4901_vm3, %v5763_v49, 0.0  ;;  %v5766_v37 = vmul.f32 %v5422_v30, %v5422_v30 }
 0x396   :  { %v6103_v38 = vsel %vm4901_vm3, %v5764_v54, 0.0  ;;  %v5767_v50 = vmul.f32 %v5595_v58, %v5595_v58 }
 0x397   :  { %v6098_v13 = vadd.f32 %v6097_v28, %v6096_v12  ;;  %v6105_v9 = vsel %vm4901_vm3, %v5765_v60, 0.0  ;;  %v6107_v12 = vsel %vm4901_vm3, %v5766_v37, 0.0 }
 0x398   :  { %v6109_v36 = vsel %vm4901_vm3, %v5767_v50, 0.0  ;;  %v9424_v50 = vld [vmem:[%s11750_s4] sm:$0x1] }
 0x399   :  { %v6100_v34 = vadd.f32 %v6099_v10, %v6098_v13 }
 0x39b   :  { %v6102_v43 = vadd.f32 %v6101_v29, %v6100_v34 }
 0x39d   :  { %v6104_v4 = vadd.f32 %v6103_v38, %v6102_v43  ;;  %v6118_v43 = vld [vmem:[%s11749_s3] sm:$0x1] }
 0x39e   :  { %v12505_v38 = vld [vmem:[#allocation38_spill] sm:$0xff] }
 0x39f   :  { %v6106_v28 = vadd.f32 %v6105_v9, %v6104_v4  ;;  %v12034_v54 = vsub.s32 0, %v12505_v38  ;;  %v12522_v9 = vld [vmem:[#allocation14_spill] sm:$0xff] }
 0x3a1   :  { %v6108_v57 = vadd.f32 %v6107_v12, %v6106_v28  ;;  %v12506_v28 = vld [vmem:[#allocation2_spill] sm:$0xff] }
 0x3a3   :  { %v6110_v10 = vadd.f32 %v6109_v36, %v6108_v57  ;;  %v12507_v57 = vld [vmem:[#allocation4_spill] sm:$0xff] }
 0x3a5   :  { %v6111_v13 = vrot.slane %v6110_v10, 4 }
 0x3a7   :  { %v6112_v25 = vadd.f32 %v6111_v13, %v6110_v10  ;;  %v12508_v10 = vld [vmem:[#allocation3_spill] sm:$0xff] }
 0x3a9   :  { %v6113_v56 = vrot.slane %v6112_v25, 2 }
 0x3ab   :  { %v6114_v1 = vadd.f32 %v6113_v56, %v6112_v25  ;;  %v12510_v56 = vld [vmem:[#allocation6_spill] sm:$0xff] }
 0x3ad   :  { %v6115_v49 = vrot.slane %v6114_v1, 1 }
 0x3af   :  { %v6116_v34 = vadd.f32 %v6115_v49, %v6114_v1  ;;  %v12511_v49 = vld [vmem:[#allocation8_spill] sm:$0xff] }
 0x3b1   :  { %v6117_v30 = vmul.f32 0.000739645, %v6116_v34 }
 0x3b3   :  { %v6119_v29 = vadd.f32 1e-05, %v6117_v30  ;;  %v12512_v30 = vld [vmem:[#allocation7_spill] sm:$0xff] }
 0x3b5   :  { %7366 = vrsqrt.f32 %v6119_v29 }
 0x3bf   :  { %v7367_v37 = vpop.eup %7366 }
 0x3c0   :  { %v6121_v58 = vmul.f32 %v7367_v37, %v6118_v43  ;;  %v12513_v43 = vld [vmem:[#allocation9_spill] sm:$0xff] }
 0x3c2   :  { %v9427_v60 = vmul.f32 %v6121_v58, %v8895_v7  ;;  %v9431_v4 = vrot.slane %v6121_v58, %v12034_v54  ;;  %v12509_v7 = vld [vmem:[#allocation5_spill] sm:$0xff]  ;;  %v12514_v58 = vld [vmem:[#allocation10_spill] sm:$0xff]  ;;  %v12524_v54 = vld [vmem:[#allocation16_spill] sm:$0xff] }
 0x3c4   :  { %v9437_v12 = vmul.f32 %v9431_v4, %v12506_v28  ;;  %v9441_v36 = vmul.f32 %v9431_v4, %v12507_v57  ;;  %v9445_v13 = vmul.f32 %v9431_v4, %v12508_v10  ;;  %v9449_v25 = vmul.f32 %v9431_v4, %v12509_v7  ;;  %v12516_v57 = vld [vmem:[#allocation12_spill] sm:$0xff]  ;;  %v12518_v7 = vld [vmem:[#allocation11_spill] sm:$0xff] }
 0x3c5   :  { %v9453_v1 = vmul.f32 %v9431_v4, %v12510_v56  ;;  %v9457_v34 = vmul.f32 %v9431_v4, %v12511_v49  ;;  %v9461_v29 = vmul.f32 %v9431_v4, %v12512_v30  ;;  %v9465_v37 = vmul.f32 %v9431_v4, %v12513_v43  ;;  %v12520_v49 = vld [vmem:[#allocation13_spill] sm:$0xff] }
 0x3c6   :  { %v9469_v28 = vmul.f32 %v9431_v4, %v12514_v58  ;;  %v9473_v10 = vmul.f32 %v9431_v4, %v12516_v57  ;;  %v9477_v56 = vmul.f32 %v9431_v4, %v12518_v7  ;;  %v9481_v30 = vmul.f32 %v9431_v4, %v12520_v49 }
 0x3c7   :  { %v9485_v43 = vmul.f32 %v9431_v4, %v12522_v9  ;;  %v9489_v58 = vmul.f32 %v9431_v4, %v12524_v54 }
 0x3c8   :  { %12515 = vst [vmem:[#allocation44_spill] sm:$0xff] %v9469_v28  ;;  %12517 = vst [vmem:[#allocation47_spill] sm:$0xff] %v9473_v10  ;;  %v12526_v28 = vld [vmem:[#allocation15_spill] sm:$0xff]  ;;  %v12528_v10 = vld [vmem:[#allocation17_spill] sm:$0xff] }
 0x3c9   :  { %12519 = vst [vmem:[#allocation108_spill] sm:$0xff] %v9477_v56  ;;  %12521 = vst [vmem:[#allocation110_spill] sm:$0xff] %v9481_v30  ;;  %v9493_v57 = vmul.f32 %v9431_v4, %v12526_v28  ;;  %v9497_v7 = vmul.f32 %v9431_v4, %v12528_v10  ;;  %v12530_v56 = vld [vmem:[#allocation18_spill] sm:$0xff]  ;;  %v12532_v30 = vld [vmem:[#allocation20_spill] sm:$0xff] }
 0x3ca   :  { %12523 = vst [vmem:[#allocation124_spill] sm:$0xff] %v9485_v43  ;;  %12525 = vst [vmem:[#allocation125_spill] sm:$0xff] %v9489_v58  ;;  %v9501_v49 = vmul.f32 %v9431_v4, %v12530_v56  ;;  %v9505_v9 = vmul.f32 %v9431_v4, %v12532_v30  ;;  %v12534_v43 = vld [vmem:[#allocation19_spill] sm:$0xff]  ;;  %v12536_v58 = vld [vmem:[#allocation21_spill] sm:$0xff] }
 0x3cb   :  { %12527 = vst [vmem:[#allocation126_spill] sm:$0xff] %v9493_v57  ;;  %12529 = vst [vmem:[#allocation129_spill] sm:$0xff] %v9497_v7  ;;  %v9509_v54 = vmul.f32 %v9431_v4, %v12534_v43  ;;  %v9513_v28 = vmul.f32 %v9431_v4, %v12536_v58  ;;  %v12538_v57 = vld [vmem:[#allocation22_spill] sm:$0xff]  ;;  %v12540_v7 = vld [vmem:[#allocation24_spill] sm:$0xff] }
 0x3cc   :  { %12531 = vst [vmem:[#allocation130_spill] sm:$0xff] %v9501_v49  ;;  %12533 = vst [vmem:[#allocation132_spill] sm:$0xff] %v9505_v9  ;;  %v9517_v10 = vmul.f32 %v9431_v4, %v12538_v57  ;;  %v9521_v56 = vmul.f32 %v9431_v4, %v12540_v7  ;;  %v12542_v49 = vld [vmem:[#allocation23_spill] sm:$0xff]  ;;  %v12544_v9 = vld [vmem:[#allocation25_spill] sm:$0xff] }
 0x3cd   :  { %12535 = vst [vmem:[#allocation72_spill] sm:$0xff] %v9509_v54  ;;  %12537 = vst [vmem:[#allocation96_spill] sm:$0xff] %v9513_v28  ;;  %v9525_v30 = vmul.f32 %v9431_v4, %v12542_v49  ;;  %v9529_v43 = vmul.f32 %v9431_v4, %v12544_v9  ;;  %v12546_v54 = vld [vmem:[#allocation26_spill] sm:$0xff]  ;;  %v12548_v28 = vld [vmem:[#allocation28_spill] sm:$0xff] }
 0x3ce   :  { %12539 = vst [vmem:[#allocation95_spill] sm:$0xff] %v9517_v10  ;;  %12541 = vst [vmem:[#allocation97_spill] sm:$0xff] %v9521_v56  ;;  %v9533_v58 = vmul.f32 %v9431_v4, %v12546_v54  ;;  %v9537_v57 = vmul.f32 %v9431_v4, %v12548_v28  ;;  %v12550_v10 = vld [vmem:[#allocation27_spill] sm:$0xff]  ;;  %v12552_v56 = vld [vmem:[#allocation29_spill] sm:$0xff] }
 0x3cf   :  { %12543 = vst [vmem:[#allocation147_spill] sm:$0xff] %v9525_v30  ;;  %12545 = vst [vmem:[#allocation149_spill] sm:$0xff] %v9529_v43  ;;  %v9541_v7 = vmul.f32 %v9431_v4, %v12550_v10  ;;  %v9545_v49 = vmul.f32 %v9431_v4, %v12552_v56  ;;  %v12554_v30 = vld [vmem:[#allocation30_spill] sm:$0xff]  ;;  %v12556_v43 = vld [vmem:[#allocation32_spill] sm:$0xff] }
 0x3d0   :  { %12547 = vst [vmem:[#allocation38_spill] sm:$0xff] %v9533_v58  ;;  %12549 = vst [vmem:[#allocation2_spill] sm:$0xff] %v9537_v57  ;;  %v9549_v9 = vmul.f32 %v9431_v4, %v12554_v30  ;;  %v9553_v54 = vmul.f32 %v9431_v4, %v12556_v43  ;;  %v12558_v58 = vld [vmem:[#allocation31_spill] sm:$0xff]  ;;  %v12560_v57 = vld [vmem:[#allocation33_spill] sm:$0xff] }
 0x3d1   :  { %12551 = vst [vmem:[#allocation4_spill] sm:$0xff] %v9541_v7  ;;  %12553 = vst [vmem:[#allocation3_spill] sm:$0xff] %v9545_v49  ;;  %v9557_v28 = vmul.f32 %v9431_v4, %v12558_v58  ;;  %v9561_v10 = vmul.f32 %v9431_v4, %v12560_v57  ;;  %v12562_v7 = vld [vmem:[#allocation34_spill] sm:$0xff]  ;;  %v12564_v49 = vld [vmem:[#allocation36_spill] sm:$0xff] }
 0x3d2   :  { %12555 = vst [vmem:[#allocation5_spill] sm:$0xff] %v9549_v9  ;;  %12557 = vst [vmem:[#allocation6_spill] sm:$0xff] %v9553_v54  ;;  %v9565_v56 = vmul.f32 %v9431_v4, %v12562_v7  ;;  %v9569_v30 = vmul.f32 %v9431_v4, %v12564_v49  ;;  %v12566_v9 = vld [vmem:[#allocation35_spill] sm:$0xff]  ;;  %v12568_v54 = vld [vmem:[#allocation37_spill] sm:$0xff] }
 0x3d3   :  { %12559 = vst [vmem:[#allocation8_spill] sm:$0xff] %v9557_v28  ;;  %12561 = vst [vmem:[#allocation7_spill] sm:$0xff] %v9561_v10  ;;  %v9573_v43 = vmul.f32 %v9431_v4, %v12566_v9  ;;  %v9577_v58 = vmul.f32 %v9431_v4, %v12568_v54  ;;  %v12570_v28 = vld [vmem:[#allocation39_spill] sm:$0xff]  ;;  %v12572_v10 = vld [vmem:[#allocation41_spill] sm:$0xff] }
 0x3d4   :  { %12563 = vst [vmem:[#allocation9_spill] sm:$0xff] %v9565_v56  ;;  %12565 = vst [vmem:[#allocation10_spill] sm:$0xff] %v9569_v30  ;;  %v9581_v57 = vmul.f32 %v9431_v4, %v12570_v28  ;;  %v9585_v7 = vmul.f32 %v9431_v4, %v12572_v10  ;;  %v12573_v56 = vld [vmem:[#allocation40_spill] sm:$0xff]  ;;  %v12575_v30 = vld [vmem:[#allocation42_spill] sm:$0xff] }
 0x3d5   :  { %12567 = vst [vmem:[#allocation12_spill] sm:$0xff] %v9573_v43  ;;  %12569 = vst [vmem:[#allocation11_spill] sm:$0xff] %v9577_v58  ;;  %v9589_v49 = vmul.f32 %v9431_v4, %v12573_v56  ;;  %v9593_v9 = vmul.f32 %v9431_v4, %v12575_v30  ;;  %v12577_v43 = vld [vmem:[#allocation45_spill] sm:$0xff]  ;;  %v12579_v58 = vld [vmem:[#allocation46_spill] sm:$0xff]  ;;  %v9609_v56 = vmul.f32 %v9431_v4, %v12414_v59 }
 0x3d6   :  { %12571 = vst [vmem:[#allocation13_spill] sm:$0xff] %v9581_v57  ;;  %v9597_v54 = vmul.f32 %v9431_v4, %v12577_v43  ;;  %v9601_v28 = vmul.f32 %v9431_v4, %v12579_v58  ;;  %v12581_v57 = vld [vmem:[#allocation43_spill] sm:$0xff] }
 0x3d7   :  { %12574 = vst [vmem:[#allocation14_spill] sm:$0xff] %v9589_v49  ;;  %12576 = vst [vmem:[#allocation16_spill] sm:$0xff] %v9593_v9  ;;  %v9605_v10 = vmul.f32 %v9431_v4, %v12581_v57  ;;  %v12584_v49 = vld [vmem:[#allocation48_spill] sm:$0xff]  ;;  %v12586_v9 = vld [vmem:[#allocation50_spill] sm:$0xff] }
 0x3d8   :  { %12578 = vst [vmem:[#allocation15_spill] sm:$0xff] %v9597_v54  ;;  %12580 = vst [vmem:[#allocation17_spill] sm:$0xff] %v9601_v28  ;;  %v9613_v30 = vmul.f32 %v9431_v4, %v12584_v49  ;;  %v9617_v43 = vmul.f32 %v9431_v4, %v12586_v9  ;;  %v12588_v54 = vld [vmem:[#allocation49_spill] sm:$0xff]  ;;  %v12590_v28 = vld [vmem:[#allocation51_spill] sm:$0xff] }
 0x3d9   :  { %12582 = vst [vmem:[#allocation18_spill] sm:$0xff] %v9605_v10  ;;  %12583 = vst [vmem:[#allocation20_spill] sm:$0xff] %v9609_v56  ;;  %v9621_v58 = vmul.f32 %v9431_v4, %v12588_v54  ;;  %v9625_v57 = vmul.f32 %v9431_v4, %v12590_v28  ;;  %v12592_v10 = vld [vmem:[#allocation52_spill] sm:$0xff]  ;;  %v12594_v56 = vld [vmem:[#allocation54_spill] sm:$0xff] }
 0x3da   :  { %12585 = vst [vmem:[#allocation19_spill] sm:$0xff] %v9613_v30  ;;  %12587 = vst [vmem:[#allocation21_spill] sm:$0xff] %v9617_v43  ;;  %v9629_v59 = vmul.f32 %v9431_v4, %v12592_v10  ;;  %v9633_v49 = vmul.f32 %v9431_v4, %v12594_v56  ;;  %v12596_v30 = vld [vmem:[#allocation53_spill] sm:$0xff]  ;;  %v12598_v43 = vld [vmem:[#allocation55_spill] sm:$0xff] }
 0x3db   :  { %12589 = vst [vmem:[#allocation22_spill] sm:$0xff] %v9621_v58  ;;  %12591 = vst [vmem:[#allocation24_spill] sm:$0xff] %v9625_v57  ;;  %v9637_v9 = vmul.f32 %v9431_v4, %v12596_v30  ;;  %v9641_v54 = vmul.f32 %v9431_v4, %v12598_v43  ;;  %v12600_v58 = vld [vmem:[#allocation56_spill] sm:$0xff]  ;;  %v12602_v57 = vld [vmem:[#allocation58_spill] sm:$0xff] }
 0x3dc   :  { %12593 = vst [vmem:[#allocation23_spill] sm:$0xff] %v9629_v59  ;;  %12595 = vst [vmem:[#allocation25_spill] sm:$0xff] %v9633_v49  ;;  %v9645_v28 = vmul.f32 %v9431_v4, %v12600_v58  ;;  %v9649_v10 = vmul.f32 %v9431_v4, %v12602_v57  ;;  %v12604_v59 = vld [vmem:[#allocation57_spill] sm:$0xff]  ;;  %v12606_v49 = vld [vmem:[#allocation59_spill] sm:$0xff] }
 0x3dd   :  { %12597 = vst [vmem:[#allocation26_spill] sm:$0xff] %v9637_v9  ;;  %12599 = vst [vmem:[#allocation28_spill] sm:$0xff] %v9641_v54  ;;  %v9653_v56 = vmul.f32 %v9431_v4, %v12604_v59  ;;  %v9657_v30 = vmul.f32 %v9431_v4, %v12606_v49  ;;  %v12608_v9 = vld [vmem:[#allocation60_spill] sm:$0xff]  ;;  %v12610_v54 = vld [vmem:[#allocation62_spill] sm:$0xff] }
 0x3de   :  { %12601 = vst [vmem:[#allocation27_spill] sm:$0xff] %v9645_v28  ;;  %12603 = vst [vmem:[#allocation29_spill] sm:$0xff] %v9649_v10  ;;  %v9661_v43 = vmul.f32 %v9431_v4, %v12608_v9  ;;  %v9665_v58 = vmul.f32 %v9431_v4, %v12610_v54  ;;  %v12612_v28 = vld [vmem:[#allocation61_spill] sm:$0xff]  ;;  %v12614_v10 = vld [vmem:[#allocation63_spill] sm:$0xff] }
 0x3df   :  { %12605 = vst [vmem:[#allocation30_spill] sm:$0xff] %v9653_v56  ;;  %12607 = vst [vmem:[#allocation32_spill] sm:$0xff] %v9657_v30  ;;  %v9669_v57 = vmul.f32 %v9431_v4, %v12612_v28  ;;  %v9673_v59 = vmul.f32 %v9431_v4, %v12614_v10  ;;  %v12616_v56 = vld [vmem:[#allocation64_spill] sm:$0xff]  ;;  %v12618_v30 = vld [vmem:[#allocation66_spill] sm:$0xff] }
 0x3e0   :  { %12609 = vst [vmem:[#allocation31_spill] sm:$0xff] %v9661_v43  ;;  %12611 = vst [vmem:[#allocation33_spill] sm:$0xff] %v9665_v58  ;;  %v9677_v49 = vmul.f32 %v9431_v4, %v12616_v56  ;;  %v9681_v9 = vmul.f32 %v9431_v4, %v12618_v30  ;;  %v12620_v43 = vld [vmem:[#allocation65_spill] sm:$0xff]  ;;  %v12622_v58 = vld [vmem:[#allocation67_spill] sm:$0xff] }
 0x3e1   :  { %12613 = vst [vmem:[#allocation34_spill] sm:$0xff] %v9669_v57  ;;  %12615 = vst [vmem:[#allocation36_spill] sm:$0xff] %v9673_v59  ;;  %v9685_v54 = vmul.f32 %v9431_v4, %v12620_v43  ;;  %v9689_v28 = vmul.f32 %v9431_v4, %v12622_v58  ;;  %v12624_v57 = vld [vmem:[#allocation68_spill] sm:$0xff]  ;;  %v12626_v59 = vld [vmem:[#allocation70_spill] sm:$0xff] }
 0x3e2   :  { %12617 = vst [vmem:[#allocation35_spill] sm:$0xff] %v9677_v49  ;;  %12619 = vst [vmem:[#allocation37_spill] sm:$0xff] %v9681_v9  ;;  %v9693_v10 = vmul.f32 %v9431_v4, %v12624_v57  ;;  %v9697_v56 = vmul.f32 %v9431_v4, %v12626_v59  ;;  %v12628_v49 = vld [vmem:[#allocation69_spill] sm:$0xff]  ;;  %v12630_v9 = vld [vmem:[#allocation71_spill] sm:$0xff] }
 0x3e3   :  { %12621 = vst [vmem:[#allocation39_spill] sm:$0xff] %v9685_v54  ;;  %12623 = vst [vmem:[#allocation41_spill] sm:$0xff] %v9689_v28  ;;  %v9701_v30 = vmul.f32 %v9431_v4, %v12628_v49  ;;  %v9705_v43 = vmul.f32 %v9431_v4, %v12630_v9  ;;  %v12632_v54 = vld [vmem:[#allocation74_spill] sm:$0xff]  ;;  %v12634_v28 = vld [vmem:[#allocation77_spill] sm:$0xff] }
 0x3e4   :  { %12625 = vst [vmem:[#allocation40_spill] sm:$0xff] %v9693_v10  ;;  %12627 = vst [vmem:[#allocation42_spill] sm:$0xff] %v9697_v56  ;;  %v9709_v58 = vmul.f32 %v9431_v4, %v12632_v54  ;;  %v9713_v57 = vmul.f32 %v9431_v4, %v12634_v28  ;;  %v12636_v10 = vld [vmem:[#allocation76_spill] sm:$0xff]  ;;  %v12638_v56 = vld [vmem:[#allocation78_spill] sm:$0xff] }
 0x3e5   :  { %12629 = vst [vmem:[#allocation45_spill] sm:$0xff] %v9701_v30  ;;  %12631 = vst [vmem:[#allocation46_spill] sm:$0xff] %v9705_v43  ;;  %v9717_v59 = vmul.f32 %v9431_v4, %v12636_v10  ;;  %v9721_v49 = vmul.f32 %v9431_v4, %v12638_v56  ;;  %v12640_v30 = vld [vmem:[#allocation82_spill] sm:$0xff]  ;;  %v12642_v43 = vld [vmem:[#allocation85_spill] sm:$0xff] }
 0x3e6   :  { %12633 = vst [vmem:[#allocation43_spill] sm:$0xff] %v9709_v58  ;;  %12635 = vst [vmem:[#allocation48_spill] sm:$0xff] %v9713_v57  ;;  %v9725_v9 = vmul.f32 %v9431_v4, %v12640_v30  ;;  %v9729_v54 = vmul.f32 %v9431_v4, %v12642_v43  ;;  %v12644_v58 = vld [vmem:[#allocation84_spill] sm:$0xff]  ;;  %v12646_v57 = vld [vmem:[#allocation86_spill] sm:$0xff] }
 0x3e7   :  { %12637 = vst [vmem:[#allocation50_spill] sm:$0xff] %v9717_v59  ;;  %12639 = vst [vmem:[#allocation49_spill] sm:$0xff] %v9721_v49  ;;  %v9733_v28 = vmul.f32 %v9431_v4, %v12644_v58  ;;  %v9737_v10 = vmul.f32 %v9431_v4, %v12646_v57  ;;  %v12648_v59 = vld [vmem:[#allocation90_spill] sm:$0xff]  ;;  %v12650_v49 = vld [vmem:[#allocation93_spill] sm:$0xff] }
 0x3e8   :  { %12641 = vst [vmem:[#allocation51_spill] sm:$0xff] %v9725_v9  ;;  %12643 = vst [vmem:[#allocation52_spill] sm:$0xff] %v9729_v54  ;;  %v9741_v56 = vmul.f32 %v9431_v4, %v12648_v59  ;;  %v9745_v30 = vmul.f32 %v9431_v4, %v12650_v49  ;;  %v12652_v9 = vld [vmem:[#allocation92_spill] sm:$0xff]  ;;  %v12654_v54 = vld [vmem:[#allocation94_spill] sm:$0xff] }
 0x3e9   :  { %12645 = vst [vmem:[#allocation54_spill] sm:$0xff] %v9733_v28  ;;  %12647 = vst [vmem:[#allocation53_spill] sm:$0xff] %v9737_v10  ;;  %v9749_v43 = vmul.f32 %v9431_v4, %v12652_v9  ;;  %v9753_v58 = vmul.f32 %v9431_v4, %v12654_v54  ;;  %v12656_v28 = vld [vmem:[#allocation98_spill] sm:$0xff]  ;;  %v12657_v10 = vld [vmem:[#allocation101_spill] sm:$0xff] }
 0x3ea   :  { %12649 = vst [vmem:[#allocation55_spill] sm:$0xff] %v9741_v56  ;;  %12651 = vst [vmem:[#allocation56_spill] sm:$0xff] %v9745_v30  ;;  %v9757_v57 = vmul.f32 %v9431_v4, %v12656_v28  ;;  %v9761_v59 = vmul.f32 %v9431_v4, %v12657_v10  ;;  %v12659_v56 = vld [vmem:[#allocation100_spill] sm:$0xff]  ;;  %v12661_v30 = vld [vmem:[#allocation102_spill] sm:$0xff]  ;;  %v9781_v10 = vmul.f32 %v9431_v4, %v12457_v32 }
 0x3eb   :  { %12653 = vst [vmem:[#allocation58_spill] sm:$0xff] %v9749_v43  ;;  %12655 = vst [vmem:[#allocation57_spill] sm:$0xff] %v9753_v58  ;;  %v9765_v49 = vmul.f32 %v9431_v4, %v12659_v56  ;;  %v9769_v9 = vmul.f32 %v9431_v4, %v12661_v30  ;;  %v12663_v43 = vld [vmem:[#allocation106_spill] sm:$0xff]  ;;  %v12665_v58 = vld [vmem:[#allocation109_spill] sm:$0xff] }
 0x3ec   :  { %12658 = vst [vmem:[#allocation59_spill] sm:$0xff] %v9761_v59  ;;  %v9773_v54 = vmul.f32 %v9431_v4, %v12663_v43  ;;  %v9777_v28 = vmul.f32 %v9431_v4, %v12665_v58  ;;  %12667 = vst [vmem:[#allocation64_spill] sm:$0xff] %v9781_v10  ;;  %v12668_v59 = vld [vmem:[#allocation111_spill] sm:$0xff]  ;;  %v12678_v10 = vld [vmem:[#allocation116_spill] sm:$0xff] }
 0x3ed   :  { %12660 = vst [vmem:[#allocation60_spill] sm:$0xff] %v9765_v49  ;;  %12662 = vst [vmem:[#allocation62_spill] sm:$0xff] %v9769_v9  ;;  %v9785_v56 = vmul.f32 %v9431_v4, %v12668_v59  ;;  %v12670_v49 = vld [vmem:[#allocation112_spill] sm:$0xff]  ;;  %v12672_v9 = vld [vmem:[#allocation113_spill] sm:$0xff]  ;;  %v9805_v59 = vmul.f32 %v9431_v4, %v12678_v10 }
 0x3ee   :  { %12664 = vst [vmem:[#allocation61_spill] sm:$0xff] %v9773_v54  ;;  %12666 = vst [vmem:[#allocation63_spill] sm:$0xff] %v9777_v28  ;;  %v9789_v30 = vmul.f32 %v9431_v4, %v12670_v49  ;;  %v9793_v43 = vmul.f32 %v9431_v4, %v12672_v9  ;;  %v12674_v54 = vld [vmem:[#allocation114_spill] sm:$0xff]  ;;  %v12676_v28 = vld [vmem:[#allocation115_spill] sm:$0xff] }
 0x3ef   :  { %12669 = vst [vmem:[#allocation66_spill] sm:$0xff] %v9785_v56  ;;  %v9797_v58 = vmul.f32 %v9431_v4, %v12674_v54  ;;  %v9801_v32 = vmul.f32 %v9431_v4, %v12676_v28  ;;  %12679 = vst [vmem:[#allocation69_spill] sm:$0xff] %v9805_v59  ;;  %v12680_v56 = vld [vmem:[#allocation117_spill] sm:$0xff]  ;;  %v12686_v59 = vld [vmem:[#allocation122_spill] sm:$0xff] }
 0x3f0   :  { %12671 = vst [vmem:[#allocation65_spill] sm:$0xff] %v9789_v30  ;;  %12673 = vst [vmem:[#allocation67_spill] sm:$0xff] %v9793_v43  ;;  %v9809_v49 = vmul.f32 %v9431_v4, %v12680_v56  ;;  %v12682_v30 = vld [vmem:[#allocation118_spill] sm:$0xff]  ;;  %v12683_v43 = vld [vmem:[#allocation119_spill] sm:$0xff]  ;;  %v9829_v56 = vmul.f32 %v9431_v4, %v12686_v59  ;;  %v9849_v59 = vmul.f32 %v9431_v4, %v8458_v3 }
 0x3f1   :  { %12675 = vst [vmem:[#allocation68_spill] sm:$0xff] %v9797_v58  ;;  %12677 = vst [vmem:[#allocation70_spill] sm:$0xff] %v9801_v32  ;;  %v9813_v9 = vmul.f32 %v9431_v4, %v12682_v30  ;;  %v9817_v54 = vmul.f32 %v9431_v4, %v12683_v43  ;;  %v12684_v58 = vld [vmem:[#allocation120_spill] sm:$0xff]  ;;  %v12685_v32 = vld [vmem:[#allocation121_spill] sm:$0xff]  ;;  %v9837_v43 = vmul.f32 %v9431_v4, %v12471_v17 }
 0x3f2   :  { %12681 = vst [vmem:[#allocation71_spill] sm:$0xff] %v9809_v49  ;;  %v9821_v28 = vmul.f32 %v9431_v4, %v12684_v58  ;;  %v9825_v10 = vmul.f32 %v9431_v4, %v12685_v32  ;;  %v12687_v49 = vld [vmem:[#allocation123_spill] sm:$0xff]  ;;  %v9841_v58 = vmul.f32 %v9431_v4, %v12472_v18  ;;  %v9845_v32 = vmul.f32 %v9431_v4, %v12473_v8 }
 0x3f3   :  { %v9833_v30 = vmul.f32 %v9431_v4, %v12687_v49  ;;  %v9853_v49 = vmul.f32 %v9431_v4, %v8470_v63  ;;  %v9857_v17 = vmul.f32 %v9431_v4, %v8478_v44  ;;  %v9861_v18 = vmul.f32 %v9431_v4, %v8482_v2 }
 0x3f4   :  { %v9865_v8 = vmul.f32 %v9431_v4, %v8488_v47  ;;  %v9869_v3 = vmul.f32 %v9431_v4, %v8496_v53  ;;  %v9873_v63 = vmul.f32 %v9431_v4, %v8502_v26  ;;  %v9877_v44 = vmul.f32 %v9431_v4, %v8506_v11 }
 0x3f5   :  { %v9881_v2 = vmul.f32 %v9431_v4, %v8517_v55  ;;  %v9885_v47 = vmul.f32 %v9431_v4, %v8525_v27  ;;  %v9889_v53 = vmul.f32 %v9431_v4, %v8531_v33  ;;  %v9893_v26 = vmul.f32 %v9431_v4, %v8535_v41 }
 0x3f6   :  { %v9897_v11 = vmul.f32 %v9431_v4, %v8541_v48  ;;  %v9901_v55 = vmul.f32 %v9431_v4, %v8549_v6  ;;  %v9905_v27 = vmul.f32 %v9431_v4, %v8555_v22  ;;  %v9909_v33 = vmul.f32 %v9431_v4, %v8559_v45 }
 0x3f7   :  { %12688 = vst [vmem:[#allocation74_spill] sm:$0xff] %v9893_v26  ;;  %v9913_v41 = vmul.f32 %v9431_v4, %v8565_v62  ;;  %v12690_v26 = vld [vmem:[#allocation127_spill] sm:$0xff]  ;;  %v9921_v6 = vmul.f32 %v9431_v4, %v8579_v52  ;;  %v9929_v45 = vmul.f32 %v9431_v4, %v12474_v15  ;;  %v9933_v62 = vmul.f32 %v9431_v4, %v8598_v24 }
 0x3f8   :  { %12689 = vst [vmem:[#allocation77_spill] sm:$0xff] %v9901_v55  ;;  %v9917_v48 = vmul.f32 %v9431_v4, %v12690_v26  ;;  %v12693_v55 = vld [vmem:[#allocation128_spill] sm:$0xff]  ;;  %v9937_v26 = vmul.f32 %v9431_v4, %v12475_v31  ;;  %v9953_v24 = vmul.f32 %v9431_v4, %v8634_v21  ;;  %v9973_v21 = vmul.f32 %v9431_v4, %v12481_v20 }
 0x3f9   :  { %12692 = vst [vmem:[#allocation78_spill] sm:$0xff] %v9921_v6  ;;  %v9925_v22 = vmul.f32 %v9431_v4, %v12693_v55  ;;  %12695 = vst [vmem:[#allocation85_spill] sm:$0xff] %v9933_v62  ;;  %v12699_v6 = vld [vmem:[#allocation134_spill] sm:$0xff]  ;;  %v12703_v62 = vld [vmem:[#allocation135_spill] sm:$0xff] }
 0x3fa   :  { %12691 = vst [vmem:[#allocation76_spill] sm:$0xff] %v9917_v48  ;;  %12696 = vst [vmem:[#allocation84_spill] sm:$0xff] %v9937_v26  ;;  %v12697_v48 = vld [vmem:[#allocation133_spill] sm:$0xff]  ;;  %v9945_v55 = vmul.f32 %v9431_v4, %v12699_v6  ;;  %v9957_v31 = vmul.f32 %v9431_v4, %v12703_v62  ;;  %v12705_v26 = vld [vmem:[#allocation136_spill] sm:$0xff] }
 0x3fb   :  { %12694 = vst [vmem:[#allocation82_spill] sm:$0xff] %v9925_v22  ;;  %v9941_v52 = vmul.f32 %v9431_v4, %v12697_v48  ;;  %v12701_v22 = vld [vmem:[#allocation131_spill] sm:$0xff]  ;;  %12702 = vst [vmem:[#allocation93_spill] sm:$0xff] %v9953_v24  ;;  %v9961_v48 = vmul.f32 %v9431_v4, %v12705_v26  ;;  %v12712_v24 = vld [vmem:[#allocation73_spill] sm:$0xff] }
 0x3fc   :  { %12700 = vst [vmem:[#allocation90_spill] sm:$0xff] %v9945_v55  ;;  %v9949_v15 = vmul.f32 %v9431_v4, %v12701_v22  ;;  %12704 = vst [vmem:[#allocation92_spill] sm:$0xff] %v9957_v31  ;;  %v12709_v55 = vld [vmem:[#allocation75_spill] sm:$0xff]  ;;  %v9977_v62 = vmul.f32 %v9431_v4, %v12712_v24  ;;  %v12714_v31 = vld [vmem:[#allocation80_spill] sm:$0xff] }
 0x3fd   :  { %12698 = vst [vmem:[#allocation86_spill] sm:$0xff] %v9941_v52  ;;  %12706 = vst [vmem:[#allocation94_spill] sm:$0xff] %v9961_v48  ;;  %v12707_v52 = vld [vmem:[#allocation137_spill] sm:$0xff]  ;;  %v9969_v22 = vmul.f32 %v9431_v4, %v12709_v55  ;;  %v9981_v26 = vmul.f32 %v9431_v4, %v12714_v31  ;;  %v12716_v48 = vld [vmem:[#allocation83_spill] sm:$0xff] }
 0x3fe   :  { %v9965_v6 = vmul.f32 %v9431_v4, %v12707_v52  ;;  %12711 = vst [vmem:[#allocation100_spill] sm:$0xff] %v9973_v21  ;;  %12713 = vst [vmem:[#allocation102_spill] sm:$0xff] %v9977_v62  ;;  %v9985_v52 = vmul.f32 %v9431_v4, %v12716_v48  ;;  %v12721_v21 = vld [vmem:[#allocation88_spill] sm:$0xff]  ;;  %v12722_v62 = vld [vmem:[#allocation91_spill] sm:$0xff] }
 0x3ff   :  { %12710 = vst [vmem:[#allocation101_spill] sm:$0xff] %v9969_v22  ;;  %12715 = vst [vmem:[#allocation106_spill] sm:$0xff] %v9981_v26  ;;  %v12719_v22 = vld [vmem:[#allocation81_spill] sm:$0xff]  ;;  %v9997_v24 = vmul.f32 %v9431_v4, %v12721_v21  ;;  %v10001_v31 = vmul.f32 %v9431_v4, %v12722_v62  ;;  %v12723_v26 = vld [vmem:[#allocation87_spill] sm:$0xff]  ;;  %v10021_v62 = vmul.f32 %v9431_v4, %v12492_v46 }
 0x400   :  { %12708 = vst [vmem:[#allocation98_spill] sm:$0xff] %v9965_v6  ;;  %12717 = vst [vmem:[#allocation109_spill] sm:$0xff] %v9985_v52  ;;  %v12718_v6 = vld [vmem:[#allocation79_spill] sm:$0xff]  ;;  %v9993_v20 = vmul.f32 %v9431_v4, %v12719_v22  ;;  %v10005_v48 = vmul.f32 %v9431_v4, %v12723_v26  ;;  %v12724_v52 = vld [vmem:[#allocation89_spill] sm:$0xff]  ;;  %v10013_v22 = vmul.f32 %v9431_v4, %v12490_v51 }
 0x401   :  { %v9989_v55 = vmul.f32 %v9431_v4, %v12718_v6  ;;  %v10009_v6 = vmul.f32 %v9431_v4, %v12724_v52  ;;  %v10025_v26 = vmul.f32 %v9431_v4, %v8742_v0  ;;  %v10029_v52 = vmul.f32 %v9431_v4, %v12493_v40 }
 0x402   :  { %12720 = vst [vmem:[#allocation111_spill] sm:$0xff] %v9993_v20  ;;  %v12725_v20 = vld [vmem:[#allocation99_spill] sm:$0xff]  ;;  %v10033_v51 = vmul.f32 %v9431_v4, %v8754_v14  ;;  %v10041_v46 = vmul.f32 %v9431_v4, %v8766_v16  ;;  %v10045_v0 = vmul.f32 %v9431_v4, %v8770_v42  ;;  %v10049_v40 = vmul.f32 %v9431_v4, %v8778_v5 }
 0x403   :  { %v10017_v21 = vmul.f32 %v9431_v4, %v12725_v20  ;;  %v10037_v20 = vmul.f32 %v9431_v4, %v8758_v23  ;;  %v10053_v14 = vmul.f32 %v9431_v4, %v8782_v19  ;;  %v10057_v23 = vmul.f32 %v9431_v4, %v8790_v61 }
 0x404   :  { %12726 = vst [vmem:[#allocation112_spill] sm:$0xff] %v10041_v46  ;;  %12727 = vst [vmem:[#allocation113_spill] sm:$0xff] %v10045_v0  ;;  %v10061_v16 = vmul.f32 %v9431_v4, %v8794_v35  ;;  %v12732_v46 = vld [vmem:[#allocation104_spill] sm:$0xff]  ;;  %v12734_v0 = vld [vmem:[#allocation107_spill] sm:$0xff] }
 0x405   :  { %12728 = vst [vmem:[#allocation114_spill] sm:$0xff] %v10049_v40  ;;  %12729 = vst [vmem:[#allocation115_spill] sm:$0xff] %v10053_v14  ;;  %v10065_v42 = vmul.f32 %v9431_v4, %v12732_v46  ;;  %v10069_v5 = vmul.f32 %v9431_v4, %v12734_v0  ;;  %v12736_v40 = vld [vmem:[#allocation103_spill] sm:$0xff]  ;;  %v12738_v14 = vld [vmem:[#allocation105_spill] sm:$0xff] }
 0x406   :  { %12730 = vst [vmem:[#allocation116_spill] sm:$0xff] %v10057_v23  ;;  %12731 = vst [vmem:[#allocation117_spill] sm:$0xff] %v10061_v16  ;;  %v10073_v19 = vmul.f32 %v9431_v4, %v12736_v40  ;;  %v10077_v61 = vmul.f32 %v9431_v4, %v12738_v14  ;;  %v12740_v23 = vld [vmem:[#allocation138_spill] sm:$0xff]  ;;  %v12742_v16 = vld [vmem:[#allocation139_spill] sm:$0xff] }
 0x407   :  { %12733 = vst [vmem:[#allocation118_spill] sm:$0xff] %v10065_v42  ;;  %12735 = vst [vmem:[#allocation119_spill] sm:$0xff] %v10069_v5  ;;  %v10081_v35 = vmul.f32 %v9431_v4, %v12740_v23  ;;  %v10085_v46 = vmul.f32 %v9431_v4, %v12742_v16  ;;  %v12744_v42 = vld [vmem:[#allocation140_spill] sm:$0xff]  ;;  %v12746_v5 = vld [vmem:[#allocation141_spill] sm:$0xff] }
 0x408   :  { %12737 = vst [vmem:[#allocation120_spill] sm:$0xff] %v10073_v19  ;;  %12739 = vst [vmem:[#allocation121_spill] sm:$0xff] %v10077_v61  ;;  %v10089_v0 = vmul.f32 %v9431_v4, %v12744_v42  ;;  %v10093_v40 = vmul.f32 %v9431_v4, %v12746_v5  ;;  %v12748_v19 = vld [vmem:[#allocation142_spill] sm:$0xff]  ;;  %v12750_v61 = vld [vmem:[#allocation143_spill] sm:$0xff]  ;;  %v12753_v42 = vsub.f32 %v9424_v50, %v9427_v60 }
 0x409   :  { %12741 = vst [vmem:[#allocation122_spill] sm:$0xff] %v10081_v35  ;;  %12743 = vst [vmem:[#allocation123_spill] sm:$0xff] %v10085_v46  ;;  %v10097_v14 = vmul.f32 %v9431_v4, %v12748_v19  ;;  %v10101_v23 = vmul.f32 %v9431_v4, %v12750_v61  ;;  %v12751_v35 = vld [vmem:[#allocation144_spill] sm:$0xff]  ;;  %v12752_v46 = vsub.s32 0, %v12505_v38  ;;  %v12754_v5 = vld [vmem:[#allocation145_spill] sm:$0xff]  ;;  %v10124_v61 = vmul.f32 %v9431_v4, %v12503_v39 }
 0x40a   :  { %12745 = vst [vmem:[#allocation127_spill] sm:$0xff] %v10089_v0  ;;  %12747 = vst [vmem:[#allocation128_spill] sm:$0xff] %v10093_v40  ;;  %v10105_v16 = vmul.f32 %v9431_v4, %v12751_v35  ;;  %v10116_v40 = vmul.f32 %v9431_v4, %v12754_v5  ;;  %v12755_v19 = vld [vmem:[#allocation146_spill] sm:$0xff]  ;;  %v12756_v35 = vld [vmem:[#allocation148_spill] sm:$0xff] }
 0x40b   :  { %12749 = vst [vmem:[#allocation133_spill] sm:$0xff] %v10097_v14  ;;  %v10112_v0 = vrot.slane %v12753_v42, %v12752_v46  ;;  %v10120_v14 = vmul.f32 %v9431_v4, %v12755_v19  ;;  %v10128_v38 = vmul.f32 %v9431_v4, %v12756_v35  ;;  %v12765_v42 = vld [vmem:[#allocation44_spill] sm:$0xff]  ;;  %v12767_v5 = vld [vmem:[#allocation47_spill] sm:$0xff]  ;;  %v12771_v35 = vld [vmem:[#allocation110_spill] sm:$0xff] }
 0x40c   :  { %v12769_v19 = vld [vmem:[#allocation108_spill] sm:$0xff] }
 0x40d   :  { %v10132_v50 = vadd.f32 %v10112_v0, %v9437_v12  ;;  %v10136_v60 = vadd.f32 %v10112_v0, %v9441_v36  ;;  %v10140_v46 = vadd.f32 %v10112_v0, %v9445_v13  ;;  %v10144_v39 = vadd.f32 %v10112_v0, %v9449_v25 }
 0x40e   :  { %v10148_v4 = vadd.f32 %v10112_v0, %v9453_v1  ;;  %v10152_v12 = vadd.f32 %v10112_v0, %v9457_v34  ;;  %v10156_v36 = vadd.f32 %v10112_v0, %v9461_v29  ;;  %v10160_v13 = vadd.f32 %v10112_v0, %v9465_v37 }
 0x40f   :  { %12757 = vst [vmem:[#allocation134_spill] sm:$0xff] %v10132_v50  ;;  %12758 = vst [vmem:[#allocation131_spill] sm:$0xff] %v10136_v60  ;;  %v10164_v25 = vadd.f32 %v10112_v0, %v12765_v42  ;;  %v10168_v1 = vadd.f32 %v10112_v0, %v12767_v5  ;;  %v10172_v34 = vadd.f32 %v10112_v0, %v12769_v19 }
 0x410   :  { %12759 = vst [vmem:[#allocation135_spill] sm:$0xff] %v10140_v46  ;;  %12760 = vst [vmem:[#allocation136_spill] sm:$0xff] %v10144_v39  ;;  %v10176_v29 = vadd.f32 %v10112_v0, %v12771_v35 }
 0x411   :  { %12761 = vst [vmem:[#allocation137_spill] sm:$0xff] %v10148_v4  ;;  %12762 = vst [vmem:[#allocation75_spill] sm:$0xff] %v10152_v12 }
 0x412   :  { %12763 = vst [vmem:[#allocation73_spill] sm:$0xff] %v10156_v36  ;;  %12764 = vst [vmem:[#allocation80_spill] sm:$0xff] %v10160_v13  ;;  %v12773_v36 = vld [vmem:[#allocation124_spill] sm:$0xff]  ;;  %v12775_v13 = vld [vmem:[#allocation125_spill] sm:$0xff] }
 0x413   :  { %12766 = vst [vmem:[#allocation83_spill] sm:$0xff] %v10164_v25  ;;  %12768 = vst [vmem:[#allocation79_spill] sm:$0xff] %v10168_v1  ;;  %v10180_v37 = vadd.f32 %v10112_v0, %v12773_v36  ;;  %v10184_v42 = vadd.f32 %v10112_v0, %v12775_v13  ;;  %v12777_v25 = vld [vmem:[#allocation126_spill] sm:$0xff]  ;;  %v12779_v1 = vld [vmem:[#allocation129_spill] sm:$0xff] }
 0x414   :  { %12770 = vst [vmem:[#allocation81_spill] sm:$0xff] %v10172_v34  ;;  %12772 = vst [vmem:[#allocation88_spill] sm:$0xff] %v10176_v29  ;;  %v10188_v5 = vadd.f32 %v10112_v0, %v12777_v25  ;;  %v10192_v19 = vadd.f32 %v10112_v0, %v12779_v1  ;;  %v12781_v34 = vld [vmem:[#allocation130_spill] sm:$0xff]  ;;  %v12783_v29 = vld [vmem:[#allocation132_spill] sm:$0xff] }
 0x415   :  { %12774 = vst [vmem:[#allocation91_spill] sm:$0xff] %v10180_v37  ;;  %12776 = vst [vmem:[#allocation87_spill] sm:$0xff] %v10184_v42  ;;  %v10196_v35 = vadd.f32 %v10112_v0, %v12781_v34  ;;  %v10200_v36 = vadd.f32 %v10112_v0, %v12783_v29  ;;  %v12785_v37 = vld [vmem:[#allocation72_spill] sm:$0xff] }
 0x416   :  { %12778 = vst [vmem:[#allocation89_spill] sm:$0xff] %v10188_v5  ;;  %12780 = vst [vmem:[#allocation99_spill] sm:$0xff] %v10192_v19  ;;  %v10204_v13 = vadd.f32 %v10112_v0, %v12785_v37  ;;  %v12787_v42 = vld [vmem:[#allocation96_spill] sm:$0xff]  ;;  %v12789_v5 = vld [vmem:[#allocation95_spill] sm:$0xff] }
 0x417   :  { %12782 = vst [vmem:[#allocation104_spill] sm:$0xff] %v10196_v35  ;;  %12784 = vst [vmem:[#allocation107_spill] sm:$0xff] %v10200_v36  ;;  %v10208_v25 = vadd.f32 %v10112_v0, %v12787_v42  ;;  %v10212_v1 = vadd.f32 %v10112_v0, %v12789_v5  ;;  %v12791_v19 = vld [vmem:[#allocation97_spill] sm:$0xff]  ;;  %v12793_v35 = vld [vmem:[#allocation147_spill] sm:$0xff] }
 0x418   :  { %12786 = vst [vmem:[#allocation103_spill] sm:$0xff] %v10204_v13  ;;  %v10216_v34 = vadd.f32 %v10112_v0, %v12791_v19  ;;  %v10220_v29 = vadd.f32 %v10112_v0, %v12793_v35  ;;  %v12795_v36 = vld [vmem:[#allocation149_spill] sm:$0xff]  ;;  %v12797_v13 = vld [vmem:[#allocation38_spill] sm:$0xff] }
 0x419   :  { %12788 = vst [vmem:[#allocation105_spill] sm:$0xff] %v10208_v25  ;;  %12790 = vst [vmem:[#allocation138_spill] sm:$0xff] %v10212_v1  ;;  %v10224_v37 = vadd.f32 %v10112_v0, %v12795_v36  ;;  %v10228_v42 = vadd.f32 %v10112_v0, %v12797_v13  ;;  %v12799_v25 = vld [vmem:[#allocation2_spill] sm:$0xff]  ;;  %v12801_v1 = vld [vmem:[#allocation4_spill] sm:$0xff] }
 0x41a   :  { %12792 = vst [vmem:[#allocation139_spill] sm:$0xff] %v10216_v34  ;;  %12794 = vst [vmem:[#allocation140_spill] sm:$0xff] %v10220_v29  ;;  %v10232_v5 = vadd.f32 %v10112_v0, %v12799_v25  ;;  %v10236_v19 = vadd.f32 %v10112_v0, %v12801_v1  ;;  %v12803_v34 = vld [vmem:[#allocation3_spill] sm:$0xff]  ;;  %v12805_v29 = vld [vmem:[#allocation5_spill] sm:$0xff] }
 0x41b   :  { %12796 = vst [vmem:[#allocation141_spill] sm:$0xff] %v10224_v37  ;;  %12798 = vst [vmem:[#allocation142_spill] sm:$0xff] %v10228_v42  ;;  %v10240_v35 = vadd.f32 %v10112_v0, %v12803_v34  ;;  %v10244_v36 = vadd.f32 %v10112_v0, %v12805_v29  ;;  %v12807_v37 = vld [vmem:[#allocation6_spill] sm:$0xff]  ;;  %v12809_v42 = vld [vmem:[#allocation8_spill] sm:$0xff] }
 0x41c   :  { %12800 = vst [vmem:[#allocation143_spill] sm:$0xff] %v10232_v5  ;;  %12802 = vst [vmem:[#allocation144_spill] sm:$0xff] %v10236_v19  ;;  %v10248_v13 = vadd.f32 %v10112_v0, %v12807_v37  ;;  %v10252_v25 = vadd.f32 %v10112_v0, %v12809_v42  ;;  %v12811_v5 = vld [vmem:[#allocation7_spill] sm:$0xff]  ;;  %v12813_v19 = vld [vmem:[#allocation9_spill] sm:$0xff] }
 0x41d   :  { %12804 = vst [vmem:[#allocation145_spill] sm:$0xff] %v10240_v35  ;;  %12806 = vst [vmem:[#allocation146_spill] sm:$0xff] %v10244_v36  ;;  %v10256_v1 = vadd.f32 %v10112_v0, %v12811_v5  ;;  %v10260_v34 = vadd.f32 %v10112_v0, %v12813_v19  ;;  %v12815_v35 = vld [vmem:[#allocation10_spill] sm:$0xff]  ;;  %v12817_v36 = vld [vmem:[#allocation12_spill] sm:$0xff]  ;;  %v10280_v19 = vadd.f32 %v10112_v0, %v9585_v7 }
 0x41e   :  { %12808 = vst [vmem:[#allocation148_spill] sm:$0xff] %v10248_v13  ;;  %12810 = vst [vmem:[#allocation44_spill] sm:$0xff] %v10252_v25  ;;  %v10264_v29 = vadd.f32 %v10112_v0, %v12815_v35  ;;  %v10268_v37 = vadd.f32 %v10112_v0, %v12817_v36  ;;  %v12819_v13 = vld [vmem:[#allocation11_spill] sm:$0xff]  ;;  %v12821_v25 = vld [vmem:[#allocation13_spill] sm:$0xff] }
 0x41f   :  { %12812 = vst [vmem:[#allocation47_spill] sm:$0xff] %v10256_v1  ;;  %12814 = vst [vmem:[#allocation108_spill] sm:$0xff] %v10260_v34  ;;  %v10272_v42 = vadd.f32 %v10112_v0, %v12819_v13  ;;  %v10276_v5 = vadd.f32 %v10112_v0, %v12821_v25  ;;  %v12824_v34 = vld [vmem:[#allocation14_spill] sm:$0xff] }
 0x420   :  { %12816 = vst [vmem:[#allocation110_spill] sm:$0xff] %v10264_v29  ;;  %12818 = vst [vmem:[#allocation124_spill] sm:$0xff] %v10268_v37  ;;  %v10284_v35 = vadd.f32 %v10112_v0, %v12824_v34  ;;  %v12826_v29 = vld [vmem:[#allocation16_spill] sm:$0xff]  ;;  %v12828_v37 = vld [vmem:[#allocation15_spill] sm:$0xff] }
 0x421   :  { %12820 = vst [vmem:[#allocation125_spill] sm:$0xff] %v10272_v42  ;;  %12822 = vst [vmem:[#allocation126_spill] sm:$0xff] %v10276_v5  ;;  %v10288_v36 = vadd.f32 %v10112_v0, %v12826_v29  ;;  %v10292_v13 = vadd.f32 %v10112_v0, %v12828_v37  ;;  %v12830_v42 = vld [vmem:[#allocation17_spill] sm:$0xff]  ;;  %v12832_v5 = vld [vmem:[#allocation18_spill] sm:$0xff] }
 0x422   :  { %12823 = vst [vmem:[#allocation129_spill] sm:$0xff] %v10280_v19  ;;  %12825 = vst [vmem:[#allocation130_spill] sm:$0xff] %v10284_v35  ;;  %v10296_v25 = vadd.f32 %v10112_v0, %v12830_v42  ;;  %v10300_v7 = vadd.f32 %v10112_v0, %v12832_v5  ;;  %v12834_v19 = vld [vmem:[#allocation20_spill] sm:$0xff]  ;;  %v12836_v35 = vld [vmem:[#allocation19_spill] sm:$0xff] }
 0x423   :  { %12827 = vst [vmem:[#allocation132_spill] sm:$0xff] %v10288_v36  ;;  %12829 = vst [vmem:[#allocation72_spill] sm:$0xff] %v10292_v13  ;;  %v10304_v34 = vadd.f32 %v10112_v0, %v12834_v19  ;;  %v10308_v29 = vadd.f32 %v10112_v0, %v12836_v35  ;;  %v12838_v36 = vld [vmem:[#allocation21_spill] sm:$0xff]  ;;  %v12840_v13 = vld [vmem:[#allocation22_spill] sm:$0xff] }
 0x424   :  { %12831 = vst [vmem:[#allocation96_spill] sm:$0xff] %v10296_v25  ;;  %12833 = vst [vmem:[#allocation95_spill] sm:$0xff] %v10300_v7  ;;  %v10312_v37 = vadd.f32 %v10112_v0, %v12838_v36  ;;  %v10316_v42 = vadd.f32 %v10112_v0, %v12840_v13  ;;  %v12842_v25 = vld [vmem:[#allocation24_spill] sm:$0xff]  ;;  %v12844_v7 = vld [vmem:[#allocation23_spill] sm:$0xff] }
 0x425   :  { %12835 = vst [vmem:[#allocation97_spill] sm:$0xff] %v10304_v34  ;;  %12837 = vst [vmem:[#allocation147_spill] sm:$0xff] %v10308_v29  ;;  %v10320_v5 = vadd.f32 %v10112_v0, %v12842_v25  ;;  %v10324_v19 = vadd.f32 %v10112_v0, %v12844_v7  ;;  %v12846_v34 = vld [vmem:[#allocation25_spill] sm:$0xff]  ;;  %v12848_v29 = vld [vmem:[#allocation26_spill] sm:$0xff] }
 0x426   :  { %12839 = vst [vmem:[#allocation149_spill] sm:$0xff] %v10312_v37  ;;  %12841 = vst [vmem:[#allocation38_spill] sm:$0xff] %v10316_v42  ;;  %v10328_v35 = vadd.f32 %v10112_v0, %v12846_v34  ;;  %v10332_v36 = vadd.f32 %v10112_v0, %v12848_v29  ;;  %v12850_v37 = vld [vmem:[#allocation28_spill] sm:$0xff]  ;;  %v12852_v42 = vld [vmem:[#allocation27_spill] sm:$0xff] }
 0x427   :  { %12843 = vst [vmem:[#allocation2_spill] sm:$0xff] %v10320_v5  ;;  %12845 = vst [vmem:[#allocation4_spill] sm:$0xff] %v10324_v19  ;;  %v10336_v13 = vadd.f32 %v10112_v0, %v12850_v37  ;;  %v10340_v25 = vadd.f32 %v10112_v0, %v12852_v42  ;;  %v12854_v5 = vld [vmem:[#allocation29_spill] sm:$0xff]  ;;  %v12856_v19 = vld [vmem:[#allocation30_spill] sm:$0xff] }
 0x428   :  { %12847 = vst [vmem:[#allocation3_spill] sm:$0xff] %v10328_v35  ;;  %12849 = vst [vmem:[#allocation5_spill] sm:$0xff] %v10332_v36  ;;  %v10344_v7 = vadd.f32 %v10112_v0, %v12854_v5  ;;  %v10348_v34 = vadd.f32 %v10112_v0, %v12856_v19  ;;  %v12858_v35 = vld [vmem:[#allocation32_spill] sm:$0xff]  ;;  %v12860_v36 = vld [vmem:[#allocation31_spill] sm:$0xff] }
 0x429   :  { %12851 = vst [vmem:[#allocation6_spill] sm:$0xff] %v10336_v13  ;;  %12853 = vst [vmem:[#allocation8_spill] sm:$0xff] %v10340_v25  ;;  %v10352_v29 = vadd.f32 %v10112_v0, %v12858_v35  ;;  %v10356_v37 = vadd.f32 %v10112_v0, %v12860_v36  ;;  %v12862_v13 = vld [vmem:[#allocation33_spill] sm:$0xff]  ;;  %v12864_v25 = vld [vmem:[#allocation34_spill] sm:$0xff] }
 0x42a   :  { %12855 = vst [vmem:[#allocation7_spill] sm:$0xff] %v10344_v7  ;;  %12857 = vst [vmem:[#allocation9_spill] sm:$0xff] %v10348_v34  ;;  %v10360_v42 = vadd.f32 %v10112_v0, %v12862_v13  ;;  %v10364_v5 = vadd.f32 %v10112_v0, %v12864_v25  ;;  %v12866_v7 = vld [vmem:[#allocation36_spill] sm:$0xff]  ;;  %v12868_v34 = vld [vmem:[#allocation35_spill] sm:$0xff] }
 0x42b   :  { %12859 = vst [vmem:[#allocation10_spill] sm:$0xff] %v10352_v29  ;;  %12861 = vst [vmem:[#allocation12_spill] sm:$0xff] %v10356_v37  ;;  %v10368_v19 = vadd.f32 %v10112_v0, %v12866_v7  ;;  %v10372_v35 = vadd.f32 %v10112_v0, %v12868_v34  ;;  %v12870_v29 = vld [vmem:[#allocation37_spill] sm:$0xff]  ;;  %v12872_v37 = vld [vmem:[#allocation39_spill] sm:$0xff] }
 0x42c   :  { %12863 = vst [vmem:[#allocation11_spill] sm:$0xff] %v10360_v42  ;;  %12865 = vst [vmem:[#allocation13_spill] sm:$0xff] %v10364_v5  ;;  %v10376_v36 = vadd.f32 %v10112_v0, %v12870_v29  ;;  %v10380_v13 = vadd.f32 %v10112_v0, %v12872_v37  ;;  %v12874_v42 = vld [vmem:[#allocation41_spill] sm:$0xff]  ;;  %v12876_v5 = vld [vmem:[#allocation40_spill] sm:$0xff] }
 0x42d   :  { %12867 = vst [vmem:[#allocation14_spill] sm:$0xff] %v10368_v19  ;;  %12869 = vst [vmem:[#allocation16_spill] sm:$0xff] %v10372_v35  ;;  %v10384_v25 = vadd.f32 %v10112_v0, %v12874_v42  ;;  %v10388_v7 = vadd.f32 %v10112_v0, %v12876_v5  ;;  %v12878_v19 = vld [vmem:[#allocation42_spill] sm:$0xff]  ;;  %v12880_v35 = vld [vmem:[#allocation45_spill] sm:$0xff] }
 0x42e   :  { %12871 = vst [vmem:[#allocation15_spill] sm:$0xff] %v10376_v36  ;;  %12873 = vst [vmem:[#allocation17_spill] sm:$0xff] %v10380_v13  ;;  %v10392_v34 = vadd.f32 %v10112_v0, %v12878_v19  ;;  %v10396_v29 = vadd.f32 %v10112_v0, %v12880_v35  ;;  %v12882_v36 = vld [vmem:[#allocation46_spill] sm:$0xff]  ;;  %v12884_v13 = vld [vmem:[#allocation43_spill] sm:$0xff] }
 0x42f   :  { %12875 = vst [vmem:[#allocation18_spill] sm:$0xff] %v10384_v25  ;;  %12877 = vst [vmem:[#allocation20_spill] sm:$0xff] %v10388_v7  ;;  %v10400_v37 = vadd.f32 %v10112_v0, %v12882_v36  ;;  %v10404_v42 = vadd.f32 %v10112_v0, %v12884_v13  ;;  %v12886_v25 = vld [vmem:[#allocation48_spill] sm:$0xff]  ;;  %v12888_v7 = vld [vmem:[#allocation50_spill] sm:$0xff] }
 0x430   :  { %12879 = vst [vmem:[#allocation19_spill] sm:$0xff] %v10392_v34  ;;  %12881 = vst [vmem:[#allocation21_spill] sm:$0xff] %v10396_v29  ;;  %v10408_v5 = vadd.f32 %v10112_v0, %v12886_v25  ;;  %v10412_v19 = vadd.f32 %v10112_v0, %v12888_v7  ;;  %v12890_v34 = vld [vmem:[#allocation49_spill] sm:$0xff]  ;;  %v12892_v29 = vld [vmem:[#allocation51_spill] sm:$0xff] }
 0x431   :  { %12883 = vst [vmem:[#allocation22_spill] sm:$0xff] %v10400_v37  ;;  %12885 = vst [vmem:[#allocation24_spill] sm:$0xff] %v10404_v42  ;;  %v10416_v35 = vadd.f32 %v10112_v0, %v12890_v34  ;;  %v10420_v36 = vadd.f32 %v10112_v0, %v12892_v29  ;;  %v12894_v37 = vld [vmem:[#allocation52_spill] sm:$0xff]  ;;  %v12896_v42 = vld [vmem:[#allocation54_spill] sm:$0xff] }
 0x432   :  { %12887 = vst [vmem:[#allocation23_spill] sm:$0xff] %v10408_v5  ;;  %12889 = vst [vmem:[#allocation25_spill] sm:$0xff] %v10412_v19  ;;  %v10424_v13 = vadd.f32 %v10112_v0, %v12894_v37  ;;  %v10428_v25 = vadd.f32 %v10112_v0, %v12896_v42  ;;  %v12898_v5 = vld [vmem:[#allocation53_spill] sm:$0xff]  ;;  %v12900_v19 = vld [vmem:[#allocation55_spill] sm:$0xff] }
 0x433   :  { %12891 = vst [vmem:[#allocation26_spill] sm:$0xff] %v10416_v35  ;;  %12893 = vst [vmem:[#allocation28_spill] sm:$0xff] %v10420_v36  ;;  %v10432_v7 = vadd.f32 %v10112_v0, %v12898_v5  ;;  %v10436_v34 = vadd.f32 %v10112_v0, %v12900_v19  ;;  %v12902_v35 = vld [vmem:[#allocation56_spill] sm:$0xff]  ;;  %v12904_v36 = vld [vmem:[#allocation58_spill] sm:$0xff]  ;;  %v10452_v5 = vadd.f32 %v10112_v0, %v9757_v57 }
 0x434   :  { %12895 = vst [vmem:[#allocation27_spill] sm:$0xff] %v10424_v13  ;;  %12897 = vst [vmem:[#allocation29_spill] sm:$0xff] %v10428_v25  ;;  %v10440_v29 = vadd.f32 %v10112_v0, %v12902_v35  ;;  %v10444_v37 = vadd.f32 %v10112_v0, %v12904_v36  ;;  %v12906_v13 = vld [vmem:[#allocation57_spill] sm:$0xff] }
 0x435   :  { %12899 = vst [vmem:[#allocation30_spill] sm:$0xff] %v10432_v7  ;;  %12901 = vst [vmem:[#allocation32_spill] sm:$0xff] %v10436_v34  ;;  %v10448_v42 = vadd.f32 %v10112_v0, %v12906_v13  ;;  %v12909_v7 = vld [vmem:[#allocation59_spill] sm:$0xff]  ;;  %v12911_v34 = vld [vmem:[#allocation60_spill] sm:$0xff] }
 0x436   :  { %12903 = vst [vmem:[#allocation31_spill] sm:$0xff] %v10440_v29  ;;  %12905 = vst [vmem:[#allocation33_spill] sm:$0xff] %v10444_v37  ;;  %v10456_v19 = vadd.f32 %v10112_v0, %v12909_v7  ;;  %v10460_v35 = vadd.f32 %v10112_v0, %v12911_v34  ;;  %v12913_v29 = vld [vmem:[#allocation62_spill] sm:$0xff]  ;;  %v12915_v37 = vld [vmem:[#allocation61_spill] sm:$0xff] }
 0x437   :  { %12907 = vst [vmem:[#allocation34_spill] sm:$0xff] %v10448_v42  ;;  %12908 = vst [vmem:[#allocation36_spill] sm:$0xff] %v10452_v5  ;;  %v10464_v36 = vadd.f32 %v10112_v0, %v12913_v29  ;;  %v10468_v13 = vadd.f32 %v10112_v0, %v12915_v37  ;;  %v12917_v42 = vld [vmem:[#allocation63_spill] sm:$0xff]  ;;  %v12919_v5 = vld [vmem:[#allocation64_spill] sm:$0xff] }
 0x438   :  { %12910 = vst [vmem:[#allocation35_spill] sm:$0xff] %v10456_v19  ;;  %12912 = vst [vmem:[#allocation37_spill] sm:$0xff] %v10460_v35  ;;  %v10472_v57 = vadd.f32 %v10112_v0, %v12917_v42  ;;  %v10476_v7 = vadd.f32 %v10112_v0, %v12919_v5  ;;  %v12921_v19 = vld [vmem:[#allocation66_spill] sm:$0xff]  ;;  %v12923_v35 = vld [vmem:[#allocation65_spill] sm:$0xff] }
 0x439   :  { %12914 = vst [vmem:[#allocation39_spill] sm:$0xff] %v10464_v36  ;;  %12916 = vst [vmem:[#allocation41_spill] sm:$0xff] %v10468_v13  ;;  %v10480_v34 = vadd.f32 %v10112_v0, %v12921_v19  ;;  %v10484_v29 = vadd.f32 %v10112_v0, %v12923_v35  ;;  %v12924_v36 = vld [vmem:[#allocation67_spill] sm:$0xff]  ;;  %v12925_v13 = vld [vmem:[#allocation68_spill] sm:$0xff] }
 0x43a   :  { %12918 = vst [vmem:[#allocation40_spill] sm:$0xff] %v10472_v57  ;;  %12920 = vst [vmem:[#allocation42_spill] sm:$0xff] %v10476_v7  ;;  %v10488_v37 = vadd.f32 %v10112_v0, %v12924_v36  ;;  %v10492_v42 = vadd.f32 %v10112_v0, %v12925_v13  ;;  %v12926_v57 = vld [vmem:[#allocation70_spill] sm:$0xff]  ;;  %v12927_v7 = vld [vmem:[#allocation69_spill] sm:$0xff]  ;;  %v10508_v36 = vadd.f32 %v10112_v0, %v9813_v9 }
 0x43b   :  { %12922 = vst [vmem:[#allocation45_spill] sm:$0xff] %v10480_v34  ;;  %v10496_v5 = vadd.f32 %v10112_v0, %v12926_v57  ;;  %v10500_v19 = vadd.f32 %v10112_v0, %v12927_v7  ;;  %v12928_v34 = vld [vmem:[#allocation71_spill] sm:$0xff]  ;;  %v10512_v13 = vadd.f32 %v10112_v0, %v9817_v54  ;;  %v10516_v57 = vadd.f32 %v10112_v0, %v9821_v28 }
 0x43c   :  { %v10504_v35 = vadd.f32 %v10112_v0, %v12928_v34  ;;  %v10520_v7 = vadd.f32 %v10112_v0, %v9825_v10  ;;  %v10524_v34 = vadd.f32 %v10112_v0, %v9829_v56  ;;  %v10528_v9 = vadd.f32 %v10112_v0, %v9833_v30 }
 0x43d   :  { %v10532_v54 = vadd.f32 %v10112_v0, %v9837_v43  ;;  %v10536_v28 = vadd.f32 %v10112_v0, %v9841_v58  ;;  %v10540_v10 = vadd.f32 %v10112_v0, %v9845_v32  ;;  %v10544_v56 = vadd.f32 %v10112_v0, %v9849_v59  ;;  %v13092_v50 = vld [vmem:[#allocation31_spill] sm:$0xff]  ;;  %v13093_v60 = vld [vmem:[#allocation33_spill] sm:$0xff] }
 0x43e   :  { %12929 = vst [vmem:[#allocation46_spill] sm:$0xff] %v10520_v7  ;;  %12930 = vst [vmem:[#allocation43_spill] sm:$0xff] %v10528_v9  ;;  %v10548_v30 = vadd.f32 %v10112_v0, %v9853_v49  ;;  %v10552_v43 = vadd.f32 %v10112_v0, %v9857_v17  ;;  %v10556_v58 = vadd.f32 %v10112_v0, %v9861_v18  ;;  %v13094_v46 = vld [vmem:[#allocation34_spill] sm:$0xff]  ;;  %v13095_v39 = vld [vmem:[#allocation36_spill] sm:$0xff] }
 0x43f   :  { %12931 = vst [vmem:[#allocation48_spill] sm:$0xff] %v10536_v28  ;;  %12932 = vst [vmem:[#allocation50_spill] sm:$0xff] %v10540_v10  ;;  %v10560_v32 = vadd.f32 %v10112_v0, %v9865_v8  ;;  %v10564_v59 = vadd.f32 %v10112_v0, %v9869_v3  ;;  %v10568_v49 = vadd.f32 %v10112_v0, %v9873_v63  ;;  %v13096_v4 = vld [vmem:[#allocation35_spill] sm:$0xff]  ;;  %v13097_v12 = vld [vmem:[#allocation37_spill] sm:$0xff] }
 0x440   :  { %12933 = vst [vmem:[#allocation49_spill] sm:$0xff] %v10544_v56  ;;  %12934 = vst [vmem:[#allocation51_spill] sm:$0xff] %v10548_v30  ;;  %v10572_v17 = vadd.f32 %v10112_v0, %v9877_v44  ;;  %v10576_v18 = vadd.f32 %v10112_v0, %v9881_v2  ;;  %v10580_v8 = vadd.f32 %v10112_v0, %v9885_v47  ;;  %v13152_v10 = vld [vmem:[#allocation131_spill] sm:$0xff] }
 0x441   :  { %12935 = vst [vmem:[#allocation52_spill] sm:$0xff] %v10552_v43  ;;  %12936 = vst [vmem:[#allocation54_spill] sm:$0xff] %v10556_v58  ;;  %v10584_v3 = vadd.f32 %v10112_v0, %v9889_v53  ;;  %v10592_v44 = vadd.f32 %v10112_v0, %v9897_v11  ;;  %v10600_v47 = vadd.f32 %v10112_v0, %v9905_v27  ;;  %v13100_v25 = vld [vmem:[#allocation40_spill] sm:$0xff]  ;;  %v13101_v1 = vld [vmem:[#allocation42_spill] sm:$0xff] }
 0x442   :  { %12937 = vst [vmem:[#allocation53_spill] sm:$0xff] %v10560_v32  ;;  %12938 = vst [vmem:[#allocation55_spill] sm:$0xff] %v10564_v59  ;;  %v12944_v59 = vld [vmem:[#allocation74_spill] sm:$0xff]  ;;  %v10604_v53 = vadd.f32 %v10112_v0, %v9909_v33  ;;  %v10624_v33 = vadd.f32 %v10112_v0, %v9929_v45  ;;  %v10644_v45 = vadd.f32 %v10112_v0, %v9949_v15  ;;  %v13157_v43 = vld [vmem:[#allocation135_spill] sm:$0xff] }
 0x443   :  { %12939 = vst [vmem:[#allocation56_spill] sm:$0xff] %v10568_v49  ;;  %12940 = vst [vmem:[#allocation58_spill] sm:$0xff] %v10572_v17  ;;  %v10588_v63 = vadd.f32 %v10112_v0, %v12944_v59  ;;  %v12947_v17 = vld [vmem:[#allocation77_spill] sm:$0xff]  ;;  %v10608_v59 = vadd.f32 %v10112_v0, %v9913_v41 }
 0x444   :  { %12941 = vst [vmem:[#allocation57_spill] sm:$0xff] %v10576_v18  ;;  %12942 = vst [vmem:[#allocation59_spill] sm:$0xff] %v10580_v8  ;;  %v10596_v2 = vadd.f32 %v10112_v0, %v12947_v17 }
 0x445   :  { %12943 = vst [vmem:[#allocation60_spill] sm:$0xff] %v10584_v3  ;;  %12945 = vst [vmem:[#allocation62_spill] sm:$0xff] %v10588_v63  ;;  %v12952_v63 = vld [vmem:[#allocation76_spill] sm:$0xff] }
 0x446   :  { %12946 = vst [vmem:[#allocation61_spill] sm:$0xff] %v10592_v44  ;;  %12948 = vst [vmem:[#allocation63_spill] sm:$0xff] %v10596_v2  ;;  %v10612_v11 = vadd.f32 %v10112_v0, %v12952_v63  ;;  %v12954_v44 = vld [vmem:[#allocation78_spill] sm:$0xff] }
 0x447   :  { %12949 = vst [vmem:[#allocation64_spill] sm:$0xff] %v10600_v47  ;;  %12950 = vst [vmem:[#allocation66_spill] sm:$0xff] %v10604_v53  ;;  %v10616_v17 = vadd.f32 %v10112_v0, %v12954_v44  ;;  %v12956_v2 = vld [vmem:[#allocation82_spill] sm:$0xff]  ;;  %v12959_v53 = vld [vmem:[#allocation85_spill] sm:$0xff] }
 0x448   :  { %12951 = vst [vmem:[#allocation65_spill] sm:$0xff] %v10608_v59  ;;  %12953 = vst [vmem:[#allocation67_spill] sm:$0xff] %v10612_v11  ;;  %v10620_v27 = vadd.f32 %v10112_v0, %v12956_v2  ;;  %v10628_v41 = vadd.f32 %v10112_v0, %v12959_v53  ;;  %v12961_v59 = vld [vmem:[#allocation84_spill] sm:$0xff]  ;;  %v12963_v11 = vld [vmem:[#allocation86_spill] sm:$0xff] }
 0x449   :  { %12955 = vst [vmem:[#allocation68_spill] sm:$0xff] %v10616_v17  ;;  %12958 = vst [vmem:[#allocation69_spill] sm:$0xff] %v10624_v33  ;;  %v10632_v63 = vadd.f32 %v10112_v0, %v12961_v59  ;;  %v10636_v44 = vadd.f32 %v10112_v0, %v12963_v11  ;;  %v12965_v17 = vld [vmem:[#allocation90_spill] sm:$0xff]  ;;  %v12968_v33 = vld [vmem:[#allocation93_spill] sm:$0xff] }
 0x44a   :  { %12957 = vst [vmem:[#allocation70_spill] sm:$0xff] %v10620_v27  ;;  %12960 = vst [vmem:[#allocation71_spill] sm:$0xff] %v10628_v41  ;;  %v10640_v2 = vadd.f32 %v10112_v0, %v12965_v17  ;;  %v10648_v53 = vadd.f32 %v10112_v0, %v12968_v33  ;;  %v12970_v41 = vld [vmem:[#allocation92_spill] sm:$0xff] }
 0x44b   :  { %12962 = vst [vmem:[#allocation74_spill] sm:$0xff] %v10632_v63  ;;  %12964 = vst [vmem:[#allocation77_spill] sm:$0xff] %v10636_v44  ;;  %v10652_v59 = vadd.f32 %v10112_v0, %v12970_v41  ;;  %v12972_v63 = vld [vmem:[#allocation94_spill] sm:$0xff] }
 0x44c   :  { %12966 = vst [vmem:[#allocation76_spill] sm:$0xff] %v10640_v2  ;;  %12967 = vst [vmem:[#allocation78_spill] sm:$0xff] %v10644_v45  ;;  %v10656_v11 = vadd.f32 %v10112_v0, %v12972_v63  ;;  %v12974_v44 = vld [vmem:[#allocation98_spill] sm:$0xff]  ;;  %v12975_v2 = vld [vmem:[#allocation101_spill] sm:$0xff] }
 0x44d   :  { %12969 = vst [vmem:[#allocation82_spill] sm:$0xff] %v10648_v53  ;;  %12971 = vst [vmem:[#allocation85_spill] sm:$0xff] %v10652_v59  ;;  %v10660_v17 = vadd.f32 %v10112_v0, %v12974_v44  ;;  %v10664_v15 = vadd.f32 %v10112_v0, %v12975_v2  ;;  %v12977_v45 = vld [vmem:[#allocation100_spill] sm:$0xff]  ;;  %v12978_v53 = vld [vmem:[#allocation102_spill] sm:$0xff]  ;;  %v10684_v2 = vadd.f32 %v10112_v0, %v9989_v55 }
 0x44e   :  { %12973 = vst [vmem:[#allocation84_spill] sm:$0xff] %v10656_v11  ;;  %v10668_v33 = vadd.f32 %v10112_v0, %v12977_v45  ;;  %v10672_v41 = vadd.f32 %v10112_v0, %v12978_v53  ;;  %v12979_v59 = vld [vmem:[#allocation106_spill] sm:$0xff]  ;;  %v12980_v11 = vld [vmem:[#allocation109_spill] sm:$0xff]  ;;  %v10692_v53 = vadd.f32 %v10112_v0, %v9997_v24  ;;  %v10704_v55 = vadd.f32 %v10112_v0, %v10009_v6 }
 0x44f   :  { %12976 = vst [vmem:[#allocation86_spill] sm:$0xff] %v10664_v15  ;;  %v10676_v63 = vadd.f32 %v10112_v0, %v12979_v59  ;;  %v10680_v44 = vadd.f32 %v10112_v0, %v12980_v11  ;;  %v12981_v15 = vld [vmem:[#allocation111_spill] sm:$0xff]  ;;  %v10696_v59 = vadd.f32 %v10112_v0, %v10001_v31  ;;  %v10700_v11 = vadd.f32 %v10112_v0, %v10005_v48 }
 0x450   :  { %v10688_v45 = vadd.f32 %v10112_v0, %v12981_v15  ;;  %v10708_v15 = vadd.f32 %v10112_v0, %v10013_v22  ;;  %v10712_v24 = vadd.f32 %v10112_v0, %v10017_v21  ;;  %v10716_v31 = vadd.f32 %v10112_v0, %v10021_v62 }
 0x451   :  { %v10720_v48 = vadd.f32 %v10112_v0, %v10025_v26  ;;  %v10724_v6 = vadd.f32 %v10112_v0, %v10029_v52  ;;  %v10728_v22 = vadd.f32 %v10112_v0, %v10033_v51  ;;  %v10732_v21 = vadd.f32 %v10112_v0, %v10037_v20 }
 0x452   :  { %12982 = vst [vmem:[#allocation90_spill] sm:$0xff] %v10712_v24  ;;  %12983 = vst [vmem:[#allocation93_spill] sm:$0xff] %v10716_v31  ;;  %v12988_v24 = vld [vmem:[#allocation112_spill] sm:$0xff]  ;;  %v12990_v31 = vld [vmem:[#allocation113_spill] sm:$0xff] }
 0x453   :  { %12984 = vst [vmem:[#allocation92_spill] sm:$0xff] %v10720_v48  ;;  %12985 = vst [vmem:[#allocation94_spill] sm:$0xff] %v10724_v6  ;;  %v10736_v62 = vadd.f32 %v10112_v0, %v12988_v24  ;;  %v10740_v26 = vadd.f32 %v10112_v0, %v12990_v31  ;;  %v12992_v48 = vld [vmem:[#allocation114_spill] sm:$0xff]  ;;  %v12994_v6 = vld [vmem:[#allocation115_spill] sm:$0xff] }
 0x454   :  { %12986 = vst [vmem:[#allocation98_spill] sm:$0xff] %v10728_v22  ;;  %12987 = vst [vmem:[#allocation101_spill] sm:$0xff] %v10732_v21  ;;  %v10744_v52 = vadd.f32 %v10112_v0, %v12992_v48  ;;  %v10748_v51 = vadd.f32 %v10112_v0, %v12994_v6  ;;  %v12996_v22 = vld [vmem:[#allocation116_spill] sm:$0xff]  ;;  %v12998_v21 = vld [vmem:[#allocation117_spill] sm:$0xff] }
 0x455   :  { %12989 = vst [vmem:[#allocation100_spill] sm:$0xff] %v10736_v62  ;;  %12991 = vst [vmem:[#allocation102_spill] sm:$0xff] %v10740_v26  ;;  %v10752_v20 = vadd.f32 %v10112_v0, %v12996_v22  ;;  %v10756_v24 = vadd.f32 %v10112_v0, %v12998_v21  ;;  %v13000_v62 = vld [vmem:[#allocation118_spill] sm:$0xff]  ;;  %v13002_v26 = vld [vmem:[#allocation119_spill] sm:$0xff] }
 0x456   :  { %12993 = vst [vmem:[#allocation106_spill] sm:$0xff] %v10744_v52  ;;  %12995 = vst [vmem:[#allocation109_spill] sm:$0xff] %v10748_v51  ;;  %v10760_v31 = vadd.f32 %v10112_v0, %v13000_v62  ;;  %v10764_v48 = vadd.f32 %v10112_v0, %v13002_v26  ;;  %v13004_v52 = vld [vmem:[#allocation120_spill] sm:$0xff]  ;;  %v13006_v51 = vld [vmem:[#allocation121_spill] sm:$0xff] }
 0x457   :  { %12997 = vst [vmem:[#allocation111_spill] sm:$0xff] %v10752_v20  ;;  %12999 = vst [vmem:[#allocation112_spill] sm:$0xff] %v10756_v24  ;;  %v10768_v6 = vadd.f32 %v10112_v0, %v13004_v52  ;;  %v10772_v22 = vadd.f32 %v10112_v0, %v13006_v51  ;;  %v13008_v20 = vld [vmem:[#allocation122_spill] sm:$0xff]  ;;  %v13009_v24 = vld [vmem:[#allocation123_spill] sm:$0xff] }
 0x458   :  { %13001 = vst [vmem:[#allocation113_spill] sm:$0xff] %v10760_v31  ;;  %13003 = vst [vmem:[#allocation114_spill] sm:$0xff] %v10764_v48  ;;  %v10776_v21 = vadd.f32 %v10112_v0, %v13008_v20  ;;  %v10780_v62 = vadd.f32 %v10112_v0, %v13009_v24  ;;  %v13011_v31 = vld [vmem:[#allocation127_spill] sm:$0xff]  ;;  %v13013_v48 = vld [vmem:[#allocation128_spill] sm:$0xff]  ;;  %v10796_v20 = vadd.f32 %v10112_v0, %v10101_v23 }
 0x459   :  { %13005 = vst [vmem:[#allocation115_spill] sm:$0xff] %v10768_v6  ;;  %13007 = vst [vmem:[#allocation116_spill] sm:$0xff] %v10772_v22  ;;  %v10784_v26 = vadd.f32 %v10112_v0, %v13011_v31  ;;  %v10788_v52 = vadd.f32 %v10112_v0, %v13013_v48  ;;  %v13015_v6 = vld [vmem:[#allocation133_spill] sm:$0xff]  ;;  %v10800_v24 = vadd.f32 %v10112_v0, %v10105_v16  ;;  %v13118_v32 = vld [vmem:[#allocation82_spill] sm:$0xff] }
 0x45a   :  { %13010 = vst [vmem:[#allocation117_spill] sm:$0xff] %v10780_v62  ;;  %v10792_v51 = vadd.f32 %v10112_v0, %v13015_v6  ;;  %13017 = vst [vmem:[#allocation121_spill] sm:$0xff] %v10796_v20  ;;  %v10804_v31 = vadd.f32 %v10112_v0, %v10116_v40  ;;  %v10808_v48 = vadd.f32 %v10112_v0, %v10120_v14  ;;  %v13119_v7 = vld [vmem:[#allocation85_spill] sm:$0xff]  ;;  %v13120_v49 = vld [vmem:[#allocation84_spill] sm:$0xff] }
 0x45b   :  { %13012 = vst [vmem:[#allocation118_spill] sm:$0xff] %v10784_v26  ;;  %13014 = vst [vmem:[#allocation119_spill] sm:$0xff] %v10788_v52  ;;  %v10812_v6 = vadd.f32 %v10112_v0, %v10124_v61  ;;  %v10816_v23 = vadd.f32 %v10112_v0, %v10128_v38  ;;  %v13079_v52 = vld [vmem:[#allocation18_spill] sm:$0xff]  ;;  %v13099_v61 = vld [vmem:[#allocation41_spill] sm:$0xff]  ;;  %v13141_v47 = vmov %v10800_v24  ;;  %v13158_v38 = vmax.f32 %v13157_v43, 0.0 }
 0x45c   :  { %13016 = vst [vmem:[#allocation120_spill] sm:$0xff] %v10792_v51  ;;  %13018 = vst [vmem:[#allocation122_spill] sm:$0xff] %v10800_v24  ;;  %v13102_v0 = vld [vmem:[#allocation45_spill] sm:$0xff]  ;;  %v13121_v27 = vld [vmem:[#allocation86_spill] sm:$0xff]  ;;  %v13153_v51 = vmax.f32 %v13152_v10, 0.0 }
 0x45d   :  { %13019 = vst [vmem:[#allocation123_spill] sm:$0xff] %v10804_v31  ;;  %13020 = vst [vmem:[#allocation127_spill] sm:$0xff] %v10808_v48  ;;  %v13098_v48 = vld [vmem:[#allocation39_spill] sm:$0xff]  ;;  %v13126_v3 = vld [vmem:[#allocation98_spill] sm:$0xff] }
 0x45e   :  { %13021 = vst [vmem:[#allocation128_spill] sm:$0xff] %v10812_v6  ;;  %13022 = vst [vmem:[#allocation133_spill] sm:$0xff] %v10816_v23  ;;  %v13059_v23 = vld [vmem:[#allocation97_spill] sm:$0xff]  ;;  %v13128_v9 = vld [vmem:[#allocation100_spill] sm:$0xff] }
 0x45f   :  { %v13127_v8 = vld [vmem:[#allocation101_spill] sm:$0xff]  ;;  %v13146_v24 = vmax.f32 %v13059_v23, 0.0  ;;  %v13147_v62 = vld [vmem:[#allocation134_spill] sm:$0xff]  ;;  %v13150_v31 = vld [vmem:[#allocation147_spill] sm:$0xff] }
 0x460   :  { %v13148_v40 = vmax.f32 %v13147_v62, 0.0  ;;  %v13151_v14 = vmax.f32 %v13150_v31, 0.0  ;;  %v13155_v6 = vld [vmem:[#allocation149_spill] sm:$0xff]  ;;  %v13160_v20 = vld [vmem:[#allocation38_spill] sm:$0xff]  ;;  %v13162_v22 = vld [vmem:[#allocation136_spill] sm:$0xff] }
 0x461   :  { %v13156_v26 = vmax.f32 %v13155_v6, 0.0  ;;  %v13161_v16 = vmax.f32 %v13160_v20, 0.0  ;;  %v13163_v23 = vmax.f32 %v13162_v22, 0.0  ;;  %v13165_v62 = vld [vmem:[#allocation2_spill] sm:$0xff]  ;;  %v13170_v10 = vld [vmem:[#allocation4_spill] sm:$0xff]  ;;  %v13175_v43 = vld [vmem:[#allocation3_spill] sm:$0xff] }
 0x462   :  { %v13138_v58 = vld [vmem:[#allocation119_spill] sm:$0xff]  ;;  %v10994_v18 = vmax.f32 %v13148_v40, %v13146_v24  ;;  %v11000_v28 = vmax.f32 %v13153_v51, %v13151_v14  ;;  %v13166_v24 = vmax.f32 %v13165_v62, 0.0  ;;  %v13167_v40 = vld [vmem:[#allocation137_spill] sm:$0xff]  ;;  %v13171_v51 = vmax.f32 %v13170_v10, 0.0 }
 0x463   :  { %v11006_v30 = vmax.f32 %v13158_v38, %v13156_v26  ;;  %v11012_v56 = vmax.f32 %v13163_v23, %v13161_v16  ;;  %v13168_v31 = vmax.f32 %v13167_v40, 0.0  ;;  %v13172_v14 = vld [vmem:[#allocation75_spill] sm:$0xff]  ;;  %v13176_v26 = vmax.f32 %v13175_v43, 0.0  ;;  %v13177_v38 = vld [vmem:[#allocation73_spill] sm:$0xff]  ;;  %v13182_v23 = vld [vmem:[#allocation80_spill] sm:$0xff] }
 0x464   :  { %13149 = vst [vmem:[#allocation97_spill] sm:$0xff] %v10994_v18  ;;  %13154 = vst [vmem:[#allocation18_spill] sm:$0xff] %v11000_v28  ;;  %v13173_v6 = vmax.f32 %v13172_v14, 0.0  ;;  %v13178_v20 = vmax.f32 %v13177_v38, 0.0  ;;  %v13180_v22 = vld [vmem:[#allocation5_spill] sm:$0xff]  ;;  %v13183_v62 = vmax.f32 %v13182_v23, 0.0 }
 0x465   :  { %13159 = vst [vmem:[#allocation31_spill] sm:$0xff] %v11006_v30  ;;  %13164 = vst [vmem:[#allocation33_spill] sm:$0xff] %v11012_v56  ;;  %v11018_v18 = vmax.f32 %v13168_v31, %v13166_v24  ;;  %v13181_v16 = vmax.f32 %v13180_v22, 0.0  ;;  %v13185_v24 = vld [vmem:[#allocation6_spill] sm:$0xff]  ;;  %v13187_v31 = vld [vmem:[#allocation83_spill] sm:$0xff] }
 0x466   :  { %v11024_v28 = vmax.f32 %v13173_v6, %v13171_v51  ;;  %v11030_v30 = vmax.f32 %v13178_v20, %v13176_v26  ;;  %v13186_v40 = vmax.f32 %v13185_v24, 0.0  ;;  %v13188_v10 = vmax.f32 %v13187_v31, 0.0  ;;  %v13190_v51 = vld [vmem:[#allocation8_spill] sm:$0xff]  ;;  %v13192_v6 = vld [vmem:[#allocation79_spill] sm:$0xff]  ;;  %v13197_v20 = vld [vmem:[#allocation81_spill] sm:$0xff] }
 0x467   :  { %13169 = vst [vmem:[#allocation34_spill] sm:$0xff] %v11018_v18  ;;  %v11036_v56 = vmax.f32 %v13183_v62, %v13181_v16  ;;  %v13191_v14 = vmax.f32 %v13190_v51, 0.0  ;;  %v13193_v43 = vmax.f32 %v13192_v6, 0.0  ;;  %v13195_v26 = vld [vmem:[#allocation7_spill] sm:$0xff]  ;;  %v13198_v22 = vmax.f32 %v13197_v20, 0.0  ;;  %v13200_v16 = vld [vmem:[#allocation9_spill] sm:$0xff] }
 0x468   :  { %13174 = vst [vmem:[#allocation36_spill] sm:$0xff] %v11024_v28  ;;  %13179 = vst [vmem:[#allocation35_spill] sm:$0xff] %v11030_v30  ;;  %v11042_v18 = vmax.f32 %v13188_v10, %v13186_v40  ;;  %v13196_v38 = vmax.f32 %v13195_v26, 0.0  ;;  %v13201_v23 = vmax.f32 %v13200_v16, 0.0  ;;  %v13202_v62 = vld [vmem:[#allocation88_spill] sm:$0xff]  ;;  %v13205_v40 = vld [vmem:[#allocation10_spill] sm:$0xff] }
 0x469   :  { %13184 = vst [vmem:[#allocation37_spill] sm:$0xff] %v11036_v56  ;;  %v11048_v28 = vmax.f32 %v13193_v43, %v13191_v14  ;;  %v13203_v24 = vmax.f32 %v13202_v62, 0.0  ;;  %v13206_v31 = vmax.f32 %v13205_v40, 0.0  ;;  %v13207_v10 = vld [vmem:[#allocation91_spill] sm:$0xff]  ;;  %v13210_v14 = vld [vmem:[#allocation12_spill] sm:$0xff] }
 0x46a   :  { %13189 = vst [vmem:[#allocation39_spill] sm:$0xff] %v11042_v18  ;;  %v11054_v30 = vmax.f32 %v13198_v22, %v13196_v38  ;;  %v13208_v51 = vmax.f32 %v13207_v10, 0.0  ;;  %v13211_v6 = vmax.f32 %v13210_v14, 0.0  ;;  %v13212_v43 = vld [vmem:[#allocation87_spill] sm:$0xff]  ;;  %v13217_v22 = vld [vmem:[#allocation89_spill] sm:$0xff] }
 0x46b   :  { %13194 = vst [vmem:[#allocation41_spill] sm:$0xff] %v11048_v28  ;;  %v11060_v56 = vmax.f32 %v13203_v24, %v13201_v23  ;;  %v13213_v26 = vmax.f32 %v13212_v43, 0.0  ;;  %v13215_v38 = vld [vmem:[#allocation11_spill] sm:$0xff]  ;;  %v13218_v16 = vmax.f32 %v13217_v22, 0.0  ;;  %v13220_v23 = vld [vmem:[#allocation13_spill] sm:$0xff] }
 0x46c   :  { %13199 = vst [vmem:[#allocation40_spill] sm:$0xff] %v11054_v30  ;;  %v11066_v18 = vmax.f32 %v13208_v51, %v13206_v31  ;;  %v13216_v20 = vmax.f32 %v13215_v38, 0.0  ;;  %v13221_v62 = vmax.f32 %v13220_v23, 0.0  ;;  %v13222_v24 = vld [vmem:[#allocation99_spill] sm:$0xff]  ;;  %v13225_v31 = vld [vmem:[#allocation14_spill] sm:$0xff]  ;;  %v13227_v51 = vld [vmem:[#allocation104_spill] sm:$0xff] }
 0x46d   :  { %13204 = vst [vmem:[#allocation42_spill] sm:$0xff] %v11060_v56  ;;  %v11072_v28 = vmax.f32 %v13213_v26, %v13211_v6  ;;  %v13223_v40 = vmax.f32 %v13222_v24, 0.0  ;;  %v13226_v10 = vmax.f32 %v13225_v31, 0.0  ;;  %v13228_v14 = vmax.f32 %v13227_v51, 0.0  ;;  %v13229_v6 = vld [vmem:[#allocation16_spill] sm:$0xff]  ;;  %v13231_v26 = vld [vmem:[#allocation107_spill] sm:$0xff] }
 0x46e   :  { %13209 = vst [vmem:[#allocation45_spill] sm:$0xff] %v11066_v18  ;;  %v11078_v30 = vmax.f32 %v13218_v16, %v13216_v20  ;;  %v13230_v43 = vmax.f32 %v13229_v6, 0.0  ;;  %v13232_v38 = vmax.f32 %v13231_v26, 0.0  ;;  %v13234_v20 = vld [vmem:[#allocation15_spill] sm:$0xff]  ;;  %v13245_v51 = vld [vmem:[#allocation138_spill] sm:$0xff] }
 0x46f   :  { %13214 = vst [vmem:[#allocation82_spill] sm:$0xff] %v11072_v28  ;;  %v11084_v56 = vmax.f32 %v13223_v40, %v13221_v62  ;;  %v11090_v18 = vmax.f32 %v13228_v14, %v13226_v10  ;;  %v13235_v22 = vmax.f32 %v13234_v20, 0.0  ;;  %v13236_v16 = vld [vmem:[#allocation103_spill] sm:$0xff]  ;;  %v13239_v62 = vld [vmem:[#allocation17_spill] sm:$0xff]  ;;  %v13244_v10 = vmax.f32 %v13079_v52, 0.0 }
 0x470   :  { %13219 = vst [vmem:[#allocation85_spill] sm:$0xff] %v11078_v30  ;;  %v11096_v28 = vmax.f32 %v13232_v38, %v13230_v43  ;;  %v13237_v23 = vmax.f32 %v13236_v16, 0.0  ;;  %v13240_v24 = vmax.f32 %v13239_v62, 0.0  ;;  %v13241_v40 = vld [vmem:[#allocation105_spill] sm:$0xff]  ;;  %v13246_v14 = vmax.f32 %v13245_v51, 0.0  ;;  %v13248_v43 = vld [vmem:[#allocation20_spill] sm:$0xff] }
 0x471   :  { %13224 = vst [vmem:[#allocation84_spill] sm:$0xff] %v11084_v56  ;;  %v13242_v31 = vmax.f32 %v13241_v40, 0.0  ;;  %v13249_v26 = vmax.f32 %v13248_v43, 0.0  ;;  %v13250_v38 = vld [vmem:[#allocation139_spill] sm:$0xff] }
 0x472   :  { %13233 = vst [vmem:[#allocation86_spill] sm:$0xff] %v11096_v28  ;;  %v11102_v30 = vmax.f32 %v13237_v23, %v13235_v22  ;;  %v11114_v6 = vmax.f32 %v13246_v14, %v13244_v10  ;;  %v13251_v20 = vmax.f32 %v13250_v38, 0.0  ;;  %v13253_v22 = vld [vmem:[#allocation19_spill] sm:$0xff]  ;;  %v13255_v23 = vld [vmem:[#allocation140_spill] sm:$0xff]  ;;  %v13263_v10 = vld [vmem:[#allocation22_spill] sm:$0xff] }
 0x473   :  { %v11108_v56 = vmax.f32 %v13242_v31, %v13240_v24  ;;  %v13254_v16 = vmax.f32 %v13253_v22, 0.0  ;;  %v13256_v62 = vmax.f32 %v13255_v23, 0.0  ;;  %v13258_v24 = vld [vmem:[#allocation21_spill] sm:$0xff]  ;;  %v13264_v51 = vmax.f32 %v13263_v10, 0.0  ;;  %v13265_v14 = vld [vmem:[#allocation142_spill] sm:$0xff] }
 0x474   :  { %13238 = vst [vmem:[#allocation98_spill] sm:$0xff] %v11102_v30  ;;  %13247 = vst [vmem:[#allocation100_spill] sm:$0xff] %v11114_v6  ;;  %v11120_v28 = vmax.f32 %v13251_v20, %v13249_v26  ;;  %v13259_v40 = vmax.f32 %v13258_v24, 0.0  ;;  %v13260_v31 = vld [vmem:[#allocation141_spill] sm:$0xff]  ;;  %v13266_v43 = vmax.f32 %v13265_v14, 0.0  ;;  %v13268_v26 = vld [vmem:[#allocation24_spill] sm:$0xff] }
 0x475   :  { %13243 = vst [vmem:[#allocation101_spill] sm:$0xff] %v11108_v56  ;;  %v11126_v30 = vmax.f32 %v13256_v62, %v13254_v16  ;;  %v13261_v52 = vmax.f32 %v13260_v31, 0.0  ;;  %v13269_v38 = vmax.f32 %v13268_v26, 0.0  ;;  %v13270_v20 = vld [vmem:[#allocation143_spill] sm:$0xff]  ;;  %v13275_v62 = vld [vmem:[#allocation144_spill] sm:$0xff] }
 0x476   :  { %13252 = vst [vmem:[#allocation119_spill] sm:$0xff] %v11120_v28  ;;  %v11138_v6 = vmax.f32 %v13266_v43, %v13264_v51  ;;  %v13271_v22 = vmax.f32 %v13270_v20, 0.0  ;;  %v13273_v16 = vld [vmem:[#allocation23_spill] sm:$0xff]  ;;  %v13276_v24 = vmax.f32 %v13275_v62, 0.0  ;;  %v13283_v51 = vld [vmem:[#allocation26_spill] sm:$0xff] }
 0x477   :  { %13257 = vst [vmem:[#allocation122_spill] sm:$0xff] %v11126_v30  ;;  %v11132_v56 = vmax.f32 %v13261_v52, %v13259_v40  ;;  %v13274_v23 = vmax.f32 %v13273_v16, 0.0  ;;  %v13278_v40 = vld [vmem:[#allocation25_spill] sm:$0xff]  ;;  %v13284_v14 = vmax.f32 %v13283_v51, 0.0  ;;  %v13285_v43 = vld [vmem:[#allocation146_spill] sm:$0xff] }
 0x478   :  { %13267 = vst [vmem:[#allocation147_spill] sm:$0xff] %v11138_v6  ;;  %v11144_v28 = vmax.f32 %v13271_v22, %v13269_v38  ;;  %v13279_v31 = vmax.f32 %v13278_v40, 0.0  ;;  %v13280_v52 = vld [vmem:[#allocation145_spill] sm:$0xff]  ;;  %v13286_v26 = vmax.f32 %v13285_v43, 0.0  ;;  %v13288_v38 = vld [vmem:[#allocation28_spill] sm:$0xff] }
 0x479   :  { %13262 = vst [vmem:[#allocation134_spill] sm:$0xff] %v11132_v56  ;;  %v11150_v30 = vmax.f32 %v13276_v24, %v13274_v23  ;;  %v13281_v10 = vmax.f32 %v13280_v52, 0.0  ;;  %v13289_v20 = vmax.f32 %v13288_v38, 0.0  ;;  %v13290_v22 = vld [vmem:[#allocation148_spill] sm:$0xff]  ;;  %v13293_v23 = vld [vmem:[#allocation27_spill] sm:$0xff] }
 0x47a   :  { %13272 = vst [vmem:[#allocation131_spill] sm:$0xff] %v11144_v28  ;;  %v11162_v6 = vmax.f32 %v13286_v26, %v13284_v14  ;;  %v13291_v16 = vmax.f32 %v13290_v22, 0.0  ;;  %v13294_v62 = vmax.f32 %v13293_v23, 0.0  ;;  %v13295_v24 = vld [vmem:[#allocation44_spill] sm:$0xff]  ;;  %v13301_v14 = vld [vmem:[#allocation30_spill] sm:$0xff] }
 0x47b   :  { %13277 = vst [vmem:[#allocation149_spill] sm:$0xff] %v11150_v30  ;;  %v11156_v56 = vmax.f32 %v13281_v10, %v13279_v31  ;;  %v13296_v40 = vmax.f32 %v13295_v24, 0.0  ;;  %v13297_v31 = vld [vmem:[#allocation29_spill] sm:$0xff]  ;;  %v13299_v10 = vld [vmem:[#allocation47_spill] sm:$0xff]  ;;  %v13302_v43 = vmax.f32 %v13301_v14, 0.0  ;;  %v13303_v26 = vld [vmem:[#allocation108_spill] sm:$0xff] }
 0x47c   :  { %13287 = vst [vmem:[#allocation38_spill] sm:$0xff] %v11162_v6  ;;  %v11168_v28 = vmax.f32 %v13291_v16, %v13289_v20  ;;  %v13298_v52 = vmax.f32 %v13297_v31, 0.0  ;;  %v13300_v51 = vmax.f32 %v13299_v10, 0.0  ;;  %v13304_v38 = vmax.f32 %v13303_v26, 0.0  ;;  %v13305_v20 = vld [vmem:[#allocation32_spill] sm:$0xff]  ;;  %v13307_v16 = vld [vmem:[#allocation110_spill] sm:$0xff] }
 0x47d   :  { %13282 = vst [vmem:[#allocation135_spill] sm:$0xff] %v11156_v56  ;;  %v11174_v30 = vmax.f32 %v13296_v40, %v13294_v62  ;;  %v13306_v22 = vmax.f32 %v13305_v20, 0.0  ;;  %v13308_v23 = vmax.f32 %v13307_v16, 0.0  ;;  %v13309_v62 = vmax.f32 %v13092_v50, 0.0  ;;  %v13310_v24 = vld [vmem:[#allocation124_spill] sm:$0xff]  ;;  %v13313_v10 = vld [vmem:[#allocation125_spill] sm:$0xff] }
 0x47e   :  { %13292 = vst [vmem:[#allocation136_spill] sm:$0xff] %v11168_v28  ;;  %v11180_v56 = vmax.f32 %v13300_v51, %v13298_v52  ;;  %v11186_v6 = vmax.f32 %v13304_v38, %v13302_v43  ;;  %v13311_v40 = vmax.f32 %v13310_v24, 0.0  ;;  %v13312_v52 = vmax.f32 %v13093_v60, 0.0  ;;  %v13316_v26 = vld [vmem:[#allocation126_spill] sm:$0xff]  ;;  %v13320_v16 = vld [vmem:[#allocation129_spill] sm:$0xff] }
 0x47f   :  { %v11192_v28 = vmax.f32 %v13308_v23, %v13306_v22  ;;  %v13314_v51 = vmax.f32 %v13313_v10, 0.0  ;;  %v13315_v43 = vmax.f32 %v13094_v46, 0.0  ;;  %v13317_v38 = vmax.f32 %v13316_v26, 0.0  ;;  %v13324_v24 = vld [vmem:[#allocation130_spill] sm:$0xff]  ;;  %v13328_v10 = vld [vmem:[#allocation132_spill] sm:$0xff] }
 0x480   :  { %v11198_v31 = vmax.f32 %v13311_v40, %v13309_v62  ;;  %v13319_v22 = vmax.f32 %v13095_v39, 0.0  ;;  %v13321_v50 = vmax.f32 %v13320_v16, 0.0  ;;  %v13323_v62 = vmax.f32 %v13096_v4, 0.0  ;;  %v13332_v26 = vld [vmem:[#allocation72_spill] sm:$0xff] }
 0x481   :  { %v11204_v14 = vmax.f32 %v13314_v51, %v13312_v52  ;;  %v11210_v20 = vmax.f32 %v13317_v38, %v13315_v43  ;;  %v13325_v60 = vmax.f32 %v13324_v24, 0.0  ;;  %v13327_v52 = vmax.f32 %v13097_v12, 0.0  ;;  %v13336_v16 = vld [vmem:[#allocation96_spill] sm:$0xff]  ;;  %v13340_v24 = vld [vmem:[#allocation95_spill] sm:$0xff] }
 0x482   :  { %v11216_v23 = vmax.f32 %v13321_v50, %v13319_v22  ;;  %v13329_v46 = vmax.f32 %v13328_v10, 0.0  ;;  %v13331_v43 = vmax.f32 %v13098_v48, 0.0  ;;  %v13333_v39 = vmax.f32 %v13332_v26, 0.0 }
 0x483   :  { %13318 = vst [vmem:[#allocation2_spill] sm:$0xff] %v11210_v20  ;;  %v11222_v40 = vmax.f32 %v13325_v60, %v13323_v62  ;;  %v13335_v22 = vmax.f32 %v13099_v61, 0.0  ;;  %v13337_v4 = vmax.f32 %v13336_v16, 0.0  ;;  %v13339_v62 = vmax.f32 %v13100_v25, 0.0  ;;  %v13489_v20 = vld [vmem:[#allocation36_spill] sm:$0xff] }
 0x484   :  { %13322 = vst [vmem:[#allocation137_spill] sm:$0xff] %v11216_v23  ;;  %v11228_v51 = vmax.f32 %v13329_v46, %v13327_v52  ;;  %v11234_v38 = vmax.f32 %v13333_v39, %v13331_v43  ;;  %v13341_v12 = vmax.f32 %v13340_v24, 0.0  ;;  %v13343_v52 = vmax.f32 %v13118_v32, 0.0 }
 0x485   :  { %13326 = vst [vmem:[#allocation4_spill] sm:$0xff] %v11222_v40  ;;  %v11240_v50 = vmax.f32 %v13337_v4, %v13335_v22  ;;  %v13344_v48 = vmax.f32 %v13101_v1, 0.0  ;;  %v13345_v46 = vmax.f32 %v13119_v7, 0.0  ;;  %v13346_v43 = vmax.f32 %v13102_v0, 0.0 }
 0x486   :  { %13330 = vst [vmem:[#allocation75_spill] sm:$0xff] %v11228_v51  ;;  %13334 = vst [vmem:[#allocation3_spill] sm:$0xff] %v11234_v38  ;;  %v11246_v60 = vmax.f32 %v13341_v12, %v13339_v62  ;;  %v13347_v26 = vmax.f32 %v13120_v49, 0.0  ;;  %v13348_v39 = vmax.f32 %v10484_v29, 0.0  ;;  %v13349_v25 = vmax.f32 %v10660_v17, 0.0 }
 0x487   :  { %13338 = vst [vmem:[#allocation73_spill] sm:$0xff] %v11240_v50  ;;  %v6696_v10 = vmax.f32 %v13344_v48, %v13343_v52  ;;  %v6697_v61 = vmax.f32 %v13346_v43, %v13345_v46  ;;  %v13350_v16 = vmax.f32 %v10488_v37, 0.0  ;;  %v13351_v32 = vmax.f32 %v13121_v27, 0.0  ;;  %v13366_v43 = vld [vmem:[#allocation46_spill] sm:$0xff] }
 0x488   :  { %13342 = vst [vmem:[#allocation5_spill] sm:$0xff] %v11246_v60  ;;  %v6698_v22 = vmax.f32 %v13348_v39, %v13347_v26  ;;  %v13352_v1 = vmax.f32 %v10492_v42, 0.0  ;;  %v13353_v7 = vmax.f32 %v10668_v33, 0.0  ;;  %v13354_v0 = vmax.f32 %v10496_v5, 0.0 }
 0x489   :  { %v6699_v4 = vmax.f32 %v13350_v16, %v13349_v25  ;;  %v13355_v49 = vmax.f32 %v10672_v41, 0.0  ;;  %v13356_v29 = vmax.f32 %v10500_v19, 0.0  ;;  %v13357_v17 = vmax.f32 %v10676_v63, 0.0  ;;  %v13371_v25 = vld [vmem:[#allocation43_spill] sm:$0xff] }
 0x48a   :  { %v6700_v62 = vmax.f32 %v13352_v1, %v13351_v32  ;;  %v6701_v24 = vmax.f32 %v13354_v0, %v13353_v7  ;;  %v13358_v37 = vmax.f32 %v10504_v35, 0.0  ;;  %v13359_v42 = vmax.f32 %v10680_v44, 0.0  ;;  %v13376_v7 = vld [vmem:[#allocation48_spill] sm:$0xff] }
 0x48b   :  { %v11276_v12 = vmax.f32 %v13356_v29, %v13355_v49  ;;  %v13360_v27 = vmax.f32 %v10508_v36, 0.0  ;;  %v13361_v5 = vmax.f32 %v10684_v2, 0.0  ;;  %v13362_v41 = vmax.f32 %v10512_v13, 0.0  ;;  %v13380_v29 = vld [vmem:[#allocation50_spill] sm:$0xff] }
 0x48c   :  { %v11282_v52 = vmax.f32 %v13358_v37, %v13357_v17  ;;  %v13363_v19 = vmax.f32 %v10688_v45, 0.0  ;;  %v13364_v63 = vmax.f32 %v10516_v57, 0.0  ;;  %v13365_v35 = vmax.f32 %v10692_v53, 0.0  ;;  %v13382_v37 = vld [vmem:[#allocation93_spill] sm:$0xff] }
 0x48d   :  { %v11288_v33 = vmax.f32 %v13360_v27, %v13359_v42  ;;  %v11294_v48 = vmax.f32 %v13362_v41, %v13361_v5  ;;  %v13367_v44 = vmax.f32 %v13366_v43, 0.0  ;;  %v13368_v36 = vmax.f32 %v10696_v59, 0.0  ;;  %v13384_v27 = vld [vmem:[#allocation49_spill] sm:$0xff] }
 0x48e   :  { %v11300_v46 = vmax.f32 %v13364_v63, %v13363_v19  ;;  %v13369_v2 = vmax.f32 %v10524_v34, 0.0  ;;  %v13370_v13 = vmax.f32 %v10700_v11, 0.0  ;;  %v13372_v45 = vmax.f32 %v13371_v25, 0.0  ;;  %v13378_v34 = vld [vmem:[#allocation90_spill] sm:$0xff]  ;;  %v13388_v19 = vld [vmem:[#allocation51_spill] sm:$0xff] }
 0x48f   :  { %v11306_v26 = vmax.f32 %v13367_v44, %v13365_v35  ;;  %v13373_v57 = vmax.f32 %v10704_v55, 0.0  ;;  %v13374_v53 = vmax.f32 %v10532_v54, 0.0  ;;  %v13375_v1 = vmax.f32 %v10708_v15, 0.0  ;;  %v13386_v54 = vld [vmem:[#allocation92_spill] sm:$0xff]  ;;  %v13390_v35 = vld [vmem:[#allocation94_spill] sm:$0xff] }
 0x490   :  { %v11312_v39 = vmax.f32 %v13369_v2, %v13368_v36  ;;  %v11318_v16 = vmax.f32 %v13372_v45, %v13370_v13  ;;  %v13377_v59 = vmax.f32 %v13376_v7, 0.0  ;;  %v13379_v49 = vmax.f32 %v13378_v34, 0.0  ;;  %v13392_v44 = vld [vmem:[#allocation52_spill] sm:$0xff]  ;;  %v13395_v25 = vld [vmem:[#allocation54_spill] sm:$0xff] }
 0x491   :  { %v11324_v32 = vmax.f32 %v13374_v53, %v13373_v57  ;;  %v13381_v11 = vmax.f32 %v13380_v29, 0.0  ;;  %v13383_v42 = vmax.f32 %v13382_v37, 0.0  ;;  %v13385_v55 = vmax.f32 %v13384_v27, 0.0  ;;  %v13403_v37 = vld [vmem:[#allocation102_spill] sm:$0xff]  ;;  %v13405_v27 = vld [vmem:[#allocation56_spill] sm:$0xff] }
 0x492   :  { %v11330_v0 = vmax.f32 %v13377_v59, %v13375_v1  ;;  %v13387_v41 = vmax.f32 %v13386_v54, 0.0  ;;  %v13389_v15 = vmax.f32 %v13388_v19, 0.0  ;;  %v13391_v43 = vmax.f32 %v13390_v35, 0.0  ;;  %v13398_v1 = vld [vmem:[#allocation53_spill] sm:$0xff]  ;;  %v13407_v54 = vld [vmem:[#allocation106_spill] sm:$0xff] }
 0x493   :  { %v11336_v17 = vmax.f32 %v13381_v11, %v13379_v49  ;;  %v11342_v5 = vmax.f32 %v13385_v55, %v13383_v42  ;;  %v13393_v36 = vmax.f32 %v13392_v44, 0.0  ;;  %v13394_v13 = vmax.f32 %v13126_v3, 0.0  ;;  %v13401_v49 = vld [vmem:[#allocation55_spill] sm:$0xff]  ;;  %v13409_v19 = vld [vmem:[#allocation58_spill] sm:$0xff]  ;;  %v13411_v35 = vld [vmem:[#allocation109_spill] sm:$0xff] }
 0x494   :  { %v11348_v63 = vmax.f32 %v13389_v15, %v13387_v41  ;;  %v13396_v45 = vmax.f32 %v13395_v25, 0.0  ;;  %v13397_v53 = vmax.f32 %v13127_v8, 0.0  ;;  %v13399_v7 = vmax.f32 %v13398_v1, 0.0  ;;  %v13413_v44 = vld [vmem:[#allocation57_spill] sm:$0xff] }
 0x495   :  { %v11354_v2 = vmax.f32 %v13393_v36, %v13391_v43  ;;  %v13400_v34 = vmax.f32 %v13128_v9, 0.0  ;;  %v13402_v29 = vmax.f32 %v13401_v49, 0.0  ;;  %v13404_v42 = vmax.f32 %v13403_v37, 0.0  ;;  %v13421_v49 = vld [vmem:[#allocation60_spill] sm:$0xff] }
 0x496   :  { %v11360_v57 = vmax.f32 %v13396_v45, %v13394_v13  ;;  %v11366_v59 = vmax.f32 %v13399_v7, %v13397_v53  ;;  %v13406_v3 = vmax.f32 %v13405_v27, 0.0  ;;  %v13408_v41 = vmax.f32 %v13407_v54, 0.0  ;;  %v13415_v13 = vld [vmem:[#allocation111_spill] sm:$0xff]  ;;  %v13419_v7 = vld [vmem:[#allocation112_spill] sm:$0xff] }
 0x497   :  { %v11372_v11 = vmax.f32 %v13402_v29, %v13400_v34  ;;  %v13410_v8 = vmax.f32 %v13409_v19, 0.0  ;;  %v13412_v43 = vmax.f32 %v13411_v35, 0.0  ;;  %v13414_v9 = vmax.f32 %v13413_v44, 0.0  ;;  %v13417_v45 = vld [vmem:[#allocation59_spill] sm:$0xff]  ;;  %v13427_v19 = vld [vmem:[#allocation114_spill] sm:$0xff]  ;;  %v13429_v35 = vld [vmem:[#allocation61_spill] sm:$0xff] }
 0x498   :  { %v11378_v55 = vmax.f32 %v13406_v3, %v13404_v42  ;;  %v13416_v25 = vmax.f32 %v13415_v13, 0.0  ;;  %v13418_v53 = vmax.f32 %v13417_v45, 0.0  ;;  %v13420_v34 = vmax.f32 %v13419_v7, 0.0  ;;  %v13423_v42 = vld [vmem:[#allocation113_spill] sm:$0xff]  ;;  %v13425_v3 = vld [vmem:[#allocation62_spill] sm:$0xff]  ;;  %v13435_v7 = vld [vmem:[#allocation116_spill] sm:$0xff] }
 0x499   :  { %v11384_v15 = vmax.f32 %v13410_v8, %v13408_v41  ;;  %v11390_v36 = vmax.f32 %v13414_v9, %v13412_v43  ;;  %v13422_v29 = vmax.f32 %v13421_v49, 0.0  ;;  %v13424_v27 = vmax.f32 %v13423_v42, 0.0  ;;  %v13431_v9 = vld [vmem:[#allocation115_spill] sm:$0xff]  ;;  %v13437_v49 = vld [vmem:[#allocation64_spill] sm:$0xff] }
 0x49a   :  { %v11396_v1 = vmax.f32 %v13418_v53, %v13416_v25  ;;  %v13426_v54 = vmax.f32 %v13425_v3, 0.0  ;;  %v13428_v8 = vmax.f32 %v13427_v19, 0.0  ;;  %v13430_v43 = vmax.f32 %v13429_v35, 0.0  ;;  %v13433_v25 = vld [vmem:[#allocation63_spill] sm:$0xff]  ;;  %v13440_v3 = vld [vmem:[#allocation66_spill] sm:$0xff] }
 0x49b   :  { %v11402_v37 = vmax.f32 %v13422_v29, %v13420_v34  ;;  %v13432_v13 = vmax.f32 %v13431_v9, 0.0  ;;  %v13434_v45 = vmax.f32 %v13433_v25, 0.0  ;;  %v13436_v34 = vmax.f32 %v13435_v7, 0.0 }
 0x49c   :  { %v11408_v41 = vmax.f32 %v13426_v54, %v13424_v27  ;;  %v11414_v44 = vmax.f32 %v13430_v43, %v13428_v8  ;;  %v13438_v29 = vmax.f32 %v13437_v49, 0.0  ;;  %v13439_v27 = vmax.f32 %v10776_v21, 0.0  ;;  %v13442_v8 = vld [vmem:[#allocation117_spill] sm:$0xff]  ;;  %v13451_v49 = vld [vmem:[#allocation68_spill] sm:$0xff] }
 0x49d   :  { %v11420_v53 = vmax.f32 %v13434_v45, %v13432_v13  ;;  %v13441_v54 = vmax.f32 %v13440_v3, 0.0  ;;  %v13443_v35 = vmax.f32 %v13442_v8, 0.0  ;;  %v13444_v43 = vld [vmem:[#allocation65_spill] sm:$0xff]  ;;  %v13446_v13 = vld [vmem:[#allocation118_spill] sm:$0xff]  ;;  %v13448_v45 = vld [vmem:[#allocation67_spill] sm:$0xff]  ;;  %v13452_v21 = vmax.f32 %v13451_v49, 0.0 }
 0x49e   :  { %v11426_v42 = vmax.f32 %v13438_v29, %v13436_v34  ;;  %v13445_v9 = vmax.f32 %v13444_v43, 0.0  ;;  %v13447_v25 = vmax.f32 %v13446_v13, 0.0  ;;  %v13449_v7 = vmax.f32 %v13448_v45, 0.0  ;;  %v13463_v45 = vld [vmem:[#allocation71_spill] sm:$0xff] }
 0x49f   :  { %v11432_v19 = vmax.f32 %v13441_v54, %v13439_v27  ;;  %v13450_v34 = vmax.f32 %v13138_v58, 0.0  ;;  %v13453_v27 = vld [vmem:[#allocation120_spill] sm:$0xff]  ;;  %v13455_v54 = vld [vmem:[#allocation70_spill] sm:$0xff]  ;;  %v13464_v58 = vmax.f32 %v13463_v45, 0.0 }
 0x4a0   :  { %v11438_v60 = vmax.f32 %v13445_v9, %v13443_v35  ;;  %v11444_v50 = vmax.f32 %v13449_v7, %v13447_v25  ;;  %v13454_v3 = vmax.f32 %v13453_v27, 0.0  ;;  %v13456_v8 = vmax.f32 %v13455_v54, 0.0  ;;  %v13457_v35 = vld [vmem:[#allocation121_spill] sm:$0xff] }
 0x4a1   :  { %v11450_v29 = vmax.f32 %v13452_v21, %v13450_v34  ;;  %v13458_v43 = vmax.f32 %v13457_v35, 0.0  ;;  %v13459_v9 = vld [vmem:[#allocation69_spill] sm:$0xff]  ;;  %v13462_v25 = vmax.f32 %v13141_v47, 0.0  ;;  %v13466_v34 = vld [vmem:[#allocation123_spill] sm:$0xff]  ;;  %v13468_v21 = vld [vmem:[#allocation74_spill] sm:$0xff] }
 0x4a2   :  { %v11456_v38 = vmax.f32 %v13456_v8, %v13454_v3  ;;  %v13460_v13 = vmax.f32 %v13459_v9, 0.0  ;;  %v13467_v49 = vmax.f32 %v13466_v34, 0.0  ;;  %v13469_v27 = vmax.f32 %v13468_v21, 0.0  ;;  %v13471_v3 = vld [vmem:[#allocation127_spill] sm:$0xff]  ;;  %v13473_v8 = vld [vmem:[#allocation77_spill] sm:$0xff] }
 0x4a3   :  { %v11468_v7 = vmax.f32 %v13464_v58, %v13462_v25  ;;  %v13472_v54 = vmax.f32 %v13471_v3, 0.0  ;;  %v13474_v35 = vmax.f32 %v13473_v8, 0.0  ;;  %v13480_v25 = vld [vmem:[#allocation133_spill] sm:$0xff]  ;;  %v13482_v58 = vld [vmem:[#allocation78_spill] sm:$0xff] }
 0x4a4   :  { %v11462_v51 = vmax.f32 %v13460_v13, %v13458_v43  ;;  %v11474_v40 = vmax.f32 %v13469_v27, %v13467_v49  ;;  %v13476_v43 = vld [vmem:[#allocation128_spill] sm:$0xff]  ;;  %v13481_v45 = vmax.f32 %v13480_v25, 0.0  ;;  %v13483_v34 = vmax.f32 %v13482_v58, 0.0  ;;  %v13484_v49 = vld [vmem:[#allocation97_spill] sm:$0xff]  ;;  %v13485_v27 = vld [vmem:[#allocation18_spill] sm:$0xff] }
 0x4a5   :  { %13465 = vst [vmem:[#allocation6_spill] sm:$0xff] %v11468_v7  ;;  %v11480_v23 = vmax.f32 %v13474_v35, %v13472_v54  ;;  %v13477_v9 = vmax.f32 %v13476_v43, 0.0  ;;  %v13478_v13 = vld [vmem:[#allocation76_spill] sm:$0xff]  ;;  %v6739_v21 = vmax.f32 %v13484_v49, %v6696_v10  ;;  %v6740_v3 = vmax.f32 %v13485_v27, %v6697_v61  ;;  %v13487_v54 = vld [vmem:[#allocation33_spill] sm:$0xff] }
 0x4a6   :  { %13461 = vst [vmem:[#allocation80_spill] sm:$0xff] %v11462_v51  ;;  %13470 = vst [vmem:[#allocation83_spill] sm:$0xff] %v11474_v40  ;;  %v13479_v47 = vmax.f32 %v13478_v13, 0.0  ;;  %v11492_v7 = vmax.f32 %v13483_v34, %v13481_v45  ;;  %v13486_v40 = vld [vmem:[#allocation31_spill] sm:$0xff]  ;;  %v6742_v35 = vmax.f32 %v13487_v54, %v6699_v4  ;;  %v6744_v13 = vmax.f32 %v13489_v20, %v6701_v24  ;;  %v13491_v25 = vld [vmem:[#allocation37_spill] sm:$0xff] }
 0x4a7   :  { %13475 = vst [vmem:[#allocation8_spill] sm:$0xff] %v11480_v23  ;;  %v6741_v8 = vmax.f32 %v13486_v40, %v6698_v22  ;;  %v13488_v23 = vld [vmem:[#allocation34_spill] sm:$0xff]  ;;  %v6746_v58 = vmax.f32 %v13491_v25, %v11282_v52  ;;  %v13492_v45 = vld [vmem:[#allocation39_spill] sm:$0xff]  ;;  %v13493_v10 = vld [vmem:[#allocation41_spill] sm:$0xff] }
 0x4a8   :  { %v11486_v51 = vmax.f32 %v13479_v47, %v13477_v9  ;;  %v6743_v43 = vmax.f32 %v13488_v23, %v6700_v62  ;;  %v13490_v9 = vld [vmem:[#allocation35_spill] sm:$0xff]  ;;  %v6747_v34 = vmax.f32 %v13492_v45, %v11288_v33  ;;  %v6748_v61 = vmax.f32 %v13493_v10, %v11294_v48  ;;  %6782 = vst.msk [vmem:[%s11751_s5] sm:$0xff] %vm4901_vm3, %v6739_v21  ;;  %v13494_v20 = vld [vmem:[#allocation40_spill] sm:$0xff]  ;;  %v13495_v40 = vld [vmem:[#allocation42_spill] sm:$0xff] }
 0x4a9   :  { %v6745_v47 = vmax.f32 %v13490_v9, %v11276_v12  ;;  %6783 = vst.msk [vmem:[%s11751_s5 + $0x8] sm:$0xff] %vm4901_vm3, %v6740_v3  ;;  %v6749_v23 = vmax.f32 %v13494_v20, %v11300_v46  ;;  %v6750_v22 = vmax.f32 %v13495_v40, %v11306_v26  ;;  %v13496_v4 = vld [vmem:[#allocation45_spill] sm:$0xff]  ;;  %v13497_v24 = vld [vmem:[#allocation82_spill] sm:$0xff]  ;;  %6784 = vst.msk [vmem:[%s11751_s5 + $0x10] sm:$0xff] %vm4901_vm3, %v6741_v8 }
 0x4aa   :  { %v6751_v62 = vmax.f32 %v13496_v4, %v11312_v39  ;;  %v6752_v12 = vmax.f32 %v13497_v24, %v11318_v16  ;;  %6785 = vst.msk [vmem:[%s11751_s5 + $0x18] sm:$0xff] %vm4901_vm3, %v6742_v35  ;;  %6786 = vst.msk [vmem:[%s11751_s5 + $0x20] sm:$0xff] %vm4901_vm3, %v6743_v43  ;;  %v13498_v52 = vld [vmem:[#allocation85_spill] sm:$0xff]  ;;  %v13499_v48 = vld [vmem:[#allocation84_spill] sm:$0xff]  ;;  %v6755_v26 = vmax.f32 %v11090_v18, %v11336_v17 }
 0x4ab   :  { %6787 = vst.msk [vmem:[%s11751_s5 + $0x28] sm:$0xff] %vm4901_vm3, %v6744_v13  ;;  %v6753_v33 = vmax.f32 %v13498_v52, %v11324_v32  ;;  %v6754_v46 = vmax.f32 %v13499_v48, %v11330_v0  ;;  %v13500_v39 = vld [vmem:[#allocation86_spill] sm:$0xff]  ;;  %6788 = vst.msk [vmem:[%s11751_s5 + $0x30] sm:$0xff] %vm4901_vm3, %v6745_v47  ;;  %v13502_v0 = vld [vmem:[#allocation101_spill] sm:$0xff] }
 0x4ac   :  { %v6756_v16 = vmax.f32 %v13500_v39, %v11342_v5  ;;  %6789 = vst.msk [vmem:[%s11751_s5 + $0x38] sm:$0xff] %vm4901_vm3, %v6746_v58  ;;  %6790 = vst.msk [vmem:[%s11751_s5 + $0x40] sm:$0xff] %vm4901_vm3, %v6747_v34  ;;  %v13501_v18 = vld [vmem:[#allocation98_spill] sm:$0xff]  ;;  %v6758_v17 = vmax.f32 %v13502_v0, %v11354_v2  ;;  %v13503_v5 = vld [vmem:[#allocation100_spill] sm:$0xff] }
 0x4ad   :  { %6791 = vst.msk [vmem:[%s11751_s5 + $0x48] sm:$0xff] %vm4901_vm3, %v6748_v61  ;;  %v6757_v32 = vmax.f32 %v13501_v18, %v11348_v63  ;;  %v6759_v49 = vmax.f32 %v13503_v5, %v11360_v57  ;;  %v13504_v21 = vld [vmem:[#allocation119_spill] sm:$0xff]  ;;  %6792 = vst.msk [vmem:[%s11751_s5 + $0x50] sm:$0xff] %vm4901_vm3, %v6749_v23  ;;  %v13505_v63 = vld [vmem:[#allocation122_spill] sm:$0xff] }
 0x4ae   :  { %v6760_v27 = vmax.f32 %v13504_v21, %v11366_v59  ;;  %6793 = vst.msk [vmem:[%s11751_s5 + $0x58] sm:$0xff] %vm4901_vm3, %v6750_v22  ;;  %6794 = vst.msk [vmem:[%s11751_s5 + $0x60] sm:$0xff] %vm4901_vm3, %v6751_v62  ;;  %v6761_v2 = vmax.f32 %v13505_v63, %v11372_v11  ;;  %v13506_v57 = vld [vmem:[#allocation134_spill] sm:$0xff]  ;;  %v13507_v3 = vld [vmem:[#allocation147_spill] sm:$0xff] }
 0x4af   :  { %6795 = vst.msk [vmem:[%s11751_s5 + $0x68] sm:$0xff] %vm4901_vm3, %v6752_v12  ;;  %v6762_v59 = vmax.f32 %v13506_v57, %v11378_v55  ;;  %v6763_v8 = vmax.f32 %v13507_v3, %v11384_v15  ;;  %v13508_v54 = vld [vmem:[#allocation131_spill] sm:$0xff]  ;;  %6796 = vst.msk [vmem:[%s11751_s5 + $0x70] sm:$0xff] %vm4901_vm3, %v6753_v33  ;;  %v13509_v11 = vld [vmem:[#allocation149_spill] sm:$0xff] }
 0x4b0   :  { %v6764_v35 = vmax.f32 %v13508_v54, %v11390_v36  ;;  %6797 = vst.msk [vmem:[%s11751_s5 + $0x78] sm:$0xff] %vm4901_vm3, %v6754_v46  ;;  %6798 = vst.msk [vmem:[%s11751_s5 + $0x80] sm:$0xff] %vm4901_vm3, %v6755_v26  ;;  %v6765_v55 = vmax.f32 %v13509_v11, %v11396_v1  ;;  %v13510_v15 = vld [vmem:[#allocation135_spill] sm:$0xff]  ;;  %v13511_v43 = vld [vmem:[#allocation38_spill] sm:$0xff]  ;;  %v6769_v1 = vmax.f32 %v11174_v30, %v11420_v53 }
 0x4b1   :  { %6799 = vst.msk [vmem:[%s11751_s5 + $0x88] sm:$0xff] %vm4901_vm3, %v6756_v16  ;;  %v6766_v36 = vmax.f32 %v13510_v15, %v11402_v37  ;;  %v6767_v13 = vmax.f32 %v13511_v43, %v11408_v41  ;;  %v13512_v9 = vld [vmem:[#allocation136_spill] sm:$0xff]  ;;  %6800 = vst.msk [vmem:[%s11751_s5 + $0x90] sm:$0xff] %vm4901_vm3, %v6757_v32  ;;  %v6770_v37 = vmax.f32 %v11180_v56, %v11426_v42  ;;  %v13513_v30 = vld [vmem:[#allocation2_spill] sm:$0xff] }
 0x4b2   :  { %v6768_v47 = vmax.f32 %v13512_v9, %v11414_v44  ;;  %6801 = vst.msk [vmem:[%s11751_s5 + $0x98] sm:$0xff] %vm4901_vm3, %v6758_v17  ;;  %6802 = vst.msk [vmem:[%s11751_s5 + $0xa0] sm:$0xff] %vm4901_vm3, %v6759_v49  ;;  %v6771_v41 = vmax.f32 %v11186_v6, %v11432_v19  ;;  %v6772_v44 = vmax.f32 %v11192_v28, %v11438_v60  ;;  %v13514_v60 = vld [vmem:[#allocation80_spill] sm:$0xff]  ;;  %v13515_v53 = vld [vmem:[#allocation137_spill] sm:$0xff] }
 0x4b3   :  { %6803 = vst.msk [vmem:[%s11751_s5 + $0xa8] sm:$0xff] %vm4901_vm3, %v6760_v27  ;;  %6804 = vst.msk [vmem:[%s11751_s5 + $0xb0] sm:$0xff] %vm4901_vm3, %v6761_v2  ;;  %v6773_v28 = vmax.f32 %v11198_v31, %v11444_v50  ;;  %v6774_v56 = vmax.f32 %v11204_v14, %v11450_v29  ;;  %v6775_v6 = vmax.f32 %v13513_v30, %v11456_v38  ;;  %v13516_v31 = vld [vmem:[#allocation6_spill] sm:$0xff]  ;;  %v13517_v14 = vld [vmem:[#allocation4_spill] sm:$0xff] }
 0x4b4   :  { %6805 = vst.msk [vmem:[%s11751_s5 + $0xb8] sm:$0xff] %vm4901_vm3, %v6762_v59  ;;  %6806 = vst.msk [vmem:[%s11751_s5 + $0xc0] sm:$0xff] %vm4901_vm3, %v6763_v8  ;;  %v6776_v42 = vmax.f32 %v13515_v53, %v13514_v60  ;;  %v6777_v38 = vmax.f32 %v13517_v14, %v13516_v31  ;;  %v13518_v50 = vld [vmem:[#allocation83_spill] sm:$0xff]  ;;  %v13520_v25 = vld [vmem:[#allocation8_spill] sm:$0xff] }
 0x4b5   :  { %6807 = vst.msk [vmem:[%s11751_s5 + $0xc8] sm:$0xff] %vm4901_vm3, %v6764_v35  ;;  %6808 = vst.msk [vmem:[%s11751_s5 + $0xd0] sm:$0xff] %vm4901_vm3, %v6765_v55  ;;  %v13519_v19 = vld [vmem:[#allocation75_spill] sm:$0xff]  ;;  %v13522_v34 = vld [vmem:[#allocation73_spill] sm:$0xff] }
 0x4b6   :  { %6809 = vst.msk [vmem:[%s11751_s5 + $0xd8] sm:$0xff] %vm4901_vm3, %v6766_v36  ;;  %6810 = vst.msk [vmem:[%s11751_s5 + $0xe0] sm:$0xff] %vm4901_vm3, %v6767_v13  ;;  %v6778_v29 = vmax.f32 %v13519_v19, %v13518_v50  ;;  %v13521_v58 = vld [vmem:[#allocation3_spill] sm:$0xff]  ;;  %v6780_v10 = vmax.f32 %v13522_v34, %v11486_v51  ;;  %v13523_v51 = vld [vmem:[#allocation5_spill] sm:$0xff] }
 0x4b7   :  { %6811 = vst.msk [vmem:[%s11751_s5 + $0xe8] sm:$0xff] %vm4901_vm3, %v6768_v47  ;;  %v6779_v45 = vmax.f32 %v13521_v58, %v13520_v25  ;;  %6812 = vst.msk [vmem:[%s11751_s5 + $0xf0] sm:$0xff] %vm4901_vm3, %v6769_v1  ;;  %v6781_v61 = vmax.f32 %v13523_v51, %v11492_v7 }
 0x4b8   :  { %6813 = vst.msk [vmem:[%s11751_s5 + $0xf8] sm:$0xff] %vm4901_vm3, %v6770_v37  ;;  %6814 = vst.msk [vmem:[%s11751_s5 + $0x100] sm:$0xff] %vm4901_vm3, %v6771_v41 }
 0x4b9   :  { %6815 = vst.msk [vmem:[%s11751_s5 + $0x108] sm:$0xff] %vm4901_vm3, %v6772_v44  ;;  %6816 = vst.msk [vmem:[%s11751_s5 + $0x110] sm:$0xff] %vm4901_vm3, %v6773_v28 }
 0x4ba   :  { %6817 = vst.msk [vmem:[%s11751_s5 + $0x118] sm:$0xff] %vm4901_vm3, %v6774_v56  ;;  %6818 = vst.msk [vmem:[%s11751_s5 + $0x120] sm:$0xff] %vm4901_vm3, %v6775_v6 }
 0x4bb   :  { %6819 = vst.msk [vmem:[%s11751_s5 + $0x128] sm:$0xff] %vm4901_vm3, %v6776_v42  ;;  %6820 = vst.msk [vmem:[%s11751_s5 + $0x130] sm:$0xff] %vm4901_vm3, %v6777_v38 }
 0x4bc   :  { %6821 = vst.msk [vmem:[%s11751_s5 + $0x138] sm:$0xff] %vm4901_vm3, %v6778_v29  ;;  %6822 = vst.msk [vmem:[%s11751_s5 + $0x140] sm:$0xff] %vm4901_vm3, %v6779_v45 }
 0x4bd   :  { %6823 = vst.msk [vmem:[%s11751_s5 + $0x148] sm:$0xff] %vm4901_vm3, %v6780_v10  ;;  %6824 = vst.msk [vmem:[%s11751_s5 + $0x150] sm:$0xff] %vm4901_vm3, %v6781_v61 }

// kernel: cnn_encoder.6
= control target key start
LH: loop header
LB: loop body
LE: loop exit
PB: predicated region body
PF: predicated region fallthrough
CT: control target
= control target key end

     0   :  { %vm959_vm0 = vcmask 523264   ;;  %s2267_s1 = inlined_call_operand.vmem [shape: bf16[1600,64], index: 1, kind: input, shape index: {}]   ;;  %s2268_s0 = inlined_call_operand.vmem [shape: bf16[24,1600], index: 0, kind: input, shape index: {}]   ;;  %s2269_s2 = inlined_call_operand.vmem [shape: f32[1,64], index: 2, kind: input, shape index: {}]   ;;  %s2270_s3 = inlined_call_operand.vmem [shape: f32[1,64], index: 3, kind: input, shape index: {}]   ;;  %s2271_s4 = inlined_call_operand.vmem [shape: f32[1,64], index: 4, kind: input, shape index: {}]   ;;  %s2272_s5 = inlined_call_operand.vmem [shape: f32[24,64], index: 5, kind: output, shape index: {}]  }
   0x1   :  { %v1709_v0 = vld [vmem:[%s2267_s1 + $0x40] sm:$0xff]   ;;  %v1713_v4 = vld [vmem:[%s2267_s1 + $0x48] sm:$0xff]   ;;  %v1717_v8 = vld [vmem:[%s2267_s1 + $0x50] sm:$0xff]  }
   0x2   :  { %v1710_v1 = vld [vmem:[%s2267_s1] sm:$0xff]   ;;  %1522 = vmatprep.subr.bf16.mxu0 %v1709_v0  ;;  %v1714_v5 = vld [vmem:[%s2267_s1 + $0x8] sm:$0xff]   ;;  %v1718_v9 = vld [vmem:[%s2267_s1 + $0x10] sm:$0xff]  }
   0x3   :  { %v1711_v2 = vld [vmem:[%s2267_s1 + $0xc0] sm:$0xff]   ;;  %1523 = vmatpush3.bf16.msra.mxu0 %v1710_v1  ;;  %v1715_v6 = vld [vmem:[%s2267_s1 + $0xc8] sm:$0xff]   ;;  %v1719_v10 = vld [vmem:[%s2267_s1 + $0xd0] sm:$0xff]  }
   0x4   :  { %v1712_v3 = vld [vmem:[%s2267_s1 + $0x80] sm:$0xff]   ;;  %1550 = vmatprep.subr.bf16.mxu1 %v1711_v2  ;;  %1524 = vmatprep.subr.bf16.mxu0 %v1713_v4  ;;  %v1716_v7 = vld [vmem:[%s2267_s1 + $0x88] sm:$0xff]   ;;  %v1720_v11 = vld [vmem:[%s2267_s1 + $0x90] sm:$0xff]  }
   0x5   :  { %1551 = vmatpush3.bf16.msra.mxu1 %v1712_v3  ;;  %v1721_v12 = vld [vmem:[%s2267_s1 + $0x58] sm:$0xff]   ;;  %v1725_v16 = vld [vmem:[%s2267_s1 + $0x60] sm:$0xff]   ;;  %v1729_v20 = vld [vmem:[%s2267_s1 + $0x68] sm:$0xff]  }
   0x6   :  { %1552 = vmatprep.subr.bf16.mxu1 %v1715_v6  ;;  %v1722_v13 = vld [vmem:[%s2267_s1 + $0x18] sm:$0xff]   ;;  %v1726_v17 = vld [vmem:[%s2267_s1 + $0x20] sm:$0xff]   ;;  %v1730_v21 = vld [vmem:[%s2267_s1 + $0x28] sm:$0xff]  }
   0x7   :  { %1525 = vmatpush3.bf16.msra.mxu0 %v1714_v5  ;;  %v1723_v14 = vld [vmem:[%s2267_s1 + $0xd8] sm:$0xff]   ;;  %v1727_v18 = vld [vmem:[%s2267_s1 + $0xe0] sm:$0xff]   ;;  %v1731_v22 = vld [vmem:[%s2267_s1 + $0xe8] sm:$0xff]  }
   0x8   :  { %1526 = vmatprep.subr.bf16.mxu0 %v1717_v8  ;;  %v1724_v15 = vld [vmem:[%s2267_s1 + $0x98] sm:$0xff]   ;;  %v1728_v19 = vld [vmem:[%s2267_s1 + $0xa0] sm:$0xff]   ;;  %v1732_v23 = vld [vmem:[%s2267_s1 + $0xa8] sm:$0xff]  }
   0x9   :  { %1553 = vmatpush3.bf16.msra.mxu1 %v1716_v7  ;;  %v1733_v24 = vld [vmem:[%s2267_s1 + $0x70] sm:$0xff]   ;;  %v1737_v28 = vld [vmem:[%s2267_s1 + $0x78] sm:$0xff]   ;;  %v1744_v34 = vld [vmem:[%s2267_s1 + $0x140] sm:$0xff]  }
   0xa   :  { %1554 = vmatprep.subr.bf16.mxu1 %v1719_v10  ;;  %v1734_v25 = vld [vmem:[%s2267_s1 + $0x30] sm:$0xff]   ;;  %v1738_v29 = vld [vmem:[%s2267_s1 + $0x38] sm:$0xff]   ;;  %v1747_v36 = vld [vmem:[%s2268_s0 + $0xc] ss:$52 sps:$4 sm:$0xff]  }
   0xb   :  { %1527 = vmatpush3.bf16.msra.mxu0 %v1718_v9  ;;  %v1735_v26 = vld [vmem:[%s2267_s1 + $0xf0] sm:$0xff]   ;;  %v1739_v30 = vld [vmem:[%s2267_s1 + $0xf8] sm:$0xff]   ;;  %v1748_v37 = vld [vmem:[%s2267_s1 + $0x100] sm:$0xff]   ;;  %1046 = vmatprep.mubr.bf16.mxu1 %v1747_v36 }
   0xc   :  { %1528 = vmatprep.subr.bf16.mxu0 %v1721_v12  ;;  %v1736_v27 = vld [vmem:[%s2267_s1 + $0xb0] sm:$0xff]   ;;  %v1742_v32 = vld [vmem:[%s2268_s0 + $0x4] ss:$52 sps:$4 sm:$0xff]   ;;  %v1745_v35 = vld [vmem:[%s2268_s0 + $0x8] ss:$52 sps:$4 sm:$0xff]  }
   0xd   :  { %1555 = vmatpush3.bf16.msra.mxu1 %v1720_v11  ;;  %v1740_v31 = vld [vmem:[%s2268_s0] ss:$52 sps:$4 sm:$0xff]   ;;  %v1743_v33 = vld [vmem:[%s2267_s1 + $0xb8] sm:$0xff]   ;;  %998 = vmatprep.mubr.bf16.mxu0 %v1742_v32  ;;  %v1751_v40 = vld [vmem:[%s2267_s1 + $0x148] sm:$0xff]  }
   0xe   :  { %1556 = vmatprep.subr.bf16.mxu1 %v1723_v14  ;;  %v1749_v38 = vld [vmem:[%s2267_s1 + $0x1c0] sm:$0xff]   ;;  %v1752_v41 = vld [vmem:[%s2267_s1 + $0x108] sm:$0xff]   ;;  %v1755_v44 = vld [vmem:[%s2267_s1 + $0x150] sm:$0xff]  }
   0xf   :  { %1529 = vmatpush3.bf16.msra.mxu0 %v1722_v13  ;;  %v1750_v39 = vld [vmem:[%s2267_s1 + $0x180] sm:$0xff]   ;;  %v1753_v42 = vld [vmem:[%s2267_s1 + $0x1c8] sm:$0xff]   ;;  %v1756_v45 = vld [vmem:[%s2267_s1 + $0x110] sm:$0xff]  }
  0x10   :  { %1530 = vmatprep.subr.bf16.mxu0 %v1725_v16  ;;  %v1754_v43 = vld [vmem:[%s2267_s1 + $0x188] sm:$0xff]   ;;  %v1757_v46 = vld [vmem:[%s2267_s1 + $0x1d0] sm:$0xff]   ;;  %v1759_v48 = vld [vmem:[%s2267_s1 + $0x158] sm:$0xff]  }
  0x11   :  { %1557 = vmatpush3.bf16.msra.mxu1 %v1724_v15  ;;  %v1758_v47 = vld [vmem:[%s2267_s1 + $0x190] sm:$0xff]   ;;  %v1760_v49 = vld [vmem:[%s2267_s1 + $0x118] sm:$0xff]   ;;  %v1763_v52 = vld [vmem:[%s2267_s1 + $0x160] sm:$0xff]  }
  0x12   :  { %1558 = vmatprep.subr.bf16.mxu1 %v1727_v18  ;;  %v1761_v50 = vld [vmem:[%s2267_s1 + $0x1d8] sm:$0xff]   ;;  %v1764_v53 = vld [vmem:[%s2267_s1 + $0x120] sm:$0xff]   ;;  %v1767_v56 = vld [vmem:[%s2267_s1 + $0x168] sm:$0xff]  }
  0x13   :  { %1531 = vmatpush3.bf16.msra.mxu0 %v1726_v17  ;;  %v1762_v51 = vld [vmem:[%s2267_s1 + $0x198] sm:$0xff]   ;;  %v1765_v54 = vld [vmem:[%s2267_s1 + $0x1e0] sm:$0xff]   ;;  %v35_v57 = vld [vmem:[%s2268_s0 + $0x68] sm:$0xff] }
  0x14   :  { %1532 = vmatprep.subr.bf16.mxu0 %v1729_v20  ;;  %v1766_v55 = vld [vmem:[%s2267_s1 + $0x1a0] sm:$0xff]   ;;  %v1407_v58 = vcombine.high %v35_v57, %v35_v57  ;;  %v1769_v59 = vld [vmem:[%s2267_s1 + $0x128] sm:$0xff]   ;;  %v1406_v60 = vcombine.low %v35_v57, %v35_v57  ;;  %v1773_v63 = vld [vmem:[%s2267_s1 + $0x170] sm:$0xff]  }
  0x15   :  { %1559 = vmatpush3.bf16.msra.mxu1 %v1728_v19  ;;  %v1771_v61 = vld [vmem:[%s2267_s1 + $0x1e8] sm:$0xff]   ;;  %v36_v0 = vld [vmem:[%s2268_s0 + $0x70] sm:$0xff]  ;;  %v1779_v6 = vld [vmem:[%s2267_s1 + $0x178] sm:$0xff]  }
  0x16   :  { %1560 = vmatprep.subr.bf16.mxu1 %v1731_v22  ;;  %v1772_v62 = vld [vmem:[%s2267_s1 + $0x1a8] sm:$0xff]   ;;  %v1409_v1 = vcombine.high %v36_v0, %v36_v0  ;;  %v1775_v2 = vld [vmem:[%s2267_s1 + $0x130] sm:$0xff]   ;;  %v1408_v3 = vcombine.low %v36_v0, %v36_v0  ;;  %v1780_v7 = vld [vmem:[%s2267_s1 + $0x138] sm:$0xff]  }
  0x17   :  { %1533 = vmatpush3.bf16.msra.mxu0 %v1730_v21  ;;  %v1777_v4 = vld [vmem:[%s2267_s1 + $0x1f0] sm:$0xff]   ;;  %v1781_v8 = vld [vmem:[%s2267_s1 + $0x1f8] sm:$0xff]   ;;  %v1786_v12 = vld [vmem:[%s2267_s1 + $0x240] sm:$0xff]  }
  0x18   :  { %1534 = vmatprep.subr.bf16.mxu0 %v1733_v24  ;;  %v1778_v5 = vld [vmem:[%s2267_s1 + $0x1b0] sm:$0xff]   ;;  %v1785_v11 = vld [vmem:[%s2267_s1 + $0x1b8] sm:$0xff]   ;;  %v1790_v15 = vld [vmem:[%s2267_s1 + $0x200] sm:$0xff]  }
  0x19   :  { %1561 = vmatpush3.bf16.msra.mxu1 %v1732_v23  ;;  %v1782_v9 = vld [vmem:[%s2268_s0 + $0x10] ss:$52 sps:$4 sm:$0xff]   ;;  %v1784_v10 = vld [vmem:[%s2268_s0 + $0x14] ss:$52 sps:$4 sm:$0xff]   ;;  %v1787_v13 = vld [vmem:[%s2268_s0 + $0x18] ss:$52 sps:$4 sm:$0xff]  }
  0x1a   :  { %1562 = vmatprep.subr.bf16.mxu1 %v1735_v26  ;;  %v1789_v14 = vld [vmem:[%s2268_s0 + $0x1c] ss:$52 sps:$4 sm:$0xff]   ;;  %v1791_v16 = vld [vmem:[%s2267_s1 + $0x2c0] sm:$0xff]   ;;  %v1793_v18 = vld [vmem:[%s2267_s1 + $0x248] sm:$0xff]  }
  0x1b   :  { %1535 = vmatpush3.bf16.msra.mxu0 %v1734_v25  ;;  %v1792_v17 = vld [vmem:[%s2267_s1 + $0x280] sm:$0xff]   ;;  %v1794_v19 = vld [vmem:[%s2267_s1 + $0x208] sm:$0xff]   ;;  %v37_v21 = vld [vmem:[%s2268_s0 + $0x78] sm:$0xff] }
  0x1c   :  { %1536 = vmatprep.subr.bf16.mxu0 %v1737_v28  ;;  %v1795_v20 = vld [vmem:[%s2267_s1 + $0x2c8] sm:$0xff]   ;;  %v1411_v22 = vcombine.high %v37_v21, %v37_v21  ;;  %v1410_v24 = vcombine.low %v37_v21, %v37_v21  ;;  %v1799_v25 = vld [vmem:[%s2267_s1 + $0x250] sm:$0xff]   ;;  %v38_v26 = vld [vmem:[%s2268_s0 + $0x80] sm:$0xff] }
  0x1d   :  { %1563 = vmatpush3.bf16.msra.mxu1 %v1736_v27  ;;  %v1797_v23 = vld [vmem:[%s2267_s1 + $0x288] sm:$0xff]   ;;  %v1413_v27 = vcombine.high %v38_v26, %v38_v26  ;;  %v1801_v28 = vld [vmem:[%s2267_s1 + $0x210] sm:$0xff]   ;;  %v1805_v32 = vld [vmem:[%s2267_s1 + $0x258] sm:$0xff]  }
  0x1e   :  { %1564 = vmatprep.subr.bf16.mxu1 %v1739_v30  ;;  %v1803_v30 = vld [vmem:[%s2267_s1 + $0x2d0] sm:$0xff]   ;;  %v1809_v36 = vld [vmem:[%s2267_s1 + $0x260] sm:$0xff]   ;;  %v1832_v57 = vld [vmem:[%s2267_s1 + $0x308] sm:$0xff]  }
  0x1f   :  { %1537 = vmatpush3.bf16.msra.mxu0 %v1738_v29  ;;  %v1412_v29 = vcombine.low %v38_v26, %v38_v26  ;;  %v1839_v0 = vld [vmem:[%s2268_s0 + $0x30] ss:$52 sps:$4 sm:$0xff]  }
  0x20   :  { %1578 = vmatprep.subr.bf16.mxu0 %v1744_v34  ;;  %v1807_v34 = vld [vmem:[%s2267_s1 + $0x2d8] sm:$0xff]  }
  0x21   :  { %1565 = vmatpush3.bf16.msra.mxu1 %v1743_v33  ;;  %v1806_v33 = vld [vmem:[%s2267_s1 + $0x218] sm:$0xff]  }
  0x22   :  { %999 = vmatmul.mubr.bf16.vlgmr.msra.gmra.mrb[0].mxu0 %v1740_v31  ;;  %1606 = vmatprep.subr.bf16.mxu1 %v1749_v38  ;;  %v1804_v31 = vld [vmem:[%s2267_s1 + $0x290] sm:$0xff]   ;;  %v1811_v38 = vld [vmem:[%s2267_s1 + $0x2e0] sm:$0xff]  }
  0x23   :  { %1579 = vmatpush3.bf16.msra.mxu0 %v1748_v37  ;;  %1006 = vmatprep.mubr.bf16.mxu0 %v1407_v58  ;;  %v1810_v37 = vld [vmem:[%s2267_s1 + $0x220] sm:$0xff]   ;;  %v39_v58 = vld [vmem:[%s2268_s0 + $0x88] sm:$0xff] }
  0x24   :  { %1047 = vmatmul.mubr.bf16.vlgmr.msra.gmra.mrb[0].mxu1 %v1745_v35  ;;  %1580 = vmatprep.subr.bf16.mxu0 %v1751_v40  ;;  %v1808_v35 = vld [vmem:[%s2267_s1 + $0x298] sm:$0xff]   ;;  %v1813_v40 = vld [vmem:[%s2267_s1 + $0x268] sm:$0xff]  }
  0x25   :  { %1607 = vmatpush3.bf16.msra.mxu1 %v1750_v39  ;;  %1054 = vmatprep.mubr.bf16.mxu1 %v1409_v1  ;;  %v1812_v39 = vld [vmem:[%s2267_s1 + $0x2a0] sm:$0xff]   ;;  %v1838_v1 = vld [vmem:[%s2267_s1 + $0x318] sm:$0xff]  }
  0x26   :  { %1608 = vmatprep.subr.bf16.mxu1 %v1753_v42  ;;  %v1815_v42 = vld [vmem:[%s2267_s1 + $0x2e8] sm:$0xff]  }
  0x27   :  { %1581 = vmatpush3.bf16.msra.mxu0 %v1752_v41  ;;  %v1814_v41 = vld [vmem:[%s2267_s1 + $0x228] sm:$0xff]  }
  0x28   :  { %1582 = vmatprep.subr.bf16.mxu0 %v1755_v44  ;;  %v1817_v44 = vld [vmem:[%s2267_s1 + $0x270] sm:$0xff]  }
  0x29   :  { %1609 = vmatpush3.bf16.msra.mxu1 %v1754_v43  ;;  %v1816_v43 = vld [vmem:[%s2267_s1 + $0x2a8] sm:$0xff]  }
  0x2a   :  { %1610 = vmatprep.subr.bf16.mxu1 %v1757_v46  ;;  %1007 = vmatmul.mubr.bf16.gmra.mrb[4].mxu0 %v1406_v60  ;;  %v1819_v46 = vld [vmem:[%s2267_s1 + $0x2f0] sm:$0xff]  }
  0x2b   :  { %1583 = vmatpush3.bf16.msra.mxu0 %v1756_v45  ;;  %1094 = vmatprep.mubr.bf16.mxu0 %v1784_v10  ;;  %v1818_v45 = vld [vmem:[%s2267_s1 + $0x230] sm:$0xff]  }
  0x2c   :  { %1584 = vmatprep.subr.bf16.mxu0 %v1759_v48  ;;  %1055 = vmatmul.mubr.bf16.gmra.mrb[4].mxu1 %v1408_v3  ;;  %v1821_v48 = vld [vmem:[%s2267_s1 + $0x278] sm:$0xff]   ;;  %v1835_v60 = vld [vmem:[%s2267_s1 + $0x310] sm:$0xff]  }
  0x2d   :  { %1611 = vmatpush3.bf16.msra.mxu1 %v1758_v47  ;;  %1142 = vmatprep.mubr.bf16.mxu1 %v1789_v14  ;;  %v1820_v47 = vld [vmem:[%s2267_s1 + $0x2b0] sm:$0xff]   ;;  %v1840_v3 = vld [vmem:[%s2268_s0 + $0x98] ss:$0 sps:$4 sm:$0xff]  }
  0x2e   :  { %1612 = vmatprep.subr.bf16.mxu1 %v1761_v50  ;;  %v1823_v50 = vld [vmem:[%s2267_s1 + $0x2f8] sm:$0xff]  }
  0x2f   :  { %1585 = vmatpush3.bf16.msra.mxu0 %v1760_v49  ;;  %v1822_v49 = vld [vmem:[%s2267_s1 + $0x238] sm:$0xff]  }
  0x30   :  { %1586 = vmatprep.subr.bf16.mxu0 %v1763_v52  ;;  %v1826_v52 = vld [vmem:[%s2268_s0 + $0x24] ss:$52 sps:$4 sm:$0xff]  }
  0x31   :  { %1613 = vmatpush3.bf16.msra.mxu1 %v1762_v51  ;;  %v1824_v51 = vld [vmem:[%s2268_s0 + $0x20] ss:$52 sps:$4 sm:$0xff]  }
  0x32   :  { %1614 = vmatprep.subr.bf16.mxu1 %v1765_v54  ;;  %v1828_v54 = vld [vmem:[%s2267_s1 + $0x300] sm:$0xff]  }
  0x33   :  { %1587 = vmatpush3.bf16.msra.mxu0 %v1764_v53  ;;  %v1827_v53 = vld [vmem:[%s2267_s1 + $0x2b8] sm:$0xff]  }
  0x34   :  { %1588 = vmatprep.subr.bf16.mxu0 %v1767_v56  ;;  %v1831_v56 = vld [vmem:[%s2268_s0 + $0x2c] ss:$52 sps:$4 sm:$0xff]  }
  0x35   :  { %1615 = vmatpush3.bf16.msra.mxu1 %v1766_v55  ;;  %v1829_v55 = vld [vmem:[%s2268_s0 + $0x28] ss:$52 sps:$4 sm:$0xff]  }
  0x36   :  { %1616 = vmatprep.subr.bf16.mxu1 %v1771_v61  ;;  %v40_v61 = vld [vmem:[%s2268_s0 + $0x90] sm:$0xff] }
  0x37   :  { %1589 = vmatpush3.bf16.msra.mxu0 %v1769_v59  ;;  %v1415_v59 = vcombine.high %v39_v58, %v39_v58 }
  0x38   :  { %1590 = vmatprep.subr.bf16.mxu0 %v1773_v63  ;;  %v1417_v63 = vcombine.high %v40_v61, %v40_v61 }
  0x39   :  { %1617 = vmatpush3.bf16.msra.mxu1 %v1772_v62  ;;  %v1414_v62 = vcombine.low %v39_v58, %v39_v58 }
  0x3a   :  { %1618 = vmatprep.subr.bf16.mxu1 %v1777_v4 }
  0x3b   :  { %1591 = vmatpush3.bf16.msra.mxu0 %v1775_v2  ;;  %v1416_v2 = vcombine.low %v40_v61, %v40_v61 }
  0x3c   :  { %1592 = vmatprep.subr.bf16.mxu0 %v1779_v6 }
  0x3d   :  { %1619 = vmatpush3.bf16.msra.mxu1 %v1778_v5  ;;  %v1392_v5 = vld [vmem:[%s2269_s2] ss:$0 sm:$0xff] }
  0x3e   :  { %1620 = vmatprep.subr.bf16.mxu1 %v1781_v8 }
  0x3f   :  { %1593 = vmatpush3.bf16.msra.mxu0 %v1780_v7 }
  0x40   :  { %1634 = vmatprep.subr.bf16.mxu0 %v1786_v12 }
  0x41   :  { %1621 = vmatpush3.bf16.msra.mxu1 %v1785_v11 }
  0x42   :  { %1095 = vmatmul.mubr.bf16.vlgmr.msra.gmra.mrb[8].mxu0 %v1782_v9  ;;  %1662 = vmatprep.subr.bf16.mxu1 %v1791_v16 }
  0x43   :  { %1635 = vmatpush3.bf16.msra.mxu0 %v1790_v15  ;;  %1102 = vmatprep.mubr.bf16.mxu0 %v1411_v22 }
  0x44   :  { %1143 = vmatmul.mubr.bf16.vlgmr.msra.gmra.mrb[8].mxu1 %v1787_v13  ;;  %1636 = vmatprep.subr.bf16.mxu0 %v1793_v18 }
  0x45   :  { %1663 = vmatpush3.bf16.msra.mxu1 %v1792_v17  ;;  %1150 = vmatprep.mubr.bf16.mxu1 %v1413_v27 }
  0x46   :  { %1664 = vmatprep.subr.bf16.mxu1 %v1795_v20 }
  0x47   :  { %1637 = vmatpush3.bf16.msra.mxu0 %v1794_v19 }
  0x48   :  { %1638 = vmatprep.subr.bf16.mxu0 %v1799_v25 }
  0x49   :  { %1665 = vmatpush3.bf16.msra.mxu1 %v1797_v23 }
  0x4a   :  { %1103 = vmatmul.mubr.bf16.gmra.mrb[12].mxu0 %v1410_v24  ;;  %1666 = vmatprep.subr.bf16.mxu1 %v1803_v30 }
  0x4b   :  { %1639 = vmatpush3.bf16.msra.mxu0 %v1801_v28  ;;  %1190 = vmatprep.mubr.bf16.mxu0 %v1826_v52 }
  0x4c   :  { %1151 = vmatmul.mubr.bf16.gmra.mrb[12].mxu1 %v1412_v29  ;;  %1640 = vmatprep.subr.bf16.mxu0 %v1805_v32 }
  0x4d   :  { %1667 = vmatpush3.bf16.msra.mxu1 %v1804_v31  ;;  %1238 = vmatprep.mubr.bf16.mxu1 %v1831_v56 }
  0x4e   :  { %1668 = vmatprep.subr.bf16.mxu1 %v1807_v34 }
  0x4f   :  { %1641 = vmatpush3.bf16.msra.mxu0 %v1806_v33 }
  0x50   :  { %1642 = vmatprep.subr.bf16.mxu0 %v1809_v36 }
  0x51   :  { %1669 = vmatpush3.bf16.msra.mxu1 %v1808_v35 }
  0x52   :  { %1670 = vmatprep.subr.bf16.mxu1 %v1811_v38 }
  0x53   :  { %1643 = vmatpush3.bf16.msra.mxu0 %v1810_v37 }
  0x54   :  { %1644 = vmatprep.subr.bf16.mxu0 %v1813_v40 }
  0x55   :  { %1671 = vmatpush3.bf16.msra.mxu1 %v1812_v39 }
  0x56   :  { %1672 = vmatprep.subr.bf16.mxu1 %v1815_v42 }
  0x57   :  { %1645 = vmatpush3.bf16.msra.mxu0 %v1814_v41 }
  0x58   :  { %1646 = vmatprep.subr.bf16.mxu0 %v1817_v44 }
  0x59   :  { %1673 = vmatpush3.bf16.msra.mxu1 %v1816_v43 }
  0x5a   :  { %1674 = vmatprep.subr.bf16.mxu1 %v1819_v46 }
  0x5b   :  { %1647 = vmatpush3.bf16.msra.mxu0 %v1818_v45 }
  0x5c   :  { %1648 = vmatprep.subr.bf16.mxu0 %v1821_v48 }
  0x5d   :  { %1675 = vmatpush3.bf16.msra.mxu1 %v1820_v47 }
  0x5e   :  { %1676 = vmatprep.subr.bf16.mxu1 %v1823_v50 }
  0x5f   :  { %1649 = vmatpush3.bf16.msra.mxu0 %v1822_v49 }
  0x60   :  { %1696 = vmatprep.subr.bf16.mxu0 %v1828_v54 }
  0x61   :  { %1677 = vmatpush3.bf16.msra.mxu1 %v1827_v53 }
  0x62   :  { %1191 = vmatmul.mubr.bf16.vlgmr.msra.gmra.mrb[16].mxu0 %v1824_v51 }
  0x63   :  { %1697 = vmatpush3.bf16.msra.mxu0 %v1828_v54  ;;  %1198 = vmatprep.mubr.bf16.mxu0 %v1415_v59 }
  0x64   :  { %1239 = vmatmul.mubr.bf16.vlgmr.msra.gmra.mrb[16].mxu1 %v1829_v55  ;;  %1698 = vmatprep.subr.bf16.mxu0 %v1832_v57 }
  0x65   :  { %1246 = vmatprep.mubr.bf16.mxu1 %v1417_v63 }
  0x67   :  { %1699 = vmatpush3.bf16.msra.mxu0 %v1832_v57 }
  0x68   :  { %1700 = vmatprep.subr.bf16.mxu0 %v1835_v60 }
  0x6a   :  { %1199 = vmatmul.mubr.bf16.gmra.mrb[20].mxu0 %v1414_v62 }
  0x6b   :  { %1704 = vmatprep.mubr.msk.bf16.mxu0 %vm959_vm0, %v1839_v0  ;;  %1701 = vmatpush3.bf16.msra.mxu0 %v1835_v60 }
  0x6c   :  { %1702 = vmatprep.subr.bf16.mxu0 %v1838_v1  ;;  %1247 = vmatmul.mubr.bf16.gmra.mrb[20].mxu1 %v1416_v2  ;;  %v1302_v2 = vlaneseq }
  0x6f   :  { %1703 = vmatpush3.bf16.msra.mxu0 %v1838_v1 }
  0x72   :  { %1705 = vmatmul.mubr.msk.bf16.vlgmr.msra.gmra.mrb[24].mxu0 %vm959_vm0, %v1840_v3 }
  0xf5   :  { %v1538_v4 = vpop.f32.mrb[0].mxu0 }
  0xf6   :  { %v1539_v6 = vpop.f32.mrb[1].mxu0 }
  0xf7   :  { %v1540_v7 = vadd.f32 %v1539_v6, %v1538_v4  ;;  %v1541_v8 = vpop.f32.mrb[2].mxu0  ;;  %v1566_v9 = vpop.f32.mrb[0].mxu1 }
  0xf8   :  { %v1542_v10 = vpop.f32.mrb[3].mxu0  ;;  %v1567_v13 = vpop.f32.mrb[1].mxu1 }
  0xf9   :  { %v1001_v11 = vadd.f32 %v1540_v7, %v1392_v5  ;;  %v1543_v12 = vadd.f32 %v1542_v10, %v1541_v8  ;;  %v1568_v14 = vadd.f32 %v1567_v13, %v1566_v9  ;;  %v1569_v15 = vpop.f32.mrb[2].mxu1 }
  0xfa   :  { %v1570_v17 = vpop.f32.mrb[3].mxu1 }
  0xfb   :  { %v1004_v16 = vadd.f32 %v1543_v12, %v1392_v5  ;;  %v1049_v18 = vadd.f32 %v1568_v14, %v1001_v11  ;;  %v1571_v19 = vadd.f32 %v1570_v17, %v1569_v15  ;;  %v2239_v11 = vshrl.u32 %v1302_v2, 7 }
  0xfd   :  { %v1052_v20 = vadd.f32 %v1571_v19, %v1004_v16  ;;  %v1544_v21 = vpop.f32.mrb[4].mxu0 }
  0xfe   :  { %v1545_v22 = vpop.f32.mrb[5].mxu0 }
  0xff   :  { %v1546_v23 = vadd.f32 %v1545_v22, %v1544_v21  ;;  %v1547_v24 = vpop.f32.mrb[6].mxu0  ;;  %v1572_v27 = vpop.f32.mrb[4].mxu1 }
 0x100   :  { %v1548_v25 = vpop.f32.mrb[7].mxu0  ;;  %v1573_v28 = vpop.f32.mrb[5].mxu1 }
 0x101   :  { %v1009_v26 = vadd.f32 %v1546_v23, %v1392_v5  ;;  %v1574_v29 = vadd.f32 %v1573_v28, %v1572_v27  ;;  %v1575_v30 = vpop.f32.mrb[6].mxu1 }
 0x102   :  { %v1576_v31 = vpop.f32.mrb[7].mxu1  ;;  %v1843_v30 = vmov 0.0  }
 0x103   :  { %v1057_v32 = vadd.f32 %v1574_v29, %v1009_v26 }
 0x115   :  { %v1594_v33 = vpop.f32.mrb[8].mxu0 }
 0x116   :  { %v1595_v34 = vpop.f32.mrb[9].mxu0 }
 0x117   :  { %v1596_v35 = vadd.f32 %v1595_v34, %v1594_v33  ;;  %v1597_v36 = vpop.f32.mrb[10].mxu0  ;;  %v1622_v37 = vpop.f32.mrb[8].mxu1 }
 0x118   :  { %v1598_v38 = vpop.f32.mrb[11].mxu0  ;;  %v1623_v41 = vpop.f32.mrb[9].mxu1 }
 0x119   :  { %v1097_v39 = vadd.f32 %v1596_v35, %v1049_v18  ;;  %v1599_v40 = vadd.f32 %v1598_v38, %v1597_v36  ;;  %v1624_v42 = vadd.f32 %v1623_v41, %v1622_v37  ;;  %v1625_v43 = vpop.f32.mrb[10].mxu1 }
 0x11a   :  { %v1626_v45 = vpop.f32.mrb[11].mxu1 }
 0x11b   :  { %v1100_v44 = vadd.f32 %v1599_v40, %v1052_v20  ;;  %v1145_v46 = vadd.f32 %v1624_v42, %v1097_v39  ;;  %v1627_v47 = vadd.f32 %v1626_v45, %v1625_v43  ;;  %v1305_v20 = vadd.s32 16, %v2239_v11 }
 0x11d   :  { %v1148_v48 = vadd.f32 %v1627_v47, %v1100_v44  ;;  %v1600_v49 = vpop.f32.mrb[12].mxu0  ;;  %vm1311_vm1 = vcmp.lt.s32.totalorder %v1305_v20, 18 }
 0x11e   :  { %v1601_v50 = vpop.f32.mrb[13].mxu0  ;;  %v1521_v31 = vsel %vm1311_vm1, 1.0, %v1843_v30 }
 0x11f   :  { %v1602_v51 = vadd.f32 %v1601_v50, %v1600_v49  ;;  %v1628_v52 = vpop.f32.mrb[12].mxu1  ;;  %v1603_v53 = vpop.f32.mrb[14].mxu0 }
 0x120   :  { %v1629_v54 = vpop.f32.mrb[13].mxu1  ;;  %v1604_v55 = vpop.f32.mrb[15].mxu0 }
 0x121   :  { %v1105_v56 = vadd.f32 %v1602_v51, %v1057_v32  ;;  %v1630_v57 = vadd.f32 %v1629_v54, %v1628_v52  ;;  %v1631_v58 = vpop.f32.mrb[14].mxu1 }
 0x122   :  { %v1632_v59 = vpop.f32.mrb[15].mxu1 }
 0x123   :  { %v1153_v60 = vadd.f32 %v1630_v57, %v1105_v56 }
 0x135   :  { %v1650_v61 = vpop.f32.mrb[16].mxu0 }
 0x136   :  { %v1651_v62 = vpop.f32.mrb[17].mxu0 }
 0x137   :  { %v1652_v63 = vadd.f32 %v1651_v62, %v1650_v61  ;;  %v1653_v0 = vpop.f32.mrb[18].mxu0  ;;  %v1678_v4 = vpop.f32.mrb[16].mxu1 }
 0x138   :  { %v1654_v1 = vpop.f32.mrb[19].mxu0  ;;  %v1679_v6 = vpop.f32.mrb[17].mxu1 }
 0x139   :  { %v1193_v3 = vadd.f32 %v1652_v63, %v1145_v46  ;;  %v1655_v5 = vadd.f32 %v1654_v1, %v1653_v0  ;;  %v1680_v8 = vadd.f32 %v1679_v6, %v1678_v4  ;;  %v1681_v9 = vpop.f32.mrb[18].mxu1  ;;  %v1357_v6 = vld [vmem:[%s2270_s3] sm:$0x1] }
 0x13a   :  { %v1682_v10 = vpop.f32.mrb[19].mxu1 }
 0x13b   :  { %v1196_v7 = vadd.f32 %v1655_v5, %v1148_v48  ;;  %v1683_v12 = vadd.f32 %v1682_v10, %v1681_v9  ;;  %v1241_v14 = vadd.f32 %v1680_v8, %v1193_v3  ;;  %v1361_v10 = vld [vmem:[%s2271_s4] sm:$0x1] }
 0x13d   :  { %v1656_v13 = vpop.f32.mrb[20].mxu0  ;;  %v1244_v18 = vadd.f32 %v1683_v12, %v1196_v7  ;;  %v1367_v7 = vsub.s32 0, %v2239_v11 }
 0x13e   :  { %v1657_v15 = vpop.f32.mrb[21].mxu0 }
 0x13f   :  { %v1658_v16 = vadd.f32 %v1657_v15, %v1656_v13  ;;  %v1659_v17 = vpop.f32.mrb[22].mxu0  ;;  %v1684_v22 = vpop.f32.mrb[20].mxu1 }
 0x140   :  { %v1660_v19 = vpop.f32.mrb[23].mxu0  ;;  %v1685_v23 = vpop.f32.mrb[21].mxu1 }
 0x141   :  { %v1201_v21 = vadd.f32 %v1658_v16, %v1153_v60  ;;  %v1686_v24 = vadd.f32 %v1685_v23, %v1684_v22  ;;  %v1687_v25 = vpop.f32.mrb[22].mxu1 }
 0x142   :  { %v1688_v26 = vpop.f32.mrb[23].mxu1 }
 0x143   :  { %v1249_v27 = vadd.f32 %v1686_v24, %v1201_v21 }
 0x145   :  { %v1706_v28 = vpop.f32.mrb[24].mxu0 }
 0x146   :  { %v1297_v29 = vadd.f32 %v1706_v28, %v1249_v27  ;;  %v1288_v32 = vpop.f32.mrb[25].mxu0 }
 0x147   :  { %v1289_v33 = vadd.f32 %v1288_v32, %v1241_v14  ;;  %v1707_v34 = vpop.f32.mrb[26].mxu0 }
 0x148   :  { %v1291_v35 = vpop.f32.mrb[27].mxu0  ;;  %v1323_v36 = vmul.f32 %v1521_v31, %v1297_v29 }
 0x149   :  { %v1292_v37 = vadd.f32 %v1291_v35, %v1244_v18  ;;  %v1324_v38 = vsel %vm959_vm0, %v1289_v33, 0.0 }
 0x14a   :  { %v1327_v41 = vsel %vm959_vm0, %v1323_v36, 0.0 }
 0x14b   :  { %v1325_v39 = vsel %vm959_vm0, %v1292_v37, 0.0 }
 0x14c   :  { %v1326_v40 = vadd.f32 %v1325_v39, %v1324_v38 }
 0x14e   :  { %v1328_v42 = vadd.f32 %v1327_v41, %v1326_v40 }
 0x150   :  { %v1329_v43 = vrot.slane %v1328_v42, 4 }
 0x152   :  { %v1330_v44 = vadd.f32 %v1329_v43, %v1328_v42 }
 0x154   :  { %v1331_v45 = vrot.slane %v1330_v44, 2 }
 0x156   :  { %v1332_v46 = vadd.f32 %v1331_v45, %v1330_v44 }
 0x158   :  { %v1333_v47 = vrot.slane %v1332_v46, 1 }
 0x15a   :  { %v1334_v48 = vadd.f32 %v1333_v47, %v1332_v46 }
 0x15c   :  { %v1335_v49 = vmul.f32 0.055555556, %v1334_v48 }
 0x15e   :  { %v1336_v50 = vsub.f32 %v1289_v33, %v1335_v49  ;;  %v1337_v51 = vsub.f32 %v1292_v37, %v1335_v49  ;;  %v1338_v52 = vsub.f32 %v1297_v29, %v1335_v49 }
 0x160   :  { %v1341_v53 = vmul.f32 %v1521_v31, %v1338_v52  ;;  %v1342_v54 = vmul.f32 %v1336_v50, %v1336_v50  ;;  %v1343_v55 = vmul.f32 %v1337_v51, %v1337_v51 }
 0x162   :  { %v1344_v56 = vmul.f32 %v1341_v53, %v1341_v53  ;;  %v1345_v57 = vsel %vm959_vm0, %v1342_v54, 0.0  ;;  %v1346_v58 = vsel %vm959_vm0, %v1343_v55, 0.0 }
 0x163   :  { %v1347_v59 = vadd.f32 %v1346_v58, %v1345_v57 }
 0x164   :  { %v1348_v60 = vsel %vm959_vm0, %v1344_v56, 0.0 }
 0x165   :  { %v1349_v61 = vadd.f32 %v1348_v60, %v1347_v59 }
 0x167   :  { %v1350_v62 = vrot.slane %v1349_v61, 4 }
 0x169   :  { %v1351_v63 = vadd.f32 %v1350_v62, %v1349_v61 }
 0x16b   :  { %v1352_v0 = vrot.slane %v1351_v63, 2 }
 0x16d   :  { %v1353_v1 = vadd.f32 %v1352_v0, %v1351_v63 }
 0x16f   :  { %v1354_v2 = vrot.slane %v1353_v1, 1 }
 0x171   :  { %v1355_v3 = vadd.f32 %v1354_v2, %v1353_v1 }
 0x173   :  { %v1356_v4 = vmul.f32 0.055555556, %v1355_v3 }
 0x175   :  { %v1358_v5 = vadd.f32 1e-05, %v1356_v4 }
 0x177   :  { %1841 = vrsqrt.f32 %v1358_v5 }
 0x181   :  { %v1842_v8 = vpop.eup %1841 }
 0x182   :  { %v1360_v9 = vmul.f32 %v1842_v8, %v1357_v6 }
 0x184   :  { %v1362_v12 = vmul.f32 %v1360_v9, %v1335_v49  ;;  %v1368_v13 = vrot.slane %v1360_v9, %v1367_v7 }
 0x186   :  { %v1363_v14 = vsub.f32 %v1361_v10, %v1362_v12  ;;  %v1370_v15 = vmul.f32 %v1368_v13, %v1289_v33  ;;  %v1371_v16 = vmul.f32 %v1368_v13, %v1292_v37  ;;  %v1372_v17 = vmul.f32 %v1368_v13, %v1297_v29 }
 0x188   :  { %v1377_v18 = vrot.slane %v1363_v14, %v1367_v7 }
 0x18a   :  { %v1379_v19 = vadd.f32 %v1377_v18, %v1370_v15  ;;  %v1380_v20 = vadd.f32 %v1377_v18, %v1371_v16  ;;  %v1381_v21 = vadd.f32 %v1377_v18, %v1372_v17 }
 0x18c   :  { %v1382_v22 = vmax.f32 %v1379_v19, 0.0  ;;  %v1383_v23 = vmax.f32 %v1380_v20, 0.0  ;;  %v1384_v24 = vmax.f32 %v1381_v21, 0.0 }
 0x18e   :  { %1385 = vst.msk [vmem:[%s2272_s5] sm:$0xff] %vm959_vm0, %v1382_v22  ;;  %1386 = vst.msk [vmem:[%s2272_s5 + $0x8] sm:$0xff] %vm959_vm0, %v1383_v23 }
 0x18f   :  { %1387 = vst.msk [vmem:[%s2272_s5 + $0x10] sm:$0xff] %vm959_vm0, %v1384_v24 }

// kernel: cnn_encoder.7
= control target key start
LH: loop header
LB: loop body
LE: loop exit
PB: predicated region body
PF: predicated region fallthrough
CT: control target
= control target key end

     0   :  { %vm1601_vm0 = vmmov 0   ;;  %vm880_vm1 = vcmask 523264   ;;  %s1975_s1 = inlined_call_operand.vmem [shape: bf16[1600,64], index: 1, kind: input, shape index: {}]   ;;  %s1976_s0 = inlined_call_operand.vmem [shape: bf16[8,1600], index: 0, kind: input, shape index: {}]   ;;  %s1977_s2 = inlined_call_operand.vmem [shape: f32[1,64], index: 2, kind: input, shape index: {}]   ;;  %s1978_s3 = inlined_call_operand.vmem [shape: f32[1,64], index: 3, kind: input, shape index: {}]   ;;  %s1979_s4 = inlined_call_operand.vmem [shape: f32[1,64], index: 4, kind: input, shape index: {}]   ;;  %s1980_s5 = inlined_call_operand.vmem [shape: f32[8,64], index: 5, kind: output, shape index: {}]  }
   0x1   :  { %v1485_v0 = vld [vmem:[%s1975_s1 + $0x40] sm:$0xff]   ;;  %v1489_v4 = vld [vmem:[%s1975_s1 + $0x48] sm:$0xff]   ;;  %v1493_v8 = vld [vmem:[%s1975_s1 + $0x50] sm:$0xff]  }
   0x2   :  { %v1486_v1 = vld [vmem:[%s1975_s1] sm:$0xff]   ;;  %1334 = vmatprep.subr.bf16.mxu0 %v1485_v0  ;;  %v1490_v5 = vld [vmem:[%s1975_s1 + $0x8] sm:$0xff]   ;;  %v1494_v9 = vld [vmem:[%s1975_s1 + $0x10] sm:$0xff]  }
   0x3   :  { %v1487_v2 = vld [vmem:[%s1975_s1 + $0xc0] sm:$0xff]   ;;  %1335 = vmatpush3.bf16.msra.mxu0 %v1486_v1  ;;  %v1491_v6 = vld [vmem:[%s1975_s1 + $0xc8] sm:$0xff]   ;;  %v1495_v10 = vld [vmem:[%s1975_s1 + $0xd0] sm:$0xff]  }
   0x4   :  { %v1488_v3 = vld [vmem:[%s1975_s1 + $0x80] sm:$0xff]   ;;  %1356 = vmatprep.subr.bf16.mxu1 %v1487_v2  ;;  %1336 = vmatprep.subr.bf16.mxu0 %v1489_v4  ;;  %v1492_v7 = vld [vmem:[%s1975_s1 + $0x88] sm:$0xff]   ;;  %v1496_v11 = vld [vmem:[%s1975_s1 + $0x90] sm:$0xff]  }
   0x5   :  { %1357 = vmatpush3.bf16.msra.mxu1 %v1488_v3  ;;  %v1497_v12 = vld [vmem:[%s1975_s1 + $0x58] sm:$0xff]   ;;  %v1501_v16 = vld [vmem:[%s1975_s1 + $0x60] sm:$0xff]   ;;  %v1505_v20 = vld [vmem:[%s1975_s1 + $0x68] sm:$0xff]  }
   0x6   :  { %1358 = vmatprep.subr.bf16.mxu1 %v1491_v6  ;;  %v1498_v13 = vld [vmem:[%s1975_s1 + $0x18] sm:$0xff]   ;;  %v1502_v17 = vld [vmem:[%s1975_s1 + $0x20] sm:$0xff]   ;;  %v1506_v21 = vld [vmem:[%s1975_s1 + $0x28] sm:$0xff]  }
   0x7   :  { %1337 = vmatpush3.bf16.msra.mxu0 %v1490_v5  ;;  %v1499_v14 = vld [vmem:[%s1975_s1 + $0xd8] sm:$0xff]   ;;  %v1503_v18 = vld [vmem:[%s1975_s1 + $0xe0] sm:$0xff]   ;;  %v1507_v22 = vld [vmem:[%s1975_s1 + $0xe8] sm:$0xff]  }
   0x8   :  { %1338 = vmatprep.subr.bf16.mxu0 %v1493_v8  ;;  %v1500_v15 = vld [vmem:[%s1975_s1 + $0x98] sm:$0xff]   ;;  %v1504_v19 = vld [vmem:[%s1975_s1 + $0xa0] sm:$0xff]   ;;  %v1508_v23 = vld [vmem:[%s1975_s1 + $0xa8] sm:$0xff]  }
   0x9   :  { %1359 = vmatpush3.bf16.msra.mxu1 %v1492_v7  ;;  %v1509_v24 = vld [vmem:[%s1975_s1 + $0x70] sm:$0xff]   ;;  %v1513_v28 = vld [vmem:[%s1975_s1 + $0x78] sm:$0xff]   ;;  %v21_v31 = vld [vmem:[%s1976_s0] sm:$0xff] }
   0xa   :  { %1360 = vmatprep.subr.bf16.mxu1 %v1495_v10  ;;  %v1510_v25 = vld [vmem:[%s1975_s1 + $0x30] sm:$0xff]   ;;  %v1514_v29 = vld [vmem:[%s1975_s1 + $0x38] sm:$0xff]   ;;  %v1219_v32 = vcombine.low %v21_v31, %v21_v31  ;;  %v1220_v33 = vcombine.high %v21_v31, %v21_v31  ;;  %v1519_v35 = vld [vmem:[%s1975_s1 + $0x140] sm:$0xff]  }
   0xb   :  { %1339 = vmatpush3.bf16.msra.mxu0 %v1494_v9  ;;  %v1511_v26 = vld [vmem:[%s1975_s1 + $0xf0] sm:$0xff]   ;;  %v1515_v30 = vld [vmem:[%s1975_s1 + $0xf8] sm:$0xff]   ;;  %v22_v36 = vld [vmem:[%s1976_s0 + $0x8] sm:$0xff] }
   0xc   :  { %1340 = vmatprep.subr.bf16.mxu0 %v1497_v12  ;;  %v1512_v27 = vld [vmem:[%s1975_s1 + $0xb0] sm:$0xff]   ;;  %v1518_v34 = vld [vmem:[%s1975_s1 + $0xb8] sm:$0xff]   ;;  %916 = vmatprep.mubr.bf16.mxu0 %v1220_v33  ;;  %v1221_v37 = vcombine.low %v22_v36, %v22_v36  ;;  %v1222_v38 = vcombine.high %v22_v36, %v22_v36  ;;  %v1522_v39 = vld [vmem:[%s1975_s1 + $0x100] sm:$0xff]  }
   0xd   :  { %1361 = vmatpush3.bf16.msra.mxu1 %v1496_v11  ;;  %v1523_v40 = vld [vmem:[%s1975_s1 + $0x1c0] sm:$0xff]   ;;  %v1525_v42 = vld [vmem:[%s1975_s1 + $0x148] sm:$0xff]   ;;  %v1529_v46 = vld [vmem:[%s1975_s1 + $0x150] sm:$0xff]  }
   0xe   :  { %1362 = vmatprep.subr.bf16.mxu1 %v1499_v14  ;;  %956 = vmatprep.mubr.bf16.mxu1 %v1222_v38  ;;  %v1524_v41 = vld [vmem:[%s1975_s1 + $0x180] sm:$0xff]   ;;  %v1526_v43 = vld [vmem:[%s1975_s1 + $0x108] sm:$0xff]   ;;  %v1530_v47 = vld [vmem:[%s1975_s1 + $0x110] sm:$0xff]  }
   0xf   :  { %1341 = vmatpush3.bf16.msra.mxu0 %v1498_v13  ;;  %v1527_v44 = vld [vmem:[%s1975_s1 + $0x1c8] sm:$0xff]   ;;  %v1531_v48 = vld [vmem:[%s1975_s1 + $0x1d0] sm:$0xff]   ;;  %v1533_v50 = vld [vmem:[%s1975_s1 + $0x158] sm:$0xff]  }
  0x10   :  { %1342 = vmatprep.subr.bf16.mxu0 %v1501_v16  ;;  %v1528_v45 = vld [vmem:[%s1975_s1 + $0x188] sm:$0xff]   ;;  %v1532_v49 = vld [vmem:[%s1975_s1 + $0x190] sm:$0xff]   ;;  %v1534_v51 = vld [vmem:[%s1975_s1 + $0x118] sm:$0xff]  }
  0x11   :  { %1363 = vmatpush3.bf16.msra.mxu1 %v1500_v15  ;;  %v1535_v52 = vld [vmem:[%s1975_s1 + $0x1d8] sm:$0xff]   ;;  %v1537_v54 = vld [vmem:[%s1975_s1 + $0x160] sm:$0xff]   ;;  %v1541_v58 = vld [vmem:[%s1975_s1 + $0x168] sm:$0xff]  }
  0x12   :  { %1364 = vmatprep.subr.bf16.mxu1 %v1503_v18  ;;  %v1536_v53 = vld [vmem:[%s1975_s1 + $0x198] sm:$0xff]   ;;  %v1538_v55 = vld [vmem:[%s1975_s1 + $0x120] sm:$0xff]   ;;  %v1542_v59 = vld [vmem:[%s1975_s1 + $0x128] sm:$0xff]  }
  0x13   :  { %1343 = vmatpush3.bf16.msra.mxu0 %v1502_v17  ;;  %v1539_v56 = vld [vmem:[%s1975_s1 + $0x1e0] sm:$0xff]   ;;  %v1543_v60 = vld [vmem:[%s1975_s1 + $0x1e8] sm:$0xff]   ;;  %v1545_v62 = vld [vmem:[%s1975_s1 + $0x170] sm:$0xff]  }
  0x14   :  { %1344 = vmatprep.subr.bf16.mxu0 %v1505_v20  ;;  %v1540_v57 = vld [vmem:[%s1975_s1 + $0x1a0] sm:$0xff]   ;;  %v1544_v61 = vld [vmem:[%s1975_s1 + $0x1a8] sm:$0xff]   ;;  %v1546_v63 = vld [vmem:[%s1975_s1 + $0x130] sm:$0xff]  }
  0x15   :  { %1365 = vmatpush3.bf16.msra.mxu1 %v1504_v19  ;;  %v1547_v0 = vld [vmem:[%s1975_s1 + $0x1f0] sm:$0xff]   ;;  %v1549_v2 = vld [vmem:[%s1975_s1 + $0x178] sm:$0xff]   ;;  %v1555_v9 = vld [vmem:[%s1975_s1 + $0x240] sm:$0xff]  }
  0x16   :  { %1366 = vmatprep.subr.bf16.mxu1 %v1507_v22  ;;  %v1548_v1 = vld [vmem:[%s1975_s1 + $0x1b0] sm:$0xff]   ;;  %v1550_v3 = vld [vmem:[%s1975_s1 + $0x138] sm:$0xff]   ;;  %v1558_v13 = vld [vmem:[%s1975_s1 + $0x200] sm:$0xff]  }
  0x17   :  { %1345 = vmatpush3.bf16.msra.mxu0 %v1506_v21  ;;  %v1551_v4 = vld [vmem:[%s1975_s1 + $0x1f8] sm:$0xff]   ;;  %v23_v5 = vld [vmem:[%s1976_s0 + $0x10] sm:$0xff]  ;;  %v1559_v14 = vld [vmem:[%s1975_s1 + $0x2c0] sm:$0xff]  }
  0x18   :  { %1346 = vmatprep.subr.bf16.mxu0 %v1509_v24  ;;  %v1223_v6 = vcombine.low %v23_v5, %v23_v5  ;;  %v1224_v7 = vcombine.high %v23_v5, %v23_v5  ;;  %v1554_v8 = vld [vmem:[%s1975_s1 + $0x1b8] sm:$0xff]   ;;  %v1560_v15 = vld [vmem:[%s1975_s1 + $0x280] sm:$0xff]   ;;  %v1561_v16 = vld [vmem:[%s1975_s1 + $0x248] sm:$0xff]  }
  0x19   :  { %1367 = vmatpush3.bf16.msra.mxu1 %v1508_v23  ;;  %v24_v10 = vld [vmem:[%s1976_s0 + $0x18] sm:$0xff]  ;;  %v1562_v17 = vld [vmem:[%s1975_s1 + $0x208] sm:$0xff]   ;;  %v1565_v20 = vld [vmem:[%s1975_s1 + $0x250] sm:$0xff]  }
  0x1a   :  { %1368 = vmatprep.subr.bf16.mxu1 %v1511_v26  ;;  %v1225_v11 = vcombine.low %v24_v10, %v24_v10  ;;  %v1226_v12 = vcombine.high %v24_v10, %v24_v10  ;;  %v1563_v18 = vld [vmem:[%s1975_s1 + $0x2c8] sm:$0xff]   ;;  %v1566_v21 = vld [vmem:[%s1975_s1 + $0x210] sm:$0xff]   ;;  %v1569_v24 = vld [vmem:[%s1975_s1 + $0x258] sm:$0xff]  }
  0x1b   :  { %1347 = vmatpush3.bf16.msra.mxu0 %v1510_v25  ;;  %v1564_v19 = vld [vmem:[%s1975_s1 + $0x288] sm:$0xff]   ;;  %v1567_v22 = vld [vmem:[%s1975_s1 + $0x2d0] sm:$0xff]   ;;  %v1570_v25 = vld [vmem:[%s1975_s1 + $0x218] sm:$0xff]  }
  0x1c   :  { %1348 = vmatprep.subr.bf16.mxu0 %v1513_v28  ;;  %v1568_v23 = vld [vmem:[%s1975_s1 + $0x290] sm:$0xff]   ;;  %v1571_v26 = vld [vmem:[%s1975_s1 + $0x2d8] sm:$0xff]   ;;  %v1573_v28 = vld [vmem:[%s1975_s1 + $0x260] sm:$0xff]  }
  0x1d   :  { %1369 = vmatpush3.bf16.msra.mxu1 %v1512_v27  ;;  %v1572_v27 = vld [vmem:[%s1975_s1 + $0x298] sm:$0xff]   ;;  %v1576_v31 = vld [vmem:[%s1975_s1 + $0x2a0] sm:$0xff]   ;;  %v1578_v33 = vld [vmem:[%s1975_s1 + $0x228] sm:$0xff]  }
  0x1e   :  { %1370 = vmatprep.subr.bf16.mxu1 %v1515_v30  ;;  %v1575_v30 = vld [vmem:[%s1975_s1 + $0x2e0] sm:$0xff]   ;;  %v1581_v36 = vld [vmem:[%s1975_s1 + $0x270] sm:$0xff]  }
  0x1f   :  { %1349 = vmatpush3.bf16.msra.mxu0 %v1514_v29  ;;  %v1574_v29 = vld [vmem:[%s1975_s1 + $0x220] sm:$0xff]   ;;  %v1583_v38 = vld [vmem:[%s1975_s1 + $0x2f0] sm:$0xff]  }
  0x20   :  { %1378 = vmatprep.subr.bf16.mxu0 %v1519_v35  ;;  %v1580_v35 = vld [vmem:[%s1975_s1 + $0x2a8] sm:$0xff]  }
  0x21   :  { %1371 = vmatpush3.bf16.msra.mxu1 %v1518_v34  ;;  %v1579_v34 = vld [vmem:[%s1975_s1 + $0x2e8] sm:$0xff]  }
  0x22   :  { %917 = vmatmul.mubr.bf16.vlgmr.msra.gmra.mrb[0].mxu0 %v1219_v32  ;;  %1400 = vmatprep.subr.bf16.mxu1 %v1523_v40  ;;  %v1577_v32 = vld [vmem:[%s1975_s1 + $0x268] sm:$0xff]   ;;  %v1585_v40 = vld [vmem:[%s1975_s1 + $0x278] sm:$0xff]  }
  0x23   :  { %1379 = vmatpush3.bf16.msra.mxu0 %v1522_v39  ;;  %996 = vmatprep.mubr.bf16.mxu0 %v1224_v7  ;;  %v1584_v39 = vld [vmem:[%s1975_s1 + $0x2b0] sm:$0xff]  }
  0x24   :  { %957 = vmatmul.mubr.bf16.vlgmr.msra.gmra.mrb[0].mxu1 %v1221_v37  ;;  %1380 = vmatprep.subr.bf16.mxu0 %v1525_v42  ;;  %v1582_v37 = vld [vmem:[%s1975_s1 + $0x230] sm:$0xff]   ;;  %v1587_v42 = vld [vmem:[%s1975_s1 + $0x2f8] sm:$0xff]  }
  0x25   :  { %1401 = vmatpush3.bf16.msra.mxu1 %v1524_v41  ;;  %1036 = vmatprep.mubr.bf16.mxu1 %v1226_v12  ;;  %v1586_v41 = vld [vmem:[%s1975_s1 + $0x238] sm:$0xff]  }
  0x26   :  { %1402 = vmatprep.subr.bf16.mxu1 %v1527_v44 }
  0x27   :  { %1381 = vmatpush3.bf16.msra.mxu0 %v1526_v43  ;;  %v25_v43 = vld [vmem:[%s1976_s0 + $0x20] sm:$0xff] }
  0x28   :  { %1382 = vmatprep.subr.bf16.mxu0 %v1529_v46  ;;  %v1227_v44 = vcombine.low %v25_v43, %v25_v43  ;;  %v1590_v46 = vld [vmem:[%s1975_s1 + $0x2b8] sm:$0xff]  }
  0x29   :  { %1403 = vmatpush3.bf16.msra.mxu1 %v1528_v45  ;;  %v1228_v45 = vcombine.high %v25_v43, %v25_v43 }
  0x2a   :  { %1404 = vmatprep.subr.bf16.mxu1 %v1531_v48  ;;  %v1600_v48 = vmov 0.0  }
  0x2b   :  { %1383 = vmatpush3.bf16.msra.mxu0 %v1530_v47  ;;  %v26_v47 = vld [vmem:[%s1976_s0 + $0x28] sm:$0xff] }
  0x2c   :  { %1384 = vmatprep.subr.bf16.mxu0 %v1533_v50  ;;  %v1230_v50 = vcombine.high %v26_v47, %v26_v47 }
  0x2d   :  { %1405 = vmatpush3.bf16.msra.mxu1 %v1532_v49  ;;  %v1229_v49 = vcombine.low %v26_v47, %v26_v47 }
  0x2e   :  { %1406 = vmatprep.subr.bf16.mxu1 %v1535_v52  ;;  %v1594_v52 = vld [vmem:[%s1975_s1 + $0x308] sm:$0xff]  }
  0x2f   :  { %1385 = vmatpush3.bf16.msra.mxu0 %v1534_v51  ;;  %v1593_v51 = vld [vmem:[%s1975_s1 + $0x300] sm:$0xff]  }
  0x30   :  { %1386 = vmatprep.subr.bf16.mxu0 %v1537_v54  ;;  %v1596_v54 = vld [vmem:[%s1975_s1 + $0x318] sm:$0xff]  }
  0x31   :  { %1407 = vmatpush3.bf16.msra.mxu1 %v1536_v53  ;;  %v1595_v53 = vld [vmem:[%s1975_s1 + $0x310] sm:$0xff]  }
  0x32   :  { %1408 = vmatprep.subr.bf16.mxu1 %v1539_v56 }
  0x33   :  { %1387 = vmatpush3.bf16.msra.mxu0 %v1538_v55  ;;  %v1597_v55 = vld [vmem:[%s1976_s0 + $0x30] ss:$0 sps:$4 sm:$0xff]  }
  0x34   :  { %1388 = vmatprep.subr.bf16.mxu0 %v1541_v58 }
  0x35   :  { %1409 = vmatpush3.bf16.msra.mxu1 %v1540_v57  ;;  %v1218_v57 = vld [vmem:[%s1977_s2] ss:$0 sm:$0xff] }
  0x36   :  { %1410 = vmatprep.subr.bf16.mxu1 %v1543_v60 }
  0x37   :  { %1389 = vmatpush3.bf16.msra.mxu0 %v1542_v59 }
  0x38   :  { %1390 = vmatprep.subr.bf16.mxu0 %v1545_v62 }
  0x39   :  { %1411 = vmatpush3.bf16.msra.mxu1 %v1544_v61 }
  0x3a   :  { %1412 = vmatprep.subr.bf16.mxu1 %v1547_v0 }
  0x3b   :  { %1391 = vmatpush3.bf16.msra.mxu0 %v1546_v63 }
  0x3c   :  { %1392 = vmatprep.subr.bf16.mxu0 %v1549_v2 }
  0x3d   :  { %1413 = vmatpush3.bf16.msra.mxu1 %v1548_v1 }
  0x3e   :  { %1414 = vmatprep.subr.bf16.mxu1 %v1551_v4 }
  0x3f   :  { %1393 = vmatpush3.bf16.msra.mxu0 %v1550_v3 }
  0x40   :  { %1422 = vmatprep.subr.bf16.mxu0 %v1555_v9 }
  0x41   :  { %1415 = vmatpush3.bf16.msra.mxu1 %v1554_v8 }
  0x42   :  { %997 = vmatmul.mubr.bf16.vlgmr.msra.gmra.mrb[4].mxu0 %v1223_v6  ;;  %1444 = vmatprep.subr.bf16.mxu1 %v1559_v14 }
  0x43   :  { %1423 = vmatpush3.bf16.msra.mxu0 %v1558_v13  ;;  %1076 = vmatprep.mubr.bf16.mxu0 %v1228_v45 }
  0x44   :  { %1037 = vmatmul.mubr.bf16.vlgmr.msra.gmra.mrb[4].mxu1 %v1225_v11  ;;  %1424 = vmatprep.subr.bf16.mxu0 %v1561_v16 }
  0x45   :  { %1445 = vmatpush3.bf16.msra.mxu1 %v1560_v15  ;;  %1116 = vmatprep.mubr.bf16.mxu1 %v1230_v50 }
  0x46   :  { %1446 = vmatprep.subr.bf16.mxu1 %v1563_v18 }
  0x47   :  { %1425 = vmatpush3.bf16.msra.mxu0 %v1562_v17 }
  0x48   :  { %1426 = vmatprep.subr.bf16.mxu0 %v1565_v20 }
  0x49   :  { %1447 = vmatpush3.bf16.msra.mxu1 %v1564_v19 }
  0x4a   :  { %1448 = vmatprep.subr.bf16.mxu1 %v1567_v22 }
  0x4b   :  { %1427 = vmatpush3.bf16.msra.mxu0 %v1566_v21 }
  0x4c   :  { %1428 = vmatprep.subr.bf16.mxu0 %v1569_v24 }
  0x4d   :  { %1449 = vmatpush3.bf16.msra.mxu1 %v1568_v23 }
  0x4e   :  { %1450 = vmatprep.subr.bf16.mxu1 %v1571_v26 }
  0x4f   :  { %1429 = vmatpush3.bf16.msra.mxu0 %v1570_v25 }
  0x50   :  { %1430 = vmatprep.subr.bf16.mxu0 %v1573_v28  ;;  %v1164_v28 = vlaneseq }
  0x51   :  { %1451 = vmatpush3.bf16.msra.mxu1 %v1572_v27 }
  0x52   :  { %1452 = vmatprep.subr.bf16.mxu1 %v1575_v30  ;;  %v1165_v30 = vshrl.u32 %v1164_v28, 7 }
  0x53   :  { %1431 = vmatpush3.bf16.msra.mxu0 %v1574_v29 }
  0x54   :  { %1432 = vmatprep.subr.bf16.mxu0 %v1577_v32  ;;  %vm1167_vm2 = vcmp.lt.s32.totalorder %v1165_v30, 2 }
  0x55   :  { %1453 = vmatpush3.bf16.msra.mxu1 %v1576_v31  ;;  %v1333_v32 = vsel %vm1167_vm2, 1.0, %v1600_v48 }
  0x56   :  { %1454 = vmatprep.subr.bf16.mxu1 %v1579_v34 }
  0x57   :  { %1433 = vmatpush3.bf16.msra.mxu0 %v1578_v33 }
  0x58   :  { %1434 = vmatprep.subr.bf16.mxu0 %v1581_v36 }
  0x59   :  { %1455 = vmatpush3.bf16.msra.mxu1 %v1580_v35 }
  0x5a   :  { %1456 = vmatprep.subr.bf16.mxu1 %v1583_v38 }
  0x5b   :  { %1435 = vmatpush3.bf16.msra.mxu0 %v1582_v37 }
  0x5c   :  { %1436 = vmatprep.subr.bf16.mxu0 %v1585_v40 }
  0x5d   :  { %1457 = vmatpush3.bf16.msra.mxu1 %v1584_v39 }
  0x5e   :  { %1458 = vmatprep.subr.bf16.mxu1 %v1587_v42 }
  0x5f   :  { %1437 = vmatpush3.bf16.msra.mxu0 %v1586_v41 }
  0x60   :  { %1471 = vmatprep.subr.bf16.mxu0 %v1600_v48 }
  0x61   :  { %1459 = vmatpush3.bf16.msra.mxu1 %v1590_v46 }
  0x62   :  { %1077 = vmatmul.mubr.bf16.vlgmr.msra.gmra.mrb[8].mxu0 %v1227_v44 }
  0x63   :  { %1472 = vmatpush3.bf16.msra.mxu0 %v1593_v51  ;;  %1479 = vmatprep.mubr.msk.bf16.mxu0 %vm1601_vm0, %v1600_v48 }
  0x64   :  { %1117 = vmatmul.mubr.bf16.vlgmr.msra.gmra.mrb[8].mxu1 %v1229_v49  ;;  %1473 = vmatprep.subr.bf16.mxu0 %v1600_v48 }
  0x67   :  { %1474 = vmatpush3.bf16.msra.mxu0 %v1594_v52 }
  0x68   :  { %1475 = vmatprep.subr.bf16.mxu0 %v1600_v48 }
  0x6b   :  { %1476 = vmatpush3.bf16.msra.mxu0 %v1595_v53 }
  0x6c   :  { %1477 = vmatprep.subr.bf16.mxu0 %v1600_v48 }
  0x6f   :  { %1478 = vmatpush3.bf16.msra.mxu0 %v1596_v54 }
  0x72   :  { %1480 = vmatmul.mubr.msk.bf16.vlgmr.msra.gmra.mrb[12].mxu0 %vm880_vm1, %v1597_v55 }
  0xf5   :  { %v1350_v56 = vpop.f32.mrb[0].mxu0 }
  0xf6   :  { %v1351_v58 = vpop.f32.mrb[1].mxu0 }
  0xf7   :  { %v1352_v59 = vadd.f32 %v1351_v58, %v1350_v56  ;;  %v1353_v60 = vpop.f32.mrb[2].mxu0  ;;  %v1372_v61 = vpop.f32.mrb[0].mxu1  ;;  %v1191_v58 = vld [vmem:[%s1978_s3] sm:$0x1] }
  0xf8   :  { %v1354_v62 = vpop.f32.mrb[3].mxu0  ;;  %v1373_v63 = vpop.f32.mrb[1].mxu1 }
  0xf9   :  { %v919_v0 = vadd.f32 %v1352_v59, %v1218_v57  ;;  %v1374_v1 = vadd.f32 %v1373_v63, %v1372_v61  ;;  %v1375_v2 = vpop.f32.mrb[2].mxu1  ;;  %v1201_v59 = vsub.s32 0, %v1165_v30  ;;  %v1195_v62 = vld [vmem:[%s1979_s4] sm:$0x1] }
  0xfa   :  { %v1376_v3 = vpop.f32.mrb[3].mxu1 }
  0xfb   :  { %v959_v4 = vadd.f32 %v1374_v1, %v919_v0 }
 0x115   :  { %v1394_v5 = vpop.f32.mrb[4].mxu0 }
 0x116   :  { %v1395_v6 = vpop.f32.mrb[5].mxu0 }
 0x117   :  { %v1396_v7 = vadd.f32 %v1395_v6, %v1394_v5  ;;  %v1397_v8 = vpop.f32.mrb[6].mxu0  ;;  %v1416_v9 = vpop.f32.mrb[4].mxu1 }
 0x118   :  { %v1398_v10 = vpop.f32.mrb[7].mxu0  ;;  %v1417_v12 = vpop.f32.mrb[5].mxu1 }
 0x119   :  { %v999_v11 = vadd.f32 %v1396_v7, %v959_v4  ;;  %v1418_v13 = vadd.f32 %v1417_v12, %v1416_v9  ;;  %v1419_v14 = vpop.f32.mrb[6].mxu1 }
 0x11a   :  { %v1420_v15 = vpop.f32.mrb[7].mxu1 }
 0x11b   :  { %v1039_v16 = vadd.f32 %v1418_v13, %v999_v11 }
 0x135   :  { %v1438_v17 = vpop.f32.mrb[8].mxu0 }
 0x136   :  { %v1439_v18 = vpop.f32.mrb[9].mxu0 }
 0x137   :  { %v1440_v19 = vadd.f32 %v1439_v18, %v1438_v17  ;;  %v1441_v20 = vpop.f32.mrb[10].mxu0  ;;  %v1460_v21 = vpop.f32.mrb[8].mxu1 }
 0x138   :  { %v1442_v22 = vpop.f32.mrb[11].mxu0  ;;  %v1461_v23 = vpop.f32.mrb[9].mxu1 }
 0x139   :  { %v1079_v24 = vadd.f32 %v1440_v19, %v1039_v16  ;;  %v1462_v25 = vadd.f32 %v1461_v23, %v1460_v21  ;;  %v1463_v26 = vpop.f32.mrb[10].mxu1 }
 0x13a   :  { %v1464_v27 = vpop.f32.mrb[11].mxu1 }
 0x13b   :  { %v1119_v29 = vadd.f32 %v1462_v25, %v1079_v24 }
 0x145   :  { %v1158_v31 = vpop.f32.mrb[12].mxu0 }
 0x146   :  { %v1159_v33 = vadd.f32 %v1158_v31, %v1119_v29  ;;  %v1481_v34 = vpop.f32.mrb[13].mxu0 }
 0x147   :  { %v1161_v35 = vpop.f32.mrb[14].mxu0 }
 0x148   :  { %v1171_v36 = vmul.f32 %v1333_v32, %v1159_v33  ;;  %v1482_v37 = vpop.f32.mrb[15].mxu0 }
 0x14a   :  { %v1172_v38 = vsel %vm880_vm1, %v1171_v36, 0.0 }
 0x14b   :  { %v1173_v39 = vrot.slane %v1172_v38, 4 }
 0x14d   :  { %v1174_v40 = vadd.f32 %v1173_v39, %v1172_v38 }
 0x14f   :  { %v1175_v41 = vrot.slane %v1174_v40, 2 }
 0x151   :  { %v1176_v42 = vadd.f32 %v1175_v41, %v1174_v40 }
 0x153   :  { %v1177_v43 = vrot.slane %v1176_v42, 1 }
 0x155   :  { %v1178_v44 = vadd.f32 %v1177_v43, %v1176_v42 }
 0x157   :  { %v1179_v45 = vmul.f32 0.5, %v1178_v44 }
 0x159   :  { %v1180_v46 = vsub.f32 %v1159_v33, %v1179_v45 }
 0x15b   :  { %v1181_v47 = vmul.f32 %v1333_v32, %v1180_v46 }
 0x15d   :  { %v1182_v49 = vmul.f32 %v1181_v47, %v1181_v47 }
 0x15f   :  { %v1183_v50 = vsel %vm880_vm1, %v1182_v49, 0.0 }
 0x160   :  { %v1184_v48 = vrot.slane %v1183_v50, 4 }
 0x162   :  { %v1185_v51 = vadd.f32 %v1184_v48, %v1183_v50 }
 0x164   :  { %v1186_v52 = vrot.slane %v1185_v51, 2 }
 0x166   :  { %v1187_v53 = vadd.f32 %v1186_v52, %v1185_v51 }
 0x168   :  { %v1188_v54 = vrot.slane %v1187_v53, 1 }
 0x16a   :  { %v1189_v55 = vadd.f32 %v1188_v54, %v1187_v53 }
 0x16c   :  { %v1190_v56 = vmul.f32 0.5, %v1189_v55 }
 0x16e   :  { %v1192_v57 = vadd.f32 1e-05, %v1190_v56 }
 0x170   :  { %1598 = vrsqrt.f32 %v1192_v57 }
 0x17a   :  { %v1599_v60 = vpop.eup %1598 }
 0x17b   :  { %v1194_v61 = vmul.f32 %v1599_v60, %v1191_v58 }
 0x17d   :  { %v1196_v63 = vmul.f32 %v1194_v61, %v1179_v45  ;;  %v1202_v0 = vrot.slane %v1194_v61, %v1201_v59 }
 0x17f   :  { %v1197_v1 = vsub.f32 %v1195_v62, %v1196_v63  ;;  %v1204_v2 = vmul.f32 %v1202_v0, %v1159_v33 }
 0x181   :  { %v1209_v3 = vrot.slane %v1197_v1, %v1201_v59 }
 0x183   :  { %v1211_v4 = vadd.f32 %v1209_v3, %v1204_v2 }
 0x185   :  { %v1212_v5 = vmax.f32 %v1211_v4, 0.0 }
 0x187   :  { %1213 = vst.msk [vmem:[%s1980_s5] sm:$0xff] %vm880_vm1, %v1212_v5 }

</bundles_post_ra>
